<compile_context>
chip_gen: v6e
topology: v6e:2x2x1
jax: 0.10.0
libtpu: 0.0.40
codegen_flags: <defaults>
</compile_context>

<pallas_src>
import functools
import math

import jax
import jax.numpy as jnp
from jax.experimental import pallas as pl
from jax.experimental.pallas import tpu as pltpu


# -------------------- configuration (small shapes, ratios mirror the module) ------------
# original: enc_hidden=384, dec_hidden=768 (adaptive_layer: 384 -> 768); here 32 -> 128 so
# the decoder stream / encoder output store is 128-lane dense.
CFG = dict(
    img_c=3, img_hw=16, patch=8,                  # 2x2 = 4 patches per image
    enc_hidden=32, enc_heads=2, enc_layers=2, enc_mlp=64, enc_eps=1e-12,
    dec_hidden=128, dec_heads=2, dec_layers=2, dec_ffn=256, dec_eps=1e-5,
    vocab=64, max_tgt=8, pad_id=1, label_smoothing=0.1,
)

_NEG = -1e9  # mask value (f32, applied with jnp.where, never summed twice)

_ENC_KEYS = ("ln1_g", "ln1_b", "wqkv", "bqkv", "wo", "bo",
             "ln2_g", "ln2_b", "fc1_w", "fc1_b", "fc2_w", "fc2_b")
_DEC_KEYS = ("sa_ln_g", "sa_ln_b", "sa_wqkv", "sa_bqkv", "sa_wo", "sa_bo",
             "ca_ln_g", "ca_ln_b", "ca_wq", "ca_bq", "ca_wkv", "ca_bkv", "ca_wo", "ca_bo",
             "ff_ln_g", "ff_ln_b", "fc1_w", "fc1_b", "fc2_w", "fc2_b")


def _vmem():
    return pl.BlockSpec(memory_space=pltpu.MemorySpace.VMEM)


def _const_index_map(ndim):
    def im(b):
        return (0,) * ndim
    return im


# ------------------------------ in-kernel helpers (values, not refs) --------------------
def _mm(x, w):
    """MXU matmul: bf16 operands (weights already bf16 at rest -> cast is a no-op), f32 acc."""
    return jnp.dot(x.astype(jnp.bfloat16), w.astype(jnp.bfloat16),
                   preferred_element_type=jnp.float32)


def _ln(x, g, b, eps):
    x = x.astype(jnp.float32)
    mu = jnp.mean(x, axis=-1, keepdims=True)
    var = jnp.mean(jnp.square(x - mu), axis=-1, keepdims=True)
    return (x - mu) * jax.lax.rsqrt(var + eps) * g + b


def _softmax(s):
    m = jnp.max(s, axis=-1, keepdims=True)
    p = jnp.exp(s - m)
    return p * pl.reciprocal(jnp.sum(p, axis=-1, keepdims=True), approx=True)


def _qkt(qh, kh, scale):
    # (Lq, dh) x (Lk, dh) -> (Lq, Lk), contracting the head dim (no explicit transpose).
    s = jax.lax.dot_general(qh.astype(jnp.bfloat16), kh.astype(jnp.bfloat16),
                            (((1,), (1,)), ((), ())),
                            preferred_element_type=jnp.float32)
    return s * scale


def _gelu(x):
    # TODO(synk): HF ViT/MBart use exact erf-GELU; tanh approximation used in-kernel.
    return jax.nn.gelu(x, approximate=True)


def _mha_into(ctx_ref, rows, q, k, v, num_heads, bias):
    """softmax(q k^T * scale + bias) v per head; each head's context is stored into
    ctx_ref[rows, h*dh:(h+1)*dh] so the caller does ONE head-merged out-projection."""
    d = q.shape[1]
    dh = d // num_heads
    scale = 1.0 / math.sqrt(dh)
    for h in range(num_heads):                                   # static, tiny head count
        sl = slice(h * dh, (h + 1) * dh)
        s = _qkt(q[:, sl], k[:, sl], scale)
        if bias is not None:
            s = s + bias
        ctx_ref[rows, sl] = _mm(_softmax(s), v[:, sl])


# ------------------------------ Pallas kernels ------------------------------------------
def _encoder_kernel(*refs, n_layers, num_heads, eps):
    # refs = (inputs..., o_ref, ctx_scratch).  One grid step == one image (batch grid).
    o_ref, ctx_ref = refs[-2], refs[-1]
    it = iter(refs[:-2])
    patches = next(it)                                  # (1, P, C*ps*ps) bf16
    patch_w, patch_b = next(it), next(it)
    cls_tok, dist_tok, pos = next(it), next(it), next(it)
    layers = [[next(it) for _ in range(len(_ENC_KEYS))] for _ in range(n_layers)]
    ln_g, ln_b, adapt_w, adapt_b = next(it), next(it), next(it), next(it)

    # patch embedding (Conv2d k=s=patch == linear over flattened patches) + [CLS|DIST] + pos
    pe = _mm(patches[0], patch_w[...]) + patch_b[...]                         # (P, De)
    x = jnp.concatenate([cls_tok[...], dist_tok[...], pe], axis=0) + pos[...]  # (S, De)

    for (ln1_g, ln1_b, wqkv, bqkv, wo, bo,
         ln2_g, ln2_b, fc1_w, fc1_b, fc2_w, fc2_b) in layers:
        d = x.shape[1]
        h = _ln(x, ln1_g[...], ln1_b[...], eps)
        qkv = _mm(h, wqkv[...]) + bqkv[...]                                   # fused Q|K|V
        _mha_into(ctx_ref, slice(None), qkv[:, :d], qkv[:, d:2 * d], qkv[:, 2 * d:],
                  num_heads, None)
        x = x + _mm(ctx_ref[...], wo[...]) + bo[...]                          # one out-proj
        h = _ln(x, ln2_g[...], ln2_b[...], eps)
        h = _gelu(_mm(h, fc1_w[...]) + fc1_b[...])
        x = x + _mm(h, fc2_w[...]) + fc2_b[...]

    # fused: final encoder LayerNorm + adaptive_layer (enc_hidden -> dec_hidden)
    h = _ln(x, ln_g[...], ln_b[...], eps)
    o_ref[0] = (_mm(h, adapt_w[...]) + adapt_b[...]).astype(o_ref.dtype)


def _decoder_kernel(*refs, n_layers, num_heads, eps, bsz, length, s_enc,
                    smooth, ignore_index, vocab):
    # refs = (inputs..., o_ref, ctx_scratch).  Grid-less; batch flattened to N = B*L rows.
    o_ref, ctx_ref = refs[-2], refs[-1]
    it = iter(refs[:-2])
    enc_ref = next(it)                    # (B*S_enc, Dd) bf16
    ids_ref = next(it)                    # (N, 1) int32 decoder input ids
    tgt_ref = next(it)                    # (N, 1) int32 shifted targets
    mask_ref = next(it)                   # (B, L) int32 key pad mask
    pos_ref = next(it)                    # (N, Dd) f32 positions (pre-tiled over batch)
    tok_ref = next(it)                    # (V, Dd) bf16 shared embedding == tied lm_head
    emb_ln_g, emb_ln_b = next(it), next(it)
    layers = [[next(it) for _ in range(len(_DEC_KEYS))] for _ in range(n_layers)]
    ln_g, ln_b = next(it), next(it)

    n = bsz * length
    d = pos_ref.shape[1]
    tok_emb = tok_ref[...]
    cls_iota = jax.lax.broadcasted_iota(jnp.int32, (n, vocab), 1)

    # gather-free token embedding: one-hot(ids) @ tok_emb (MXU), * sqrt(d), + pos, embed LN
    onehot_in = (cls_iota == ids_ref[...]).astype(jnp.bfloat16)
    x = jnp.dot(onehot_in, tok_emb, preferred_element_type=jnp.float32)
    x = x * math.sqrt(d) + pos_ref[...]
    x = _ln(x, emb_ln_g[...], emb_ln_b[...], eps)                             # (N, Dd)

    enc = enc_ref[...]                                                        # (B*S_enc, Dd)
    qi = jax.lax.broadcasted_iota(jnp.int32, (length, length), 0)
    ki = jax.lax.broadcasted_iota(jnp.int32, (length, length), 1)
    causal_ok = qi >= ki                                                      # (L, L)
    key_ok = mask_ref[...] > 0                                                # (B, L)

    for (sa_ln_g, sa_ln_b, sa_wqkv, sa_bqkv, sa_wo, sa_bo,
         ca_ln_g, ca_ln_b, ca_wq, ca_bq, ca_wkv, ca_bkv, ca_wo, ca_bo,
         ff_ln_g, ff_ln_b, fc1_w, fc1_b, fc2_w, fc2_b) in layers:
        # --- masked self-attention: one flattened QKV matmul, per-batch softmax only
        h = _ln(x, sa_ln_g[...], sa_ln_b[...], eps)
        qkv = _mm(h, sa_wqkv[...]) + sa_bqkv[...]                             # (N, 3Dd)
        for b in range(bsz):                                                  # static, tiny
            r = slice(b * length, (b + 1) * length)
            bias = jnp.where(causal_ok & key_ok[b:b + 1, :], 0.0, _NEG)
            _mha_into(ctx_ref, r, qkv[r, :d], qkv[r, d:2 * d], qkv[r, 2 * d:],
                      num_heads, bias)
        x = x + _mm(ctx_ref[...], sa_wo[...]) + sa_bo[...]                    # one out-proj

        # --- cross-attention over encoder states (no encoder mask, mirrors the module)
        h = _ln(x, ca_ln_g[...], ca_ln_b[...], eps)
        q = _mm(h, ca_wq[...]) + ca_bq[...]                                   # (N, Dd)
        kv = _mm(enc, ca_wkv[...]) + ca_bkv[...]                              # (B*S, 2Dd) K|V
        for b in range(bsz):
            qr = slice(b * length, (b + 1) * length)
            kr = slice(b * s_enc, (b + 1) * s_enc)
            _mha_into(ctx_ref, qr, q[qr], kv[kr, :d], kv[kr, d:], num_heads, None)
        x = x + _mm(ctx_ref[...], ca_wo[...]) + ca_bo[...]

        # --- feed-forward
        h = _ln(x, ff_ln_g[...], ff_ln_b[...], eps)
        h = _gelu(_mm(h, fc1_w[...]) + fc1_b[...])
        x = x + _mm(h, fc2_w[...]) + fc2_b[...]

    # --- final decoder LN -> tied lm_head (h @ tok_emb^T) -> label-smoothed CE, all in VMEM
    h = _ln(x, ln_g[...], ln_b[...], eps)
    logits = jax.lax.dot_general(h.astype(jnp.bfloat16), tok_emb,
                                 (((1,), (1,)), ((), ())),
                                 preferred_element_type=jnp.float32)          # (N, V)
    m = jnp.max(logits, axis=-1, keepdims=True)
    lse = jnp.log(jnp.sum(jnp.exp(logits - m), axis=-1, keepdims=True)) + m
    tgt = tgt_ref[...]
    logit_tgt = jnp.sum(jnp.where(cls_iota == tgt, logits, 0.0), axis=-1, keepdims=True)
    nll_tgt = lse - logit_tgt                                                 # -log p[target]
    # smoothing term: sum_j -log p_j = V*lse - rowsum(logits)  (no 2nd full reduction pass)
    nll_all = vocab * lse - jnp.sum(logits, axis=-1, keepdims=True)
    per_tok = (1.0 - smooth) * nll_tgt + (smooth / vocab) * nll_all
    valid = (tgt != ignore_index).astype(jnp.float32)
    total = jnp.sum(per_tok * valid, axis=0, keepdims=True)                   # (1, 1)
    count = jnp.sum(valid, axis=0, keepdims=True)                             # (1, 1)
    o_ref[...] = total / jnp.maximum(count, 1.0)


# ------------------------------ wrappers (two pallas_calls total) ------------------------
def encode(params, pixel_values):
    c, hw, ps = CFG["img_c"], CFG["img_hw"], CFG["patch"]
    de, heads, eps = CFG["enc_hidden"], CFG["enc_heads"], CFG["enc_eps"]
    dd = CFG["dec_hidden"]
    bsz = pixel_values.shape[0]
    nh = nw = hw // ps
    npat = nh * nw
    s_enc = npat + 2

    # Conv2d(kernel=stride=patch) on NCHW == linear over flattened patches (layout-only glue).
    patches = pixel_values.reshape(bsz, c, nh, ps, nw, ps)
    patches = patches.transpose(0, 2, 4, 1, 3, 5).reshape(bsz, npat, c * ps * ps)
    patches = patches.astype(jnp.bfloat16)

    weights = [params["patch_w"], params["patch_b"], params["cls_token"],
               params["dist_token"], params["pos_emb"]]
    for lp in params["enc_layers"]:
        weights += [lp[k] for k in _ENC_KEYS]
    weights += [params["enc_ln_g"], params["enc_ln_b"], params["adapt_w"], params["adapt_b"]]

    enc = pl.pallas_call(
        functools.partial(_encoder_kernel, n_layers=CFG["enc_layers"],
                          num_heads=heads, eps=eps),
        out_shape=jax.ShapeDtypeStruct((bsz, s_enc, dd), jnp.bfloat16),
        grid=(bsz,),                                   # batch grid: megacore-parallel on v7x
        in_specs=[pl.BlockSpec((1, npat, c * ps * ps), lambda b: (b, 0, 0))]
                 + [pl.BlockSpec(a.shape, _const_index_map(a.ndim)) for a in weights],
        out_specs=pl.BlockSpec((1, s_enc, dd), lambda b: (b, 0, 0)),
        scratch_shapes=[pltpu.VMEM((s_enc, de), jnp.float32)],   # head-merged attention ctx
        compiler_params=pltpu.CompilerParams(dimension_semantics=("parallel",)),
    )(patches, *weights)
    return enc.reshape(bsz * s_enc, dd)                # (B*S_enc, Dd) bf16, lane-dense store


def decode_loss(params, enc_flat, tgt_inputs, att_mask):
    mt = CFG["max_tgt"]
    dd, heads, eps = CFG["dec_hidden"], CFG["dec_heads"], CFG["dec_eps"]
    v = CFG["vocab"]
    bsz = tgt_inputs.shape[0]
    length = mt - 1
    s_enc = enc_flat.shape[0] // bsz
    n = bsz * length

    dec_in = tgt_inputs[:, :length].reshape(n, 1).astype(jnp.int32)
    targets = tgt_inputs[:, 1:mt].reshape(n, 1).astype(jnp.int32)
    dec_mask = att_mask[:, :length].astype(jnp.int32)
    # MBart learned positions (offset 2), pre-tiled across batch (layout-only glue).
    pos = jnp.tile(params["dec_pos_emb"][2:2 + length], (bsz, 1))

    args = [enc_flat, dec_in, targets, dec_mask, pos, params["tok_emb"],
            params["emb_ln_g"], params["emb_ln_b"]]
    for lp in params["dec_layers"]:
        args += [lp[k] for k in _DEC_KEYS]
    args += [params["dec_ln_g"], params["dec_ln_b"]]

    out = pl.pallas_call(
        functools.partial(_decoder_kernel, n_layers=CFG["dec_layers"], num_heads=heads,
                          eps=eps, bsz=bsz, length=length, s_enc=s_enc,
                          smooth=CFG["label_smoothing"], ignore_index=CFG["pad_id"],
                          vocab=v),
        out_shape=jax.ShapeDtypeStruct((1, 1), jnp.float32),
        in_specs=[_vmem()] * len(args),
        out_specs=_vmem(),
        scratch_shapes=[pltpu.VMEM((n, dd), jnp.float32)],       # head-merged attention ctx
    )(*args)
    return out[0, 0]


def vntrocr_forward(params, pixel_values, tgt_inputs, att_mask):
    # Static decoder length (= max_tgt): pad positions are masked as attention keys and
    # ignored by the CE (ignore_index), matching the loss of the original dynamic
    # `att_mask.sum(-1).max().item()` slicing without a host sync.
    # TODO(synk): the dynamic max_input_len truncation itself is not reproduced.
    enc = encode(params, pixel_values)                 # (B*S_enc, dec_hidden) bf16
    return decode_loss(params, enc, tgt_inputs, att_mask)


# ------------------------------ deterministic synthetic parameters -----------------------
def init_params():
    keys = iter(jax.random.split(jax.random.PRNGKey(0), 512))
    c, hw, ps = CFG["img_c"], CFG["img_hw"], CFG["patch"]
    de, dm = CFG["enc_hidden"], CFG["enc_mlp"]
    dd, df = CFG["dec_hidden"], CFG["dec_ffn"]
    v, mt = CFG["vocab"], CFG["max_tgt"]
    n_patches = (hw // ps) ** 2

    def w(shape, scale=0.02):          # weight matrices: bf16 at rest (halves weight DMA)
        return (scale * jax.random.normal(next(keys), shape, jnp.float32)).astype(jnp.bfloat16)

    def fvec(d, scale=0.02):           # f32 learned row vectors (cls/dist tokens)
        return scale * jax.random.normal(next(keys), (1, d), jnp.float32)

    def zvec(d):                       # biases / LN betas, pre-shaped (1, D), f32
        return jnp.zeros((1, d), jnp.float32)

    def ovec(d):                       # LN gammas, pre-shaped (1, D), f32
        return jnp.ones((1, d), jnp.float32)

    def enc_layer(d, m):
        return dict(ln1_g=ovec(d), ln1_b=zvec(d),
                    wqkv=w((d, 3 * d)), bqkv=zvec(3 * d),        # fused Q|K|V
                    wo=w((d, d)), bo=zvec(d),
                    ln2_g=ovec(d), ln2_b=zvec(d),
                    fc1_w=w((d, m)), fc1_b=zvec(m),
                    fc2_w=w((m, d)), fc2_b=zvec(d))

    def dec_layer(d, f):
        return dict(sa_ln_g=ovec(d), sa_ln_b=zvec(d),
                    sa_wqkv=w((d, 3 * d)), sa_bqkv=zvec(3 * d),  # fused Q|K|V
                    sa_wo=w((d, d)), sa_bo=zvec(d),
                    ca_ln_g=ovec(d), ca_ln_b=zvec(d),
                    ca_wq=w((d, d)), ca_bq=zvec(d),
                    ca_wkv=w((d, 2 * d)), ca_bkv=zvec(2 * d),    # fused K|V
                    ca_wo=w((d, d)), ca_bo=zvec(d),
                    ff_ln_g=ovec(d), ff_ln_b=zvec(d),
                    fc1_w=w((d, f)), fc1_b=zvec(f),
                    fc2_w=w((f, d)), fc2_b=zvec(d))

    return dict(
        patch_w=w((c * ps * ps, de)), patch_b=zvec(de),
        cls_token=fvec(de), dist_token=fvec(de),                 # DeiT: cls + dist tokens
        pos_emb=0.02 * jax.random.normal(next(keys), (n_patches + 2, de), jnp.float32),
        enc_layers=[enc_layer(de, dm) for _ in range(CFG["enc_layers"])],
        enc_ln_g=ovec(de), enc_ln_b=zvec(de),
        adapt_w=w((de, dd)), adapt_b=zvec(dd),
        tok_emb=w((v, dd)),                                      # shared emb == tied lm_head
        dec_pos_emb=0.02 * jax.random.normal(next(keys), (mt + 2, dd), jnp.float32),
        emb_ln_g=ovec(dd), emb_ln_b=zvec(dd),
        dec_layers=[dec_layer(dd, df) for _ in range(CFG["dec_layers"])],
        dec_ln_g=ovec(dd), dec_ln_b=zvec(dd),
    )


if __name__ == "__main__":
    params = init_params()
    k_img, k_tok = jax.random.split(jax.random.PRNGKey(0))
    bsz, mt = 2, CFG["max_tgt"]
    pixel_values = jax.random.normal(
        k_img, (bsz, CFG["img_c"], CFG["img_hw"], CFG["img_hw"]), jnp.float32)
    lengths = jnp.array([mt, mt - 2], jnp.int32)
    att_mask = (jnp.arange(mt)[None, :] < lengths[:, None]).astype(jnp.int32)
    tgt_inputs = jax.random.randint(k_tok, (bsz, mt), 2, CFG["vocab"], jnp.int32)
    tgt_inputs = jnp.where(att_mask > 0, tgt_inputs, CFG["pad_id"])

    forward = jax.jit(vntrocr_forward)       # static shapes -> compiles once, no host sync
    loss = jax.block_until_ready(forward(params, pixel_values, tgt_inputs, att_mask))
    assert bool(jnp.isfinite(loss)), "loss is not finite"
    print("KERNEL_OK")
</pallas_src>

<mosaic_0001>
module attributes {stable_mosaic.version = 11 : i64} {
  func.func @_encoder_kernel(%arg0: i32, %arg1: memref<1x4x192xbf16, #tpu.memory_space<vmem>>, %arg2: memref<192x32xbf16, #tpu.memory_space<vmem>>, %arg3: memref<1x32xf32, #tpu.memory_space<vmem>>, %arg4: memref<1x32xf32, #tpu.memory_space<vmem>>, %arg5: memref<1x32xf32, #tpu.memory_space<vmem>>, %arg6: memref<6x32xf32, #tpu.memory_space<vmem>>, %arg7: memref<1x32xf32, #tpu.memory_space<vmem>>, %arg8: memref<1x32xf32, #tpu.memory_space<vmem>>, %arg9: memref<32x96xbf16, #tpu.memory_space<vmem>>, %arg10: memref<1x96xf32, #tpu.memory_space<vmem>>, %arg11: memref<32x32xbf16, #tpu.memory_space<vmem>>, %arg12: memref<1x32xf32, #tpu.memory_space<vmem>>, %arg13: memref<1x32xf32, #tpu.memory_space<vmem>>, %arg14: memref<1x32xf32, #tpu.memory_space<vmem>>, %arg15: memref<32x64xbf16, #tpu.memory_space<vmem>>, %arg16: memref<1x64xf32, #tpu.memory_space<vmem>>, %arg17: memref<64x32xbf16, #tpu.memory_space<vmem>>, %arg18: memref<1x32xf32, #tpu.memory_space<vmem>>, %arg19: memref<1x32xf32, #tpu.memory_space<vmem>>, %arg20: memref<1x32xf32, #tpu.memory_space<vmem>>, %arg21: memref<32x96xbf16, #tpu.memory_space<vmem>>, %arg22: memref<1x96xf32, #tpu.memory_space<vmem>>, %arg23: memref<32x32xbf16, #tpu.memory_space<vmem>>, %arg24: memref<1x32xf32, #tpu.memory_space<vmem>>, %arg25: memref<1x32xf32, #tpu.memory_space<vmem>>, %arg26: memref<1x32xf32, #tpu.memory_space<vmem>>, %arg27: memref<32x64xbf16, #tpu.memory_space<vmem>>, %arg28: memref<1x64xf32, #tpu.memory_space<vmem>>, %arg29: memref<64x32xbf16, #tpu.memory_space<vmem>>, %arg30: memref<1x32xf32, #tpu.memory_space<vmem>>, %arg31: memref<1x32xf32, #tpu.memory_space<vmem>>, %arg32: memref<1x32xf32, #tpu.memory_space<vmem>>, %arg33: memref<32x128xbf16, #tpu.memory_space<vmem>>, %arg34: memref<1x128xf32, #tpu.memory_space<vmem>>, %arg35: memref<1x6x128xbf16, #tpu.memory_space<vmem>>, %arg36: memref<6x32xf32, #tpu.memory_space<vmem>>) attributes {dimension_semantics = [#tpu.dimension_semantics<parallel>], iteration_bounds = array<i64: 2>, scalar_prefetch = 0 : i64, scratch_operands = 1 : i64, tpu.core_type = #tpu.core_type<tc>, window_params = [{transform_indices = @transform_0, window_bounds = array<i64: 1, 4, 192>}, {pipeline_mode = #tpu.pipeline_mode<synchronous>, transform_indices = @transform_1, window_bounds = array<i64: 192, 32>}, {pipeline_mode = #tpu.pipeline_mode<synchronous>, transform_indices = @transform_2, window_bounds = array<i64: 1, 32>}, {pipeline_mode = #tpu.pipeline_mode<synchronous>, transform_indices = @transform_3, window_bounds = array<i64: 1, 32>}, {pipeline_mode = #tpu.pipeline_mode<synchronous>, transform_indices = @transform_4, window_bounds = array<i64: 1, 32>}, {pipeline_mode = #tpu.pipeline_mode<synchronous>, transform_indices = @transform_5, window_bounds = array<i64: 6, 32>}, {pipeline_mode = #tpu.pipeline_mode<synchronous>, transform_indices = @transform_6, window_bounds = array<i64: 1, 32>}, {pipeline_mode = #tpu.pipeline_mode<synchronous>, transform_indices = @transform_7, window_bounds = array<i64: 1, 32>}, {pipeline_mode = #tpu.pipeline_mode<synchronous>, transform_indices = @transform_8, window_bounds = array<i64: 32, 96>}, {pipeline_mode = #tpu.pipeline_mode<synchronous>, transform_indices = @transform_9, window_bounds = array<i64: 1, 96>}, {pipeline_mode = #tpu.pipeline_mode<synchronous>, transform_indices = @transform_10, window_bounds = array<i64: 32, 32>}, {pipeline_mode = #tpu.pipeline_mode<synchronous>, transform_indices = @transform_11, window_bounds = array<i64: 1, 32>}, {pipeline_mode = #tpu.pipeline_mode<synchronous>, transform_indices = @transform_12, window_bounds = array<i64: 1, 32>}, {pipeline_mode = #tpu.pipeline_mode<synchronous>, transform_indices = @transform_13, window_bounds = array<i64: 1, 32>}, {pipeline_mode = #tpu.pipeline_mode<synchronous>, transform_indices = @transform_14, window_bounds = array<i64: 32, 64>}, {pipeline_mode = #tpu.pipeline_mode<synchronous>, transform_indices = @transform_15, window_bounds = array<i64: 1, 64>}, {pipeline_mode = #tpu.pipeline_mode<synchronous>, transform_indices = @transform_16, window_bounds = array<i64: 64, 32>}, {pipeline_mode = #tpu.pipeline_mode<synchronous>, transform_indices = @transform_17, window_bounds = array<i64: 1, 32>}, {pipeline_mode = #tpu.pipeline_mode<synchronous>, transform_indices = @transform_18, window_bounds = array<i64: 1, 32>}, {pipeline_mode = #tpu.pipeline_mode<synchronous>, transform_indices = @transform_19, window_bounds = array<i64: 1, 32>}, {pipeline_mode = #tpu.pipeline_mode<synchronous>, transform_indices = @transform_20, window_bounds = array<i64: 32, 96>}, {pipeline_mode = #tpu.pipeline_mode<synchronous>, transform_indices = @transform_21, window_bounds = array<i64: 1, 96>}, {pipeline_mode = #tpu.pipeline_mode<synchronous>, transform_indices = @transform_22, window_bounds = array<i64: 32, 32>}, {pipeline_mode = #tpu.pipeline_mode<synchronous>, transform_indices = @transform_23, window_bounds = array<i64: 1, 32>}, {pipeline_mode = #tpu.pipeline_mode<synchronous>, transform_indices = @transform_24, window_bounds = array<i64: 1, 32>}, {pipeline_mode = #tpu.pipeline_mode<synchronous>, transform_indices = @transform_25, window_bounds = array<i64: 1, 32>}, {pipeline_mode = #tpu.pipeline_mode<synchronous>, transform_indices = @transform_26, window_bounds = array<i64: 32, 64>}, {pipeline_mode = #tpu.pipeline_mode<synchronous>, transform_indices = @transform_27, window_bounds = array<i64: 1, 64>}, {pipeline_mode = #tpu.pipeline_mode<synchronous>, transform_indices = @transform_28, window_bounds = array<i64: 64, 32>}, {pipeline_mode = #tpu.pipeline_mode<synchronous>, transform_indices = @transform_29, window_bounds = array<i64: 1, 32>}, {pipeline_mode = #tpu.pipeline_mode<synchronous>, transform_indices = @transform_30, window_bounds = array<i64: 1, 32>}, {pipeline_mode = #tpu.pipeline_mode<synchronous>, transform_indices = @transform_31, window_bounds = array<i64: 1, 32>}, {pipeline_mode = #tpu.pipeline_mode<synchronous>, transform_indices = @transform_32, window_bounds = array<i64: 32, 128>}, {pipeline_mode = #tpu.pipeline_mode<synchronous>, transform_indices = @transform_33, window_bounds = array<i64: 1, 128>}, {transform_indices = @transform_34, window_bounds = array<i64: 1, 6, 128>}]} {
    %c0 = arith.constant 0 : index
    %c0_0 = arith.constant 0 : index
    %c0_1 = arith.constant 0 : index
    %0 = vector.load %arg1[%c0, %c0_0, %c0_1] : memref<1x4x192xbf16, #tpu.memory_space<vmem>>, vector<1x4x192xbf16>
    %1 = vector.shape_cast %0 : vector<1x4x192xbf16> to vector<4x192xbf16>
    %c0_2 = arith.constant 0 : index
    %c0_3 = arith.constant 0 : index
    %2 = vector.load %arg2[%c0_2, %c0_3] : memref<192x32xbf16, #tpu.memory_space<vmem>>, vector<192x32xbf16>
    %cst = arith.constant dense<0.000000e+00> : vector<4x32xf32>
    %3 = tpu.matmul %1, %2, %cst {dimension_numbers = #tpu.dot_dimension_numbers<[1], [0], [0], [1], [0, 0, 1, 1], [], []>} : vector<4x192xbf16>, vector<192x32xbf16>, vector<4x32xf32> -> vector<4x32xf32>
    %c0_4 = arith.constant 0 : index
    %c0_5 = arith.constant 0 : index
    %4 = vector.load %arg3[%c0_4, %c0_5] : memref<1x32xf32, #tpu.memory_space<vmem>>, vector<1x32xf32>
    %5 = vector.broadcast %4 : vector<1x32xf32> to vector<4x32xf32>
    %6 = arith.addf %3, %5 : vector<4x32xf32>
    %c0_6 = arith.constant 0 : index
    %c0_7 = arith.constant 0 : index
    %7 = vector.load %arg4[%c0_6, %c0_7] : memref<1x32xf32, #tpu.memory_space<vmem>>, vector<1x32xf32>
    %c0_8 = arith.constant 0 : index
    %c0_9 = arith.constant 0 : index
    %8 = vector.load %arg5[%c0_8, %c0_9] : memref<1x32xf32, #tpu.memory_space<vmem>>, vector<1x32xf32>
    %9 = tpu.concatenate %7, %8, %6 in 0 : vector<1x32xf32>, vector<1x32xf32>, vector<4x32xf32> -> vector<6x32xf32>
    %c0_10 = arith.constant 0 : index
    %c0_11 = arith.constant 0 : index
    %10 = vector.load %arg6[%c0_10, %c0_11] : memref<6x32xf32, #tpu.memory_space<vmem>>, vector<6x32xf32>
    %11 = arith.addf %9, %10 : vector<6x32xf32>
    %c0_12 = arith.constant 0 : index
    %c0_13 = arith.constant 0 : index
    %12 = vector.load %arg7[%c0_12, %c0_13] : memref<1x32xf32, #tpu.memory_space<vmem>>, vector<1x32xf32>
    %c0_14 = arith.constant 0 : index
    %c0_15 = arith.constant 0 : index
    %13 = vector.load %arg8[%c0_14, %c0_15] : memref<1x32xf32, #tpu.memory_space<vmem>>, vector<1x32xf32>
    %cst_16 = arith.constant dense<0.000000e+00> : vector<6xf32>
    %14 = vector.multi_reduction <add>, %11, %cst_16 [1] : vector<6x32xf32> to vector<6xf32>
    %15 = vector.shape_cast %14 : vector<6xf32> to vector<6x1xf32>
    %cst_17 = arith.constant 3.200000e+01 : f32
    %16 = vector.broadcast %cst_17 : f32 to vector<6x1xf32>
    %17 = arith.divf %15, %16 : vector<6x1xf32>
    %18 = vector.broadcast %17 : vector<6x1xf32> to vector<6x32xf32>
    %19 = arith.subf %11, %18 : vector<6x32xf32>
    %20 = arith.mulf %19, %19 : vector<6x32xf32>
    %cst_18 = arith.constant dense<0.000000e+00> : vector<6xf32>
    %21 = vector.multi_reduction <add>, %20, %cst_18 [1] : vector<6x32xf32> to vector<6xf32>
    %22 = vector.shape_cast %21 : vector<6xf32> to vector<6x1xf32>
    %cst_19 = arith.constant 3.200000e+01 : f32
    %23 = vector.broadcast %cst_19 : f32 to vector<6x1xf32>
    %24 = arith.divf %22, %23 : vector<6x1xf32>
    %25 = vector.broadcast %17 : vector<6x1xf32> to vector<6x32xf32>
    %26 = arith.subf %11, %25 : vector<6x32xf32>
    %cst_20 = arith.constant 9.99999996E-13 : f32
    %27 = vector.broadcast %cst_20 : f32 to vector<6x1xf32>
    %28 = arith.addf %24, %27 : vector<6x1xf32>
    %29 = math.rsqrt %28 : vector<6x1xf32>
    %30 = vector.broadcast %29 : vector<6x1xf32> to vector<6x32xf32>
    %31 = arith.mulf %26, %30 : vector<6x32xf32>
    %32 = vector.broadcast %12 : vector<1x32xf32> to vector<6x32xf32>
    %33 = arith.mulf %31, %32 : vector<6x32xf32>
    %34 = vector.broadcast %13 : vector<1x32xf32> to vector<6x32xf32>
    %35 = arith.addf %33, %34 : vector<6x32xf32>
    %c0_21 = arith.constant 0 : index
    %c0_22 = arith.constant 0 : index
    %36 = vector.load %arg9[%c0_21, %c0_22] : memref<32x96xbf16, #tpu.memory_space<vmem>>, vector<32x96xbf16>
    %37 = arith.truncf %35 : vector<6x32xf32> to vector<6x32xbf16>
    %cst_23 = arith.constant dense<0.000000e+00> : vector<6x96xf32>
    %38 = tpu.matmul %37, %36, %cst_23 {dimension_numbers = #tpu.dot_dimension_numbers<[1], [0], [0], [1], [0, 0, 1, 1], [], []>} : vector<6x32xbf16>, vector<32x96xbf16>, vector<6x96xf32> -> vector<6x96xf32>
    %c0_24 = arith.constant 0 : index
    %c0_25 = arith.constant 0 : index
    %39 = vector.load %arg10[%c0_24, %c0_25] : memref<1x96xf32, #tpu.memory_space<vmem>>, vector<1x96xf32>
    %40 = vector.broadcast %39 : vector<1x96xf32> to vector<6x96xf32>
    %41 = arith.addf %38, %40 : vector<6x96xf32>
    %42 = vector.extract_strided_slice %41 {offsets = [0, 0], sizes = [6, 32], strides = [1, 1]} : vector<6x96xf32> to vector<6x32xf32>
    %43 = vector.extract_strided_slice %41 {offsets = [0, 32], sizes = [6, 32], strides = [1, 1]} : vector<6x96xf32> to vector<6x32xf32>
    %44 = vector.extract_strided_slice %41 {offsets = [0, 64], sizes = [6, 32], strides = [1, 1]} : vector<6x96xf32> to vector<6x32xf32>
    %45 = vector.extract_strided_slice %42 {offsets = [0, 0], sizes = [6, 16], strides = [1, 1]} : vector<6x32xf32> to vector<6x16xf32>
    %46 = vector.extract_strided_slice %43 {offsets = [0, 0], sizes = [6, 16], strides = [1, 1]} : vector<6x32xf32> to vector<6x16xf32>
    %47 = arith.truncf %45 : vector<6x16xf32> to vector<6x16xbf16>
    %48 = arith.truncf %46 : vector<6x16xf32> to vector<6x16xbf16>
    %cst_26 = arith.constant dense<0.000000e+00> : vector<6x6xf32>
    %49 = tpu.matmul %47, %48, %cst_26 {dimension_numbers = #tpu.dot_dimension_numbers<[1], [1], [0], [0], [0, 0, 1, 0], [], []>} : vector<6x16xbf16>, vector<6x16xbf16>, vector<6x6xf32> -> vector<6x6xf32>
    %cst_27 = arith.constant 2.500000e-01 : f32
    %50 = vector.broadcast %cst_27 : f32 to vector<6x6xf32>
    %51 = arith.mulf %49, %50 : vector<6x6xf32>
    %cst_28 = arith.constant dense<0xFF800000> : vector<6xf32>
    %52 = vector.multi_reduction <maximumf>, %51, %cst_28 [1] : vector<6x6xf32> to vector<6xf32>
    %53 = vector.shape_cast %52 : vector<6xf32> to vector<6x1xf32>
    %54 = vector.broadcast %53 : vector<6x1xf32> to vector<6x6xf32>
    %55 = arith.subf %51, %54 : vector<6x6xf32>
    %56 = math.exp %55 : vector<6x6xf32>
    %cst_29 = arith.constant dense<0.000000e+00> : vector<6xf32>
    %57 = vector.multi_reduction <add>, %56, %cst_29 [1] : vector<6x6xf32> to vector<6xf32>
    %58 = vector.shape_cast %57 : vector<6xf32> to vector<6x1xf32>
    %59 = tpu.reciprocal %58 {approx = true} : vector<6x1xf32> -> vector<6x1xf32>
    %60 = vector.broadcast %59 : vector<6x1xf32> to vector<6x6xf32>
    %61 = arith.mulf %56, %60 : vector<6x6xf32>
    %62 = vector.extract_strided_slice %44 {offsets = [0, 0], sizes = [6, 16], strides = [1, 1]} : vector<6x32xf32> to vector<6x16xf32>
    %63 = arith.truncf %61 : vector<6x6xf32> to vector<6x6xbf16>
    %64 = arith.truncf %62 : vector<6x16xf32> to vector<6x16xbf16>
    %cst_30 = arith.constant dense<0.000000e+00> : vector<6x16xf32>
    %65 = tpu.matmul %63, %64, %cst_30 {dimension_numbers = #tpu.dot_dimension_numbers<[1], [0], [0], [1], [0, 0, 1, 1], [], []>} : vector<6x6xbf16>, vector<6x16xbf16>, vector<6x16xf32> -> vector<6x16xf32>
    %c0_31 = arith.constant 0 : index
    %c0_32 = arith.constant 0 : index
    %66 = vector.load %arg36[%c0_31, %c0_32] : memref<6x32xf32, #tpu.memory_space<vmem>>, vector<6x16xf32>
    tpu.vector_store %arg36[%c0_31, %c0_32], %65 {strides = array<i32>} : memref<6x32xf32, #tpu.memory_space<vmem>>, vector<6x16xf32>,
    %67 = vector.extract_strided_slice %42 {offsets = [0, 16], sizes = [6, 16], strides = [1, 1]} : vector<6x32xf32> to vector<6x16xf32>
    %68 = vector.extract_strided_slice %43 {offsets = [0, 16], sizes = [6, 16], strides = [1, 1]} : vector<6x32xf32> to vector<6x16xf32>
    %69 = arith.truncf %67 : vector<6x16xf32> to vector<6x16xbf16>
    %70 = arith.truncf %68 : vector<6x16xf32> to vector<6x16xbf16>
    %cst_33 = arith.constant dense<0.000000e+00> : vector<6x6xf32>
    %71 = tpu.matmul %69, %70, %cst_33 {dimension_numbers = #tpu.dot_dimension_numbers<[1], [1], [0], [0], [0, 0, 1, 0], [], []>} : vector<6x16xbf16>, vector<6x16xbf16>, vector<6x6xf32> -> vector<6x6xf32>
    %cst_34 = arith.constant 2.500000e-01 : f32
    %72 = vector.broadcast %cst_34 : f32 to vector<6x6xf32>
    %73 = arith.mulf %71, %72 : vector<6x6xf32>
    %cst_35 = arith.constant dense<0xFF800000> : vector<6xf32>
    %74 = vector.multi_reduction <maximumf>, %73, %cst_35 [1] : vector<6x6xf32> to vector<6xf32>
    %75 = vector.shape_cast %74 : vector<6xf32> to vector<6x1xf32>
    %76 = vector.broadcast %75 : vector<6x1xf32> to vector<6x6xf32>
    %77 = arith.subf %73, %76 : vector<6x6xf32>
    %78 = math.exp %77 : vector<6x6xf32>
    %cst_36 = arith.constant dense<0.000000e+00> : vector<6xf32>
    %79 = vector.multi_reduction <add>, %78, %cst_36 [1] : vector<6x6xf32> to vector<6xf32>
    %80 = vector.shape_cast %79 : vector<6xf32> to vector<6x1xf32>
    %81 = tpu.reciprocal %80 {approx = true} : vector<6x1xf32> -> vector<6x1xf32>
    %82 = vector.broadcast %81 : vector<6x1xf32> to vector<6x6xf32>
    %83 = arith.mulf %78, %82 : vector<6x6xf32>
    %84 = vector.extract_strided_slice %44 {offsets = [0, 16], sizes = [6, 16], strides = [1, 1]} : vector<6x32xf32> to vector<6x16xf32>
    %85 = arith.truncf %83 : vector<6x6xf32> to vector<6x6xbf16>
    %86 = arith.truncf %84 : vector<6x16xf32> to vector<6x16xbf16>
    %cst_37 = arith.constant dense<0.000000e+00> : vector<6x16xf32>
    %87 = tpu.matmul %85, %86, %cst_37 {dimension_numbers = #tpu.dot_dimension_numbers<[1], [0], [0], [1], [0, 0, 1, 1], [], []>} : vector<6x6xbf16>, vector<6x16xbf16>, vector<6x16xf32> -> vector<6x16xf32>
    %c0_38 = arith.constant 0 : index
    %c16 = arith.constant 16 : index
    %88 = vector.load %arg36[%c0_38, %c16] : memref<6x32xf32, #tpu.memory_space<vmem>>, vector<6x16xf32>
    tpu.vector_store %arg36[%c0_38, %c16], %87 {strides = array<i32>} : memref<6x32xf32, #tpu.memory_space<vmem>>, vector<6x16xf32>,
    %c0_39 = arith.constant 0 : index
    %c0_40 = arith.constant 0 : index
    %89 = vector.load %arg36[%c0_39, %c0_40] : memref<6x32xf32, #tpu.memory_space<vmem>>, vector<6x32xf32>
    %c0_41 = arith.constant 0 : index
    %c0_42 = arith.constant 0 : index
    %90 = vector.load %arg11[%c0_41, %c0_42] : memref<32x32xbf16, #tpu.memory_space<vmem>>, vector<32x32xbf16>
    %91 = arith.truncf %89 : vector<6x32xf32> to vector<6x32xbf16>
    %cst_43 = arith.constant dense<0.000000e+00> : vector<6x32xf32>
    %92 = tpu.matmul %91, %90, %cst_43 {dimension_numbers = #tpu.dot_dimension_numbers<[1], [0], [0], [1], [0, 0, 1, 1], [], []>} : vector<6x32xbf16>, vector<32x32xbf16>, vector<6x32xf32> -> vector<6x32xf32>
    %93 = arith.addf %11, %92 : vector<6x32xf32>
    %c0_44 = arith.constant 0 : index
    %c0_45 = arith.constant 0 : index
    %94 = vector.load %arg12[%c0_44, %c0_45] : memref<1x32xf32, #tpu.memory_space<vmem>>, vector<1x32xf32>
    %95 = vector.broadcast %94 : vector<1x32xf32> to vector<6x32xf32>
    %96 = arith.addf %93, %95 : vector<6x32xf32>
    %c0_46 = arith.constant 0 : index
    %c0_47 = arith.constant 0 : index
    %97 = vector.load %arg13[%c0_46, %c0_47] : memref<1x32xf32, #tpu.memory_space<vmem>>, vector<1x32xf32>
    %c0_48 = arith.constant 0 : index
    %c0_49 = arith.constant 0 : index
    %98 = vector.load %arg14[%c0_48, %c0_49] : memref<1x32xf32, #tpu.memory_space<vmem>>, vector<1x32xf32>
    %cst_50 = arith.constant dense<0.000000e+00> : vector<6xf32>
    %99 = vector.multi_reduction <add>, %96, %cst_50 [1] : vector<6x32xf32> to vector<6xf32>
    %100 = vector.shape_cast %99 : vector<6xf32> to vector<6x1xf32>
    %cst_51 = arith.constant 3.200000e+01 : f32
    %101 = vector.broadcast %cst_51 : f32 to vector<6x1xf32>
    %102 = arith.divf %100, %101 : vector<6x1xf32>
    %103 = vector.broadcast %102 : vector<6x1xf32> to vector<6x32xf32>
    %104 = arith.subf %96, %103 : vector<6x32xf32>
    %105 = arith.mulf %104, %104 : vector<6x32xf32>
    %cst_52 = arith.constant dense<0.000000e+00> : vector<6xf32>
    %106 = vector.multi_reduction <add>, %105, %cst_52 [1] : vector<6x32xf32> to vector<6xf32>
    %107 = vector.shape_cast %106 : vector<6xf32> to vector<6x1xf32>
    %cst_53 = arith.constant 3.200000e+01 : f32
    %108 = vector.broadcast %cst_53 : f32 to vector<6x1xf32>
    %109 = arith.divf %107, %108 : vector<6x1xf32>
    %110 = vector.broadcast %102 : vector<6x1xf32> to vector<6x32xf32>
    %111 = arith.subf %96, %110 : vector<6x32xf32>
    %cst_54 = arith.constant 9.99999996E-13 : f32
    %112 = vector.broadcast %cst_54 : f32 to vector<6x1xf32>
    %113 = arith.addf %109, %112 : vector<6x1xf32>
    %114 = math.rsqrt %113 : vector<6x1xf32>
    %115 = vector.broadcast %114 : vector<6x1xf32> to vector<6x32xf32>
    %116 = arith.mulf %111, %115 : vector<6x32xf32>
    %117 = vector.broadcast %97 : vector<1x32xf32> to vector<6x32xf32>
    %118 = arith.mulf %116, %117 : vector<6x32xf32>
    %119 = vector.broadcast %98 : vector<1x32xf32> to vector<6x32xf32>
    %120 = arith.addf %118, %119 : vector<6x32xf32>
    %c0_55 = arith.constant 0 : index
    %c0_56 = arith.constant 0 : index
    %121 = vector.load %arg15[%c0_55, %c0_56] : memref<32x64xbf16, #tpu.memory_space<vmem>>, vector<32x64xbf16>
    %122 = arith.truncf %120 : vector<6x32xf32> to vector<6x32xbf16>
    %cst_57 = arith.constant dense<0.000000e+00> : vector<6x64xf32>
    %123 = tpu.matmul %122, %121, %cst_57 {dimension_numbers = #tpu.dot_dimension_numbers<[1], [0], [0], [1], [0, 0, 1, 1], [], []>} : vector<6x32xbf16>, vector<32x64xbf16>, vector<6x64xf32> -> vector<6x64xf32>
    %c0_58 = arith.constant 0 : index
    %c0_59 = arith.constant 0 : index
    %124 = vector.load %arg16[%c0_58, %c0_59] : memref<1x64xf32, #tpu.memory_space<vmem>>, vector<1x64xf32>
    %125 = vector.broadcast %124 : vector<1x64xf32> to vector<6x64xf32>
    %126 = arith.addf %123, %125 : vector<6x64xf32>
    %127 = arith.mulf %126, %126 : vector<6x64xf32>
    %128 = arith.mulf %126, %127 : vector<6x64xf32>
    %cst_60 = arith.constant 4.471500e-02 : f32
    %129 = vector.broadcast %cst_60 : f32 to vector<6x64xf32>
    %130 = arith.mulf %129, %128 : vector<6x64xf32>
    %131 = arith.addf %126, %130 : vector<6x64xf32>
    %cst_61 = arith.constant 0.797884583 : f32
    %132 = vector.broadcast %cst_61 : f32 to vector<6x64xf32>
    %133 = arith.mulf %132, %131 : vector<6x64xf32>
    %134 = math.tanh %133 : vector<6x64xf32>
    %cst_62 = arith.constant 1.000000e+00 : f32
    %135 = vector.broadcast %cst_62 : f32 to vector<6x64xf32>
    %136 = arith.addf %135, %134 : vector<6x64xf32>
    %cst_63 = arith.constant 5.000000e-01 : f32
    %137 = vector.broadcast %cst_63 : f32 to vector<6x64xf32>
    %138 = arith.mulf %137, %136 : vector<6x64xf32>
    %139 = arith.mulf %126, %138 : vector<6x64xf32>
    %c0_64 = arith.constant 0 : index
    %c0_65 = arith.constant 0 : index
    %140 = vector.load %arg17[%c0_64, %c0_65] : memref<64x32xbf16, #tpu.memory_space<vmem>>, vector<64x32xbf16>
    %141 = arith.truncf %139 : vector<6x64xf32> to vector<6x64xbf16>
    %cst_66 = arith.constant dense<0.000000e+00> : vector<6x32xf32>
    %142 = tpu.matmul %141, %140, %cst_66 {dimension_numbers = #tpu.dot_dimension_numbers<[1], [0], [0], [1], [0, 0, 1, 1], [], []>} : vector<6x64xbf16>, vector<64x32xbf16>, vector<6x32xf32> -> vector<6x32xf32>
    %143 = arith.addf %96, %142 : vector<6x32xf32>
    %c0_67 = arith.constant 0 : index
    %c0_68 = arith.constant 0 : index
    %144 = vector.load %arg18[%c0_67, %c0_68] : memref<1x32xf32, #tpu.memory_space<vmem>>, vector<1x32xf32>
    %145 = vector.broadcast %144 : vector<1x32xf32> to vector<6x32xf32>
    %146 = arith.addf %143, %145 : vector<6x32xf32>
    %c0_69 = arith.constant 0 : index
    %c0_70 = arith.constant 0 : index
    %147 = vector.load %arg19[%c0_69, %c0_70] : memref<1x32xf32, #tpu.memory_space<vmem>>, vector<1x32xf32>
    %c0_71 = arith.constant 0 : index
    %c0_72 = arith.constant 0 : index
    %148 = vector.load %arg20[%c0_71, %c0_72] : memref<1x32xf32, #tpu.memory_space<vmem>>, vector<1x32xf32>
    %cst_73 = arith.constant dense<0.000000e+00> : vector<6xf32>
    %149 = vector.multi_reduction <add>, %146, %cst_73 [1] : vector<6x32xf32> to vector<6xf32>
    %150 = vector.shape_cast %149 : vector<6xf32> to vector<6x1xf32>
    %cst_74 = arith.constant 3.200000e+01 : f32
    %151 = vector.broadcast %cst_74 : f32 to vector<6x1xf32>
    %152 = arith.divf %150, %151 : vector<6x1xf32>
    %153 = vector.broadcast %152 : vector<6x1xf32> to vector<6x32xf32>
    %154 = arith.subf %146, %153 : vector<6x32xf32>
    %155 = arith.mulf %154, %154 : vector<6x32xf32>
    %cst_75 = arith.constant dense<0.000000e+00> : vector<6xf32>
    %156 = vector.multi_reduction <add>, %155, %cst_75 [1] : vector<6x32xf32> to vector<6xf32>
    %157 = vector.shape_cast %156 : vector<6xf32> to vector<6x1xf32>
    %cst_76 = arith.constant 3.200000e+01 : f32
    %158 = vector.broadcast %cst_76 : f32 to vector<6x1xf32>
    %159 = arith.divf %157, %158 : vector<6x1xf32>
    %160 = vector.broadcast %152 : vector<6x1xf32> to vector<6x32xf32>
    %161 = arith.subf %146, %160 : vector<6x32xf32>
    %cst_77 = arith.constant 9.99999996E-13 : f32
    %162 = vector.broadcast %cst_77 : f32 to vector<6x1xf32>
    %163 = arith.addf %159, %162 : vector<6x1xf32>
    %164 = math.rsqrt %163 : vector<6x1xf32>
    %165 = vector.broadcast %164 : vector<6x1xf32> to vector<6x32xf32>
    %166 = arith.mulf %161, %165 : vector<6x32xf32>
    %167 = vector.broadcast %147 : vector<1x32xf32> to vector<6x32xf32>
    %168 = arith.mulf %166, %167 : vector<6x32xf32>
    %169 = vector.broadcast %148 : vector<1x32xf32> to vector<6x32xf32>
    %170 = arith.addf %168, %169 : vector<6x32xf32>
    %c0_78 = arith.constant 0 : index
    %c0_79 = arith.constant 0 : index
    %171 = vector.load %arg21[%c0_78, %c0_79] : memref<32x96xbf16, #tpu.memory_space<vmem>>, vector<32x96xbf16>
    %172 = arith.truncf %170 : vector<6x32xf32> to vector<6x32xbf16>
    %cst_80 = arith.constant dense<0.000000e+00> : vector<6x96xf32>
    %173 = tpu.matmul %172, %171, %cst_80 {dimension_numbers = #tpu.dot_dimension_numbers<[1], [0], [0], [1], [0, 0, 1, 1], [], []>} : vector<6x32xbf16>, vector<32x96xbf16>, vector<6x96xf32> -> vector<6x96xf32>
    %c0_81 = arith.constant 0 : index
    %c0_82 = arith.constant 0 : index
    %174 = vector.load %arg22[%c0_81, %c0_82] : memref<1x96xf32, #tpu.memory_space<vmem>>, vector<1x96xf32>
    %175 = vector.broadcast %174 : vector<1x96xf32> to vector<6x96xf32>
    %176 = arith.addf %173, %175 : vector<6x96xf32>
    %177 = vector.extract_strided_slice %176 {offsets = [0, 0], sizes = [6, 32], strides = [1, 1]} : vector<6x96xf32> to vector<6x32xf32>
    %178 = vector.extract_strided_slice %176 {offsets = [0, 32], sizes = [6, 32], strides = [1, 1]} : vector<6x96xf32> to vector<6x32xf32>
    %179 = vector.extract_strided_slice %176 {offsets = [0, 64], sizes = [6, 32], strides = [1, 1]} : vector<6x96xf32> to vector<6x32xf32>
    %180 = vector.extract_strided_slice %177 {offsets = [0, 0], sizes = [6, 16], strides = [1, 1]} : vector<6x32xf32> to vector<6x16xf32>
    %181 = vector.extract_strided_slice %178 {offsets = [0, 0], sizes = [6, 16], strides = [1, 1]} : vector<6x32xf32> to vector<6x16xf32>
    %182 = arith.truncf %180 : vector<6x16xf32> to vector<6x16xbf16>
    %183 = arith.truncf %181 : vector<6x16xf32> to vector<6x16xbf16>
    %cst_83 = arith.constant dense<0.000000e+00> : vector<6x6xf32>
    %184 = tpu.matmul %182, %183, %cst_83 {dimension_numbers = #tpu.dot_dimension_numbers<[1], [1], [0], [0], [0, 0, 1, 0], [], []>} : vector<6x16xbf16>, vector<6x16xbf16>, vector<6x6xf32> -> vector<6x6xf32>
    %cst_84 = arith.constant 2.500000e-01 : f32
    %185 = vector.broadcast %cst_84 : f32 to vector<6x6xf32>
    %186 = arith.mulf %184, %185 : vector<6x6xf32>
    %cst_85 = arith.constant dense<0xFF800000> : vector<6xf32>
    %187 = vector.multi_reduction <maximumf>, %186, %cst_85 [1] : vector<6x6xf32> to vector<6xf32>
    %188 = vector.shape_cast %187 : vector<6xf32> to vector<6x1xf32>
    %189 = vector.broadcast %188 : vector<6x1xf32> to vector<6x6xf32>
    %190 = arith.subf %186, %189 : vector<6x6xf32>
    %191 = math.exp %190 : vector<6x6xf32>
    %cst_86 = arith.constant dense<0.000000e+00> : vector<6xf32>
    %192 = vector.multi_reduction <add>, %191, %cst_86 [1] : vector<6x6xf32> to vector<6xf32>
    %193 = vector.shape_cast %192 : vector<6xf32> to vector<6x1xf32>
    %194 = tpu.reciprocal %193 {approx = true} : vector<6x1xf32> -> vector<6x1xf32>
    %195 = vector.broadcast %194 : vector<6x1xf32> to vector<6x6xf32>
    %196 = arith.mulf %191, %195 : vector<6x6xf32>
    %197 = vector.extract_strided_slice %179 {offsets = [0, 0], sizes = [6, 16], strides = [1, 1]} : vector<6x32xf32> to vector<6x16xf32>
    %198 = arith.truncf %196 : vector<6x6xf32> to vector<6x6xbf16>
    %199 = arith.truncf %197 : vector<6x16xf32> to vector<6x16xbf16>
    %cst_87 = arith.constant dense<0.000000e+00> : vector<6x16xf32>
    %200 = tpu.matmul %198, %199, %cst_87 {dimension_numbers = #tpu.dot_dimension_numbers<[1], [0], [0], [1], [0, 0, 1, 1], [], []>} : vector<6x6xbf16>, vector<6x16xbf16>, vector<6x16xf32> -> vector<6x16xf32>
    %c0_88 = arith.constant 0 : index
    %c0_89 = arith.constant 0 : index
    %201 = vector.load %arg36[%c0_88, %c0_89] : memref<6x32xf32, #tpu.memory_space<vmem>>, vector<6x16xf32>
    tpu.vector_store %arg36[%c0_88, %c0_89], %200 {strides = array<i32>} : memref<6x32xf32, #tpu.memory_space<vmem>>, vector<6x16xf32>,
    %202 = vector.extract_strided_slice %177 {offsets = [0, 16], sizes = [6, 16], strides = [1, 1]} : vector<6x32xf32> to vector<6x16xf32>
    %203 = vector.extract_strided_slice %178 {offsets = [0, 16], sizes = [6, 16], strides = [1, 1]} : vector<6x32xf32> to vector<6x16xf32>
    %204 = arith.truncf %202 : vector<6x16xf32> to vector<6x16xbf16>
    %205 = arith.truncf %203 : vector<6x16xf32> to vector<6x16xbf16>
    %cst_90 = arith.constant dense<0.000000e+00> : vector<6x6xf32>
    %206 = tpu.matmul %204, %205, %cst_90 {dimension_numbers = #tpu.dot_dimension_numbers<[1], [1], [0], [0], [0, 0, 1, 0], [], []>} : vector<6x16xbf16>, vector<6x16xbf16>, vector<6x6xf32> -> vector<6x6xf32>
    %cst_91 = arith.constant 2.500000e-01 : f32
    %207 = vector.broadcast %cst_91 : f32 to vector<6x6xf32>
    %208 = arith.mulf %206, %207 : vector<6x6xf32>
    %cst_92 = arith.constant dense<0xFF800000> : vector<6xf32>
    %209 = vector.multi_reduction <maximumf>, %208, %cst_92 [1] : vector<6x6xf32> to vector<6xf32>
    %210 = vector.shape_cast %209 : vector<6xf32> to vector<6x1xf32>
    %211 = vector.broadcast %210 : vector<6x1xf32> to vector<6x6xf32>
    %212 = arith.subf %208, %211 : vector<6x6xf32>
    %213 = math.exp %212 : vector<6x6xf32>
    %cst_93 = arith.constant dense<0.000000e+00> : vector<6xf32>
    %214 = vector.multi_reduction <add>, %213, %cst_93 [1] : vector<6x6xf32> to vector<6xf32>
    %215 = vector.shape_cast %214 : vector<6xf32> to vector<6x1xf32>
    %216 = tpu.reciprocal %215 {approx = true} : vector<6x1xf32> -> vector<6x1xf32>
    %217 = vector.broadcast %216 : vector<6x1xf32> to vector<6x6xf32>
    %218 = arith.mulf %213, %217 : vector<6x6xf32>
    %219 = vector.extract_strided_slice %179 {offsets = [0, 16], sizes = [6, 16], strides = [1, 1]} : vector<6x32xf32> to vector<6x16xf32>
    %220 = arith.truncf %218 : vector<6x6xf32> to vector<6x6xbf16>
    %221 = arith.truncf %219 : vector<6x16xf32> to vector<6x16xbf16>
    %cst_94 = arith.constant dense<0.000000e+00> : vector<6x16xf32>
    %222 = tpu.matmul %220, %221, %cst_94 {dimension_numbers = #tpu.dot_dimension_numbers<[1], [0], [0], [1], [0, 0, 1, 1], [], []>} : vector<6x6xbf16>, vector<6x16xbf16>, vector<6x16xf32> -> vector<6x16xf32>
    %c0_95 = arith.constant 0 : index
    %c16_96 = arith.constant 16 : index
    %223 = vector.load %arg36[%c0_95, %c16_96] : memref<6x32xf32, #tpu.memory_space<vmem>>, vector<6x16xf32>
    tpu.vector_store %arg36[%c0_95, %c16_96], %222 {strides = array<i32>} : memref<6x32xf32, #tpu.memory_space<vmem>>, vector<6x16xf32>,
    %c0_97 = arith.constant 0 : index
    %c0_98 = arith.constant 0 : index
    %224 = vector.load %arg36[%c0_97, %c0_98] : memref<6x32xf32, #tpu.memory_space<vmem>>, vector<6x32xf32>
    %c0_99 = arith.constant 0 : index
    %c0_100 = arith.constant 0 : index
    %225 = vector.load %arg23[%c0_99, %c0_100] : memref<32x32xbf16, #tpu.memory_space<vmem>>, vector<32x32xbf16>
    %226 = arith.truncf %224 : vector<6x32xf32> to vector<6x32xbf16>
    %cst_101 = arith.constant dense<0.000000e+00> : vector<6x32xf32>
    %227 = tpu.matmul %226, %225, %cst_101 {dimension_numbers = #tpu.dot_dimension_numbers<[1], [0], [0], [1], [0, 0, 1, 1], [], []>} : vector<6x32xbf16>, vector<32x32xbf16>, vector<6x32xf32> -> vector<6x32xf32>
    %228 = arith.addf %146, %227 : vector<6x32xf32>
    %c0_102 = arith.constant 0 : index
    %c0_103 = arith.constant 0 : index
    %229 = vector.load %arg24[%c0_102, %c0_103] : memref<1x32xf32, #tpu.memory_space<vmem>>, vector<1x32xf32>
    %230 = vector.broadcast %229 : vector<1x32xf32> to vector<6x32xf32>
    %231 = arith.addf %228, %230 : vector<6x32xf32>
    %c0_104 = arith.constant 0 : index
    %c0_105 = arith.constant 0 : index
    %232 = vector.load %arg25[%c0_104, %c0_105] : memref<1x32xf32, #tpu.memory_space<vmem>>, vector<1x32xf32>
    %c0_106 = arith.constant 0 : index
    %c0_107 = arith.constant 0 : index
    %233 = vector.load %arg26[%c0_106, %c0_107] : memref<1x32xf32, #tpu.memory_space<vmem>>, vector<1x32xf32>
    %cst_108 = arith.constant dense<0.000000e+00> : vector<6xf32>
    %234 = vector.multi_reduction <add>, %231, %cst_108 [1] : vector<6x32xf32> to vector<6xf32>
    %235 = vector.shape_cast %234 : vector<6xf32> to vector<6x1xf32>
    %cst_109 = arith.constant 3.200000e+01 : f32
    %236 = vector.broadcast %cst_109 : f32 to vector<6x1xf32>
    %237 = arith.divf %235, %236 : vector<6x1xf32>
    %238 = vector.broadcast %237 : vector<6x1xf32> to vector<6x32xf32>
    %239 = arith.subf %231, %238 : vector<6x32xf32>
    %240 = arith.mulf %239, %239 : vector<6x32xf32>
    %cst_110 = arith.constant dense<0.000000e+00> : vector<6xf32>
    %241 = vector.multi_reduction <add>, %240, %cst_110 [1] : vector<6x32xf32> to vector<6xf32>
    %242 = vector.shape_cast %241 : vector<6xf32> to vector<6x1xf32>
    %cst_111 = arith.constant 3.200000e+01 : f32
    %243 = vector.broadcast %cst_111 : f32 to vector<6x1xf32>
    %244 = arith.divf %242, %243 : vector<6x1xf32>
    %245 = vector.broadcast %237 : vector<6x1xf32> to vector<6x32xf32>
    %246 = arith.subf %231, %245 : vector<6x32xf32>
    %cst_112 = arith.constant 9.99999996E-13 : f32
    %247 = vector.broadcast %cst_112 : f32 to vector<6x1xf32>
    %248 = arith.addf %244, %247 : vector<6x1xf32>
    %249 = math.rsqrt %248 : vector<6x1xf32>
    %250 = vector.broadcast %249 : vector<6x1xf32> to vector<6x32xf32>
    %251 = arith.mulf %246, %250 : vector<6x32xf32>
    %252 = vector.broadcast %232 : vector<1x32xf32> to vector<6x32xf32>
    %253 = arith.mulf %251, %252 : vector<6x32xf32>
    %254 = vector.broadcast %233 : vector<1x32xf32> to vector<6x32xf32>
    %255 = arith.addf %253, %254 : vector<6x32xf32>
    %c0_113 = arith.constant 0 : index
    %c0_114 = arith.constant 0 : index
    %256 = vector.load %arg27[%c0_113, %c0_114] : memref<32x64xbf16, #tpu.memory_space<vmem>>, vector<32x64xbf16>
    %257 = arith.truncf %255 : vector<6x32xf32> to vector<6x32xbf16>
    %cst_115 = arith.constant dense<0.000000e+00> : vector<6x64xf32>
    %258 = tpu.matmul %257, %256, %cst_115 {dimension_numbers = #tpu.dot_dimension_numbers<[1], [0], [0], [1], [0, 0, 1, 1], [], []>} : vector<6x32xbf16>, vector<32x64xbf16>, vector<6x64xf32> -> vector<6x64xf32>
    %c0_116 = arith.constant 0 : index
    %c0_117 = arith.constant 0 : index
    %259 = vector.load %arg28[%c0_116, %c0_117] : memref<1x64xf32, #tpu.memory_space<vmem>>, vector<1x64xf32>
    %260 = vector.broadcast %259 : vector<1x64xf32> to vector<6x64xf32>
    %261 = arith.addf %258, %260 : vector<6x64xf32>
    %262 = arith.mulf %261, %261 : vector<6x64xf32>
    %263 = arith.mulf %261, %262 : vector<6x64xf32>
    %cst_118 = arith.constant 4.471500e-02 : f32
    %264 = vector.broadcast %cst_118 : f32 to vector<6x64xf32>
    %265 = arith.mulf %264, %263 : vector<6x64xf32>
    %266 = arith.addf %261, %265 : vector<6x64xf32>
    %cst_119 = arith.constant 0.797884583 : f32
    %267 = vector.broadcast %cst_119 : f32 to vector<6x64xf32>
    %268 = arith.mulf %267, %266 : vector<6x64xf32>
    %269 = math.tanh %268 : vector<6x64xf32>
    %cst_120 = arith.constant 1.000000e+00 : f32
    %270 = vector.broadcast %cst_120 : f32 to vector<6x64xf32>
    %271 = arith.addf %270, %269 : vector<6x64xf32>
    %cst_121 = arith.constant 5.000000e-01 : f32
    %272 = vector.broadcast %cst_121 : f32 to vector<6x64xf32>
    %273 = arith.mulf %272, %271 : vector<6x64xf32>
    %274 = arith.mulf %261, %273 : vector<6x64xf32>
    %c0_122 = arith.constant 0 : index
    %c0_123 = arith.constant 0 : index
    %275 = vector.load %arg29[%c0_122, %c0_123] : memref<64x32xbf16, #tpu.memory_space<vmem>>, vector<64x32xbf16>
    %276 = arith.truncf %274 : vector<6x64xf32> to vector<6x64xbf16>
    %cst_124 = arith.constant dense<0.000000e+00> : vector<6x32xf32>
    %277 = tpu.matmul %276, %275, %cst_124 {dimension_numbers = #tpu.dot_dimension_numbers<[1], [0], [0], [1], [0, 0, 1, 1], [], []>} : vector<6x64xbf16>, vector<64x32xbf16>, vector<6x32xf32> -> vector<6x32xf32>
    %278 = arith.addf %231, %277 : vector<6x32xf32>
    %c0_125 = arith.constant 0 : index
    %c0_126 = arith.constant 0 : index
    %279 = vector.load %arg30[%c0_125, %c0_126] : memref<1x32xf32, #tpu.memory_space<vmem>>, vector<1x32xf32>
    %280 = vector.broadcast %279 : vector<1x32xf32> to vector<6x32xf32>
    %281 = arith.addf %278, %280 : vector<6x32xf32>
    %c0_127 = arith.constant 0 : index
    %c0_128 = arith.constant 0 : index
    %282 = vector.load %arg31[%c0_127, %c0_128] : memref<1x32xf32, #tpu.memory_space<vmem>>, vector<1x32xf32>
    %c0_129 = arith.constant 0 : index
    %c0_130 = arith.constant 0 : index
    %283 = vector.load %arg32[%c0_129, %c0_130] : memref<1x32xf32, #tpu.memory_space<vmem>>, vector<1x32xf32>
    %cst_131 = arith.constant dense<0.000000e+00> : vector<6xf32>
    %284 = vector.multi_reduction <add>, %281, %cst_131 [1] : vector<6x32xf32> to vector<6xf32>
    %285 = vector.shape_cast %284 : vector<6xf32> to vector<6x1xf32>
    %cst_132 = arith.constant 3.200000e+01 : f32
    %286 = vector.broadcast %cst_132 : f32 to vector<6x1xf32>
    %287 = arith.divf %285, %286 : vector<6x1xf32>
    %288 = vector.broadcast %287 : vector<6x1xf32> to vector<6x32xf32>
    %289 = arith.subf %281, %288 : vector<6x32xf32>
    %290 = arith.mulf %289, %289 : vector<6x32xf32>
    %cst_133 = arith.constant dense<0.000000e+00> : vector<6xf32>
    %291 = vector.multi_reduction <add>, %290, %cst_133 [1] : vector<6x32xf32> to vector<6xf32>
    %292 = vector.shape_cast %291 : vector<6xf32> to vector<6x1xf32>
    %cst_134 = arith.constant 3.200000e+01 : f32
    %293 = vector.broadcast %cst_134 : f32 to vector<6x1xf32>
    %294 = arith.divf %292, %293 : vector<6x1xf32>
    %295 = vector.broadcast %287 : vector<6x1xf32> to vector<6x32xf32>
    %296 = arith.subf %281, %295 : vector<6x32xf32>
    %cst_135 = arith.constant 9.99999996E-13 : f32
    %297 = vector.broadcast %cst_135 : f32 to vector<6x1xf32>
    %298 = arith.addf %294, %297 : vector<6x1xf32>
    %299 = math.rsqrt %298 : vector<6x1xf32>
    %300 = vector.broadcast %299 : vector<6x1xf32> to vector<6x32xf32>
    %301 = arith.mulf %296, %300 : vector<6x32xf32>
    %302 = vector.broadcast %282 : vector<1x32xf32> to vector<6x32xf32>
    %303 = arith.mulf %301, %302 : vector<6x32xf32>
    %304 = vector.broadcast %283 : vector<1x32xf32> to vector<6x32xf32>
    %305 = arith.addf %303, %304 : vector<6x32xf32>
    %c0_136 = arith.constant 0 : index
    %c0_137 = arith.constant 0 : index
    %306 = vector.load %arg33[%c0_136, %c0_137] : memref<32x128xbf16, #tpu.memory_space<vmem>>, vector<32x128xbf16>
    %307 = arith.truncf %305 : vector<6x32xf32> to vector<6x32xbf16>
    %cst_138 = arith.constant dense<0.000000e+00> : vector<6x128xf32>
    %308 = tpu.matmul %307, %306, %cst_138 {dimension_numbers = #tpu.dot_dimension_numbers<[1], [0], [0], [1], [0, 0, 1, 1], [], []>} : vector<6x32xbf16>, vector<32x128xbf16>, vector<6x128xf32> -> vector<6x128xf32>
    %c0_139 = arith.constant 0 : index
    %c0_140 = arith.constant 0 : index
    %309 = vector.load %arg34[%c0_139, %c0_140] : memref<1x128xf32, #tpu.memory_space<vmem>>, vector<1x128xf32>
    %310 = vector.broadcast %309 : vector<1x128xf32> to vector<6x128xf32>
    %311 = arith.addf %308, %310 : vector<6x128xf32>
    %312 = arith.truncf %311 : vector<6x128xf32> to vector<6x128xbf16>
    %c0_141 = arith.constant 0 : index
    %c0_142 = arith.constant 0 : index
    %c0_143 = arith.constant 0 : index
    %313 = vector.load %arg35[%c0_141, %c0_142, %c0_143] : memref<1x6x128xbf16, #tpu.memory_space<vmem>>, vector<1x6x128xbf16>
    %314 = vector.shape_cast %313 : vector<1x6x128xbf16> to vector<6x128xbf16>
    %315 = vector.shape_cast %312 : vector<6x128xbf16> to vector<1x6x128xbf16>
    tpu.vector_store %arg35[%c0_141, %c0_142, %c0_143], %315 {strides = array<i32>} : memref<1x6x128xbf16, #tpu.memory_space<vmem>>, vector<1x6x128xbf16>,
    return
  }
  func.func @transform_0(%arg0: i32) -> (i32, i32, i32) {
    %c0_i32 = arith.constant 0 : i32
    %c0_i32_0 = arith.constant 0 : i32
    %c0_i32_1 = arith.constant 0 : i32
    return %arg0, %c0_i32, %c0_i32_0 : i32, i32, i32
  }
  func.func @transform_1(%arg0: i32) -> (i32, i32) {
    %c0_i32 = arith.constant 0 : i32
    %c0_i32_0 = arith.constant 0 : i32
    %c0_i32_1 = arith.constant 0 : i32
    return %c0_i32, %c0_i32_0 : i32, i32
  }
  func.func @transform_2(%arg0: i32) -> (i32, i32) {
    %c0_i32 = arith.constant 0 : i32
    %c0_i32_0 = arith.constant 0 : i32
    %c0_i32_1 = arith.constant 0 : i32
    return %c0_i32, %c0_i32_0 : i32, i32
  }
  func.func @transform_3(%arg0: i32) -> (i32, i32) {
    %c0_i32 = arith.constant 0 : i32
    %c0_i32_0 = arith.constant 0 : i32
    %c0_i32_1 = arith.constant 0 : i32
    return %c0_i32, %c0_i32_0 : i32, i32
  }
  func.func @transform_4(%arg0: i32) -> (i32, i32) {
    %c0_i32 = arith.constant 0 : i32
    %c0_i32_0 = arith.constant 0 : i32
    %c0_i32_1 = arith.constant 0 : i32
    return %c0_i32, %c0_i32_0 : i32, i32
  }
  func.func @transform_5(%arg0: i32) -> (i32, i32) {
    %c0_i32 = arith.constant 0 : i32
    %c0_i32_0 = arith.constant 0 : i32
    %c0_i32_1 = arith.constant 0 : i32
    return %c0_i32, %c0_i32_0 : i32, i32
  }
  func.func @transform_6(%arg0: i32) -> (i32, i32) {
    %c0_i32 = arith.constant 0 : i32
    %c0_i32_0 = arith.constant 0 : i32
    %c0_i32_1 = arith.constant 0 : i32
    return %c0_i32, %c0_i32_0 : i32, i32
  }
  func.func @transform_7(%arg0: i32) -> (i32, i32) {
    %c0_i32 = arith.constant 0 : i32
    %c0_i32_0 = arith.constant 0 : i32
    %c0_i32_1 = arith.constant 0 : i32
    return %c0_i32, %c0_i32_0 : i32, i32
  }
  func.func @transform_8(%arg0: i32) -> (i32, i32) {
    %c0_i32 = arith.constant 0 : i32
    %c0_i32_0 = arith.constant 0 : i32
    %c0_i32_1 = arith.constant 0 : i32
    return %c0_i32, %c0_i32_0 : i32, i32
  }
  func.func @transform_9(%arg0: i32) -> (i32, i32) {
    %c0_i32 = arith.constant 0 : i32
    %c0_i32_0 = arith.constant 0 : i32
    %c0_i32_1 = arith.constant 0 : i32
    return %c0_i32, %c0_i32_0 : i32, i32
  }
  func.func @transform_10(%arg0: i32) -> (i32, i32) {
    %c0_i32 = arith.constant 0 : i32
    %c0_i32_0 = arith.constant 0 : i32
    %c0_i32_1 = arith.constant 0 : i32
    return %c0_i32, %c0_i32_0 : i32, i32
  }
  func.func @transform_11(%arg0: i32) -> (i32, i32) {
    %c0_i32 = arith.constant 0 : i32
    %c0_i32_0 = arith.constant 0 : i32
    %c0_i32_1 = arith.constant 0 : i32
    return %c0_i32, %c0_i32_0 : i32, i32
  }
  func.func @transform_12(%arg0: i32) -> (i32, i32) {
    %c0_i32 = arith.constant 0 : i32
    %c0_i32_0 = arith.constant 0 : i32
    %c0_i32_1 = arith.constant 0 : i32
    return %c0_i32, %c0_i32_0 : i32, i32
  }
  func.func @transform_13(%arg0: i32) -> (i32, i32) {
    %c0_i32 = arith.constant 0 : i32
    %c0_i32_0 = arith.constant 0 : i32
    %c0_i32_1 = arith.constant 0 : i32
    return %c0_i32, %c0_i32_0 : i32, i32
  }
  func.func @transform_14(%arg0: i32) -> (i32, i32) {
    %c0_i32 = arith.constant 0 : i32
    %c0_i32_0 = arith.constant 0 : i32
    %c0_i32_1 = arith.constant 0 : i32
    return %c0_i32, %c0_i32_0 : i32, i32
  }
  func.func @transform_15(%arg0: i32) -> (i32, i32) {
    %c0_i32 = arith.constant 0 : i32
    %c0_i32_0 = arith.constant 0 : i32
    %c0_i32_1 = arith.constant 0 : i32
    return %c0_i32, %c0_i32_0 : i32, i32
  }
  func.func @transform_16(%arg0: i32) -> (i32, i32) {
    %c0_i32 = arith.constant 0 : i32
    %c0_i32_0 = arith.constant 0 : i32
    %c0_i32_1 = arith.constant 0 : i32
    return %c0_i32, %c0_i32_0 : i32, i32
  }
  func.func @transform_17(%arg0: i32) -> (i32, i32) {
    %c0_i32 = arith.constant 0 : i32
    %c0_i32_0 = arith.constant 0 : i32
    %c0_i32_1 = arith.constant 0 : i32
    return %c0_i32, %c0_i32_0 : i32, i32
  }
  func.func @transform_18(%arg0: i32) -> (i32, i32) {
    %c0_i32 = arith.constant 0 : i32
    %c0_i32_0 = arith.constant 0 : i32
    %c0_i32_1 = arith.constant 0 : i32
    return %c0_i32, %c0_i32_0 : i32, i32
  }
  func.func @transform_19(%arg0: i32) -> (i32, i32) {
    %c0_i32 = arith.constant 0 : i32
    %c0_i32_0 = arith.constant 0 : i32
    %c0_i32_1 = arith.constant 0 : i32
    return %c0_i32, %c0_i32_0 : i32, i32
  }
  func.func @transform_20(%arg0: i32) -> (i32, i32) {
    %c0_i32 = arith.constant 0 : i32
    %c0_i32_0 = arith.constant 0 : i32
    %c0_i32_1 = arith.constant 0 : i32
    return %c0_i32, %c0_i32_0 : i32, i32
  }
  func.func @transform_21(%arg0: i32) -> (i32, i32) {
    %c0_i32 = arith.constant 0 : i32
    %c0_i32_0 = arith.constant 0 : i32
    %c0_i32_1 = arith.constant 0 : i32
    return %c0_i32, %c0_i32_0 : i32, i32
  }
  func.func @transform_22(%arg0: i32) -> (i32, i32) {
    %c0_i32 = arith.constant 0 : i32
    %c0_i32_0 = arith.constant 0 : i32
    %c0_i32_1 = arith.constant 0 : i32
    return %c0_i32, %c0_i32_0 : i32, i32
  }
  func.func @transform_23(%arg0: i32) -> (i32, i32) {
    %c0_i32 = arith.constant 0 : i32
    %c0_i32_0 = arith.constant 0 : i32
    %c0_i32_1 = arith.constant 0 : i32
    return %c0_i32, %c0_i32_0 : i32, i32
  }
  func.func @transform_24(%arg0: i32) -> (i32, i32) {
    %c0_i32 = arith.constant 0 : i32
    %c0_i32_0 = arith.constant 0 : i32
    %c0_i32_1 = arith.constant 0 : i32
    return %c0_i32, %c0_i32_0 : i32, i32
  }
  func.func @transform_25(%arg0: i32) -> (i32, i32) {
    %c0_i32 = arith.constant 0 : i32
    %c0_i32_0 = arith.constant 0 : i32
    %c0_i32_1 = arith.constant 0 : i32
    return %c0_i32, %c0_i32_0 : i32, i32
  }
  func.func @transform_26(%arg0: i32) -> (i32, i32) {
    %c0_i32 = arith.constant 0 : i32
    %c0_i32_0 = arith.constant 0 : i32
    %c0_i32_1 = arith.constant 0 : i32
    return %c0_i32, %c0_i32_0 : i32, i32
  }
  func.func @transform_27(%arg0: i32) -> (i32, i32) {
    %c0_i32 = arith.constant 0 : i32
    %c0_i32_0 = arith.constant 0 : i32
    %c0_i32_1 = arith.constant 0 : i32
    return %c0_i32, %c0_i32_0 : i32, i32
  }
  func.func @transform_28(%arg0: i32) -> (i32, i32) {
    %c0_i32 = arith.constant 0 : i32
    %c0_i32_0 = arith.constant 0 : i32
    %c0_i32_1 = arith.constant 0 : i32
    return %c0_i32, %c0_i32_0 : i32, i32
  }
  func.func @transform_29(%arg0: i32) -> (i32, i32) {
    %c0_i32 = arith.constant 0 : i32
    %c0_i32_0 = arith.constant 0 : i32
    %c0_i32_1 = arith.constant 0 : i32
    return %c0_i32, %c0_i32_0 : i32, i32
  }
  func.func @transform_30(%arg0: i32) -> (i32, i32) {
    %c0_i32 = arith.constant 0 : i32
    %c0_i32_0 = arith.constant 0 : i32
    %c0_i32_1 = arith.constant 0 : i32
    return %c0_i32, %c0_i32_0 : i32, i32
  }
  func.func @transform_31(%arg0: i32) -> (i32, i32) {
    %c0_i32 = arith.constant 0 : i32
    %c0_i32_0 = arith.constant 0 : i32
    %c0_i32_1 = arith.constant 0 : i32
    return %c0_i32, %c0_i32_0 : i32, i32
  }
  func.func @transform_32(%arg0: i32) -> (i32, i32) {
    %c0_i32 = arith.constant 0 : i32
    %c0_i32_0 = arith.constant 0 : i32
    %c0_i32_1 = arith.constant 0 : i32
    return %c0_i32, %c0_i32_0 : i32, i32
  }
  func.func @transform_33(%arg0: i32) -> (i32, i32) {
    %c0_i32 = arith.constant 0 : i32
    %c0_i32_0 = arith.constant 0 : i32
    %c0_i32_1 = arith.constant 0 : i32
    return %c0_i32, %c0_i32_0 : i32, i32
  }
  func.func @transform_34(%arg0: i32) -> (i32, i32, i32) {
    %c0_i32 = arith.constant 0 : i32
    %c0_i32_0 = arith.constant 0 : i32
    %c0_i32_1 = arith.constant 0 : i32
    return %arg0, %c0_i32, %c0_i32_0 : i32, i32, i32
  }
}

module attributes {stable_mosaic.version = 11 : i64} {
  func.func @_decoder_kernel(%arg0: memref<12x128xbf16, #tpu.memory_space<vmem>>, %arg1: memref<14x1xi32, #tpu.memory_space<vmem>>, %arg2: memref<14x1xi32, #tpu.memory_space<vmem>>, %arg3: memref<2x7xi32, #tpu.memory_space<vmem>>, %arg4: memref<14x128xf32, #tpu.memory_space<vmem>>, %arg5: memref<64x128xbf16, #tpu.memory_space<vmem>>, %arg6: memref<1x128xf32, #tpu.memory_space<vmem>>, %arg7: memref<1x128xf32, #tpu.memory_space<vmem>>, %arg8: memref<1x128xf32, #tpu.memory_space<vmem>>, %arg9: memref<1x128xf32, #tpu.memory_space<vmem>>, %arg10: memref<128x384xbf16, #tpu.memory_space<vmem>>, %arg11: memref<1x384xf32, #tpu.memory_space<vmem>>, %arg12: memref<128x128xbf16, #tpu.memory_space<vmem>>, %arg13: memref<1x128xf32, #tpu.memory_space<vmem>>, %arg14: memref<1x128xf32, #tpu.memory_space<vmem>>, %arg15: memref<1x128xf32, #tpu.memory_space<vmem>>, %arg16: memref<128x128xbf16, #tpu.memory_space<vmem>>, %arg17: memref<1x128xf32, #tpu.memory_space<vmem>>, %arg18: memref<128x256xbf16, #tpu.memory_space<vmem>>, %arg19: memref<1x256xf32, #tpu.memory_space<vmem>>, %arg20: memref<128x128xbf16, #tpu.memory_space<vmem>>, %arg21: memref<1x128xf32, #tpu.memory_space<vmem>>, %arg22: memref<1x128xf32, #tpu.memory_space<vmem>>, %arg23: memref<1x128xf32, #tpu.memory_space<vmem>>, %arg24: memref<128x256xbf16, #tpu.memory_space<vmem>>, %arg25: memref<1x256xf32, #tpu.memory_space<vmem>>, %arg26: memref<256x128xbf16, #tpu.memory_space<vmem>>, %arg27: memref<1x128xf32, #tpu.memory_space<vmem>>, %arg28: memref<1x128xf32, #tpu.memory_space<vmem>>, %arg29: memref<1x128xf32, #tpu.memory_space<vmem>>, %arg30: memref<128x384xbf16, #tpu.memory_space<vmem>>, %arg31: memref<1x384xf32, #tpu.memory_space<vmem>>, %arg32: memref<128x128xbf16, #tpu.memory_space<vmem>>, %arg33: memref<1x128xf32, #tpu.memory_space<vmem>>, %arg34: memref<1x128xf32, #tpu.memory_space<vmem>>, %arg35: memref<1x128xf32, #tpu.memory_space<vmem>>, %arg36: memref<128x128xbf16, #tpu.memory_space<vmem>>, %arg37: memref<1x128xf32, #tpu.memory_space<vmem>>, %arg38: memref<128x256xbf16, #tpu.memory_space<vmem>>, %arg39: memref<1x256xf32, #tpu.memory_space<vmem>>, %arg40: memref<128x128xbf16, #tpu.memory_space<vmem>>, %arg41: memref<1x128xf32, #tpu.memory_space<vmem>>, %arg42: memref<1x128xf32, #tpu.memory_space<vmem>>, %arg43: memref<1x128xf32, #tpu.memory_space<vmem>>, %arg44: memref<128x256xbf16, #tpu.memory_space<vmem>>, %arg45: memref<1x256xf32, #tpu.memory_space<vmem>>, %arg46: memref<256x128xbf16, #tpu.memory_space<vmem>>, %arg47: memref<1x128xf32, #tpu.memory_space<vmem>>, %arg48: memref<1x128xf32, #tpu.memory_space<vmem>>, %arg49: memref<1x128xf32, #tpu.memory_space<vmem>>, %arg50: memref<1x1xf32, #tpu.memory_space<vmem>>, %arg51: memref<14x128xf32, #tpu.memory_space<vmem>>) attributes {dimension_semantics = [], scalar_prefetch = 0 : i64, scratch_operands = 1 : i64, tpu.core_type = #tpu.core_type<tc>} {
    %c0 = arith.constant 0 : index
    %c0_0 = arith.constant 0 : index
    %0 = vector.load %arg5[%c0, %c0_0] : memref<64x128xbf16, #tpu.memory_space<vmem>>, vector<64x128xbf16>
    %1 = tpu.iota {dimensions = array<i32: 1>} : vector<14x64xi32>
    %c0_1 = arith.constant 0 : index
    %c0_2 = arith.constant 0 : index
    %2 = vector.load %arg1[%c0_1, %c0_2] : memref<14x1xi32, #tpu.memory_space<vmem>>, vector<14x1xi32>
    %3 = vector.broadcast %2 : vector<14x1xi32> to vector<14x64xi32>
    %4 = arith.cmpi eq, %1, %3 : vector<14x64xi32>
    %5 = arith.extui %4 : vector<14x64xi1> to vector<14x64xi32>
    %6 = arith.sitofp %5 : vector<14x64xi32> to vector<14x64xf32>
    %7 = arith.truncf %6 : vector<14x64xf32> to vector<14x64xbf16>
    %cst = arith.constant dense<0.000000e+00> : vector<14x128xf32>
    %8 = tpu.matmul %7, %0, %cst {dimension_numbers = #tpu.dot_dimension_numbers<[1], [0], [0], [1], [0, 0, 1, 1], [], []>} : vector<14x64xbf16>, vector<64x128xbf16>, vector<14x128xf32> -> vector<14x128xf32>
    %cst_3 = arith.constant 11.3137083 : f32
    %9 = vector.broadcast %cst_3 : f32 to vector<14x128xf32>
    %10 = arith.mulf %8, %9 : vector<14x128xf32>
    %c0_4 = arith.constant 0 : index
    %c0_5 = arith.constant 0 : index
    %11 = vector.load %arg4[%c0_4, %c0_5] : memref<14x128xf32, #tpu.memory_space<vmem>>, vector<14x128xf32>
    %12 = arith.addf %10, %11 : vector<14x128xf32>
    %c0_6 = arith.constant 0 : index
    %c0_7 = arith.constant 0 : index
    %13 = vector.load %arg6[%c0_6, %c0_7] : memref<1x128xf32, #tpu.memory_space<vmem>>, vector<1x128xf32>
    %c0_8 = arith.constant 0 : index
    %c0_9 = arith.constant 0 : index
    %14 = vector.load %arg7[%c0_8, %c0_9] : memref<1x128xf32, #tpu.memory_space<vmem>>, vector<1x128xf32>
    %cst_10 = arith.constant dense<0.000000e+00> : vector<14xf32>
    %15 = vector.multi_reduction <add>, %12, %cst_10 [1] : vector<14x128xf32> to vector<14xf32>
    %16 = vector.shape_cast %15 : vector<14xf32> to vector<14x1xf32>
    %cst_11 = arith.constant 1.280000e+02 : f32
    %17 = vector.broadcast %cst_11 : f32 to vector<14x1xf32>
    %18 = arith.divf %16, %17 : vector<14x1xf32>
    %19 = vector.broadcast %18 : vector<14x1xf32> to vector<14x128xf32>
    %20 = arith.subf %12, %19 : vector<14x128xf32>
    %21 = arith.mulf %20, %20 : vector<14x128xf32>
    %cst_12 = arith.constant dense<0.000000e+00> : vector<14xf32>
    %22 = vector.multi_reduction <add>, %21, %cst_12 [1] : vector<14x128xf32> to vector<14xf32>
    %23 = vector.shape_cast %22 : vector<14xf32> to vector<14x1xf32>
    %cst_13 = arith.constant 1.280000e+02 : f32
    %24 = vector.broadcast %cst_13 : f32 to vector<14x1xf32>
    %25 = arith.divf %23, %24 : vector<14x1xf32>
    %26 = vector.broadcast %18 : vector<14x1xf32> to vector<14x128xf32>
    %27 = arith.subf %12, %26 : vector<14x128xf32>
    %cst_14 = arith.constant 9.99999974E-6 : f32
    %28 = vector.broadcast %cst_14 : f32 to vector<14x1xf32>
    %29 = arith.addf %25, %28 : vector<14x1xf32>
    %30 = math.rsqrt %29 : vector<14x1xf32>
    %31 = vector.broadcast %30 : vector<14x1xf32> to vector<14x128xf32>
    %32 = arith.mulf %27, %31 : vector<14x128xf32>
    %33 = vector.broadcast %13 : vector<1x128xf32> to vector<14x128xf32>
    %34 = arith.mulf %32, %33 : vector<14x128xf32>
    %35 = vector.broadcast %14 : vector<1x128xf32> to vector<14x128xf32>
    %36 = arith.addf %34, %35 : vector<14x128xf32>
    %c0_15 = arith.constant 0 : index
    %c0_16 = arith.constant 0 : index
    %37 = vector.load %arg0[%c0_15, %c0_16] : memref<12x128xbf16, #tpu.memory_space<vmem>>, vector<12x128xbf16>
    %38 = tpu.iota {dimensions = array<i32: 0>} : vector<7x7xi32>
    %39 = tpu.iota {dimensions = array<i32: 1>} : vector<7x7xi32>
    %40 = arith.cmpi sge, %38, %39 : vector<7x7xi32>
    %c0_17 = arith.constant 0 : index
    %c0_18 = arith.constant 0 : index
    %41 = vector.load %arg3[%c0_17, %c0_18] : memref<2x7xi32, #tpu.memory_space<vmem>>, vector<2x7xi32>
    %c0_i32 = arith.constant 0 : i32
    %42 = vector.broadcast %c0_i32 : i32 to vector<2x7xi32>
    %43 = arith.cmpi sgt, %41, %42 : vector<2x7xi32>
    %c0_19 = arith.constant 0 : index
    %c0_20 = arith.constant 0 : index
    %44 = vector.load %arg8[%c0_19, %c0_20] : memref<1x128xf32, #tpu.memory_space<vmem>>, vector<1x128xf32>
    %c0_21 = arith.constant 0 : index
    %c0_22 = arith.constant 0 : index
    %45 = vector.load %arg9[%c0_21, %c0_22] : memref<1x128xf32, #tpu.memory_space<vmem>>, vector<1x128xf32>
    %cst_23 = arith.constant dense<0.000000e+00> : vector<14xf32>
    %46 = vector.multi_reduction <add>, %36, %cst_23 [1] : vector<14x128xf32> to vector<14xf32>
    %47 = vector.shape_cast %46 : vector<14xf32> to vector<14x1xf32>
    %cst_24 = arith.constant 1.280000e+02 : f32
    %48 = vector.broadcast %cst_24 : f32 to vector<14x1xf32>
    %49 = arith.divf %47, %48 : vector<14x1xf32>
    %50 = vector.broadcast %49 : vector<14x1xf32> to vector<14x128xf32>
    %51 = arith.subf %36, %50 : vector<14x128xf32>
    %52 = arith.mulf %51, %51 : vector<14x128xf32>
    %cst_25 = arith.constant dense<0.000000e+00> : vector<14xf32>
    %53 = vector.multi_reduction <add>, %52, %cst_25 [1] : vector<14x128xf32> to vector<14xf32>
    %54 = vector.shape_cast %53 : vector<14xf32> to vector<14x1xf32>
    %cst_26 = arith.constant 1.280000e+02 : f32
    %55 = vector.broadcast %cst_26 : f32 to vector<14x1xf32>
    %56 = arith.divf %54, %55 : vector<14x1xf32>
    %57 = vector.broadcast %49 : vector<14x1xf32> to vector<14x128xf32>
    %58 = arith.subf %36, %57 : vector<14x128xf32>
    %cst_27 = arith.constant 9.99999974E-6 : f32
    %59 = vector.broadcast %cst_27 : f32 to vector<14x1xf32>
    %60 = arith.addf %56, %59 : vector<14x1xf32>
    %61 = math.rsqrt %60 : vector<14x1xf32>
    %62 = vector.broadcast %61 : vector<14x1xf32> to vector<14x128xf32>
    %63 = arith.mulf %58, %62 : vector<14x128xf32>
    %64 = vector.broadcast %44 : vector<1x128xf32> to vector<14x128xf32>
    %65 = arith.mulf %63, %64 : vector<14x128xf32>
    %66 = vector.broadcast %45 : vector<1x128xf32> to vector<14x128xf32>
    %67 = arith.addf %65, %66 : vector<14x128xf32>
    %c0_28 = arith.constant 0 : index
    %c0_29 = arith.constant 0 : index
    %68 = vector.load %arg10[%c0_28, %c0_29] : memref<128x384xbf16, #tpu.memory_space<vmem>>, vector<128x384xbf16>
    %69 = arith.truncf %67 : vector<14x128xf32> to vector<14x128xbf16>
    %cst_30 = arith.constant dense<0.000000e+00> : vector<14x384xf32>
    %70 = tpu.matmul %69, %68, %cst_30 {dimension_numbers = #tpu.dot_dimension_numbers<[1], [0], [0], [1], [0, 0, 1, 1], [], []>} : vector<14x128xbf16>, vector<128x384xbf16>, vector<14x384xf32> -> vector<14x384xf32>
    %c0_31 = arith.constant 0 : index
    %c0_32 = arith.constant 0 : index
    %71 = vector.load %arg11[%c0_31, %c0_32] : memref<1x384xf32, #tpu.memory_space<vmem>>, vector<1x384xf32>
    %72 = vector.broadcast %71 : vector<1x384xf32> to vector<14x384xf32>
    %73 = arith.addf %70, %72 : vector<14x384xf32>
    %74 = vector.extract_strided_slice %43 {offsets = [0, 0], sizes = [1, 7], strides = [1, 1]} : vector<2x7xi1> to vector<1x7xi1>
    %75 = vector.broadcast %74 : vector<1x7xi1> to vector<7x7xi1>
    %76 = arith.andi %40, %75 : vector<7x7xi1>
    %cst_33 = arith.constant 0.000000e+00 : f32
    %cst_34 = arith.constant -1.000000e+09 : f32
    %77 = vector.broadcast %cst_33 : f32 to vector<7x7xf32>
    %78 = vector.broadcast %cst_34 : f32 to vector<7x7xf32>
    %79 = arith.select %76, %77, %78 : vector<7x7xi1>, vector<7x7xf32>
    %80 = vector.extract_strided_slice %73 {offsets = [0, 0], sizes = [7, 128], strides = [1, 1]} : vector<14x384xf32> to vector<7x128xf32>
    %81 = vector.extract_strided_slice %73 {offsets = [0, 128], sizes = [7, 128], strides = [1, 1]} : vector<14x384xf32> to vector<7x128xf32>
    %82 = vector.extract_strided_slice %73 {offsets = [0, 256], sizes = [7, 128], strides = [1, 1]} : vector<14x384xf32> to vector<7x128xf32>
    %83 = vector.extract_strided_slice %80 {offsets = [0, 0], sizes = [7, 64], strides = [1, 1]} : vector<7x128xf32> to vector<7x64xf32>
    %84 = vector.extract_strided_slice %81 {offsets = [0, 0], sizes = [7, 64], strides = [1, 1]} : vector<7x128xf32> to vector<7x64xf32>
    %85 = arith.truncf %83 : vector<7x64xf32> to vector<7x64xbf16>
    %86 = arith.truncf %84 : vector<7x64xf32> to vector<7x64xbf16>
    %cst_35 = arith.constant dense<0.000000e+00> : vector<7x7xf32>
    %87 = tpu.matmul %85, %86, %cst_35 {dimension_numbers = #tpu.dot_dimension_numbers<[1], [1], [0], [0], [0, 0, 1, 0], [], []>} : vector<7x64xbf16>, vector<7x64xbf16>, vector<7x7xf32> -> vector<7x7xf32>
    %cst_36 = arith.constant 1.250000e-01 : f32
    %88 = vector.broadcast %cst_36 : f32 to vector<7x7xf32>
    %89 = arith.mulf %87, %88 : vector<7x7xf32>
    %90 = arith.addf %89, %79 : vector<7x7xf32>
    %cst_37 = arith.constant dense<0xFF800000> : vector<7xf32>
    %91 = vector.multi_reduction <maximumf>, %90, %cst_37 [1] : vector<7x7xf32> to vector<7xf32>
    %92 = vector.shape_cast %91 : vector<7xf32> to vector<7x1xf32>
    %93 = vector.broadcast %92 : vector<7x1xf32> to vector<7x7xf32>
    %94 = arith.subf %90, %93 : vector<7x7xf32>
    %95 = math.exp %94 : vector<7x7xf32>
    %cst_38 = arith.constant dense<0.000000e+00> : vector<7xf32>
    %96 = vector.multi_reduction <add>, %95, %cst_38 [1] : vector<7x7xf32> to vector<7xf32>
    %97 = vector.shape_cast %96 : vector<7xf32> to vector<7x1xf32>
    %98 = tpu.reciprocal %97 {approx = true} : vector<7x1xf32> -> vector<7x1xf32>
    %99 = vector.broadcast %98 : vector<7x1xf32> to vector<7x7xf32>
    %100 = arith.mulf %95, %99 : vector<7x7xf32>
    %101 = vector.extract_strided_slice %82 {offsets = [0, 0], sizes = [7, 64], strides = [1, 1]} : vector<7x128xf32> to vector<7x64xf32>
    %102 = arith.truncf %100 : vector<7x7xf32> to vector<7x7xbf16>
    %103 = arith.truncf %101 : vector<7x64xf32> to vector<7x64xbf16>
    %cst_39 = arith.constant dense<0.000000e+00> : vector<7x64xf32>
    %104 = tpu.matmul %102, %103, %cst_39 {dimension_numbers = #tpu.dot_dimension_numbers<[1], [0], [0], [1], [0, 0, 1, 1], [], []>} : vector<7x7xbf16>, vector<7x64xbf16>, vector<7x64xf32> -> vector<7x64xf32>
    %c0_40 = arith.constant 0 : index
    %c0_41 = arith.constant 0 : index
    %105 = vector.load %arg51[%c0_40, %c0_41] : memref<14x128xf32, #tpu.memory_space<vmem>>, vector<7x64xf32>
    tpu.vector_store %arg51[%c0_40, %c0_41], %104 {strides = array<i32>} : memref<14x128xf32, #tpu.memory_space<vmem>>, vector<7x64xf32>,
    %106 = vector.extract_strided_slice %80 {offsets = [0, 64], sizes = [7, 64], strides = [1, 1]} : vector<7x128xf32> to vector<7x64xf32>
    %107 = vector.extract_strided_slice %81 {offsets = [0, 64], sizes = [7, 64], strides = [1, 1]} : vector<7x128xf32> to vector<7x64xf32>
    %108 = arith.truncf %106 : vector<7x64xf32> to vector<7x64xbf16>
    %109 = arith.truncf %107 : vector<7x64xf32> to vector<7x64xbf16>
    %cst_42 = arith.constant dense<0.000000e+00> : vector<7x7xf32>
    %110 = tpu.matmul %108, %109, %cst_42 {dimension_numbers = #tpu.dot_dimension_numbers<[1], [1], [0], [0], [0, 0, 1, 0], [], []>} : vector<7x64xbf16>, vector<7x64xbf16>, vector<7x7xf32> -> vector<7x7xf32>
    %cst_43 = arith.constant 1.250000e-01 : f32
    %111 = vector.broadcast %cst_43 : f32 to vector<7x7xf32>
    %112 = arith.mulf %110, %111 : vector<7x7xf32>
    %113 = arith.addf %112, %79 : vector<7x7xf32>
    %cst_44 = arith.constant dense<0xFF800000> : vector<7xf32>
    %114 = vector.multi_reduction <maximumf>, %113, %cst_44 [1] : vector<7x7xf32> to vector<7xf32>
    %115 = vector.shape_cast %114 : vector<7xf32> to vector<7x1xf32>
    %116 = vector.broadcast %115 : vector<7x1xf32> to vector<7x7xf32>
    %117 = arith.subf %113, %116 : vector<7x7xf32>
    %118 = math.exp %117 : vector<7x7xf32>
    %cst_45 = arith.constant dense<0.000000e+00> : vector<7xf32>
    %119 = vector.multi_reduction <add>, %118, %cst_45 [1] : vector<7x7xf32> to vector<7xf32>
    %120 = vector.shape_cast %119 : vector<7xf32> to vector<7x1xf32>
    %121 = tpu.reciprocal %120 {approx = true} : vector<7x1xf32> -> vector<7x1xf32>
    %122 = vector.broadcast %121 : vector<7x1xf32> to vector<7x7xf32>
    %123 = arith.mulf %118, %122 : vector<7x7xf32>
    %124 = vector.extract_strided_slice %82 {offsets = [0, 64], sizes = [7, 64], strides = [1, 1]} : vector<7x128xf32> to vector<7x64xf32>
    %125 = arith.truncf %123 : vector<7x7xf32> to vector<7x7xbf16>
    %126 = arith.truncf %124 : vector<7x64xf32> to vector<7x64xbf16>
    %cst_46 = arith.constant dense<0.000000e+00> : vector<7x64xf32>
    %127 = tpu.matmul %125, %126, %cst_46 {dimension_numbers = #tpu.dot_dimension_numbers<[1], [0], [0], [1], [0, 0, 1, 1], [], []>} : vector<7x7xbf16>, vector<7x64xbf16>, vector<7x64xf32> -> vector<7x64xf32>
    %c0_47 = arith.constant 0 : index
    %c64 = arith.constant 64 : index
    %128 = vector.load %arg51[%c0_47, %c64] : memref<14x128xf32, #tpu.memory_space<vmem>>, vector<7x64xf32>
    tpu.vector_store %arg51[%c0_47, %c64], %127 {strides = array<i32>} : memref<14x128xf32, #tpu.memory_space<vmem>>, vector<7x64xf32>,
    %129 = vector.extract_strided_slice %43 {offsets = [1, 0], sizes = [1, 7], strides = [1, 1]} : vector<2x7xi1> to vector<1x7xi1>
    %130 = vector.broadcast %129 : vector<1x7xi1> to vector<7x7xi1>
    %131 = arith.andi %40, %130 : vector<7x7xi1>
    %cst_48 = arith.constant 0.000000e+00 : f32
    %cst_49 = arith.constant -1.000000e+09 : f32
    %132 = vector.broadcast %cst_48 : f32 to vector<7x7xf32>
    %133 = vector.broadcast %cst_49 : f32 to vector<7x7xf32>
    %134 = arith.select %131, %132, %133 : vector<7x7xi1>, vector<7x7xf32>
    %135 = vector.extract_strided_slice %73 {offsets = [7, 0], sizes = [7, 128], strides = [1, 1]} : vector<14x384xf32> to vector<7x128xf32>
    %136 = vector.extract_strided_slice %73 {offsets = [7, 128], sizes = [7, 128], strides = [1, 1]} : vector<14x384xf32> to vector<7x128xf32>
    %137 = vector.extract_strided_slice %73 {offsets = [7, 256], sizes = [7, 128], strides = [1, 1]} : vector<14x384xf32> to vector<7x128xf32>
    %138 = vector.extract_strided_slice %135 {offsets = [0, 0], sizes = [7, 64], strides = [1, 1]} : vector<7x128xf32> to vector<7x64xf32>
    %139 = vector.extract_strided_slice %136 {offsets = [0, 0], sizes = [7, 64], strides = [1, 1]} : vector<7x128xf32> to vector<7x64xf32>
    %140 = arith.truncf %138 : vector<7x64xf32> to vector<7x64xbf16>
    %141 = arith.truncf %139 : vector<7x64xf32> to vector<7x64xbf16>
    %cst_50 = arith.constant dense<0.000000e+00> : vector<7x7xf32>
    %142 = tpu.matmul %140, %141, %cst_50 {dimension_numbers = #tpu.dot_dimension_numbers<[1], [1], [0], [0], [0, 0, 1, 0], [], []>} : vector<7x64xbf16>, vector<7x64xbf16>, vector<7x7xf32> -> vector<7x7xf32>
    %cst_51 = arith.constant 1.250000e-01 : f32
    %143 = vector.broadcast %cst_51 : f32 to vector<7x7xf32>
    %144 = arith.mulf %142, %143 : vector<7x7xf32>
    %145 = arith.addf %144, %134 : vector<7x7xf32>
    %cst_52 = arith.constant dense<0xFF800000> : vector<7xf32>
    %146 = vector.multi_reduction <maximumf>, %145, %cst_52 [1] : vector<7x7xf32> to vector<7xf32>
    %147 = vector.shape_cast %146 : vector<7xf32> to vector<7x1xf32>
    %148 = vector.broadcast %147 : vector<7x1xf32> to vector<7x7xf32>
    %149 = arith.subf %145, %148 : vector<7x7xf32>
    %150 = math.exp %149 : vector<7x7xf32>
    %cst_53 = arith.constant dense<0.000000e+00> : vector<7xf32>
    %151 = vector.multi_reduction <add>, %150, %cst_53 [1] : vector<7x7xf32> to vector<7xf32>
    %152 = vector.shape_cast %151 : vector<7xf32> to vector<7x1xf32>
    %153 = tpu.reciprocal %152 {approx = true} : vector<7x1xf32> -> vector<7x1xf32>
    %154 = vector.broadcast %153 : vector<7x1xf32> to vector<7x7xf32>
    %155 = arith.mulf %150, %154 : vector<7x7xf32>
    %156 = vector.extract_strided_slice %137 {offsets = [0, 0], sizes = [7, 64], strides = [1, 1]} : vector<7x128xf32> to vector<7x64xf32>
    %157 = arith.truncf %155 : vector<7x7xf32> to vector<7x7xbf16>
    %158 = arith.truncf %156 : vector<7x64xf32> to vector<7x64xbf16>
    %cst_54 = arith.constant dense<0.000000e+00> : vector<7x64xf32>
    %159 = tpu.matmul %157, %158, %cst_54 {dimension_numbers = #tpu.dot_dimension_numbers<[1], [0], [0], [1], [0, 0, 1, 1], [], []>} : vector<7x7xbf16>, vector<7x64xbf16>, vector<7x64xf32> -> vector<7x64xf32>
    %c7 = arith.constant 7 : index
    %c0_55 = arith.constant 0 : index
    %160 = vector.load %arg51[%c7, %c0_55] : memref<14x128xf32, #tpu.memory_space<vmem>>, vector<7x64xf32>
    tpu.vector_store %arg51[%c7, %c0_55], %159 {strides = array<i32>} : memref<14x128xf32, #tpu.memory_space<vmem>>, vector<7x64xf32>,
    %161 = vector.extract_strided_slice %135 {offsets = [0, 64], sizes = [7, 64], strides = [1, 1]} : vector<7x128xf32> to vector<7x64xf32>
    %162 = vector.extract_strided_slice %136 {offsets = [0, 64], sizes = [7, 64], strides = [1, 1]} : vector<7x128xf32> to vector<7x64xf32>
    %163 = arith.truncf %161 : vector<7x64xf32> to vector<7x64xbf16>
    %164 = arith.truncf %162 : vector<7x64xf32> to vector<7x64xbf16>
    %cst_56 = arith.constant dense<0.000000e+00> : vector<7x7xf32>
    %165 = tpu.matmul %163, %164, %cst_56 {dimension_numbers = #tpu.dot_dimension_numbers<[1], [1], [0], [0], [0, 0, 1, 0], [], []>} : vector<7x64xbf16>, vector<7x64xbf16>, vector<7x7xf32> -> vector<7x7xf32>
    %cst_57 = arith.constant 1.250000e-01 : f32
    %166 = vector.broadcast %cst_57 : f32 to vector<7x7xf32>
    %167 = arith.mulf %165, %166 : vector<7x7xf32>
    %168 = arith.addf %167, %134 : vector<7x7xf32>
    %cst_58 = arith.constant dense<0xFF800000> : vector<7xf32>
    %169 = vector.multi_reduction <maximumf>, %168, %cst_58 [1] : vector<7x7xf32> to vector<7xf32>
    %170 = vector.shape_cast %169 : vector<7xf32> to vector<7x1xf32>
    %171 = vector.broadcast %170 : vector<7x1xf32> to vector<7x7xf32>
    %172 = arith.subf %168, %171 : vector<7x7xf32>
    %173 = math.exp %172 : vector<7x7xf32>
    %cst_59 = arith.constant dense<0.000000e+00> : vector<7xf32>
    %174 = vector.multi_reduction <add>, %173, %cst_59 [1] : vector<7x7xf32> to vector<7xf32>
    %175 = vector.shape_cast %174 : vector<7xf32> to vector<7x1xf32>
    %176 = tpu.reciprocal %175 {approx = true} : vector<7x1xf32> -> vector<7x1xf32>
    %177 = vector.broadcast %176 : vector<7x1xf32> to vector<7x7xf32>
    %178 = arith.mulf %173, %177 : vector<7x7xf32>
    %179 = vector.extract_strided_slice %137 {offsets = [0, 64], sizes = [7, 64], strides = [1, 1]} : vector<7x128xf32> to vector<7x64xf32>
    %180 = arith.truncf %178 : vector<7x7xf32> to vector<7x7xbf16>
    %181 = arith.truncf %179 : vector<7x64xf32> to vector<7x64xbf16>
    %cst_60 = arith.constant dense<0.000000e+00> : vector<7x64xf32>
    %182 = tpu.matmul %180, %181, %cst_60 {dimension_numbers = #tpu.dot_dimension_numbers<[1], [0], [0], [1], [0, 0, 1, 1], [], []>} : vector<7x7xbf16>, vector<7x64xbf16>, vector<7x64xf32> -> vector<7x64xf32>
    %c7_61 = arith.constant 7 : index
    %c64_62 = arith.constant 64 : index
    %183 = vector.load %arg51[%c7_61, %c64_62] : memref<14x128xf32, #tpu.memory_space<vmem>>, vector<7x64xf32>
    tpu.vector_store %arg51[%c7_61, %c64_62], %182 {strides = array<i32>} : memref<14x128xf32, #tpu.memory_space<vmem>>, vector<7x64xf32>,
    %c0_63 = arith.constant 0 : index
    %c0_64 = arith.constant 0 : index
    %184 = vector.load %arg51[%c0_63, %c0_64] : memref<14x128xf32, #tpu.memory_space<vmem>>, vector<14x128xf32>
    %c0_65 = arith.constant 0 : index
    %c0_66 = arith.constant 0 : index
    %185 = vector.load %arg12[%c0_65, %c0_66] : memref<128x128xbf16, #tpu.memory_space<vmem>>, vector<128x128xbf16>
    %186 = arith.truncf %184 : vector<14x128xf32> to vector<14x128xbf16>
    %cst_67 = arith.constant dense<0.000000e+00> : vector<14x128xf32>
    %187 = tpu.matmul %186, %185, %cst_67 {dimension_numbers = #tpu.dot_dimension_numbers<[1], [0], [0], [1], [0, 0, 1, 1], [], []>} : vector<14x128xbf16>, vector<128x128xbf16>, vector<14x128xf32> -> vector<14x128xf32>
    %188 = arith.addf %36, %187 : vector<14x128xf32>
    %c0_68 = arith.constant 0 : index
    %c0_69 = arith.constant 0 : index
    %189 = vector.load %arg13[%c0_68, %c0_69] : memref<1x128xf32, #tpu.memory_space<vmem>>, vector<1x128xf32>
    %190 = vector.broadcast %189 : vector<1x128xf32> to vector<14x128xf32>
    %191 = arith.addf %188, %190 : vector<14x128xf32>
    %c0_70 = arith.constant 0 : index
    %c0_71 = arith.constant 0 : index
    %192 = vector.load %arg14[%c0_70, %c0_71] : memref<1x128xf32, #tpu.memory_space<vmem>>, vector<1x128xf32>
    %c0_72 = arith.constant 0 : index
    %c0_73 = arith.constant 0 : index
    %193 = vector.load %arg15[%c0_72, %c0_73] : memref<1x128xf32, #tpu.memory_space<vmem>>, vector<1x128xf32>
    %cst_74 = arith.constant dense<0.000000e+00> : vector<14xf32>
    %194 = vector.multi_reduction <add>, %191, %cst_74 [1] : vector<14x128xf32> to vector<14xf32>
    %195 = vector.shape_cast %194 : vector<14xf32> to vector<14x1xf32>
    %cst_75 = arith.constant 1.280000e+02 : f32
    %196 = vector.broadcast %cst_75 : f32 to vector<14x1xf32>
    %197 = arith.divf %195, %196 : vector<14x1xf32>
    %198 = vector.broadcast %197 : vector<14x1xf32> to vector<14x128xf32>
    %199 = arith.subf %191, %198 : vector<14x128xf32>
    %200 = arith.mulf %199, %199 : vector<14x128xf32>
    %cst_76 = arith.constant dense<0.000000e+00> : vector<14xf32>
    %201 = vector.multi_reduction <add>, %200, %cst_76 [1] : vector<14x128xf32> to vector<14xf32>
    %202 = vector.shape_cast %201 : vector<14xf32> to vector<14x1xf32>
    %cst_77 = arith.constant 1.280000e+02 : f32
    %203 = vector.broadcast %cst_77 : f32 to vector<14x1xf32>
    %204 = arith.divf %202, %203 : vector<14x1xf32>
    %205 = vector.broadcast %197 : vector<14x1xf32> to vector<14x128xf32>
    %206 = arith.subf %191, %205 : vector<14x128xf32>
    %cst_78 = arith.constant 9.99999974E-6 : f32
    %207 = vector.broadcast %cst_78 : f32 to vector<14x1xf32>
    %208 = arith.addf %204, %207 : vector<14x1xf32>
    %209 = math.rsqrt %208 : vector<14x1xf32>
    %210 = vector.broadcast %209 : vector<14x1xf32> to vector<14x128xf32>
    %211 = arith.mulf %206, %210 : vector<14x128xf32>
    %212 = vector.broadcast %192 : vector<1x128xf32> to vector<14x128xf32>
    %213 = arith.mulf %211, %212 : vector<14x128xf32>
    %214 = vector.broadcast %193 : vector<1x128xf32> to vector<14x128xf32>
    %215 = arith.addf %213, %214 : vector<14x128xf32>
    %c0_79 = arith.constant 0 : index
    %c0_80 = arith.constant 0 : index
    %216 = vector.load %arg16[%c0_79, %c0_80] : memref<128x128xbf16, #tpu.memory_space<vmem>>, vector<128x128xbf16>
    %217 = arith.truncf %215 : vector<14x128xf32> to vector<14x128xbf16>
    %cst_81 = arith.constant dense<0.000000e+00> : vector<14x128xf32>
    %218 = tpu.matmul %217, %216, %cst_81 {dimension_numbers = #tpu.dot_dimension_numbers<[1], [0], [0], [1], [0, 0, 1, 1], [], []>} : vector<14x128xbf16>, vector<128x128xbf16>, vector<14x128xf32> -> vector<14x128xf32>
    %c0_82 = arith.constant 0 : index
    %c0_83 = arith.constant 0 : index
    %219 = vector.load %arg17[%c0_82, %c0_83] : memref<1x128xf32, #tpu.memory_space<vmem>>, vector<1x128xf32>
    %220 = vector.broadcast %219 : vector<1x128xf32> to vector<14x128xf32>
    %221 = arith.addf %218, %220 : vector<14x128xf32>
    %c0_84 = arith.constant 0 : index
    %c0_85 = arith.constant 0 : index
    %222 = vector.load %arg18[%c0_84, %c0_85] : memref<128x256xbf16, #tpu.memory_space<vmem>>, vector<128x256xbf16>
    %cst_86 = arith.constant dense<0.000000e+00> : vector<12x256xf32>
    %223 = tpu.matmul %37, %222, %cst_86 {dimension_numbers = #tpu.dot_dimension_numbers<[1], [0], [0], [1], [0, 0, 1, 1], [], []>} : vector<12x128xbf16>, vector<128x256xbf16>, vector<12x256xf32> -> vector<12x256xf32>
    %c0_87 = arith.constant 0 : index
    %c0_88 = arith.constant 0 : index
    %224 = vector.load %arg19[%c0_87, %c0_88] : memref<1x256xf32, #tpu.memory_space<vmem>>, vector<1x256xf32>
    %225 = vector.broadcast %224 : vector<1x256xf32> to vector<12x256xf32>
    %226 = arith.addf %223, %225 : vector<12x256xf32>
    %227 = vector.extract_strided_slice %221 {offsets = [0, 0], sizes = [7, 128], strides = [1, 1]} : vector<14x128xf32> to vector<7x128xf32>
    %228 = vector.extract_strided_slice %226 {offsets = [0, 0], sizes = [6, 128], strides = [1, 1]} : vector<12x256xf32> to vector<6x128xf32>
    %229 = vector.extract_strided_slice %226 {offsets = [0, 128], sizes = [6, 128], strides = [1, 1]} : vector<12x256xf32> to vector<6x128xf32>
    %230 = vector.extract_strided_slice %227 {offsets = [0, 0], sizes = [7, 64], strides = [1, 1]} : vector<7x128xf32> to vector<7x64xf32>
    %231 = vector.extract_strided_slice %228 {offsets = [0, 0], sizes = [6, 64], strides = [1, 1]} : vector<6x128xf32> to vector<6x64xf32>
    %232 = arith.truncf %230 : vector<7x64xf32> to vector<7x64xbf16>
    %233 = arith.truncf %231 : vector<6x64xf32> to vector<6x64xbf16>
    %cst_89 = arith.constant dense<0.000000e+00> : vector<7x6xf32>
    %234 = tpu.matmul %232, %233, %cst_89 {dimension_numbers = #tpu.dot_dimension_numbers<[1], [1], [0], [0], [0, 0, 1, 0], [], []>} : vector<7x64xbf16>, vector<6x64xbf16>, vector<7x6xf32> -> vector<7x6xf32>
    %cst_90 = arith.constant 1.250000e-01 : f32
    %235 = vector.broadcast %cst_90 : f32 to vector<7x6xf32>
    %236 = arith.mulf %234, %235 : vector<7x6xf32>
    %cst_91 = arith.constant dense<0xFF800000> : vector<7xf32>
    %237 = vector.multi_reduction <maximumf>, %236, %cst_91 [1] : vector<7x6xf32> to vector<7xf32>
    %238 = vector.shape_cast %237 : vector<7xf32> to vector<7x1xf32>
    %239 = vector.broadcast %238 : vector<7x1xf32> to vector<7x6xf32>
    %240 = arith.subf %236, %239 : vector<7x6xf32>
    %241 = math.exp %240 : vector<7x6xf32>
    %cst_92 = arith.constant dense<0.000000e+00> : vector<7xf32>
    %242 = vector.multi_reduction <add>, %241, %cst_92 [1] : vector<7x6xf32> to vector<7xf32>
    %243 = vector.shape_cast %242 : vector<7xf32> to vector<7x1xf32>
    %244 = tpu.reciprocal %243 {approx = true} : vector<7x1xf32> -> vector<7x1xf32>
    %245 = vector.broadcast %244 : vector<7x1xf32> to vector<7x6xf32>
    %246 = arith.mulf %241, %245 : vector<7x6xf32>
    %247 = vector.extract_strided_slice %229 {offsets = [0, 0], sizes = [6, 64], strides = [1, 1]} : vector<6x128xf32> to vector<6x64xf32>
    %248 = arith.truncf %246 : vector<7x6xf32> to vector<7x6xbf16>
    %249 = arith.truncf %247 : vector<6x64xf32> to vector<6x64xbf16>
    %cst_93 = arith.constant dense<0.000000e+00> : vector<7x64xf32>
    %250 = tpu.matmul %248, %249, %cst_93 {dimension_numbers = #tpu.dot_dimension_numbers<[1], [0], [0], [1], [0, 0, 1, 1], [], []>} : vector<7x6xbf16>, vector<6x64xbf16>, vector<7x64xf32> -> vector<7x64xf32>
    %c0_94 = arith.constant 0 : index
    %c0_95 = arith.constant 0 : index
    %251 = vector.load %arg51[%c0_94, %c0_95] : memref<14x128xf32, #tpu.memory_space<vmem>>, vector<7x64xf32>
    tpu.vector_store %arg51[%c0_94, %c0_95], %250 {strides = array<i32>} : memref<14x128xf32, #tpu.memory_space<vmem>>, vector<7x64xf32>,
    %252 = vector.extract_strided_slice %227 {offsets = [0, 64], sizes = [7, 64], strides = [1, 1]} : vector<7x128xf32> to vector<7x64xf32>
    %253 = vector.extract_strided_slice %228 {offsets = [0, 64], sizes = [6, 64], strides = [1, 1]} : vector<6x128xf32> to vector<6x64xf32>
    %254 = arith.truncf %252 : vector<7x64xf32> to vector<7x64xbf16>
    %255 = arith.truncf %253 : vector<6x64xf32> to vector<6x64xbf16>
    %cst_96 = arith.constant dense<0.000000e+00> : vector<7x6xf32>
    %256 = tpu.matmul %254, %255, %cst_96 {dimension_numbers = #tpu.dot_dimension_numbers<[1], [1], [0], [0], [0, 0, 1, 0], [], []>} : vector<7x64xbf16>, vector<6x64xbf16>, vector<7x6xf32> -> vector<7x6xf32>
    %cst_97 = arith.constant 1.250000e-01 : f32
    %257 = vector.broadcast %cst_97 : f32 to vector<7x6xf32>
    %258 = arith.mulf %256, %257 : vector<7x6xf32>
    %cst_98 = arith.constant dense<0xFF800000> : vector<7xf32>
    %259 = vector.multi_reduction <maximumf>, %258, %cst_98 [1] : vector<7x6xf32> to vector<7xf32>
    %260 = vector.shape_cast %259 : vector<7xf32> to vector<7x1xf32>
    %261 = vector.broadcast %260 : vector<7x1xf32> to vector<7x6xf32>
    %262 = arith.subf %258, %261 : vector<7x6xf32>
    %263 = math.exp %262 : vector<7x6xf32>
    %cst_99 = arith.constant dense<0.000000e+00> : vector<7xf32>
    %264 = vector.multi_reduction <add>, %263, %cst_99 [1] : vector<7x6xf32> to vector<7xf32>
    %265 = vector.shape_cast %264 : vector<7xf32> to vector<7x1xf32>
    %266 = tpu.reciprocal %265 {approx = true} : vector<7x1xf32> -> vector<7x1xf32>
    %267 = vector.broadcast %266 : vector<7x1xf32> to vector<7x6xf32>
    %268 = arith.mulf %263, %267 : vector<7x6xf32>
    %269 = vector.extract_strided_slice %229 {offsets = [0, 64], sizes = [6, 64], strides = [1, 1]} : vector<6x128xf32> to vector<6x64xf32>
    %270 = arith.truncf %268 : vector<7x6xf32> to vector<7x6xbf16>
    %271 = arith.truncf %269 : vector<6x64xf32> to vector<6x64xbf16>
    %cst_100 = arith.constant dense<0.000000e+00> : vector<7x64xf32>
    %272 = tpu.matmul %270, %271, %cst_100 {dimension_numbers = #tpu.dot_dimension_numbers<[1], [0], [0], [1], [0, 0, 1, 1], [], []>} : vector<7x6xbf16>, vector<6x64xbf16>, vector<7x64xf32> -> vector<7x64xf32>
    %c0_101 = arith.constant 0 : index
    %c64_102 = arith.constant 64 : index
    %273 = vector.load %arg51[%c0_101, %c64_102] : memref<14x128xf32, #tpu.memory_space<vmem>>, vector<7x64xf32>
    tpu.vector_store %arg51[%c0_101, %c64_102], %272 {strides = array<i32>} : memref<14x128xf32, #tpu.memory_space<vmem>>, vector<7x64xf32>,
    %274 = vector.extract_strided_slice %221 {offsets = [7, 0], sizes = [7, 128], strides = [1, 1]} : vector<14x128xf32> to vector<7x128xf32>
    %275 = vector.extract_strided_slice %226 {offsets = [6, 0], sizes = [6, 128], strides = [1, 1]} : vector<12x256xf32> to vector<6x128xf32>
    %276 = vector.extract_strided_slice %226 {offsets = [6, 128], sizes = [6, 128], strides = [1, 1]} : vector<12x256xf32> to vector<6x128xf32>
    %277 = vector.extract_strided_slice %274 {offsets = [0, 0], sizes = [7, 64], strides = [1, 1]} : vector<7x128xf32> to vector<7x64xf32>
    %278 = vector.extract_strided_slice %275 {offsets = [0, 0], sizes = [6, 64], strides = [1, 1]} : vector<6x128xf32> to vector<6x64xf32>
    %279 = arith.truncf %277 : vector<7x64xf32> to vector<7x64xbf16>
    %280 = arith.truncf %278 : vector<6x64xf32> to vector<6x64xbf16>
    %cst_103 = arith.constant dense<0.000000e+00> : vector<7x6xf32>
    %281 = tpu.matmul %279, %280, %cst_103 {dimension_numbers = #tpu.dot_dimension_numbers<[1], [1], [0], [0], [0, 0, 1, 0], [], []>} : vector<7x64xbf16>, vector<6x64xbf16>, vector<7x6xf32> -> vector<7x6xf32>
    %cst_104 = arith.constant 1.250000e-01 : f32
    %282 = vector.broadcast %cst_104 : f32 to vector<7x6xf32>
    %283 = arith.mulf %281, %282 : vector<7x6xf32>
    %cst_105 = arith.constant dense<0xFF800000> : vector<7xf32>
    %284 = vector.multi_reduction <maximumf>, %283, %cst_105 [1] : vector<7x6xf32> to vector<7xf32>
    %285 = vector.shape_cast %284 : vector<7xf32> to vector<7x1xf32>
    %286 = vector.broadcast %285 : vector<7x1xf32> to vector<7x6xf32>
    %287 = arith.subf %283, %286 : vector<7x6xf32>
    %288 = math.exp %287 : vector<7x6xf32>
    %cst_106 = arith.constant dense<0.000000e+00> : vector<7xf32>
    %289 = vector.multi_reduction <add>, %288, %cst_106 [1] : vector<7x6xf32> to vector<7xf32>
    %290 = vector.shape_cast %289 : vector<7xf32> to vector<7x1xf32>
    %291 = tpu.reciprocal %290 {approx = true} : vector<7x1xf32> -> vector<7x1xf32>
    %292 = vector.broadcast %291 : vector<7x1xf32> to vector<7x6xf32>
    %293 = arith.mulf %288, %292 : vector<7x6xf32>
    %294 = vector.extract_strided_slice %276 {offsets = [0, 0], sizes = [6, 64], strides = [1, 1]} : vector<6x128xf32> to vector<6x64xf32>
    %295 = arith.truncf %293 : vector<7x6xf32> to vector<7x6xbf16>
    %296 = arith.truncf %294 : vector<6x64xf32> to vector<6x64xbf16>
    %cst_107 = arith.constant dense<0.000000e+00> : vector<7x64xf32>
    %297 = tpu.matmul %295, %296, %cst_107 {dimension_numbers = #tpu.dot_dimension_numbers<[1], [0], [0], [1], [0, 0, 1, 1], [], []>} : vector<7x6xbf16>, vector<6x64xbf16>, vector<7x64xf32> -> vector<7x64xf32>
    %c7_108 = arith.constant 7 : index
    %c0_109 = arith.constant 0 : index
    %298 = vector.load %arg51[%c7_108, %c0_109] : memref<14x128xf32, #tpu.memory_space<vmem>>, vector<7x64xf32>
    tpu.vector_store %arg51[%c7_108, %c0_109], %297 {strides = array<i32>} : memref<14x128xf32, #tpu.memory_space<vmem>>, vector<7x64xf32>,
    %299 = vector.extract_strided_slice %274 {offsets = [0, 64], sizes = [7, 64], strides = [1, 1]} : vector<7x128xf32> to vector<7x64xf32>
    %300 = vector.extract_strided_slice %275 {offsets = [0, 64], sizes = [6, 64], strides = [1, 1]} : vector<6x128xf32> to vector<6x64xf32>
    %301 = arith.truncf %299 : vector<7x64xf32> to vector<7x64xbf16>
    %302 = arith.truncf %300 : vector<6x64xf32> to vector<6x64xbf16>
    %cst_110 = arith.constant dense<0.000000e+00> : vector<7x6xf32>
    %303 = tpu.matmul %301, %302, %cst_110 {dimension_numbers = #tpu.dot_dimension_numbers<[1], [1], [0], [0], [0, 0, 1, 0], [], []>} : vector<7x64xbf16>, vector<6x64xbf16>, vector<7x6xf32> -> vector<7x6xf32>
    %cst_111 = arith.constant 1.250000e-01 : f32
    %304 = vector.broadcast %cst_111 : f32 to vector<7x6xf32>
    %305 = arith.mulf %303, %304 : vector<7x6xf32>
    %cst_112 = arith.constant dense<0xFF800000> : vector<7xf32>
    %306 = vector.multi_reduction <maximumf>, %305, %cst_112 [1] : vector<7x6xf32> to vector<7xf32>
    %307 = vector.shape_cast %306 : vector<7xf32> to vector<7x1xf32>
    %308 = vector.broadcast %307 : vector<7x1xf32> to vector<7x6xf32>
    %309 = arith.subf %305, %308 : vector<7x6xf32>
    %310 = math.exp %309 : vector<7x6xf32>
    %cst_113 = arith.constant dense<0.000000e+00> : vector<7xf32>
    %311 = vector.multi_reduction <add>, %310, %cst_113 [1] : vector<7x6xf32> to vector<7xf32>
    %312 = vector.shape_cast %311 : vector<7xf32> to vector<7x1xf32>
    %313 = tpu.reciprocal %312 {approx = true} : vector<7x1xf32> -> vector<7x1xf32>
    %314 = vector.broadcast %313 : vector<7x1xf32> to vector<7x6xf32>
    %315 = arith.mulf %310, %314 : vector<7x6xf32>
    %316 = vector.extract_strided_slice %276 {offsets = [0, 64], sizes = [6, 64], strides = [1, 1]} : vector<6x128xf32> to vector<6x64xf32>
    %317 = arith.truncf %315 : vector<7x6xf32> to vector<7x6xbf16>
    %318 = arith.truncf %316 : vector<6x64xf32> to vector<6x64xbf16>
    %cst_114 = arith.constant dense<0.000000e+00> : vector<7x64xf32>
    %319 = tpu.matmul %317, %318, %cst_114 {dimension_numbers = #tpu.dot_dimension_numbers<[1], [0], [0], [1], [0, 0, 1, 1], [], []>} : vector<7x6xbf16>, vector<6x64xbf16>, vector<7x64xf32> -> vector<7x64xf32>
    %c7_115 = arith.constant 7 : index
    %c64_116 = arith.constant 64 : index
    %320 = vector.load %arg51[%c7_115, %c64_116] : memref<14x128xf32, #tpu.memory_space<vmem>>, vector<7x64xf32>
    tpu.vector_store %arg51[%c7_115, %c64_116], %319 {strides = array<i32>} : memref<14x128xf32, #tpu.memory_space<vmem>>, vector<7x64xf32>,
    %c0_117 = arith.constant 0 : index
    %c0_118 = arith.constant 0 : index
    %321 = vector.load %arg51[%c0_117, %c0_118] : memref<14x128xf32, #tpu.memory_space<vmem>>, vector<14x128xf32>
    %c0_119 = arith.constant 0 : index
    %c0_120 = arith.constant 0 : index
    %322 = vector.load %arg20[%c0_119, %c0_120] : memref<128x128xbf16, #tpu.memory_space<vmem>>, vector<128x128xbf16>
    %323 = arith.truncf %321 : vector<14x128xf32> to vector<14x128xbf16>
    %cst_121 = arith.constant dense<0.000000e+00> : vector<14x128xf32>
    %324 = tpu.matmul %323, %322, %cst_121 {dimension_numbers = #tpu.dot_dimension_numbers<[1], [0], [0], [1], [0, 0, 1, 1], [], []>} : vector<14x128xbf16>, vector<128x128xbf16>, vector<14x128xf32> -> vector<14x128xf32>
    %325 = arith.addf %191, %324 : vector<14x128xf32>
    %c0_122 = arith.constant 0 : index
    %c0_123 = arith.constant 0 : index
    %326 = vector.load %arg21[%c0_122, %c0_123] : memref<1x128xf32, #tpu.memory_space<vmem>>, vector<1x128xf32>
    %327 = vector.broadcast %326 : vector<1x128xf32> to vector<14x128xf32>
    %328 = arith.addf %325, %327 : vector<14x128xf32>
    %c0_124 = arith.constant 0 : index
    %c0_125 = arith.constant 0 : index
    %329 = vector.load %arg22[%c0_124, %c0_125] : memref<1x128xf32, #tpu.memory_space<vmem>>, vector<1x128xf32>
    %c0_126 = arith.constant 0 : index
    %c0_127 = arith.constant 0 : index
    %330 = vector.load %arg23[%c0_126, %c0_127] : memref<1x128xf32, #tpu.memory_space<vmem>>, vector<1x128xf32>
    %cst_128 = arith.constant dense<0.000000e+00> : vector<14xf32>
    %331 = vector.multi_reduction <add>, %328, %cst_128 [1] : vector<14x128xf32> to vector<14xf32>
    %332 = vector.shape_cast %331 : vector<14xf32> to vector<14x1xf32>
    %cst_129 = arith.constant 1.280000e+02 : f32
    %333 = vector.broadcast %cst_129 : f32 to vector<14x1xf32>
    %334 = arith.divf %332, %333 : vector<14x1xf32>
    %335 = vector.broadcast %334 : vector<14x1xf32> to vector<14x128xf32>
    %336 = arith.subf %328, %335 : vector<14x128xf32>
    %337 = arith.mulf %336, %336 : vector<14x128xf32>
    %cst_130 = arith.constant dense<0.000000e+00> : vector<14xf32>
    %338 = vector.multi_reduction <add>, %337, %cst_130 [1] : vector<14x128xf32> to vector<14xf32>
    %339 = vector.shape_cast %338 : vector<14xf32> to vector<14x1xf32>
    %cst_131 = arith.constant 1.280000e+02 : f32
    %340 = vector.broadcast %cst_131 : f32 to vector<14x1xf32>
    %341 = arith.divf %339, %340 : vector<14x1xf32>
    %342 = vector.broadcast %334 : vector<14x1xf32> to vector<14x128xf32>
    %343 = arith.subf %328, %342 : vector<14x128xf32>
    %cst_132 = arith.constant 9.99999974E-6 : f32
    %344 = vector.broadcast %cst_132 : f32 to vector<14x1xf32>
    %345 = arith.addf %341, %344 : vector<14x1xf32>
    %346 = math.rsqrt %345 : vector<14x1xf32>
    %347 = vector.broadcast %346 : vector<14x1xf32> to vector<14x128xf32>
    %348 = arith.mulf %343, %347 : vector<14x128xf32>
    %349 = vector.broadcast %329 : vector<1x128xf32> to vector<14x128xf32>
    %350 = arith.mulf %348, %349 : vector<14x128xf32>
    %351 = vector.broadcast %330 : vector<1x128xf32> to vector<14x128xf32>
    %352 = arith.addf %350, %351 : vector<14x128xf32>
    %c0_133 = arith.constant 0 : index
    %c0_134 = arith.constant 0 : index
    %353 = vector.load %arg24[%c0_133, %c0_134] : memref<128x256xbf16, #tpu.memory_space<vmem>>, vector<128x256xbf16>
    %354 = arith.truncf %352 : vector<14x128xf32> to vector<14x128xbf16>
    %cst_135 = arith.constant dense<0.000000e+00> : vector<14x256xf32>
    %355 = tpu.matmul %354, %353, %cst_135 {dimension_numbers = #tpu.dot_dimension_numbers<[1], [0], [0], [1], [0, 0, 1, 1], [], []>} : vector<14x128xbf16>, vector<128x256xbf16>, vector<14x256xf32> -> vector<14x256xf32>
    %c0_136 = arith.constant 0 : index
    %c0_137 = arith.constant 0 : index
    %356 = vector.load %arg25[%c0_136, %c0_137] : memref<1x256xf32, #tpu.memory_space<vmem>>, vector<1x256xf32>
    %357 = vector.broadcast %356 : vector<1x256xf32> to vector<14x256xf32>
    %358 = arith.addf %355, %357 : vector<14x256xf32>
    %359 = arith.mulf %358, %358 : vector<14x256xf32>
    %360 = arith.mulf %358, %359 : vector<14x256xf32>
    %cst_138 = arith.constant 4.471500e-02 : f32
    %361 = vector.broadcast %cst_138 : f32 to vector<14x256xf32>
    %362 = arith.mulf %361, %360 : vector<14x256xf32>
    %363 = arith.addf %358, %362 : vector<14x256xf32>
    %cst_139 = arith.constant 0.797884583 : f32
    %364 = vector.broadcast %cst_139 : f32 to vector<14x256xf32>
    %365 = arith.mulf %364, %363 : vector<14x256xf32>
    %366 = math.tanh %365 : vector<14x256xf32>
    %cst_140 = arith.constant 1.000000e+00 : f32
    %367 = vector.broadcast %cst_140 : f32 to vector<14x256xf32>
    %368 = arith.addf %367, %366 : vector<14x256xf32>
    %cst_141 = arith.constant 5.000000e-01 : f32
    %369 = vector.broadcast %cst_141 : f32 to vector<14x256xf32>
    %370 = arith.mulf %369, %368 : vector<14x256xf32>
    %371 = arith.mulf %358, %370 : vector<14x256xf32>
    %c0_142 = arith.constant 0 : index
    %c0_143 = arith.constant 0 : index
    %372 = vector.load %arg26[%c0_142, %c0_143] : memref<256x128xbf16, #tpu.memory_space<vmem>>, vector<256x128xbf16>
    %373 = arith.truncf %371 : vector<14x256xf32> to vector<14x256xbf16>
    %cst_144 = arith.constant dense<0.000000e+00> : vector<14x128xf32>
    %374 = tpu.matmul %373, %372, %cst_144 {dimension_numbers = #tpu.dot_dimension_numbers<[1], [0], [0], [1], [0, 0, 1, 1], [], []>} : vector<14x256xbf16>, vector<256x128xbf16>, vector<14x128xf32> -> vector<14x128xf32>
    %375 = arith.addf %328, %374 : vector<14x128xf32>
    %c0_145 = arith.constant 0 : index
    %c0_146 = arith.constant 0 : index
    %376 = vector.load %arg27[%c0_145, %c0_146] : memref<1x128xf32, #tpu.memory_space<vmem>>, vector<1x128xf32>
    %377 = vector.broadcast %376 : vector<1x128xf32> to vector<14x128xf32>
    %378 = arith.addf %375, %377 : vector<14x128xf32>
    %c0_147 = arith.constant 0 : index
    %c0_148 = arith.constant 0 : index
    %379 = vector.load %arg28[%c0_147, %c0_148] : memref<1x128xf32, #tpu.memory_space<vmem>>, vector<1x128xf32>
    %c0_149 = arith.constant 0 : index
    %c0_150 = arith.constant 0 : index
    %380 = vector.load %arg29[%c0_149, %c0_150] : memref<1x128xf32, #tpu.memory_space<vmem>>, vector<1x128xf32>
    %cst_151 = arith.constant dense<0.000000e+00> : vector<14xf32>
    %381 = vector.multi_reduction <add>, %378, %cst_151 [1] : vector<14x128xf32> to vector<14xf32>
    %382 = vector.shape_cast %381 : vector<14xf32> to vector<14x1xf32>
    %cst_152 = arith.constant 1.280000e+02 : f32
    %383 = vector.broadcast %cst_152 : f32 to vector<14x1xf32>
    %384 = arith.divf %382, %383 : vector<14x1xf32>
    %385 = vector.broadcast %384 : vector<14x1xf32> to vector<14x128xf32>
    %386 = arith.subf %378, %385 : vector<14x128xf32>
    %387 = arith.mulf %386, %386 : vector<14x128xf32>
    %cst_153 = arith.constant dense<0.000000e+00> : vector<14xf32>
    %388 = vector.multi_reduction <add>, %387, %cst_153 [1] : vector<14x128xf32> to vector<14xf32>
    %389 = vector.shape_cast %388 : vector<14xf32> to vector<14x1xf32>
    %cst_154 = arith.constant 1.280000e+02 : f32
    %390 = vector.broadcast %cst_154 : f32 to vector<14x1xf32>
    %391 = arith.divf %389, %390 : vector<14x1xf32>
    %392 = vector.broadcast %384 : vector<14x1xf32> to vector<14x128xf32>
    %393 = arith.subf %378, %392 : vector<14x128xf32>
    %cst_155 = arith.constant 9.99999974E-6 : f32
    %394 = vector.broadcast %cst_155 : f32 to vector<14x1xf32>
    %395 = arith.addf %391, %394 : vector<14x1xf32>
    %396 = math.rsqrt %395 : vector<14x1xf32>
    %397 = vector.broadcast %396 : vector<14x1xf32> to vector<14x128xf32>
    %398 = arith.mulf %393, %397 : vector<14x128xf32>
    %399 = vector.broadcast %379 : vector<1x128xf32> to vector<14x128xf32>
    %400 = arith.mulf %398, %399 : vector<14x128xf32>
    %401 = vector.broadcast %380 : vector<1x128xf32> to vector<14x128xf32>
    %402 = arith.addf %400, %401 : vector<14x128xf32>
    %c0_156 = arith.constant 0 : index
    %c0_157 = arith.constant 0 : index
    %403 = vector.load %arg30[%c0_156, %c0_157] : memref<128x384xbf16, #tpu.memory_space<vmem>>, vector<128x384xbf16>
    %404 = arith.truncf %402 : vector<14x128xf32> to vector<14x128xbf16>
    %cst_158 = arith.constant dense<0.000000e+00> : vector<14x384xf32>
    %405 = tpu.matmul %404, %403, %cst_158 {dimension_numbers = #tpu.dot_dimension_numbers<[1], [0], [0], [1], [0, 0, 1, 1], [], []>} : vector<14x128xbf16>, vector<128x384xbf16>, vector<14x384xf32> -> vector<14x384xf32>
    %c0_159 = arith.constant 0 : index
    %c0_160 = arith.constant 0 : index
    %406 = vector.load %arg31[%c0_159, %c0_160] : memref<1x384xf32, #tpu.memory_space<vmem>>, vector<1x384xf32>
    %407 = vector.broadcast %406 : vector<1x384xf32> to vector<14x384xf32>
    %408 = arith.addf %405, %407 : vector<14x384xf32>
    %409 = vector.extract_strided_slice %43 {offsets = [0, 0], sizes = [1, 7], strides = [1, 1]} : vector<2x7xi1> to vector<1x7xi1>
    %410 = vector.broadcast %409 : vector<1x7xi1> to vector<7x7xi1>
    %411 = arith.andi %40, %410 : vector<7x7xi1>
    %cst_161 = arith.constant 0.000000e+00 : f32
    %cst_162 = arith.constant -1.000000e+09 : f32
    %412 = vector.broadcast %cst_161 : f32 to vector<7x7xf32>
    %413 = vector.broadcast %cst_162 : f32 to vector<7x7xf32>
    %414 = arith.select %411, %412, %413 : vector<7x7xi1>, vector<7x7xf32>
    %415 = vector.extract_strided_slice %408 {offsets = [0, 0], sizes = [7, 128], strides = [1, 1]} : vector<14x384xf32> to vector<7x128xf32>
    %416 = vector.extract_strided_slice %408 {offsets = [0, 128], sizes = [7, 128], strides = [1, 1]} : vector<14x384xf32> to vector<7x128xf32>
    %417 = vector.extract_strided_slice %408 {offsets = [0, 256], sizes = [7, 128], strides = [1, 1]} : vector<14x384xf32> to vector<7x128xf32>
    %418 = vector.extract_strided_slice %415 {offsets = [0, 0], sizes = [7, 64], strides = [1, 1]} : vector<7x128xf32> to vector<7x64xf32>
    %419 = vector.extract_strided_slice %416 {offsets = [0, 0], sizes = [7, 64], strides = [1, 1]} : vector<7x128xf32> to vector<7x64xf32>
    %420 = arith.truncf %418 : vector<7x64xf32> to vector<7x64xbf16>
    %421 = arith.truncf %419 : vector<7x64xf32> to vector<7x64xbf16>
    %cst_163 = arith.constant dense<0.000000e+00> : vector<7x7xf32>
    %422 = tpu.matmul %420, %421, %cst_163 {dimension_numbers = #tpu.dot_dimension_numbers<[1], [1], [0], [0], [0, 0, 1, 0], [], []>} : vector<7x64xbf16>, vector<7x64xbf16>, vector<7x7xf32> -> vector<7x7xf32>
    %cst_164 = arith.constant 1.250000e-01 : f32
    %423 = vector.broadcast %cst_164 : f32 to vector<7x7xf32>
    %424 = arith.mulf %422, %423 : vector<7x7xf32>
    %425 = arith.addf %424, %414 : vector<7x7xf32>
    %cst_165 = arith.constant dense<0xFF800000> : vector<7xf32>
    %426 = vector.multi_reduction <maximumf>, %425, %cst_165 [1] : vector<7x7xf32> to vector<7xf32>
    %427 = vector.shape_cast %426 : vector<7xf32> to vector<7x1xf32>
    %428 = vector.broadcast %427 : vector<7x1xf32> to vector<7x7xf32>
    %429 = arith.subf %425, %428 : vector<7x7xf32>
    %430 = math.exp %429 : vector<7x7xf32>
    %cst_166 = arith.constant dense<0.000000e+00> : vector<7xf32>
    %431 = vector.multi_reduction <add>, %430, %cst_166 [1] : vector<7x7xf32> to vector<7xf32>
    %432 = vector.shape_cast %431 : vector<7xf32> to vector<7x1xf32>
    %433 = tpu.reciprocal %432 {approx = true} : vector<7x1xf32> -> vector<7x1xf32>
    %434 = vector.broadcast %433 : vector<7x1xf32> to vector<7x7xf32>
    %435 = arith.mulf %430, %434 : vector<7x7xf32>
    %436 = vector.extract_strided_slice %417 {offsets = [0, 0], sizes = [7, 64], strides = [1, 1]} : vector<7x128xf32> to vector<7x64xf32>
    %437 = arith.truncf %435 : vector<7x7xf32> to vector<7x7xbf16>
    %438 = arith.truncf %436 : vector<7x64xf32> to vector<7x64xbf16>
    %cst_167 = arith.constant dense<0.000000e+00> : vector<7x64xf32>
    %439 = tpu.matmul %437, %438, %cst_167 {dimension_numbers = #tpu.dot_dimension_numbers<[1], [0], [0], [1], [0, 0, 1, 1], [], []>} : vector<7x7xbf16>, vector<7x64xbf16>, vector<7x64xf32> -> vector<7x64xf32>
    %c0_168 = arith.constant 0 : index
    %c0_169 = arith.constant 0 : index
    %440 = vector.load %arg51[%c0_168, %c0_169] : memref<14x128xf32, #tpu.memory_space<vmem>>, vector<7x64xf32>
    tpu.vector_store %arg51[%c0_168, %c0_169], %439 {strides = array<i32>} : memref<14x128xf32, #tpu.memory_space<vmem>>, vector<7x64xf32>,
    %441 = vector.extract_strided_slice %415 {offsets = [0, 64], sizes = [7, 64], strides = [1, 1]} : vector<7x128xf32> to vector<7x64xf32>
    %442 = vector.extract_strided_slice %416 {offsets = [0, 64], sizes = [7, 64], strides = [1, 1]} : vector<7x128xf32> to vector<7x64xf32>
    %443 = arith.truncf %441 : vector<7x64xf32> to vector<7x64xbf16>
    %444 = arith.truncf %442 : vector<7x64xf32> to vector<7x64xbf16>
    %cst_170 = arith.constant dense<0.000000e+00> : vector<7x7xf32>
    %445 = tpu.matmul %443, %444, %cst_170 {dimension_numbers = #tpu.dot_dimension_numbers<[1], [1], [0], [0], [0, 0, 1, 0], [], []>} : vector<7x64xbf16>, vector<7x64xbf16>, vector<7x7xf32> -> vector<7x7xf32>
    %cst_171 = arith.constant 1.250000e-01 : f32
    %446 = vector.broadcast %cst_171 : f32 to vector<7x7xf32>
    %447 = arith.mulf %445, %446 : vector<7x7xf32>
    %448 = arith.addf %447, %414 : vector<7x7xf32>
    %cst_172 = arith.constant dense<0xFF800000> : vector<7xf32>
    %449 = vector.multi_reduction <maximumf>, %448, %cst_172 [1] : vector<7x7xf32> to vector<7xf32>
    %450 = vector.shape_cast %449 : vector<7xf32> to vector<7x1xf32>
    %451 = vector.broadcast %450 : vector<7x1xf32> to vector<7x7xf32>
    %452 = arith.subf %448, %451 : vector<7x7xf32>
    %453 = math.exp %452 : vector<7x7xf32>
    %cst_173 = arith.constant dense<0.000000e+00> : vector<7xf32>
    %454 = vector.multi_reduction <add>, %453, %cst_173 [1] : vector<7x7xf32> to vector<7xf32>
    %455 = vector.shape_cast %454 : vector<7xf32> to vector<7x1xf32>
    %456 = tpu.reciprocal %455 {approx = true} : vector<7x1xf32> -> vector<7x1xf32>
    %457 = vector.broadcast %456 : vector<7x1xf32> to vector<7x7xf32>
    %458 = arith.mulf %453, %457 : vector<7x7xf32>
    %459 = vector.extract_strided_slice %417 {offsets = [0, 64], sizes = [7, 64], strides = [1, 1]} : vector<7x128xf32> to vector<7x64xf32>
    %460 = arith.truncf %458 : vector<7x7xf32> to vector<7x7xbf16>
    %461 = arith.truncf %459 : vector<7x64xf32> to vector<7x64xbf16>
    %cst_174 = arith.constant dense<0.000000e+00> : vector<7x64xf32>
    %462 = tpu.matmul %460, %461, %cst_174 {dimension_numbers = #tpu.dot_dimension_numbers<[1], [0], [0], [1], [0, 0, 1, 1], [], []>} : vector<7x7xbf16>, vector<7x64xbf16>, vector<7x64xf32> -> vector<7x64xf32>
    %c0_175 = arith.constant 0 : index
    %c64_176 = arith.constant 64 : index
    %463 = vector.load %arg51[%c0_175, %c64_176] : memref<14x128xf32, #tpu.memory_space<vmem>>, vector<7x64xf32>
    tpu.vector_store %arg51[%c0_175, %c64_176], %462 {strides = array<i32>} : memref<14x128xf32, #tpu.memory_space<vmem>>, vector<7x64xf32>,
    %464 = vector.extract_strided_slice %43 {offsets = [1, 0], sizes = [1, 7], strides = [1, 1]} : vector<2x7xi1> to vector<1x7xi1>
    %465 = vector.broadcast %464 : vector<1x7xi1> to vector<7x7xi1>
    %466 = arith.andi %40, %465 : vector<7x7xi1>
    %cst_177 = arith.constant 0.000000e+00 : f32
    %cst_178 = arith.constant -1.000000e+09 : f32
    %467 = vector.broadcast %cst_177 : f32 to vector<7x7xf32>
    %468 = vector.broadcast %cst_178 : f32 to vector<7x7xf32>
    %469 = arith.select %466, %467, %468 : vector<7x7xi1>, vector<7x7xf32>
    %470 = vector.extract_strided_slice %408 {offsets = [7, 0], sizes = [7, 128], strides = [1, 1]} : vector<14x384xf32> to vector<7x128xf32>
    %471 = vector.extract_strided_slice %408 {offsets = [7, 128], sizes = [7, 128], strides = [1, 1]} : vector<14x384xf32> to vector<7x128xf32>
    %472 = vector.extract_strided_slice %408 {offsets = [7, 256], sizes = [7, 128], strides = [1, 1]} : vector<14x384xf32> to vector<7x128xf32>
    %473 = vector.extract_strided_slice %470 {offsets = [0, 0], sizes = [7, 64], strides = [1, 1]} : vector<7x128xf32> to vector<7x64xf32>
    %474 = vector.extract_strided_slice %471 {offsets = [0, 0], sizes = [7, 64], strides = [1, 1]} : vector<7x128xf32> to vector<7x64xf32>
    %475 = arith.truncf %473 : vector<7x64xf32> to vector<7x64xbf16>
    %476 = arith.truncf %474 : vector<7x64xf32> to vector<7x64xbf16>
    %cst_179 = arith.constant dense<0.000000e+00> : vector<7x7xf32>
    %477 = tpu.matmul %475, %476, %cst_179 {dimension_numbers = #tpu.dot_dimension_numbers<[1], [1], [0], [0], [0, 0, 1, 0], [], []>} : vector<7x64xbf16>, vector<7x64xbf16>, vector<7x7xf32> -> vector<7x7xf32>
    %cst_180 = arith.constant 1.250000e-01 : f32
    %478 = vector.broadcast %cst_180 : f32 to vector<7x7xf32>
    %479 = arith.mulf %477, %478 : vector<7x7xf32>
    %480 = arith.addf %479, %469 : vector<7x7xf32>
    %cst_181 = arith.constant dense<0xFF800000> : vector<7xf32>
    %481 = vector.multi_reduction <maximumf>, %480, %cst_181 [1] : vector<7x7xf32> to vector<7xf32>
    %482 = vector.shape_cast %481 : vector<7xf32> to vector<7x1xf32>
    %483 = vector.broadcast %482 : vector<7x1xf32> to vector<7x7xf32>
    %484 = arith.subf %480, %483 : vector<7x7xf32>
    %485 = math.exp %484 : vector<7x7xf32>
    %cst_182 = arith.constant dense<0.000000e+00> : vector<7xf32>
    %486 = vector.multi_reduction <add>, %485, %cst_182 [1] : vector<7x7xf32> to vector<7xf32>
    %487 = vector.shape_cast %486 : vector<7xf32> to vector<7x1xf32>
    %488 = tpu.reciprocal %487 {approx = true} : vector<7x1xf32> -> vector<7x1xf32>
    %489 = vector.broadcast %488 : vector<7x1xf32> to vector<7x7xf32>
    %490 = arith.mulf %485, %489 : vector<7x7xf32>
    %491 = vector.extract_strided_slice %472 {offsets = [0, 0], sizes = [7, 64], strides = [1, 1]} : vector<7x128xf32> to vector<7x64xf32>
    %492 = arith.truncf %490 : vector<7x7xf32> to vector<7x7xbf16>
    %493 = arith.truncf %491 : vector<7x64xf32> to vector<7x64xbf16>
    %cst_183 = arith.constant dense<0.000000e+00> : vector<7x64xf32>
    %494 = tpu.matmul %492, %493, %cst_183 {dimension_numbers = #tpu.dot_dimension_numbers<[1], [0], [0], [1], [0, 0, 1, 1], [], []>} : vector<7x7xbf16>, vector<7x64xbf16>, vector<7x64xf32> -> vector<7x64xf32>
    %c7_184 = arith.constant 7 : index
    %c0_185 = arith.constant 0 : index
    %495 = vector.load %arg51[%c7_184, %c0_185] : memref<14x128xf32, #tpu.memory_space<vmem>>, vector<7x64xf32>
    tpu.vector_store %arg51[%c7_184, %c0_185], %494 {strides = array<i32>} : memref<14x128xf32, #tpu.memory_space<vmem>>, vector<7x64xf32>,
    %496 = vector.extract_strided_slice %470 {offsets = [0, 64], sizes = [7, 64], strides = [1, 1]} : vector<7x128xf32> to vector<7x64xf32>
    %497 = vector.extract_strided_slice %471 {offsets = [0, 64], sizes = [7, 64], strides = [1, 1]} : vector<7x128xf32> to vector<7x64xf32>
    %498 = arith.truncf %496 : vector<7x64xf32> to vector<7x64xbf16>
    %499 = arith.truncf %497 : vector<7x64xf32> to vector<7x64xbf16>
    %cst_186 = arith.constant dense<0.000000e+00> : vector<7x7xf32>
    %500 = tpu.matmul %498, %499, %cst_186 {dimension_numbers = #tpu.dot_dimension_numbers<[1], [1], [0], [0], [0, 0, 1, 0], [], []>} : vector<7x64xbf16>, vector<7x64xbf16>, vector<7x7xf32> -> vector<7x7xf32>
    %cst_187 = arith.constant 1.250000e-01 : f32
    %501 = vector.broadcast %cst_187 : f32 to vector<7x7xf32>
    %502 = arith.mulf %500, %501 : vector<7x7xf32>
    %503 = arith.addf %502, %469 : vector<7x7xf32>
    %cst_188 = arith.constant dense<0xFF800000> : vector<7xf32>
    %504 = vector.multi_reduction <maximumf>, %503, %cst_188 [1] : vector<7x7xf32> to vector<7xf32>
    %505 = vector.shape_cast %504 : vector<7xf32> to vector<7x1xf32>
    %506 = vector.broadcast %505 : vector<7x1xf32> to vector<7x7xf32>
    %507 = arith.subf %503, %506 : vector<7x7xf32>
    %508 = math.exp %507 : vector<7x7xf32>
    %cst_189 = arith.constant dense<0.000000e+00> : vector<7xf32>
    %509 = vector.multi_reduction <add>, %508, %cst_189 [1] : vector<7x7xf32> to vector<7xf32>
    %510 = vector.shape_cast %509 : vector<7xf32> to vector<7x1xf32>
    %511 = tpu.reciprocal %510 {approx = true} : vector<7x1xf32> -> vector<7x1xf32>
    %512 = vector.broadcast %511 : vector<7x1xf32> to vector<7x7xf32>
    %513 = arith.mulf %508, %512 : vector<7x7xf32>
    %514 = vector.extract_strided_slice %472 {offsets = [0, 64], sizes = [7, 64], strides = [1, 1]} : vector<7x128xf32> to vector<7x64xf32>
    %515 = arith.truncf %513 : vector<7x7xf32> to vector<7x7xbf16>
    %516 = arith.truncf %514 : vector<7x64xf32> to vector<7x64xbf16>
    %cst_190 = arith.constant dense<0.000000e+00> : vector<7x64xf32>
    %517 = tpu.matmul %515, %516, %cst_190 {dimension_numbers = #tpu.dot_dimension_numbers<[1], [0], [0], [1], [0, 0, 1, 1], [], []>} : vector<7x7xbf16>, vector<7x64xbf16>, vector<7x64xf32> -> vector<7x64xf32>
    %c7_191 = arith.constant 7 : index
    %c64_192 = arith.constant 64 : index
    %518 = vector.load %arg51[%c7_191, %c64_192] : memref<14x128xf32, #tpu.memory_space<vmem>>, vector<7x64xf32>
    tpu.vector_store %arg51[%c7_191, %c64_192], %517 {strides = array<i32>} : memref<14x128xf32, #tpu.memory_space<vmem>>, vector<7x64xf32>,
    %c0_193 = arith.constant 0 : index
    %c0_194 = arith.constant 0 : index
    %519 = vector.load %arg51[%c0_193, %c0_194] : memref<14x128xf32, #tpu.memory_space<vmem>>, vector<14x128xf32>
    %c0_195 = arith.constant 0 : index
    %c0_196 = arith.constant 0 : index
    %520 = vector.load %arg32[%c0_195, %c0_196] : memref<128x128xbf16, #tpu.memory_space<vmem>>, vector<128x128xbf16>
    %521 = arith.truncf %519 : vector<14x128xf32> to vector<14x128xbf16>
    %cst_197 = arith.constant dense<0.000000e+00> : vector<14x128xf32>
    %522 = tpu.matmul %521, %520, %cst_197 {dimension_numbers = #tpu.dot_dimension_numbers<[1], [0], [0], [1], [0, 0, 1, 1], [], []>} : vector<14x128xbf16>, vector<128x128xbf16>, vector<14x128xf32> -> vector<14x128xf32>
    %523 = arith.addf %378, %522 : vector<14x128xf32>
    %c0_198 = arith.constant 0 : index
    %c0_199 = arith.constant 0 : index
    %524 = vector.load %arg33[%c0_198, %c0_199] : memref<1x128xf32, #tpu.memory_space<vmem>>, vector<1x128xf32>
    %525 = vector.broadcast %524 : vector<1x128xf32> to vector<14x128xf32>
    %526 = arith.addf %523, %525 : vector<14x128xf32>
    %c0_200 = arith.constant 0 : index
    %c0_201 = arith.constant 0 : index
    %527 = vector.load %arg34[%c0_200, %c0_201] : memref<1x128xf32, #tpu.memory_space<vmem>>, vector<1x128xf32>
    %c0_202 = arith.constant 0 : index
    %c0_203 = arith.constant 0 : index
    %528 = vector.load %arg35[%c0_202, %c0_203] : memref<1x128xf32, #tpu.memory_space<vmem>>, vector<1x128xf32>
    %cst_204 = arith.constant dense<0.000000e+00> : vector<14xf32>
    %529 = vector.multi_reduction <add>, %526, %cst_204 [1] : vector<14x128xf32> to vector<14xf32>
    %530 = vector.shape_cast %529 : vector<14xf32> to vector<14x1xf32>
    %cst_205 = arith.constant 1.280000e+02 : f32
    %531 = vector.broadcast %cst_205 : f32 to vector<14x1xf32>
    %532 = arith.divf %530, %531 : vector<14x1xf32>
    %533 = vector.broadcast %532 : vector<14x1xf32> to vector<14x128xf32>
    %534 = arith.subf %526, %533 : vector<14x128xf32>
    %535 = arith.mulf %534, %534 : vector<14x128xf32>
    %cst_206 = arith.constant dense<0.000000e+00> : vector<14xf32>
    %536 = vector.multi_reduction <add>, %535, %cst_206 [1] : vector<14x128xf32> to vector<14xf32>
    %537 = vector.shape_cast %536 : vector<14xf32> to vector<14x1xf32>
    %cst_207 = arith.constant 1.280000e+02 : f32
    %538 = vector.broadcast %cst_207 : f32 to vector<14x1xf32>
    %539 = arith.divf %537, %538 : vector<14x1xf32>
    %540 = vector.broadcast %532 : vector<14x1xf32> to vector<14x128xf32>
    %541 = arith.subf %526, %540 : vector<14x128xf32>
    %cst_208 = arith.constant 9.99999974E-6 : f32
    %542 = vector.broadcast %cst_208 : f32 to vector<14x1xf32>
    %543 = arith.addf %539, %542 : vector<14x1xf32>
    %544 = math.rsqrt %543 : vector<14x1xf32>
    %545 = vector.broadcast %544 : vector<14x1xf32> to vector<14x128xf32>
    %546 = arith.mulf %541, %545 : vector<14x128xf32>
    %547 = vector.broadcast %527 : vector<1x128xf32> to vector<14x128xf32>
    %548 = arith.mulf %546, %547 : vector<14x128xf32>
    %549 = vector.broadcast %528 : vector<1x128xf32> to vector<14x128xf32>
    %550 = arith.addf %548, %549 : vector<14x128xf32>
    %c0_209 = arith.constant 0 : index
    %c0_210 = arith.constant 0 : index
    %551 = vector.load %arg36[%c0_209, %c0_210] : memref<128x128xbf16, #tpu.memory_space<vmem>>, vector<128x128xbf16>
    %552 = arith.truncf %550 : vector<14x128xf32> to vector<14x128xbf16>
    %cst_211 = arith.constant dense<0.000000e+00> : vector<14x128xf32>
    %553 = tpu.matmul %552, %551, %cst_211 {dimension_numbers = #tpu.dot_dimension_numbers<[1], [0], [0], [1], [0, 0, 1, 1], [], []>} : vector<14x128xbf16>, vector<128x128xbf16>, vector<14x128xf32> -> vector<14x128xf32>
    %c0_212 = arith.constant 0 : index
    %c0_213 = arith.constant 0 : index
    %554 = vector.load %arg37[%c0_212, %c0_213] : memref<1x128xf32, #tpu.memory_space<vmem>>, vector<1x128xf32>
    %555 = vector.broadcast %554 : vector<1x128xf32> to vector<14x128xf32>
    %556 = arith.addf %553, %555 : vector<14x128xf32>
    %c0_214 = arith.constant 0 : index
    %c0_215 = arith.constant 0 : index
    %557 = vector.load %arg38[%c0_214, %c0_215] : memref<128x256xbf16, #tpu.memory_space<vmem>>, vector<128x256xbf16>
    %cst_216 = arith.constant dense<0.000000e+00> : vector<12x256xf32>
    %558 = tpu.matmul %37, %557, %cst_216 {dimension_numbers = #tpu.dot_dimension_numbers<[1], [0], [0], [1], [0, 0, 1, 1], [], []>} : vector<12x128xbf16>, vector<128x256xbf16>, vector<12x256xf32> -> vector<12x256xf32>
    %c0_217 = arith.constant 0 : index
    %c0_218 = arith.constant 0 : index
    %559 = vector.load %arg39[%c0_217, %c0_218] : memref<1x256xf32, #tpu.memory_space<vmem>>, vector<1x256xf32>
    %560 = vector.broadcast %559 : vector<1x256xf32> to vector<12x256xf32>
    %561 = arith.addf %558, %560 : vector<12x256xf32>
    %562 = vector.extract_strided_slice %556 {offsets = [0, 0], sizes = [7, 128], strides = [1, 1]} : vector<14x128xf32> to vector<7x128xf32>
    %563 = vector.extract_strided_slice %561 {offsets = [0, 0], sizes = [6, 128], strides = [1, 1]} : vector<12x256xf32> to vector<6x128xf32>
    %564 = vector.extract_strided_slice %561 {offsets = [0, 128], sizes = [6, 128], strides = [1, 1]} : vector<12x256xf32> to vector<6x128xf32>
    %565 = vector.extract_strided_slice %562 {offsets = [0, 0], sizes = [7, 64], strides = [1, 1]} : vector<7x128xf32> to vector<7x64xf32>
    %566 = vector.extract_strided_slice %563 {offsets = [0, 0], sizes = [6, 64], strides = [1, 1]} : vector<6x128xf32> to vector<6x64xf32>
    %567 = arith.truncf %565 : vector<7x64xf32> to vector<7x64xbf16>
    %568 = arith.truncf %566 : vector<6x64xf32> to vector<6x64xbf16>
    %cst_219 = arith.constant dense<0.000000e+00> : vector<7x6xf32>
    %569 = tpu.matmul %567, %568, %cst_219 {dimension_numbers = #tpu.dot_dimension_numbers<[1], [1], [0], [0], [0, 0, 1, 0], [], []>} : vector<7x64xbf16>, vector<6x64xbf16>, vector<7x6xf32> -> vector<7x6xf32>
    %cst_220 = arith.constant 1.250000e-01 : f32
    %570 = vector.broadcast %cst_220 : f32 to vector<7x6xf32>
    %571 = arith.mulf %569, %570 : vector<7x6xf32>
    %cst_221 = arith.constant dense<0xFF800000> : vector<7xf32>
    %572 = vector.multi_reduction <maximumf>, %571, %cst_221 [1] : vector<7x6xf32> to vector<7xf32>
    %573 = vector.shape_cast %572 : vector<7xf32> to vector<7x1xf32>
    %574 = vector.broadcast %573 : vector<7x1xf32> to vector<7x6xf32>
    %575 = arith.subf %571, %574 : vector<7x6xf32>
    %576 = math.exp %575 : vector<7x6xf32>
    %cst_222 = arith.constant dense<0.000000e+00> : vector<7xf32>
    %577 = vector.multi_reduction <add>, %576, %cst_222 [1] : vector<7x6xf32> to vector<7xf32>
    %578 = vector.shape_cast %577 : vector<7xf32> to vector<7x1xf32>
    %579 = tpu.reciprocal %578 {approx = true} : vector<7x1xf32> -> vector<7x1xf32>
    %580 = vector.broadcast %579 : vector<7x1xf32> to vector<7x6xf32>
    %581 = arith.mulf %576, %580 : vector<7x6xf32>
    %582 = vector.extract_strided_slice %564 {offsets = [0, 0], sizes = [6, 64], strides = [1, 1]} : vector<6x128xf32> to vector<6x64xf32>
    %583 = arith.truncf %581 : vector<7x6xf32> to vector<7x6xbf16>
    %584 = arith.truncf %582 : vector<6x64xf32> to vector<6x64xbf16>
    %cst_223 = arith.constant dense<0.000000e+00> : vector<7x64xf32>
    %585 = tpu.matmul %583, %584, %cst_223 {dimension_numbers = #tpu.dot_dimension_numbers<[1], [0], [0], [1], [0, 0, 1, 1], [], []>} : vector<7x6xbf16>, vector<6x64xbf16>, vector<7x64xf32> -> vector<7x64xf32>
    %c0_224 = arith.constant 0 : index
    %c0_225 = arith.constant 0 : index
    %586 = vector.load %arg51[%c0_224, %c0_225] : memref<14x128xf32, #tpu.memory_space<vmem>>, vector<7x64xf32>
    tpu.vector_store %arg51[%c0_224, %c0_225], %585 {strides = array<i32>} : memref<14x128xf32, #tpu.memory_space<vmem>>, vector<7x64xf32>,
    %587 = vector.extract_strided_slice %562 {offsets = [0, 64], sizes = [7, 64], strides = [1, 1]} : vector<7x128xf32> to vector<7x64xf32>
    %588 = vector.extract_strided_slice %563 {offsets = [0, 64], sizes = [6, 64], strides = [1, 1]} : vector<6x128xf32> to vector<6x64xf32>
    %589 = arith.truncf %587 : vector<7x64xf32> to vector<7x64xbf16>
    %590 = arith.truncf %588 : vector<6x64xf32> to vector<6x64xbf16>
    %cst_226 = arith.constant dense<0.000000e+00> : vector<7x6xf32>
    %591 = tpu.matmul %589, %590, %cst_226 {dimension_numbers = #tpu.dot_dimension_numbers<[1], [1], [0], [0], [0, 0, 1, 0], [], []>} : vector<7x64xbf16>, vector<6x64xbf16>, vector<7x6xf32> -> vector<7x6xf32>
    %cst_227 = arith.constant 1.250000e-01 : f32
    %592 = vector.broadcast %cst_227 : f32 to vector<7x6xf32>
    %593 = arith.mulf %591, %592 : vector<7x6xf32>
    %cst_228 = arith.constant dense<0xFF800000> : vector<7xf32>
    %594 = vector.multi_reduction <maximumf>, %593, %cst_228 [1] : vector<7x6xf32> to vector<7xf32>
    %595 = vector.shape_cast %594 : vector<7xf32> to vector<7x1xf32>
    %596 = vector.broadcast %595 : vector<7x1xf32> to vector<7x6xf32>
    %597 = arith.subf %593, %596 : vector<7x6xf32>
    %598 = math.exp %597 : vector<7x6xf32>
    %cst_229 = arith.constant dense<0.000000e+00> : vector<7xf32>
    %599 = vector.multi_reduction <add>, %598, %cst_229 [1] : vector<7x6xf32> to vector<7xf32>
    %600 = vector.shape_cast %599 : vector<7xf32> to vector<7x1xf32>
    %601 = tpu.reciprocal %600 {approx = true} : vector<7x1xf32> -> vector<7x1xf32>
    %602 = vector.broadcast %601 : vector<7x1xf32> to vector<7x6xf32>
    %603 = arith.mulf %598, %602 : vector<7x6xf32>
    %604 = vector.extract_strided_slice %564 {offsets = [0, 64], sizes = [6, 64], strides = [1, 1]} : vector<6x128xf32> to vector<6x64xf32>
    %605 = arith.truncf %603 : vector<7x6xf32> to vector<7x6xbf16>
    %606 = arith.truncf %604 : vector<6x64xf32> to vector<6x64xbf16>
    %cst_230 = arith.constant dense<0.000000e+00> : vector<7x64xf32>
    %607 = tpu.matmul %605, %606, %cst_230 {dimension_numbers = #tpu.dot_dimension_numbers<[1], [0], [0], [1], [0, 0, 1, 1], [], []>} : vector<7x6xbf16>, vector<6x64xbf16>, vector<7x64xf32> -> vector<7x64xf32>
    %c0_231 = arith.constant 0 : index
    %c64_232 = arith.constant 64 : index
    %608 = vector.load %arg51[%c0_231, %c64_232] : memref<14x128xf32, #tpu.memory_space<vmem>>, vector<7x64xf32>
    tpu.vector_store %arg51[%c0_231, %c64_232], %607 {strides = array<i32>} : memref<14x128xf32, #tpu.memory_space<vmem>>, vector<7x64xf32>,
    %609 = vector.extract_strided_slice %556 {offsets = [7, 0], sizes = [7, 128], strides = [1, 1]} : vector<14x128xf32> to vector<7x128xf32>
    %610 = vector.extract_strided_slice %561 {offsets = [6, 0], sizes = [6, 128], strides = [1, 1]} : vector<12x256xf32> to vector<6x128xf32>
    %611 = vector.extract_strided_slice %561 {offsets = [6, 128], sizes = [6, 128], strides = [1, 1]} : vector<12x256xf32> to vector<6x128xf32>
    %612 = vector.extract_strided_slice %609 {offsets = [0, 0], sizes = [7, 64], strides = [1, 1]} : vector<7x128xf32> to vector<7x64xf32>
    %613 = vector.extract_strided_slice %610 {offsets = [0, 0], sizes = [6, 64], strides = [1, 1]} : vector<6x128xf32> to vector<6x64xf32>
    %614 = arith.truncf %612 : vector<7x64xf32> to vector<7x64xbf16>
    %615 = arith.truncf %613 : vector<6x64xf32> to vector<6x64xbf16>
    %cst_233 = arith.constant dense<0.000000e+00> : vector<7x6xf32>
    %616 = tpu.matmul %614, %615, %cst_233 {dimension_numbers = #tpu.dot_dimension_numbers<[1], [1], [0], [0], [0, 0, 1, 0], [], []>} : vector<7x64xbf16>, vector<6x64xbf16>, vector<7x6xf32> -> vector<7x6xf32>
    %cst_234 = arith.constant 1.250000e-01 : f32
    %617 = vector.broadcast %cst_234 : f32 to vector<7x6xf32>
    %618 = arith.mulf %616, %617 : vector<7x6xf32>
    %cst_235 = arith.constant dense<0xFF800000> : vector<7xf32>
    %619 = vector.multi_reduction <maximumf>, %618, %cst_235 [1] : vector<7x6xf32> to vector<7xf32>
    %620 = vector.shape_cast %619 : vector<7xf32> to vector<7x1xf32>
    %621 = vector.broadcast %620 : vector<7x1xf32> to vector<7x6xf32>
    %622 = arith.subf %618, %621 : vector<7x6xf32>
    %623 = math.exp %622 : vector<7x6xf32>
    %cst_236 = arith.constant dense<0.000000e+00> : vector<7xf32>
    %624 = vector.multi_reduction <add>, %623, %cst_236 [1] : vector<7x6xf32> to vector<7xf32>
    %625 = vector.shape_cast %624 : vector<7xf32> to vector<7x1xf32>
    %626 = tpu.reciprocal %625 {approx = true} : vector<7x1xf32> -> vector<7x1xf32>
    %627 = vector.broadcast %626 : vector<7x1xf32> to vector<7x6xf32>
    %628 = arith.mulf %623, %627 : vector<7x6xf32>
    %629 = vector.extract_strided_slice %611 {offsets = [0, 0], sizes = [6, 64], strides = [1, 1]} : vector<6x128xf32> to vector<6x64xf32>
    %630 = arith.truncf %628 : vector<7x6xf32> to vector<7x6xbf16>
    %631 = arith.truncf %629 : vector<6x64xf32> to vector<6x64xbf16>
    %cst_237 = arith.constant dense<0.000000e+00> : vector<7x64xf32>
    %632 = tpu.matmul %630, %631, %cst_237 {dimension_numbers = #tpu.dot_dimension_numbers<[1], [0], [0], [1], [0, 0, 1, 1], [], []>} : vector<7x6xbf16>, vector<6x64xbf16>, vector<7x64xf32> -> vector<7x64xf32>
    %c7_238 = arith.constant 7 : index
    %c0_239 = arith.constant 0 : index
    %633 = vector.load %arg51[%c7_238, %c0_239] : memref<14x128xf32, #tpu.memory_space<vmem>>, vector<7x64xf32>
    tpu.vector_store %arg51[%c7_238, %c0_239], %632 {strides = array<i32>} : memref<14x128xf32, #tpu.memory_space<vmem>>, vector<7x64xf32>,
    %634 = vector.extract_strided_slice %609 {offsets = [0, 64], sizes = [7, 64], strides = [1, 1]} : vector<7x128xf32> to vector<7x64xf32>
    %635 = vector.extract_strided_slice %610 {offsets = [0, 64], sizes = [6, 64], strides = [1, 1]} : vector<6x128xf32> to vector<6x64xf32>
    %636 = arith.truncf %634 : vector<7x64xf32> to vector<7x64xbf16>
    %637 = arith.truncf %635 : vector<6x64xf32> to vector<6x64xbf16>
    %cst_240 = arith.constant dense<0.000000e+00> : vector<7x6xf32>
    %638 = tpu.matmul %636, %637, %cst_240 {dimension_numbers = #tpu.dot_dimension_numbers<[1], [1], [0], [0], [0, 0, 1, 0], [], []>} : vector<7x64xbf16>, vector<6x64xbf16>, vector<7x6xf32> -> vector<7x6xf32>
    %cst_241 = arith.constant 1.250000e-01 : f32
    %639 = vector.broadcast %cst_241 : f32 to vector<7x6xf32>
    %640 = arith.mulf %638, %639 : vector<7x6xf32>
    %cst_242 = arith.constant dense<0xFF800000> : vector<7xf32>
    %641 = vector.multi_reduction <maximumf>, %640, %cst_242 [1] : vector<7x6xf32> to vector<7xf32>
    %642 = vector.shape_cast %641 : vector<7xf32> to vector<7x1xf32>
    %643 = vector.broadcast %642 : vector<7x1xf32> to vector<7x6xf32>
    %644 = arith.subf %640, %643 : vector<7x6xf32>
    %645 = math.exp %644 : vector<7x6xf32>
    %cst_243 = arith.constant dense<0.000000e+00> : vector<7xf32>
    %646 = vector.multi_reduction <add>, %645, %cst_243 [1] : vector<7x6xf32> to vector<7xf32>
    %647 = vector.shape_cast %646 : vector<7xf32> to vector<7x1xf32>
    %648 = tpu.reciprocal %647 {approx = true} : vector<7x1xf32> -> vector<7x1xf32>
    %649 = vector.broadcast %648 : vector<7x1xf32> to vector<7x6xf32>
    %650 = arith.mulf %645, %649 : vector<7x6xf32>
    %651 = vector.extract_strided_slice %611 {offsets = [0, 64], sizes = [6, 64], strides = [1, 1]} : vector<6x128xf32> to vector<6x64xf32>
    %652 = arith.truncf %650 : vector<7x6xf32> to vector<7x6xbf16>
    %653 = arith.truncf %651 : vector<6x64xf32> to vector<6x64xbf16>
    %cst_244 = arith.constant dense<0.000000e+00> : vector<7x64xf32>
    %654 = tpu.matmul %652, %653, %cst_244 {dimension_numbers = #tpu.dot_dimension_numbers<[1], [0], [0], [1], [0, 0, 1, 1], [], []>} : vector<7x6xbf16>, vector<6x64xbf16>, vector<7x64xf32> -> vector<7x64xf32>
    %c7_245 = arith.constant 7 : index
    %c64_246 = arith.constant 64 : index
    %655 = vector.load %arg51[%c7_245, %c64_246] : memref<14x128xf32, #tpu.memory_space<vmem>>, vector<7x64xf32>
    tpu.vector_store %arg51[%c7_245, %c64_246], %654 {strides = array<i32>} : memref<14x128xf32, #tpu.memory_space<vmem>>, vector<7x64xf32>,
    %c0_247 = arith.constant 0 : index
    %c0_248 = arith.constant 0 : index
    %656 = vector.load %arg51[%c0_247, %c0_248] : memref<14x128xf32, #tpu.memory_space<vmem>>, vector<14x128xf32>
    %c0_249 = arith.constant 0 : index
    %c0_250 = arith.constant 0 : index
    %657 = vector.load %arg40[%c0_249, %c0_250] : memref<128x128xbf16, #tpu.memory_space<vmem>>, vector<128x128xbf16>
    %658 = arith.truncf %656 : vector<14x128xf32> to vector<14x128xbf16>
    %cst_251 = arith.constant dense<0.000000e+00> : vector<14x128xf32>
    %659 = tpu.matmul %658, %657, %cst_251 {dimension_numbers = #tpu.dot_dimension_numbers<[1], [0], [0], [1], [0, 0, 1, 1], [], []>} : vector<14x128xbf16>, vector<128x128xbf16>, vector<14x128xf32> -> vector<14x128xf32>
    %660 = arith.addf %526, %659 : vector<14x128xf32>
    %c0_252 = arith.constant 0 : index
    %c0_253 = arith.constant 0 : index
    %661 = vector.load %arg41[%c0_252, %c0_253] : memref<1x128xf32, #tpu.memory_space<vmem>>, vector<1x128xf32>
    %662 = vector.broadcast %661 : vector<1x128xf32> to vector<14x128xf32>
    %663 = arith.addf %660, %662 : vector<14x128xf32>
    %c0_254 = arith.constant 0 : index
    %c0_255 = arith.constant 0 : index
    %664 = vector.load %arg42[%c0_254, %c0_255] : memref<1x128xf32, #tpu.memory_space<vmem>>, vector<1x128xf32>
    %c0_256 = arith.constant 0 : index
    %c0_257 = arith.constant 0 : index
    %665 = vector.load %arg43[%c0_256, %c0_257] : memref<1x128xf32, #tpu.memory_space<vmem>>, vector<1x128xf32>
    %cst_258 = arith.constant dense<0.000000e+00> : vector<14xf32>
    %666 = vector.multi_reduction <add>, %663, %cst_258 [1] : vector<14x128xf32> to vector<14xf32>
    %667 = vector.shape_cast %666 : vector<14xf32> to vector<14x1xf32>
    %cst_259 = arith.constant 1.280000e+02 : f32
    %668 = vector.broadcast %cst_259 : f32 to vector<14x1xf32>
    %669 = arith.divf %667, %668 : vector<14x1xf32>
    %670 = vector.broadcast %669 : vector<14x1xf32> to vector<14x128xf32>
    %671 = arith.subf %663, %670 : vector<14x128xf32>
    %672 = arith.mulf %671, %671 : vector<14x128xf32>
    %cst_260 = arith.constant dense<0.000000e+00> : vector<14xf32>
    %673 = vector.multi_reduction <add>, %672, %cst_260 [1] : vector<14x128xf32> to vector<14xf32>
    %674 = vector.shape_cast %673 : vector<14xf32> to vector<14x1xf32>
    %cst_261 = arith.constant 1.280000e+02 : f32
    %675 = vector.broadcast %cst_261 : f32 to vector<14x1xf32>
    %676 = arith.divf %674, %675 : vector<14x1xf32>
    %677 = vector.broadcast %669 : vector<14x1xf32> to vector<14x128xf32>
    %678 = arith.subf %663, %677 : vector<14x128xf32>
    %cst_262 = arith.constant 9.99999974E-6 : f32
    %679 = vector.broadcast %cst_262 : f32 to vector<14x1xf32>
    %680 = arith.addf %676, %679 : vector<14x1xf32>
    %681 = math.rsqrt %680 : vector<14x1xf32>
    %682 = vector.broadcast %681 : vector<14x1xf32> to vector<14x128xf32>
    %683 = arith.mulf %678, %682 : vector<14x128xf32>
    %684 = vector.broadcast %664 : vector<1x128xf32> to vector<14x128xf32>
    %685 = arith.mulf %683, %684 : vector<14x128xf32>
    %686 = vector.broadcast %665 : vector<1x128xf32> to vector<14x128xf32>
    %687 = arith.addf %685, %686 : vector<14x128xf32>
    %c0_263 = arith.constant 0 : index
    %c0_264 = arith.constant 0 : index
    %688 = vector.load %arg44[%c0_263, %c0_264] : memref<128x256xbf16, #tpu.memory_space<vmem>>, vector<128x256xbf16>
    %689 = arith.truncf %687 : vector<14x128xf32> to vector<14x128xbf16>
    %cst_265 = arith.constant dense<0.000000e+00> : vector<14x256xf32>
    %690 = tpu.matmul %689, %688, %cst_265 {dimension_numbers = #tpu.dot_dimension_numbers<[1], [0], [0], [1], [0, 0, 1, 1], [], []>} : vector<14x128xbf16>, vector<128x256xbf16>, vector<14x256xf32> -> vector<14x256xf32>
    %c0_266 = arith.constant 0 : index
    %c0_267 = arith.constant 0 : index
    %691 = vector.load %arg45[%c0_266, %c0_267] : memref<1x256xf32, #tpu.memory_space<vmem>>, vector<1x256xf32>
    %692 = vector.broadcast %691 : vector<1x256xf32> to vector<14x256xf32>
    %693 = arith.addf %690, %692 : vector<14x256xf32>
    %694 = arith.mulf %693, %693 : vector<14x256xf32>
    %695 = arith.mulf %693, %694 : vector<14x256xf32>
    %cst_268 = arith.constant 4.471500e-02 : f32
    %696 = vector.broadcast %cst_268 : f32 to vector<14x256xf32>
    %697 = arith.mulf %696, %695 : vector<14x256xf32>
    %698 = arith.addf %693, %697 : vector<14x256xf32>
    %cst_269 = arith.constant 0.797884583 : f32
    %699 = vector.broadcast %cst_269 : f32 to vector<14x256xf32>
    %700 = arith.mulf %699, %698 : vector<14x256xf32>
    %701 = math.tanh %700 : vector<14x256xf32>
    %cst_270 = arith.constant 1.000000e+00 : f32
    %702 = vector.broadcast %cst_270 : f32 to vector<14x256xf32>
    %703 = arith.addf %702, %701 : vector<14x256xf32>
    %cst_271 = arith.constant 5.000000e-01 : f32
    %704 = vector.broadcast %cst_271 : f32 to vector<14x256xf32>
    %705 = arith.mulf %704, %703 : vector<14x256xf32>
    %706 = arith.mulf %693, %705 : vector<14x256xf32>
    %c0_272 = arith.constant 0 : index
    %c0_273 = arith.constant 0 : index
    %707 = vector.load %arg46[%c0_272, %c0_273] : memref<256x128xbf16, #tpu.memory_space<vmem>>, vector<256x128xbf16>
    %708 = arith.truncf %706 : vector<14x256xf32> to vector<14x256xbf16>
    %cst_274 = arith.constant dense<0.000000e+00> : vector<14x128xf32>
    %709 = tpu.matmul %708, %707, %cst_274 {dimension_numbers = #tpu.dot_dimension_numbers<[1], [0], [0], [1], [0, 0, 1, 1], [], []>} : vector<14x256xbf16>, vector<256x128xbf16>, vector<14x128xf32> -> vector<14x128xf32>
    %710 = arith.addf %663, %709 : vector<14x128xf32>
    %c0_275 = arith.constant 0 : index
    %c0_276 = arith.constant 0 : index
    %711 = vector.load %arg47[%c0_275, %c0_276] : memref<1x128xf32, #tpu.memory_space<vmem>>, vector<1x128xf32>
    %712 = vector.broadcast %711 : vector<1x128xf32> to vector<14x128xf32>
    %713 = arith.addf %710, %712 : vector<14x128xf32>
    %c0_277 = arith.constant 0 : index
    %c0_278 = arith.constant 0 : index
    %714 = vector.load %arg48[%c0_277, %c0_278] : memref<1x128xf32, #tpu.memory_space<vmem>>, vector<1x128xf32>
    %c0_279 = arith.constant 0 : index
    %c0_280 = arith.constant 0 : index
    %715 = vector.load %arg49[%c0_279, %c0_280] : memref<1x128xf32, #tpu.memory_space<vmem>>, vector<1x128xf32>
    %cst_281 = arith.constant dense<0.000000e+00> : vector<14xf32>
    %716 = vector.multi_reduction <add>, %713, %cst_281 [1] : vector<14x128xf32> to vector<14xf32>
    %717 = vector.shape_cast %716 : vector<14xf32> to vector<14x1xf32>
    %cst_282 = arith.constant 1.280000e+02 : f32
    %718 = vector.broadcast %cst_282 : f32 to vector<14x1xf32>
    %719 = arith.divf %717, %718 : vector<14x1xf32>
    %720 = vector.broadcast %719 : vector<14x1xf32> to vector<14x128xf32>
    %721 = arith.subf %713, %720 : vector<14x128xf32>
    %722 = arith.mulf %721, %721 : vector<14x128xf32>
    %cst_283 = arith.constant dense<0.000000e+00> : vector<14xf32>
    %723 = vector.multi_reduction <add>, %722, %cst_283 [1] : vector<14x128xf32> to vector<14xf32>
    %724 = vector.shape_cast %723 : vector<14xf32> to vector<14x1xf32>
    %cst_284 = arith.constant 1.280000e+02 : f32
    %725 = vector.broadcast %cst_284 : f32 to vector<14x1xf32>
    %726 = arith.divf %724, %725 : vector<14x1xf32>
    %727 = vector.broadcast %719 : vector<14x1xf32> to vector<14x128xf32>
    %728 = arith.subf %713, %727 : vector<14x128xf32>
    %cst_285 = arith.constant 9.99999974E-6 : f32
    %729 = vector.broadcast %cst_285 : f32 to vector<14x1xf32>
    %730 = arith.addf %726, %729 : vector<14x1xf32>
    %731 = math.rsqrt %730 : vector<14x1xf32>
    %732 = vector.broadcast %731 : vector<14x1xf32> to vector<14x128xf32>
    %733 = arith.mulf %728, %732 : vector<14x128xf32>
    %734 = vector.broadcast %714 : vector<1x128xf32> to vector<14x128xf32>
    %735 = arith.mulf %733, %734 : vector<14x128xf32>
    %736 = vector.broadcast %715 : vector<1x128xf32> to vector<14x128xf32>
    %737 = arith.addf %735, %736 : vector<14x128xf32>
    %738 = arith.truncf %737 : vector<14x128xf32> to vector<14x128xbf16>
    %cst_286 = arith.constant dense<0.000000e+00> : vector<14x64xf32>
    %739 = tpu.matmul %738, %0, %cst_286 {dimension_numbers = #tpu.dot_dimension_numbers<[1], [1], [0], [0], [0, 0, 1, 0], [], []>} : vector<14x128xbf16>, vector<64x128xbf16>, vector<14x64xf32> -> vector<14x64xf32>
    %cst_287 = arith.constant dense<0xFF800000> : vector<14xf32>
    %740 = vector.multi_reduction <maximumf>, %739, %cst_287 [1] : vector<14x64xf32> to vector<14xf32>
    %741 = vector.shape_cast %740 : vector<14xf32> to vector<14x1xf32>
    %742 = vector.broadcast %741 : vector<14x1xf32> to vector<14x64xf32>
    %743 = arith.subf %739, %742 : vector<14x64xf32>
    %744 = math.exp %743 : vector<14x64xf32>
    %cst_288 = arith.constant dense<0.000000e+00> : vector<14xf32>
    %745 = vector.multi_reduction <add>, %744, %cst_288 [1] : vector<14x64xf32> to vector<14xf32>
    %746 = vector.shape_cast %745 : vector<14xf32> to vector<14x1xf32>
    %747 = math.log %746 : vector<14x1xf32>
    %748 = arith.addf %747, %741 : vector<14x1xf32>
    %c0_289 = arith.constant 0 : index
    %c0_290 = arith.constant 0 : index
    %749 = vector.load %arg2[%c0_289, %c0_290] : memref<14x1xi32, #tpu.memory_space<vmem>>, vector<14x1xi32>
    %750 = vector.broadcast %749 : vector<14x1xi32> to vector<14x64xi32>
    %751 = arith.cmpi eq, %1, %750 : vector<14x64xi32>
    %cst_291 = arith.constant 0.000000e+00 : f32
    %752 = vector.broadcast %cst_291 : f32 to vector<14x64xf32>
    %753 = arith.select %751, %739, %752 : vector<14x64xi1>, vector<14x64xf32>
    %cst_292 = arith.constant dense<0.000000e+00> : vector<14xf32>
    %754 = vector.multi_reduction <add>, %753, %cst_292 [1] : vector<14x64xf32> to vector<14xf32>
    %755 = vector.shape_cast %754 : vector<14xf32> to vector<14x1xf32>
    %756 = arith.subf %748, %755 : vector<14x1xf32>
    %cst_293 = arith.constant 6.400000e+01 : f32
    %757 = vector.broadcast %cst_293 : f32 to vector<14x1xf32>
    %758 = arith.mulf %757, %748 : vector<14x1xf32>
    %cst_294 = arith.constant dense<0.000000e+00> : vector<14xf32>
    %759 = vector.multi_reduction <add>, %739, %cst_294 [1] : vector<14x64xf32> to vector<14xf32>
    %760 = vector.shape_cast %759 : vector<14xf32> to vector<14x1xf32>
    %761 = arith.subf %758, %760 : vector<14x1xf32>
    %cst_295 = arith.constant 0.899999976 : f32
    %762 = vector.broadcast %cst_295 : f32 to vector<14x1xf32>
    %763 = arith.mulf %762, %756 : vector<14x1xf32>
    %cst_296 = arith.constant 1.562500e-03 : f32
    %764 = vector.broadcast %cst_296 : f32 to vector<14x1xf32>
    %765 = arith.mulf %764, %761 : vector<14x1xf32>
    %766 = arith.addf %763, %765 : vector<14x1xf32>
    %c1_i32 = arith.constant 1 : i32
    %767 = vector.broadcast %c1_i32 : i32 to vector<14x1xi32>
    %768 = arith.cmpi ne, %749, %767 : vector<14x1xi32>
    %769 = arith.extui %768 : vector<14x1xi1> to vector<14x1xi32>
    %770 = arith.sitofp %769 : vector<14x1xi32> to vector<14x1xf32>
    %771 = arith.mulf %766, %770 : vector<14x1xf32>
    %cst_297 = arith.constant dense<0.000000e+00> : vector<1xf32>
    %772 = vector.multi_reduction <add>, %771, %cst_297 [0] : vector<14x1xf32> to vector<1xf32>
    %773 = vector.shape_cast %772 : vector<1xf32> to vector<1x1xf32>
    %cst_298 = arith.constant dense<0.000000e+00> : vector<1xf32>
    %774 = vector.multi_reduction <add>, %770, %cst_298 [0] : vector<14x1xf32> to vector<1xf32>
    %775 = vector.shape_cast %774 : vector<1xf32> to vector<1x1xf32>
    %cst_299 = arith.constant 1.000000e+00 : f32
    %776 = vector.broadcast %cst_299 : f32 to vector<1x1xf32>
    %777 = arith.maximumf %775, %776 : vector<1x1xf32>
    %778 = arith.divf %773, %777 : vector<1x1xf32>
    %c0_300 = arith.constant 0 : index
    %c0_301 = arith.constant 0 : index
    %779 = vector.load %arg50[%c0_300, %c0_301] : memref<1x1xf32, #tpu.memory_space<vmem>>, vector<1x1xf32>
    tpu.vector_store %arg50[%c0_300, %c0_301], %778 {strides = array<i32>} : memref<1x1xf32, #tpu.memory_space<vmem>>, vector<1x1xf32>,
    return
  }
}

</mosaic_0001>

<bundles_post_ra>
// kernel: tile.9
= control target key start
LH: loop header
LB: loop body
LE: loop exit
PB: predicated region body
PF: predicated region fallthrough
CT: control target
= control target key end

     0   :  { %s32_s0 = inlined_call_operand.vmem [shape: f32[2,7,128], index: 0, kind: input, shape index: {}]   ;;  %s33_s1 = inlined_call_operand.vmem [shape: f32[14,128], index: 1, kind: output, shape index: {}]  }
   0x1   :  { %v2_v0 = vld [vmem:[%s32_s0] sm:$0x7f]   ;;  %v8_v1 = vld [vmem:[%s32_s0 + $0x8] sm:$0x7f]  }
   0x2   :  { %3 = vst [vmem:[%s33_s1] sm:$0x7f] %v2_v0   ;;  %9 = vst [vmem:[%s33_s1 + $0x7] sm:$0x7f] %v8_v1  }

// kernel: vntrocr_forward.2
= control target key start
LH: loop header
LB: loop body
LE: loop exit
PB: predicated region body
PF: predicated region fallthrough
CT: control target
= control target key end

     0   :  { %s4847_s6 = smov 1   ;;  %s4848_s10 = smov 2   ;;  %s5572_s0 = inlined_call_operand.smem [shape: u32[35], index: -1, kind: input, shape index: {}] }
   0x1   :  { %s4930_s5 = sld [smem:[%s5572_s0]]   ;;  %s4849_s14 = smov 3  }
   0x2   :  { %s4935_s9 = sld [smem:[%s5572_s0 + %s4847_s6]]   ;;  %s4850_s18 = smov 4  }
   0x3   :  { %s4940_s13 = sld [smem:[%s5572_s0 + %s4848_s10]]   ;;  %s4851_s22 = smov 5  }
   0x4   :  { %s4945_s17 = sld [smem:[%s5572_s0 + %s4849_s14]]   ;;  %s4852_s26 = smov 6  }
   0x5   :  { %s4950_s21 = sld [smem:[%s5572_s0 + %s4850_s18]]   ;;  %s4853_s30 = smov 7  }
   0x6   :  { %s4955_s25 = sld [smem:[%s5572_s0 + %s4851_s22]]   ;;  %s4854_s4 = smov 8  }
   0x7   :  { %5582 = sst [smem:[#allocation65_spill]] %s4930_s5  ;;  %s4855_s10 = smov 9  }
   0x8   :  { %5583 = sst [smem:[#allocation66_spill]] %s4935_s9  ;;  %s4856_s15 = smov 10  }
   0x9   :  { %s4960_s29 = sld [smem:[%s5572_s0 + %s4852_s26]]   ;;  %s4857_s20 = smov 11  }
   0xa   :  { %s4965_s3 = sld [smem:[%s5572_s0 + %s4853_s30]]   ;;  %s4858_s26 = smov 12  }
   0xb   :  { %5584 = sst [smem:[#allocation67_spill]] %s4950_s21  ;;  %s4859_s1 = smov 13  }
   0xc   :  { %s4970_s8 = sld [smem:[%s5572_s0 + %s4854_s4]]   ;;  %s4860_s7 = smov 14  }
   0xd   :  { %s4975_s14 = sld [smem:[%s5572_s0 + %s4855_s10]]   ;;  %s4862_s22 = smov 16  }
   0xe   :  { %s4980_s19 = sld [smem:[%s5572_s0 + %s4856_s15]]   ;;  %s4861_s15 = smov 15  }
   0xf   :  { %5585 = sst [smem:[#allocation68_spill]] %s4960_s29  ;;  %s4863_s28 = smov 17  }
  0x10   :  { %5586 = sst [smem:[#allocation69_spill]] %s4965_s3 }
  0x11   :  { %s4985_s24 = sld [smem:[%s5572_s0 + %s4857_s20]]  }
  0x12   :  { %5587 = sst [smem:[#allocation70_spill]] %s4970_s8 }
  0x13   :  { %s4990_s30 = sld [smem:[%s5572_s0 + %s4858_s26]]  }
  0x14   :  { %5588 = sst [smem:[#allocation71_spill]] %s4980_s19 }
  0x15   :  { %s4995_s6 = sld [smem:[%s5572_s0 + %s4859_s1]]  }
  0x16   :  { %s5000_s12 = sld [smem:[%s5572_s0 + %s4860_s7]]   ;;  %s4864_s7 = smov 18  }
  0x17   :  { %s5005_s20 = sld [smem:[%s5572_s0 + %s4861_s15]]   ;;  %s4865_s15 = smov 19  }
  0x18   :  { %s5010_s27 = sld [smem:[%s5572_s0 + %s4862_s22]]   ;;  %s4866_s22 = smov 20  }
  0x19   :  { %5589 = sst [smem:[#allocation72_spill]] %s4990_s30 }
  0x1a   :  { %s5015_s4 = sld [smem:[%s5572_s0 + %s4863_s28]]   ;;  %s4867_s28 = smov 21  }
  0x1b   :  { %5590 = sst [smem:[#allocation73_spill]] %s4995_s6 }
  0x1c   :  { %5591 = sst [smem:[#allocation74_spill]] %s5000_s12 }
  0x1d   :  { %s5020_s5 = sld [smem:[%s5572_s0 + %s4864_s7]]   ;;  %s4868_s7 = smov 22  }
  0x1e   :  { %5592 = sst [smem:[#allocation75_spill]] %s5010_s27 }
  0x1f   :  { %s5025_s9 = sld [smem:[%s5572_s0 + %s4865_s15]]   ;;  %s4869_s15 = smov 23  }
  0x20   :  { %5593 = sst [smem:[#allocation76_spill]] %s5015_s4 }
  0x21   :  { %s5030_s27 = sld [smem:[%s5572_s0 + %s4866_s22]]   ;;  %s4870_s22 = smov 24  }
  0x22   :  { %s5035_s4 = sld [smem:[%s5572_s0 + %s4867_s28]]   ;;  %s4871_s28 = smov 25  }
  0x23   :  { %5594 = sst [smem:[#allocation77_spill]] %s5020_s5 }
  0x24   :  { %s5040_s12 = sld [smem:[%s5572_s0 + %s4868_s7]]   ;;  %s4872_s7 = smov 26  }
  0x25   :  { %5595 = sst [smem:[#allocation78_spill]] %s5025_s9 }
  0x26   :  { %s5045_s9 = sld [smem:[%s5572_s0 + %s4869_s15]]   ;;  %s4873_s15 = smov 27  }
  0x27   :  { %s5050_s30 = sld [smem:[%s5572_s0 + %s4870_s22]]   ;;  %s4874_s22 = smov 28  }
  0x28   :  { %5596 = sst [smem:[#allocation79_spill]] %s5035_s4 }
  0x29   :  { %s5055_s4 = sld [smem:[%s5572_s0 + %s4871_s28]]   ;;  %s4875_s28 = smov 29  }
  0x2a   :  { %s5060_s19 = sld [smem:[%s5572_s0 + %s4872_s7]]   ;;  %s4876_s7 = smov 30  }
  0x2b   :  { %s5070_s8 = sld [smem:[%s5572_s0 + %s4874_s22]]   ;;  %s4878_s22 = smov 32  }
  0x2c   :  { %5597 = sst [smem:[#allocation80_spill]] %s5045_s9 }
  0x2d   :  { %s5065_s9 = sld [smem:[%s5572_s0 + %s4873_s15]]   ;;  %s4877_s15 = smov 31  }
  0x2e   :  { %s5080_s29 = sld [smem:[%s5572_s0 + %s4876_s7]]   ;;  %s4880_s7 = smov 34  }
  0x2f   :  { %5598 = sst [smem:[#allocation81_spill]] %s5055_s4 }
  0x30   :  { %s5075_s4 = sld [smem:[%s5572_s0 + %s4875_s28]]   ;;  %s4879_s28 = smov 33  }
  0x31   :  { %5600 = sst [smem:[#allocation83_spill]] %s5070_s8 }
  0x32   :  { %s5090_s8 = sld [smem:[%s5572_s0 + %s4878_s22]]  }
  0x33   :  { %5599 = sst [smem:[#allocation82_spill]] %s5065_s9 }
  0x34   :  { %5602 = sst [smem:[#allocation85_spill]] %s5080_s29 }
  0x35   :  { %s5085_s9 = sld [smem:[%s5572_s0 + %s4877_s15]]  }
  0x36   :  { %5601 = sst [smem:[#allocation84_spill]] %s5075_s4 }
  0x37   :  { %s5095_s21 = sld [smem:[%s5572_s0 + %s4879_s28]]  }
  0x38   :  { %s5100_s29 = sld [smem:[%s5572_s0 + %s4880_s7]]  }
  0x39   :  { %74 = vsyncpa [#allocation4], 0 }
  0x3a   :  { %75 = vsyncpa [#allocation6], 0 }
  0x3b   :  { %76 = vsyncpa [#allocation9], 0 }
  0x3c   :  { %77 = vsyncpa [#allocation12], 0 }
  0x3d   :  { %78 = vsyncpa [#allocation15], 0 }
  0x3e   :  { %79 = vsyncpa [#allocation18], 0 }
  0x3f   :  { %80 = vsyncpa [#allocation21], 0 }
  0x40   :  { %81 = vsyncpa [#allocation24], 0 }
  0x41   :  { %82 = vsyncpa [#allocation27], 0 }
  0x42   :  { %83 = vsyncpa [#allocation30], 0 }
  0x43   :  { %84 = vsyncpa [#allocation33], 0 }
  0x44   :  { %85 = vsyncpa [#allocation36], 0 }
  0x45   :  { %86 = vsyncpa [#allocation39], 0 }
  0x46   :  { %87 = vsyncpa [#allocation42], 0 }
  0x47   :  { %88 = vsyncpa [#allocation45], 0 }
  0x48   :  { %89 = vsyncpa [#allocation48], 0  ;;  %s5102_s15 = smov 0  }
  0x49 LB: > { %s4881_s0 = smov [#allocation5]   ;;  %s5108_s18 = sadd.s32 4294967295, %s4845_s15   ;;  %s4845_s15 = sphi %s5102_s15, %s95_s15  }
  0x4a   : > { %s872_s16 = sshll.u32 %s4881_s0, 4  ;;  %p3259_p0 = scmp.ge.s32.totalorder %s4845_s15, 1  ;;  %s873_s16 = int_to_ptr.vmem [resolvable:$true] %s872_s16 }
  0x4b   : > { %p845_p1 = scmp.lt.s32.totalorder %s4845_s15, 3  ;;  %p5576_p2 = scmp.eq.s32.totalorder %s5108_s18, 0 }
  0x4c   : > { %s4882_s23 = smov [#allocation8]   ;;  %s4883_s28 = smov [#allocation11]  }
  0x4d   : > { %p5113_p3 = pnand %p3259_p0, %p845_p1  ;;  %s894_s26 = sshll.u32 %s4882_s23, 4  ;;  %s5119_s26 = int_to_ptr.vmem [resolvable:$true] %s894_s26 }
  0x4e   : > { %s916_s1 = sshll.u32 %s4883_s28, 4  ;;  %s4884_s7 = smov [#allocation14]   ;;  %s5127_s1 = int_to_ptr.vmem [resolvable:$true] %s916_s1 }
  0x4f   : > { %s5603_s22 = scalar_select %p5113_p3, 1, 0 }
  0x50   : > { %p3697_p4 = pneg %p5113_p3  ;;  %s940_s10 = sshll.u32 %s4884_s7, 4  ;;  %s5129_s10 = int_to_ptr.vmem [resolvable:$true] %s940_s10 }
  0x51   : > { %s4006_s0 = scalar_lea.vmem %s873_s16, 16  ;;  %s4013_s23 = scalar_lea.vmem %s873_s16, 32 }
  0x52   : > { %p5123_p5 = pnand %p5576_p2, %p3697_p4  ;;  %p4007_p7 = scmp.ne.s32.totalorder %s873_s16, %s4006_s0 }
  0x53   : > { %p4014_p10 = scmp.lt.s32.totalorder %s873_s16, %s873_s16  ;;  %p4015_p11 = scmp.lt.s32.totalorder %s4013_s23, %s4006_s0 }
  0x54   : > { %p5133_p6 = pneg %p5123_p5 }
  0x55   : > { %p4016_p12 = por %p4015_p11, %p4014_p10 }
  0x56   : > { %p4009_p8 = pnand %p4007_p7, %p5133_p6 }
  0x58   : > { %p4010_p9 = pneg %p4009_p8 }
  0x5a   : > { %p4017_p13 = pnand %p4016_p12, %p4010_p9 }
  0x5c   : > { %4020 = shalt.err (!%p4017_p13)
}
  0x5d   : > { %3703 = dma.hbm_to_vmem [thread:$0]  (!%p5123_p5), %s4945_s17, 16, %s873_s16, [#allocation6]  }
  0x5e   : > { %s4032_s28 = scalar_lea.vmem %s5119_s26, 128  ;;  %p4040_p7 = scmp.lt.s32.totalorder %s5119_s26, %s5119_s26 }
  0x5f   : > { %p4033_p0 = scmp.ne.s32.totalorder %s5119_s26, %s4032_s28  ;;  %p4041_p8 = scmp.lt.s32.totalorder %s4032_s28, %s4032_s28 }
  0x61   : > { %p4035_p1 = pnand %p4033_p0, %p5133_p6  ;;  %p4042_p2 = por %p4041_p8, %p4040_p7 }
  0x63   : > { %p4036_p4 = pneg %p4035_p1 }
  0x65   : > { %p4043_p10 = pnand %p4042_p2, %p4036_p4 }
  0x67   : > { %4046 = shalt.err (!%p4043_p10)
}
  0x68   : > { %3709 = dma.hbm_to_vmem [thread:$0]  (!%p5123_p5), %s4955_s25, 128, %s5119_s26, [#allocation9]  }
  0x69   : > { %s4058_s16 = scalar_lea.vmem %s5127_s1, 16  ;;  %s4065_s7 = scalar_lea.vmem %s5127_s1, 32 }
  0x6a   : > { %p4059_p9 = scmp.ne.s32.totalorder %s5127_s1, %s4058_s16  ;;  %p4066_p13 = scmp.lt.s32.totalorder %s5127_s1, %s5127_s1 }
  0x6b   : > { %p4067_p2 = scmp.lt.s32.totalorder %s4065_s7, %s4058_s16 }
  0x6c   : > { %p4061_p11 = pnand %p4059_p9, %p5133_p6 }
  0x6d   : > { %p4068_p0 = por %p4067_p2, %p4066_p13 }
  0x6e   : > { %p4062_p12 = pneg %p4061_p11 }
  0x70   : > { %p4069_p1 = pnand %p4068_p0, %p4062_p12 }
  0x72   : > { %4072 = shalt.err (!%p4069_p1)
}
  0x73   : > { %s5606_s3 = sld [smem:[#allocation69_spill]]  ;;  %s4084_s26 = scalar_lea.vmem %s5129_s10, 16 }
  0x74   : > { %p4085_p4 = scmp.ne.s32.totalorder %s5129_s10, %s4084_s26  ;;  %s4091_s0 = scalar_lea.vmem %s5129_s10, 32 }
  0x75   : > { %p4092_p10 = scmp.lt.s32.totalorder %s5129_s10, %s5129_s10  ;;  %p4093_p9 = scmp.lt.s32.totalorder %s4091_s0, %s4084_s26 }
  0x76   : > { %p4087_p7 = pnand %p4085_p4, %p5133_p6 }
  0x77   : > { %p4094_p11 = por %p4093_p9, %p4092_p10 }
  0x78   : > { %p4088_p8 = pneg %p4087_p7 }
  0x79   : > { %3715 = dma.hbm_to_vmem [thread:$0]  (!%p5123_p5), %s5606_s3, 16, %s5127_s1, [#allocation12]  }
  0x7a   : > { %p4095_p12 = pnand %p4094_p11, %p4088_p8 }
  0x7c   : > { %4098 = shalt.err (!%p4095_p12)
}
  0x7d   : > { %3721 = dma.hbm_to_vmem [thread:$0]  (!%p5123_p5), %s4975_s14, 16, %s5129_s10, [#allocation15]  }
  0x7e   : > { %s4885_s23 = smov [#allocation17]   ;;  %s4886_s28 = smov [#allocation20]  }
  0x7f   : > { %s964_s1 = sshll.u32 %s4885_s23, 4  ;;  %s986_s16 = sshll.u32 %s4886_s28, 4  ;;  %s965_s1 = int_to_ptr.vmem [resolvable:$true] %s964_s1  ;;  %s987_s16 = int_to_ptr.vmem [resolvable:$true] %s986_s16 }
  0x80   : > { %s4110_s7 = scalar_lea.vmem %s965_s1, 16  ;;  %s4117_s26 = scalar_lea.vmem %s965_s1, 32 }
  0x81   : > { %p4111_p13 = scmp.ne.s32.totalorder %s965_s1, %s4110_s7  ;;  %p4118_p1 = scmp.lt.s32.totalorder %s965_s1, %s965_s1 }
  0x82   : > { %p4119_p4 = scmp.lt.s32.totalorder %s4117_s26, %s4110_s7 }
  0x83   : > { %p4113_p2 = pnand %p4111_p13, %p5133_p6 }
  0x84   : > { %p4120_p7 = por %p4119_p4, %p4118_p1 }
  0x85   : > { %p4114_p0 = pneg %p4113_p2 }
  0x87   : > { %p4121_p8 = pnand %p4120_p7, %p4114_p0 }
  0x89   : > { %4124 = shalt.err (!%p4121_p8)
}
  0x8a   : > { %3727 = dma.hbm_to_vmem [thread:$0]  (!%p5123_p5), %s4985_s24, 16, %s965_s1, [#allocation18]  }
  0x8b   : > { %s4136_s10 = scalar_lea.vmem %s987_s16, 16  ;;  %s4143_s0 = scalar_lea.vmem %s987_s16, 32 }
  0x8c   : > { %p4137_p10 = scmp.ne.s32.totalorder %s987_s16, %s4136_s10  ;;  %p4144_p12 = scmp.lt.s32.totalorder %s987_s16, %s987_s16 }
  0x8d   : > { %p4145_p13 = scmp.lt.s32.totalorder %s4143_s0, %s4136_s10 }
  0x8e   : > { %p4139_p9 = pnand %p4137_p10, %p5133_p6 }
  0x8f   : > { %p4146_p2 = por %p4145_p13, %p4144_p12 }
  0x90   : > { %p4140_p11 = pneg %p4139_p9 }
  0x92   : > { %p4147_p3 = pnand %p4146_p2, %p4140_p11 }
  0x94   : > { %4150 = shalt.err (!%p4147_p3)
}
  0x95   : > { %s5607_s6 = sld [smem:[#allocation73_spill]]  ;;  %s4887_s23 = smov [#allocation23]  }
  0x96   : > { %s1010_s28 = sshll.u32 %s4887_s23, 4  ;;  %s4888_s1 = smov [#allocation26]   ;;  %s1011_s28 = int_to_ptr.vmem [resolvable:$true] %s1010_s28 }
  0x97   : > { %s1035_s7 = sshll.u32 %s4888_s1, 4  ;;  %s4162_s26 = scalar_lea.vmem %s1011_s28, 16  ;;  %s1036_s7 = int_to_ptr.vmem [resolvable:$true] %s1035_s7 }
  0x98   : > { %p4163_p0 = scmp.ne.s32.totalorder %s1011_s28, %s4162_s26  ;;  %s4169_s3 = scalar_lea.vmem %s1011_s28, 32 }
  0x99   : > { %p4170_p7 = scmp.lt.s32.totalorder %s1011_s28, %s1011_s28  ;;  %p4171_p8 = scmp.lt.s32.totalorder %s4169_s3, %s4162_s26 }
  0x9a   : > { %p4165_p1 = pnand %p4163_p0, %p5133_p6 }
  0x9b   : > { %3733 = dma.hbm_to_vmem [thread:$0]  (!%p5123_p5), %s5607_s6, 16, %s987_s16, [#allocation21]  }
  0x9c   : > { %p4166_p4 = pneg %p4165_p1  ;;  %p4172_p10 = por %p4171_p8, %p4170_p7 }
  0x9e   : > { %p4173_p3 = pnand %p4172_p10, %p4166_p4 }
  0xa0   : > { %4176 = shalt.err (!%p4173_p3)
}
  0xa1   : > { %3739 = dma.hbm_to_vmem [thread:$0]  (!%p5123_p5), %s5005_s20, 16, %s1011_s28, [#allocation24]  }
  0xa2   : > { %s4188_s16 = scalar_lea.vmem %s1036_s7, 16  ;;  %s4195_s10 = scalar_lea.vmem %s1036_s7, 32 }
  0xa3   : > { %p4189_p9 = scmp.ne.s32.totalorder %s1036_s7, %s4188_s16  ;;  %p4196_p13 = scmp.lt.s32.totalorder %s1036_s7, %s1036_s7 }
  0xa4   : > { %p4197_p2 = scmp.lt.s32.totalorder %s4195_s10, %s4188_s16 }
  0xa5   : > { %p4191_p11 = pnand %p4189_p9, %p5133_p6 }
  0xa6   : > { %p4198_p0 = por %p4197_p2, %p4196_p13 }
  0xa7   : > { %p4192_p12 = pneg %p4191_p11 }
  0xa9   : > { %p4199_p1 = pnand %p4198_p0, %p4192_p12 }
  0xab   : > { %4202 = shalt.err (!%p4199_p1)
}
  0xac   : > { %s5608_s5 = sld [smem:[#allocation77_spill]]  ;;  %s4889_s3 = smov [#allocation29]  }
  0xad   : > { %s1056_s0 = sshll.u32 %s4889_s3, 4  ;;  %s4890_s23 = smov [#allocation32]   ;;  %s1057_s0 = int_to_ptr.vmem [resolvable:$true] %s1056_s0 }
  0xae   : > { %s1080_s28 = sshll.u32 %s4890_s23, 4  ;;  %s4214_s1 = scalar_lea.vmem %s1057_s0, 256  ;;  %s1081_s28 = int_to_ptr.vmem [resolvable:$true] %s1080_s28 }
  0xaf   : > { %p4215_p4 = scmp.ne.s32.totalorder %s1057_s0, %s4214_s1  ;;  %p4222_p10 = scmp.lt.s32.totalorder %s1057_s0, %s1057_s0 }
  0xb0   : > { %p4223_p3 = scmp.lt.s32.totalorder %s4214_s1, %s4214_s1 }
  0xb1   : > { %p4217_p7 = pnand %p4215_p4, %p5133_p6 }
  0xb2   : > { %3745 = dma.hbm_to_vmem [thread:$0]  (!%p5123_p5), %s5608_s5, 16, %s1036_s7, [#allocation27]  }
  0xb3   : > { %p4218_p8 = pneg %p4217_p7  ;;  %p4224_p9 = por %p4223_p3, %p4222_p10 }
  0xb5   : > { %p4225_p11 = pnand %p4224_p9, %p4218_p8 }
  0xb7   : > { %4228 = shalt.err (!%p4225_p11)
}
  0xb8   : > { %s5578_s26 = smov 64   ;;  %s5580_s7 = smov 4  }
  0xb9   : > { %3751 = dma.hbm_to_vmem [thread:$0]  (!%p5123_p5), %s5030_s27, 256, %s1057_s0, [#allocation30], %s5578_s26, %s5578_s26, %s5580_s7  }
  0xba   : > { %s4240_s16 = scalar_lea.vmem %s1081_s28, 256  ;;  %p4248_p0 = scmp.lt.s32.totalorder %s1081_s28, %s1081_s28 }
  0xbb   : > { %p4241_p12 = scmp.ne.s32.totalorder %s1081_s28, %s4240_s16  ;;  %p4249_p1 = scmp.lt.s32.totalorder %s4240_s16, %s4240_s16 }
  0xbd   : > { %p4243_p13 = pnand %p4241_p12, %p5133_p6  ;;  %p4250_p4 = por %p4249_p1, %p4248_p0 }
  0xbf   : > { %p4244_p2 = pneg %p4243_p13 }
  0xc1   : > { %p4251_p7 = pnand %p4250_p4, %p4244_p2 }
  0xc3   : > { %4254 = shalt.err (!%p4251_p7)
}
  0xc4   : > { %3757 = dma.hbm_to_vmem [thread:$0]  (!%p5123_p5), %s5040_s12, 256, %s1081_s28, [#allocation33], %s5578_s26, %s5578_s26, %s5580_s7  }
  0xc5   : > { %s4893_s10 = smov [#allocation35]   ;;  %s4894_s0 = smov [#allocation38]  }
  0xc6   : > { %s1105_s3 = sshll.u32 %s4893_s10, 4  ;;  %s1126_s23 = sshll.u32 %s4894_s0, 4  ;;  %s1106_s3 = int_to_ptr.vmem [resolvable:$true] %s1105_s3  ;;  %s1127_s23 = int_to_ptr.vmem [resolvable:$true] %s1126_s23 }
  0xc7   : > { %s4266_s1 = scalar_lea.vmem %s1106_s3, 16  ;;  %s4273_s16 = scalar_lea.vmem %s1106_s3, 32 }
  0xc8   : > { %p4267_p8 = scmp.ne.s32.totalorder %s1106_s3, %s4266_s1  ;;  %p4274_p9 = scmp.lt.s32.totalorder %s1106_s3, %s1106_s3 }
  0xc9   : > { %p4275_p11 = scmp.lt.s32.totalorder %s4273_s16, %s4266_s1 }
  0xca   : > { %p4269_p10 = pnand %p4267_p8, %p5133_p6 }
  0xcb   : > { %p4276_p12 = por %p4275_p11, %p4274_p9 }
  0xcc   : > { %p4270_p3 = pneg %p4269_p10 }
  0xce   : > { %p4277_p13 = pnand %p4276_p12, %p4270_p3 }
  0xd0   : > { %4280 = shalt.err (!%p4277_p13)
}
  0xd1   : > { %3763 = dma.hbm_to_vmem [thread:$0]  (!%p5123_p5), %s5050_s30, 16, %s1106_s3, [#allocation36]  }
  0xd2   : > { %s4292_s28 = scalar_lea.vmem %s1127_s23, 256  ;;  %p4300_p4 = scmp.lt.s32.totalorder %s1127_s23, %s1127_s23 }
  0xd3   : > { %p4293_p2 = scmp.ne.s32.totalorder %s1127_s23, %s4292_s28  ;;  %p4301_p7 = scmp.lt.s32.totalorder %s4292_s28, %s4292_s28 }
  0xd5   : > { %p4295_p0 = pnand %p4293_p2, %p5133_p6  ;;  %p4302_p8 = por %p4301_p7, %p4300_p4 }
  0xd7   : > { %p4296_p1 = pneg %p4295_p0 }
  0xd9   : > { %p4303_p10 = pnand %p4302_p8, %p4296_p1 }
  0xdb   : > { %4306 = shalt.err (!%p4303_p10)
}
  0xdc   : > { %3769 = dma.hbm_to_vmem [thread:$0]  (!%p5123_p5), %s5060_s19, 256, %s1127_s23, [#allocation39], %s5578_s26, %s5578_s26, %s5580_s7  }
  0xdd   : > { %s4895_s10 = smov [#allocation41]   ;;  %s4896_s0 = smov [#allocation44]  }
  0xde   : > { %s1154_s3 = sshll.u32 %s4895_s10, 4  ;;  %s1176_s1 = sshll.u32 %s4896_s0, 4  ;;  %s1155_s3 = int_to_ptr.vmem [resolvable:$true] %s1154_s3  ;;  %s1177_s1 = int_to_ptr.vmem [resolvable:$true] %s1176_s1 }
  0xdf   : > { %s4318_s16 = scalar_lea.vmem %s1155_s3, 16  ;;  %s4325_s28 = scalar_lea.vmem %s1155_s3, 32 }
  0xe0   : > { %p4319_p3 = scmp.ne.s32.totalorder %s1155_s3, %s4318_s16  ;;  %p4326_p12 = scmp.lt.s32.totalorder %s1155_s3, %s1155_s3 }
  0xe1   : > { %p4327_p13 = scmp.lt.s32.totalorder %s4325_s28, %s4318_s16 }
  0xe2   : > { %p4321_p9 = pnand %p4319_p3, %p5133_p6 }
  0xe3   : > { %p4328_p2 = por %p4327_p13, %p4326_p12 }
  0xe4   : > { %p4322_p11 = pneg %p4321_p9 }
  0xe6   : > { %p4329_p0 = pnand %p4328_p2, %p4322_p11 }
  0xe8   : > { %4332 = shalt.err (!%p4329_p0)
}
  0xe9   : > { %s5609_s4 = sld [smem:[#allocation84_spill]]  ;;  %s4344_s23 = scalar_lea.vmem %s1177_s1, 16 }
  0xea   : > { %p4345_p1 = scmp.ne.s32.totalorder %s1177_s1, %s4344_s23  ;;  %s4351_s10 = scalar_lea.vmem %s1177_s1, 32 }
  0xeb   : > { %p4352_p8 = scmp.lt.s32.totalorder %s1177_s1, %s1177_s1  ;;  %p4353_p10 = scmp.lt.s32.totalorder %s4351_s10, %s4344_s23 }
  0xec   : > { %p4347_p4 = pnand %p4345_p1, %p5133_p6 }
  0xed   : > { %p4354_p3 = por %p4353_p10, %p4352_p8 }
  0xee   : > { %p4348_p7 = pneg %p4347_p4 }
  0xef   : > { %3775 = dma.hbm_to_vmem [thread:$0]  (!%p5123_p5), %s5609_s4, 16, %s1155_s3, [#allocation42]  }
  0xf0   : > { %p4355_p9 = pnand %p4354_p3, %p4348_p7 }
  0xf2   : > { %4358 = shalt.err (!%p4355_p9)
}
  0xf3   : > { %3781 = dma.hbm_to_vmem [thread:$0]  (!%p5123_p5), %s5085_s9, 16, %s1177_s1, [#allocation45]  }
  0xf4   : > { %s4897_s0 = smov [#allocation3]   ;;  %s4898_s3 = smov [#allocation7]  }
  0xf5   : > { %s861_s16 = sshll.u32 %s4897_s0, 4  ;;  %s883_s28 = sshll.u32 %s4898_s3, 4  ;;  %s862_s16 = int_to_ptr.vmem [resolvable:$true] %s861_s16  ;;  %s884_s28 = int_to_ptr.vmem [resolvable:$true] %s883_s28 }
  0xf6   : > { %s4370_s26 = scalar_lea.vmem %s862_s16, 16  ;;  %s4377_s7 = scalar_lea.vmem %s862_s16, 32 }
  0xf7   : > { %p4371_p11 = scmp.ne.s32.totalorder %s862_s16, %s4370_s26  ;;  %p4378_p2 = scmp.lt.s32.totalorder %s862_s16, %s862_s16 }
  0xf8   : > { %p4379_p0 = scmp.lt.s32.totalorder %s4377_s7, %s4370_s26 }
  0xf9   : > { %p4373_p12 = pnand %p4371_p11, %p5133_p6 }
  0xfa   : > { %p4380_p1 = por %p4379_p0, %p4378_p2 }
  0xfb   : > { %p4374_p13 = pneg %p4373_p12 }
  0xfd   : > { %p4381_p4 = pnand %p4380_p1, %p4374_p13 }
  0xff   : > { %4384 = shalt.err (!%p4381_p4)
}
 0x100   : > { %3700 = dma.hbm_to_vmem [thread:$0]  (!%p5123_p5), %s4940_s13, 16, %s862_s16, [#allocation4]  }
 0x101   : > { %s4396_s1 = scalar_lea.vmem %s884_s28, 16  ;;  %s4403_s23 = scalar_lea.vmem %s884_s28, 32 }
 0x102   : > { %p4397_p7 = scmp.ne.s32.totalorder %s884_s28, %s4396_s1  ;;  %p4404_p3 = scmp.lt.s32.totalorder %s884_s28, %s884_s28 }
 0x103   : > { %p4405_p9 = scmp.lt.s32.totalorder %s4403_s23, %s4396_s1 }
 0x104   : > { %p4399_p8 = pnand %p4397_p7, %p5133_p6 }
 0x105   : > { %p4406_p11 = por %p4405_p9, %p4404_p3 }
 0x106   : > { %p4400_p10 = pneg %p4399_p8 }
 0x108   : > { %p4407_p12 = pnand %p4406_p11, %p4400_p10 }
 0x10a   : > { %4410 = shalt.err (!%p4407_p12)
}
 0x10b   : > { %s5610_s26 = sld [smem:[#allocation67_spill]]  ;;  %s4899_s7 = smov [#allocation10]  }
 0x10c   : > { %s905_s10 = sshll.u32 %s4899_s7, 4  ;;  %s4900_s0 = smov [#allocation13]   ;;  %s906_s10 = int_to_ptr.vmem [resolvable:$true] %s905_s10 }
 0x10d   : > { %s926_s16 = sshll.u32 %s4900_s0, 4  ;;  %s4422_s3 = scalar_lea.vmem %s906_s10, 16  ;;  %s927_s16 = int_to_ptr.vmem [resolvable:$true] %s926_s16 }
 0x10e   : > { %p4423_p13 = scmp.ne.s32.totalorder %s906_s10, %s4422_s3  ;;  %s4429_s4 = scalar_lea.vmem %s906_s10, 32 }
 0x10f   : > { %p4430_p1 = scmp.lt.s32.totalorder %s906_s10, %s906_s10  ;;  %p4431_p4 = scmp.lt.s32.totalorder %s4429_s4, %s4422_s3 }
 0x110   : > { %p4425_p2 = pnand %p4423_p13, %p5133_p6 }
 0x111   : > { %3706 = dma.hbm_to_vmem [thread:$0]  (!%p5123_p5), %s5610_s26, 16, %s884_s28, [#allocation6]  }
 0x112   : > { %p4426_p0 = pneg %p4425_p2  ;;  %p4432_p7 = por %p4431_p4, %p4430_p1 }
 0x114   : > { %p4433_p8 = pnand %p4432_p7, %p4426_p0 }
 0x116   : > { %4436 = shalt.err (!%p4433_p8)
}
 0x117   : > { %s5611_s1 = sld [smem:[#allocation68_spill]]  ;;  %s4448_s28 = scalar_lea.vmem %s927_s16, 256 }
 0x118   : > { %p4449_p10 = scmp.ne.s32.totalorder %s927_s16, %s4448_s28  ;;  %p4456_p11 = scmp.lt.s32.totalorder %s927_s16, %s927_s16 }
 0x119   : > { %p4457_p12 = scmp.lt.s32.totalorder %s4448_s28, %s4448_s28 }
 0x11a   : > { %p4451_p3 = pnand %p4449_p10, %p5133_p6 }
 0x11b   : > { %p4458_p13 = por %p4457_p12, %p4456_p11 }
 0x11c   : > { %p4452_p9 = pneg %p4451_p3 }
 0x11d   : > { %3712 = dma.hbm_to_vmem [thread:$0]  (!%p5123_p5), %s5611_s1, 16, %s906_s10, [#allocation9]  }
 0x11e   : > { %p4459_p2 = pnand %p4458_p13, %p4452_p9 }
 0x120   : > { %4462 = shalt.err (!%p4459_p2)
}
 0x121   : > { %s5612_s4 = smov 4   ;;  %s5613_s23 = smov 64  }
 0x122   : > { %s5614_s26 = sld [smem:[#allocation70_spill]]  ;;  %s4901_s7 = smov [#allocation16]  }
 0x123   : > { %s950_s10 = sshll.u32 %s4901_s7, 4  ;;  %s4902_s0 = smov [#allocation19]   ;;  %s951_s10 = int_to_ptr.vmem [resolvable:$true] %s950_s10 }
 0x124   : > { %s975_s3 = sshll.u32 %s4902_s0, 4  ;;  %s4474_s1 = scalar_lea.vmem %s951_s10, 256  ;;  %s976_s3 = int_to_ptr.vmem [resolvable:$true] %s975_s3 }
 0x125   : > { %p4475_p0 = scmp.ne.s32.totalorder %s951_s10, %s4474_s1  ;;  %p4482_p7 = scmp.lt.s32.totalorder %s951_s10, %s951_s10 }
 0x126   : > { %p4483_p8 = scmp.lt.s32.totalorder %s4474_s1, %s4474_s1 }
 0x127   : > { %p4477_p1 = pnand %p4475_p0, %p5133_p6 }
 0x128   : > { %3718 = dma.hbm_to_vmem [thread:$0]  (!%p5123_p5), %s5614_s26, 256, %s927_s16, [#allocation12], %s5613_s23, %s5613_s23, %s5612_s4  }
 0x129   : > { %p4478_p4 = pneg %p4477_p1  ;;  %p4484_p10 = por %p4483_p8, %p4482_p7 }
 0x12b   : > { %p4485_p3 = pnand %p4484_p10, %p4478_p4 }
 0x12d   : > { %4488 = shalt.err (!%p4485_p3)
}
 0x12e   : > { %s5615_s16 = sld [smem:[#allocation71_spill]]  ;;  %s4500_s28 = scalar_lea.vmem %s976_s3, 16 }
 0x12f   : > { %p4501_p9 = scmp.ne.s32.totalorder %s976_s3, %s4500_s28  ;;  %s4507_s26 = scalar_lea.vmem %s976_s3, 32 }
 0x130   : > { %p4508_p13 = scmp.lt.s32.totalorder %s976_s3, %s976_s3  ;;  %p4509_p2 = scmp.lt.s32.totalorder %s4507_s26, %s4500_s28 }
 0x131   : > { %p4503_p11 = pnand %p4501_p9, %p5133_p6 }
 0x132   : > { %p4510_p0 = por %p4509_p2, %p4508_p13 }
 0x133   : > { %p4504_p12 = pneg %p4503_p11 }
 0x134   : > { %3724 = dma.hbm_to_vmem [thread:$0]  (!%p5123_p5), %s5615_s16, 256, %s951_s10, [#allocation15], %s5613_s23, %s5613_s23, %s5612_s4  }
 0x135   : > { %p4511_p1 = pnand %p4510_p0, %p4504_p12 }
 0x137   : > { %4514 = shalt.err (!%p4511_p1)
}
 0x138   : > { %s5616_s7 = sld [smem:[#allocation72_spill]]  ;;  %s4903_s0 = smov [#allocation22]  }
 0x139   : > { %s996_s1 = sshll.u32 %s4903_s0, 4  ;;  %s4904_s10 = smov [#allocation25]   ;;  %s997_s1 = int_to_ptr.vmem [resolvable:$true] %s996_s1 }
 0x13a   : > { %s1024_s16 = sshll.u32 %s4904_s10, 4  ;;  %s4526_s5 = scalar_lea.vmem %s997_s1, 256  ;;  %s1025_s16 = int_to_ptr.vmem [resolvable:$true] %s1024_s16 }
 0x13b   : > { %p4527_p4 = scmp.ne.s32.totalorder %s997_s1, %s4526_s5  ;;  %p4534_p10 = scmp.lt.s32.totalorder %s997_s1, %s997_s1 }
 0x13c   : > { %p4535_p3 = scmp.lt.s32.totalorder %s4526_s5, %s4526_s5 }
 0x13d   : > { %p4529_p7 = pnand %p4527_p4, %p5133_p6 }
 0x13e   : > { %3730 = dma.hbm_to_vmem [thread:$0]  (!%p5123_p5), %s5616_s7, 16, %s976_s3, [#allocation18]  }
 0x13f   : > { %p4530_p8 = pneg %p4529_p7  ;;  %p4536_p9 = por %p4535_p3, %p4534_p10 }
 0x141   : > { %p4537_p11 = pnand %p4536_p9, %p4530_p8 }
 0x143   : > { %4540 = shalt.err (!%p4537_p11)
}
 0x144   : > { %s5617_s3 = sld [smem:[#allocation74_spill]]  ;;  %s4552_s28 = scalar_lea.vmem %s1025_s16, 16 }
 0x145   : > { %p4553_p12 = scmp.ne.s32.totalorder %s1025_s16, %s4552_s28  ;;  %s4559_s26 = scalar_lea.vmem %s1025_s16, 32 }
 0x146   : > { %p4560_p0 = scmp.lt.s32.totalorder %s1025_s16, %s1025_s16  ;;  %p4561_p1 = scmp.lt.s32.totalorder %s4559_s26, %s4552_s28 }
 0x147   : > { %p4555_p13 = pnand %p4553_p12, %p5133_p6 }
 0x148   : > { %p4562_p4 = por %p4561_p1, %p4560_p0 }
 0x149   : > { %p4556_p2 = pneg %p4555_p13 }
 0x14a   : > { %3736 = dma.hbm_to_vmem [thread:$0]  (!%p5123_p5), %s5617_s3, 256, %s997_s1, [#allocation21], %s5613_s23, %s5613_s23, %s5612_s4  }
 0x14b   : > { %p4563_p7 = pnand %p4562_p4, %p4556_p2 }
 0x14d   : > { %4566 = shalt.err (!%p4563_p7)
}
 0x14e   : > { %s5618_s5 = sld [smem:[#allocation76_spill]]  ;;  %s4905_s7 = smov [#allocation28]  }
 0x14f   : > { %s1046_s0 = sshll.u32 %s4905_s7, 4  ;;  %s4906_s1 = smov [#allocation31]   ;;  %s1047_s0 = int_to_ptr.vmem [resolvable:$true] %s1046_s0 }
 0x150   : > { %s1070_s10 = sshll.u32 %s4906_s1, 4  ;;  %s4578_s3 = scalar_lea.vmem %s1047_s0, 16  ;;  %s1071_s10 = int_to_ptr.vmem [resolvable:$true] %s1070_s10 }
 0x151   : > { %p4579_p8 = scmp.ne.s32.totalorder %s1047_s0, %s4578_s3  ;;  %s4585_s6 = scalar_lea.vmem %s1047_s0, 32 }
 0x152   : > { %p4586_p9 = scmp.lt.s32.totalorder %s1047_s0, %s1047_s0  ;;  %p4587_p11 = scmp.lt.s32.totalorder %s4585_s6, %s4578_s3 }
 0x153   : > { %p4581_p10 = pnand %p4579_p8, %p5133_p6 }
 0x154   : > { %3742 = dma.hbm_to_vmem [thread:$0]  (!%p5123_p5), %s5618_s5, 16, %s1025_s16, [#allocation24]  }
 0x155   : > { %p4582_p3 = pneg %p4581_p10  ;;  %p4588_p12 = por %p4587_p11, %p4586_p9 }
 0x157   : > { %p4589_p13 = pnand %p4588_p12, %p4582_p3 }
 0x159   : > { %4592 = shalt.err (!%p4589_p13)
}
 0x15a   : > { %s5619_s28 = sld [smem:[#allocation78_spill]]  ;;  %s4604_s16 = scalar_lea.vmem %s1071_s10, 16 }
 0x15b   : > { %p4605_p2 = scmp.ne.s32.totalorder %s1071_s10, %s4604_s16  ;;  %s4611_s26 = scalar_lea.vmem %s1071_s10, 32 }
 0x15c   : > { %p4612_p4 = scmp.lt.s32.totalorder %s1071_s10, %s1071_s10  ;;  %p4613_p7 = scmp.lt.s32.totalorder %s4611_s26, %s4604_s16 }
 0x15d   : > { %p4607_p0 = pnand %p4605_p2, %p5133_p6 }
 0x15e   : > { %p4614_p8 = por %p4613_p7, %p4612_p4 }
 0x15f   : > { %p4608_p1 = pneg %p4607_p0 }
 0x160   : > { %3748 = dma.hbm_to_vmem [thread:$0]  (!%p5123_p5), %s5619_s28, 16, %s1047_s0, [#allocation27]  }
 0x161   : > { %p4615_p10 = pnand %p4614_p8, %p4608_p1 }
 0x163   : > { %4618 = shalt.err (!%p4615_p10)
}
 0x164   : > { %s5620_s6 = sld [smem:[#allocation79_spill]]  ;;  %s4907_s5 = smov [#allocation34]  }
 0x165   : > { %s1094_s7 = sshll.u32 %s4907_s5, 4  ;;  %s4908_s0 = smov [#allocation37]   ;;  %s1095_s7 = int_to_ptr.vmem [resolvable:$true] %s1094_s7 }
 0x166   : > { %s1116_s1 = sshll.u32 %s4908_s0, 4  ;;  %s4630_s3 = scalar_lea.vmem %s1095_s7, 16  ;;  %s1117_s1 = int_to_ptr.vmem [resolvable:$true] %s1116_s1 }
 0x167   : > { %p4631_p3 = scmp.ne.s32.totalorder %s1095_s7, %s4630_s3  ;;  %s4637_s28 = scalar_lea.vmem %s1095_s7, 32 }
 0x168   : > { %p4638_p12 = scmp.lt.s32.totalorder %s1095_s7, %s1095_s7  ;;  %p4639_p13 = scmp.lt.s32.totalorder %s4637_s28, %s4630_s3 }
 0x169   : > { %p4633_p9 = pnand %p4631_p3, %p5133_p6 }
 0x16a   : > { %3754 = dma.hbm_to_vmem [thread:$0]  (!%p5123_p5), %s5620_s6, 16, %s1071_s10, [#allocation30]  }
 0x16b   : > { %p4634_p11 = pneg %p4633_p9  ;;  %p4640_p2 = por %p4639_p13, %p4638_p12 }
 0x16d   : > { %p4641_p0 = pnand %p4640_p2, %p4634_p11 }
 0x16f   : > { %4644 = shalt.err (!%p4641_p0)
}
 0x170   : > { %s5621_s16 = sld [smem:[#allocation80_spill]]  ;;  %s4656_s10 = scalar_lea.vmem %s1117_s1, 16 }
 0x171   : > { %p4657_p1 = scmp.ne.s32.totalorder %s1117_s1, %s4656_s10  ;;  %s4663_s26 = scalar_lea.vmem %s1117_s1, 32 }
 0x172   : > { %p4664_p8 = scmp.lt.s32.totalorder %s1117_s1, %s1117_s1  ;;  %p4665_p10 = scmp.lt.s32.totalorder %s4663_s26, %s4656_s10 }
 0x173   : > { %p4659_p4 = pnand %p4657_p1, %p5133_p6 }
 0x174   : > { %p4666_p3 = por %p4665_p10, %p4664_p8 }
 0x175   : > { %p4660_p7 = pneg %p4659_p4 }
 0x176   : > { %3760 = dma.hbm_to_vmem [thread:$0]  (!%p5123_p5), %s5621_s16, 16, %s1095_s7, [#allocation33]  }
 0x177   : > { %p4667_p9 = pnand %p4666_p3, %p4660_p7 }
 0x179   : > { %4670 = shalt.err (!%p4667_p9)
}
 0x17a   : > { %s5622_s6 = sld [smem:[#allocation81_spill]]  ;;  %s4909_s5 = smov [#allocation40]  }
 0x17b   : > { %s1140_s0 = sshll.u32 %s4909_s5, 4  ;;  %s4910_s7 = smov [#allocation43]   ;;  %s1141_s0 = int_to_ptr.vmem [resolvable:$true] %s1140_s0 }
 0x17c   : > { %s1165_s3 = sshll.u32 %s4910_s7, 4  ;;  %s4682_s28 = scalar_lea.vmem %s1141_s0, 16  ;;  %s1166_s3 = int_to_ptr.vmem [resolvable:$true] %s1165_s3 }
 0x17d   : > { %p4683_p11 = scmp.ne.s32.totalorder %s1141_s0, %s4682_s28  ;;  %s4689_s16 = scalar_lea.vmem %s1141_s0, 32 }
 0x17e   : > { %p4690_p2 = scmp.lt.s32.totalorder %s1141_s0, %s1141_s0  ;;  %p4691_p0 = scmp.lt.s32.totalorder %s4689_s16, %s4682_s28 }
 0x17f   : > { %p4685_p12 = pnand %p4683_p11, %p5133_p6 }
 0x180   : > { %3766 = dma.hbm_to_vmem [thread:$0]  (!%p5123_p5), %s5622_s6, 16, %s1117_s1, [#allocation36]  }
 0x181   : > { %p4686_p13 = pneg %p4685_p12  ;;  %p4692_p1 = por %p4691_p0, %p4690_p2 }
 0x183   : > { %p4693_p4 = pnand %p4692_p1, %p4686_p13 }
 0x185   : > { %4696 = shalt.err (!%p4693_p4)
}
 0x186   : > { %s5623_s10 = sld [smem:[#allocation82_spill]]  ;;  %s4708_s1 = scalar_lea.vmem %s1166_s3, 16 }
 0x187   : > { %p4709_p7 = scmp.ne.s32.totalorder %s1166_s3, %s4708_s1  ;;  %s4715_s26 = scalar_lea.vmem %s1166_s3, 32 }
 0x188   : > { %p4716_p3 = scmp.lt.s32.totalorder %s1166_s3, %s1166_s3  ;;  %p4717_p9 = scmp.lt.s32.totalorder %s4715_s26, %s4708_s1 }
 0x189   : > { %p4711_p8 = pnand %p4709_p7, %p5133_p6 }
 0x18a   : > { %p4718_p11 = por %p4717_p9, %p4716_p3 }
 0x18b   : > { %p4712_p10 = pneg %p4711_p8 }
 0x18c   : > { %3772 = dma.hbm_to_vmem [thread:$0]  (!%p5123_p5), %s5623_s10, 16, %s1141_s0, [#allocation39]  }
 0x18d   : > { %p4719_p12 = pnand %p4718_p11, %p4712_p10 }
 0x18f   : > { %4722 = shalt.err (!%p4719_p12)
}
 0x190   : > { %s5624_s6 = sld [smem:[#allocation85_spill]]  ;;  %s4911_s5 = smov [#allocation46]  }
 0x191   : > { %s1186_s7 = sshll.u32 %s4911_s5, 4  ;;  %s4912_s0 = smov [#allocation47]   ;;  %s1187_s7 = int_to_ptr.vmem [resolvable:$true] %s1186_s7 }
 0x192   : > { %s1200_s28 = sshll.u32 %s4912_s0, 4  ;;  %s4734_s16 = scalar_lea.vmem %s1187_s7, 256  ;;  %s1201_s28 = int_to_ptr.vmem [resolvable:$true] %s1200_s28 }
 0x193   : > { %p4735_p13 = scmp.ne.s32.totalorder %s1187_s7, %s4734_s16  ;;  %p4742_p1 = scmp.lt.s32.totalorder %s1187_s7, %s1187_s7 }
 0x194   : > { %p4743_p4 = scmp.lt.s32.totalorder %s4734_s16, %s4734_s16 }
 0x195   : > { %p4737_p2 = pnand %p4735_p13, %p5133_p6 }
 0x196   : > { %3778 = dma.hbm_to_vmem [thread:$0]  (!%p5123_p5), %s5624_s6, 16, %s1166_s3, [#allocation42]  }
 0x197   : > { %p4738_p0 = pneg %p4737_p2  ;;  %p4744_p7 = por %p4743_p4, %p4742_p1 }
 0x199   : > { %p4745_p8 = pnand %p4744_p7, %p4738_p0 }
 0x19b   : > { %4748 = shalt.err (!%p4745_p8)
}
 0x19c   : > { %3784 = dma.hbm_to_vmem [thread:$0]  (!%p5123_p5), %s5090_s8, 256, %s1187_s7, [#allocation45], %s5613_s23, %s5613_s23, %s5612_s4  }
 0x19d   : > { %s4760_s3 = scalar_lea.vmem %s1201_s28, 16  ;;  %s4767_s10 = scalar_lea.vmem %s1201_s28, 32 }
 0x19e   : > { %p4761_p10 = scmp.ne.s32.totalorder %s1201_s28, %s4760_s3  ;;  %p4768_p11 = scmp.lt.s32.totalorder %s1201_s28, %s1201_s28 }
 0x19f   : > { %p4769_p12 = scmp.lt.s32.totalorder %s4767_s10, %s4760_s3 }
 0x1a0   : > { %p4763_p3 = pnand %p4761_p10, %p5133_p6 }
 0x1a1   : > { %p4770_p13 = por %p4769_p12, %p4768_p11 }
 0x1a2   : > { %p4764_p9 = pneg %p4763_p3 }
 0x1a4   : > { %p4771_p2 = pnand %p4770_p13, %p4764_p9 }
 0x1a6   : > { %4774 = shalt.err (!%p4771_p2)
}
 0x1a7   : > { %3787 = dma.hbm_to_vmem [thread:$0]  (!%p5123_p5), %s5095_s21, 16, %s1201_s28, [#allocation48]  }
 0x1a8   : > { %p5625_p0 = scmp.ne.s32.totalorder %s5603_s22, 0 }
 0x1a9   : > { %p5626_p1 = scmp.eq.s32.totalorder (!%p5625_p0), %s5108_s18, 0 }
 0x1aa   : > { %1221 = sbr.rel (%p5625_p0) target bundleno = 6542 (0x198e), region = 156 }
 0x1af   : > { %4780 = dma.done.wait (%p5626_p1), [#allocation4], 16   ;;  %p5627_p4 = pmov %p5626_p1 }
 0x1b0   : > { %p5628_p6 = pmov %p5626_p1 }
 0x1b1   : > { %4782 = vsyncadd (%p5627_p4), [#allocation4], 4294967280 }
 0x1b2   : > { %4784 = dma.done.wait (%p5628_p6), [#allocation6], 32   ;;  %p5629_p7 = pmov %p5626_p1 }
 0x1b3   : > { %p5630_p8 = pmov %p5626_p1 }
 0x1b4   : > { %4786 = vsyncadd (%p5629_p7), [#allocation6], 4294967264 }
 0x1b5   : > { %4788 = dma.done.wait (%p5630_p8), [#allocation9], 144   ;;  %p5631_p5 = pmov %p5626_p1 }
 0x1b6   : > { %p5632_p10 = pmov %p5626_p1 }
 0x1b7   : > { %4790 = vsyncadd (%p5631_p5), [#allocation9], 4294967152 }
 0x1b8   : > { %4792 = dma.done.wait (%p5632_p10), [#allocation12], 272   ;;  %p5633_p3 = pmov %p5626_p1 }
 0x1b9   : > { %p5634_p9 = pmov %p5626_p1 }
 0x1ba   : > { %4794 = vsyncadd (%p5633_p3), [#allocation12], 4294967024 }
 0x1bb   : > { %4796 = dma.done.wait (%p5634_p9), [#allocation15], 272   ;;  %p5635_p11 = pmov %p5626_p1 }
 0x1bc   : > { %p5636_p12 = pmov %p5626_p1 }
 0x1bd   : > { %4798 = vsyncadd (%p5635_p11), [#allocation15], 4294967024 }
 0x1be   : > { %4800 = dma.done.wait (%p5636_p12), [#allocation18], 32   ;;  %p5637_p13 = pmov %p5626_p1 }
 0x1bf   : > { %p5638_p2 = pmov %p5626_p1 }
 0x1c0   : > { %4802 = vsyncadd (%p5637_p13), [#allocation18], 4294967264 }
 0x1c1   : > { %4804 = dma.done.wait (%p5638_p2), [#allocation21], 272   ;;  %p5639_p0 = pmov %p5626_p1 }
 0x1c3   : > { %4806 = vsyncadd (%p5639_p0), [#allocation21], 4294967024  ;;  %p5640_p1 = pmov %p5639_p0 }
 0x1c4   : > { %p5641_p4 = pmov %p5639_p0 }
 0x1c5   : > { %4808 = dma.done.wait (%p5640_p1), [#allocation24], 32  }
 0x1c6   : > { %4810 = vsyncadd (%p5641_p4), [#allocation24], 4294967264  ;;  %p5642_p6 = pmov %p5639_p0 }
 0x1c7   : > { %p5643_p7 = pmov %p5639_p0 }
 0x1c8   : > { %4812 = dma.done.wait (%p5642_p6), [#allocation27], 32  }
 0x1c9   : > { %4814 = vsyncadd (%p5643_p7), [#allocation27], 4294967264  ;;  %p5644_p8 = pmov %p5639_p0 }
 0x1ca   : > { %p5645_p5 = pmov %p5639_p0 }
 0x1cb   : > { %4816 = dma.done.wait (%p5644_p8), [#allocation30], 272  }
 0x1cc   : > { %4818 = vsyncadd (%p5645_p5), [#allocation30], 4294967024  ;;  %p5646_p10 = pmov %p5639_p0 }
 0x1cd   : > { %p5647_p3 = pmov %p5639_p0 }
 0x1ce   : > { %4820 = dma.done.wait (%p5646_p10), [#allocation33], 272  }
 0x1cf   : > { %4822 = vsyncadd (%p5647_p3), [#allocation33], 4294967024  ;;  %p5648_p9 = pmov %p5639_p0 }
 0x1d0   : > { %p5649_p11 = pmov %p5639_p0 }
 0x1d1   : > { %4824 = dma.done.wait (%p5648_p9), [#allocation36], 32  }
 0x1d2   : > { %4826 = vsyncadd (%p5649_p11), [#allocation36], 4294967264  ;;  %p5650_p12 = pmov %p5639_p0 }
 0x1d3   : > { %p5651_p13 = pmov %p5639_p0 }
 0x1d4   : > { %4828 = dma.done.wait (%p5650_p12), [#allocation39], 272  }
 0x1d5   : > { %4830 = vsyncadd (%p5651_p13), [#allocation39], 4294967024  ;;  %p5652_p2 = pmov %p5639_p0 }
 0x1d7   : > { %4832 = dma.done.wait (%p5652_p2), [#allocation42], 32  }
 0x1d8   : > { %4834 = vsyncadd (%p5639_p0), [#allocation42], 4294967264  ;;  %p5653_p1 = pmov %p5639_p0 }
 0x1d9   : > { %p5654_p4 = pmov %p5639_p0 }
 0x1da   : > { %4836 = dma.done.wait (%p5653_p1), [#allocation45], 272  }
 0x1db   : > { %4838 = vsyncadd (%p5654_p4), [#allocation45], 4294967024  ;;  %p5655_p6 = pmov %p5639_p0 }
 0x1dc   : > { %p5656_p7 = pmov %p5639_p0 }
 0x1dd   : > { %4840 = dma.done.wait (%p5655_p6), [#allocation48], 16  }
 0x1de   : > { %4842 = vsyncadd (%p5656_p7), [#allocation48], 4294967280  ;;  %s5657_s22 = sld [smem:[#allocation66_spill]]  ;;  %v4913_v0 = vmov 0   ;;  %p1422_p8 = scmp.lt.s32.totalorder %s5108_s18, 1  ;;  %vm1546_vm0 = vcmask 523264  }
 0x1df   : > { %s5658_s2 = sld [smem:[#allocation65_spill]]  ;;  %1550 = vmatprep.subr.bf16.mxu0 %v4913_v0  ;;  %v3325_v15 = vld [vmem:[#allocation3] ss:$0 sm:$0xff]  ;;  %v1590_v16 = vld [vmem:[#allocation5] sm:$0x1]  ;;  %vm1601_vm1 = vcmask 1040384  }
 0x1e0   : > { %s5662_s18 = smov (!%p1422_p8, %s5108_s18), 1  ;;  %v3340_v17 = vld [vmem:[#allocation7] ss:$0 sm:$0xff]  ;;  %vm1603_vm2 = vcmask 1041408   ;;  %v1605_v23 = vld [vmem:[#allocation8] sm:$0x3f] }
 0x1e1   : > { %s3401_s11 = sshll.u32 %s5662_s18, 2  ;;  %v1602_v21 = vsel %vm1601_vm1, %v1590_v16, %v3340_v17  ;;  %vm1609_vm3 = vcmask 259072   ;;  %v3943_v34 = vld [vmem:[#allocation13 + $0x8] sm:$0xff]   ;;  %v4914_v35 = vmov 0.0   ;;  %vm4915_vm4 = vmmov 0   ;;  %v3944_v36 = vld [vmem:[#allocation13] sm:$0xff]  }
 0x1e2   : > { %3449 = vmatprep.subr.bf16.mxu1 %v4914_v35  ;;  %3453 = vmatprep.mubr.msk.bf16.mxu1 %vm4915_vm4, %v4914_v35  ;;  %v3341_v41 = vld [vmem:[#allocation10] ss:$0 sm:$0xff]  ;;  %v3342_v43 = vld [vmem:[#allocation11] ss:$0 sm:$0xff]  ;;  %vm1662_vm5 = vcmask 261120   ;;  %s4916_s23 = smov 64   ;;  %s1430_s16 = scalar_lea.vmem %s5100_s29, %s3401_s11 }
 0x1e3   : > { %3450 = vmatpush3.bf16.msra.mxu1 %v3943_v34  ;;  %v3343_v47 = vld [vmem:[#allocation14] ss:$0 sm:$0xff]  ;;  %s4917_s1 = smov 96   ;;  %vm1710_vm6 = vcmask 130048   ;;  %vm1777_vm7 = vcmask 1042432   ;;  %vm1758_vm8 = vcmask 46080  }
 0x1e4   : > { %v3931_v1 = vld [vmem:[%s5657_s22 + $0x38] sm:$0xff]   ;;  %v3932_v2 = vld [vmem:[%s5657_s22 + $0x30] sm:$0xff]   ;;  %v3933_v3 = vld [vmem:[%s5657_s22 + $0x28] sm:$0xff]   ;;  %3451 = vmatprep.subr.bf16.mxu1 %v4914_v35  ;;  %s4918_s26 = smov 80   ;;  %s4919_s6 = smov 112   ;;  %vm1773_vm9 = vcmask 48128  }
 0x1e5   : > { %1551 = vmatpush1.bf16.msra.mxu0 %v3931_v1  ;;  %s1426_s4 = scalar_lea.vmem %s5658_s2, %s3401_s11  ;;  %v3934_v4 = vld [vmem:[%s5657_s22 + $0x20] sm:$0xff]   ;;  %v3935_v5 = vld [vmem:[%s5657_s22 + $0x18] sm:$0xff]   ;;  %v3936_v8 = vld [vmem:[%s5657_s22 + $0x10] sm:$0xff]   ;;  %vm1821_vm10 = vcmask 128000   ;;  %s4920_s5 = smov 48   ;;  %vm1938_vm11 = vcmask 259200  }
 0x1e6   : > { %1552 = vmatprep.subr.bf16.mxu0 %v4913_v0  ;;  %v3326_v6 = vld.sshfl [vmem:[%s1426_s4] sm:$0x33 pattern:$0x76325410]  ;;  %v3937_v9 = vld [vmem:[%s5657_s22 + $0x8] sm:$0xff]   ;;  %v3939_v11 = vld [vmem:[%s5657_s22 + $0x58] sm:$0xff]  }
 0x1e7   : > { %v1472_v7 = vcombine.high %v3326_v6, %v3326_v6  ;;  %v3938_v10 = vld [vmem:[%s5657_s22] sm:$0xff]   ;;  %v3940_v12 = vld [vmem:[%s5657_s22 + $0x50] sm:$0xff]   ;;  %v3941_v13 = vld [vmem:[%s5657_s22 + $0x48] sm:$0xff]   ;;  %3452 = vmatpush3.bf16.msra.mxu1 %v3944_v36  ;;  %s4921_s7 = smov 16   ;;  %s5659_s0 = sld [smem:[#allocation75_spill]] }
 0x1e8   : > { %v3942_v14 = vld [vmem:[%s5657_s22 + $0x40] sm:$0xff]   ;;  %3457 = vmatprep.subr.bf16.mxu1 %v4914_v35  ;;  %v3945_v34 = vld [vmem:[#allocation16 + $0x8] sm:$0xff]   ;;  %v3946_v36 = vld [vmem:[#allocation16] sm:$0xff]   ;;  %s5660_s28 = sld [smem:[#allocation83_spill]] }
 0x1e9   : > { %1553 = vmatpush1.bf16.msra.mxu0 %v3932_v2  ;;  %3339 = vmatprep.mubr.msk.bf16.mxu0 %vm1546_vm0, %v1472_v7 }
 0x1ea   : > { %1554 = vmatprep.subr.bf16.mxu0 %v4913_v0 }
 0x1ed   : > { %1555 = vmatpush1.bf16.msra.mxu0 %v3933_v3 }
 0x1ee   : > { %1556 = vmatprep.subr.bf16.mxu0 %v4913_v0 }
 0x1f1   : > { %1557 = vmatpush1.bf16.msra.mxu0 %v3934_v4 }
 0x1f2   : > { %1558 = vmatprep.subr.bf16.mxu0 %v4913_v0 }
 0x1f5   : > { %1559 = vmatpush1.bf16.msra.mxu0 %v3935_v5 }
 0x1f6   : > { %1560 = vmatprep.subr.bf16.mxu0 %v4913_v0 }
 0x1f9   : > { %1561 = vmatpush1.bf16.msra.mxu0 %v3936_v8 }
 0x1fa   : > { %1562 = vmatprep.subr.bf16.mxu0 %v4913_v0 }
 0x1fd   : > { %1563 = vmatpush1.bf16.msra.mxu0 %v3937_v9 }
 0x1fe   : > { %1564 = vmatprep.subr.bf16.mxu0 %v4913_v0 }
 0x201   : > { %1565 = vmatpush1.bf16.msra.mxu0 %v3938_v10 }
 0x202   : > { %1574 = vmatprep.subr.bf16.mxu0 %v4913_v0 }
 0x205   : > { %1575 = vmatpush2.bf16.msra.mxu0 %v3939_v11 }
 0x206   : > { %1576 = vmatprep.subr.bf16.mxu0 %v4913_v0 }
 0x209   : > { %1577 = vmatpush2.bf16.msra.mxu0 %v3940_v12 }
 0x20a   : > { %1578 = vmatprep.subr.bf16.mxu0 %v4913_v0 }
 0x20d   : > { %1579 = vmatpush2.bf16.msra.mxu0 %v3941_v13 }
 0x20e   : > { %1580 = vmatprep.subr.bf16.mxu0 %v4913_v0 }
 0x211   : > { %1581 = vmatpush2.bf16.msra.mxu0 %v3942_v14 }
 0x212   : > { %3489 = vmatprep.subr.bf16.mxu0 %v4914_v35 }
 0x214   : > { %1583 = vmatmul.mubr.bf16.vlgmr.msra.gmra.mxu0 %v3326_v6 }
 0x215   : > { %3493 = vmatprep.mubr.msk.bf16.mxu0 %vm4915_vm4, %v4914_v35 }
 0x2d4   : > { %v1584_v18 = vpop.f32.mrf.mxu0 }
 0x2d5   : > { %v1585_v19 = vadd.f32 %v3325_v15, %v1584_v18 }
 0x2d6   : > { %v1586_v20 = vpop.f32.mrf.mxu0 }
 0x2d7   : > { %v1599_v22 = vrot.slane %v1585_v19, 6 }
 0x2d8   : > { %v1587_v24 = vpop.f32.mrf.mxu0 }
 0x2d9   : > { %v1604_v25 = vsel %vm1603_vm2, %v1602_v21, %v1599_v22 }
 0x2da   : > { %v1588_v26 = vpop.f32.mrf.mxu0  ;;  %v5412_v27 = vadd.f32 %v1605_v23, %v1604_v25 }
 0x2dc   : > { %v1610_v28 = vsel %vm1609_vm3, %v5412_v27, 0.0 }
 0x2dd   : > { %1611 = vadd.xlane.f32.xlu0 %v1610_v28 }
 0x366   : > { %v1612_v29 = vpop.xlane.xlu0 %1611 }
 0x367   : > { %v1614_v30 = vmul.f32 0.03125, %v1612_v29 }
 0x369   : > { %v1615_v31 = vsub.f32 %v5412_v27, %v1614_v30 }
 0x36b   : > { %v1616_v32 = vmul.f32 %v1615_v31, %v1615_v31 }
 0x36d   : > { %v1617_v33 = vsel %vm1609_vm3, %v1616_v32, 0.0 }
 0x36e   : > { %1618 = vadd.xlane.f32.xlu0 %v1617_v33 }
 0x3f7   : > { %v1619_v37 = vpop.xlane.xlu0 %1618 }
 0x3f8   : > { %v1620_v38 = vmul.f32 0.03125, %v1619_v37 }
 0x3fa   : > { %v1621_v39 = vadd.f32 1e-12, %v1620_v38 }
 0x3fc   : > { %3965 = vrsqrt.f32 %v1621_v39 }
 0x409   : > { %v3966_v40 = vpop.eup %3965 }
 0x40a   : > { %v1623_v42 = vmul.f32 %v3966_v40, %v1615_v31 }
 0x40c   : > { %v1630_v44 = vmul.f32 %v3341_v41, %v1623_v42 }
 0x40e   : > { %v1637_v45 = vadd.f32 %v3342_v43, %v1630_v44 }
 0x410   : > { %v1642_v46 = vpack.c.bf16 %v1637_v45, %v1637_v45  ;;  %v3354_v45 = vld [vmem:[#allocation17] ss:$0 sm:$0xff] }
 0x412   : > { %3454 = vmatmul.mubr.msk.bf16.vlgmr.msra.gmra.mxu1 %vm1662_vm5, %v1642_v46 }
 0x413   : > { %3459 = vmatprep.mubr.msk.bf16.mxu1 %vm4915_vm4, %v4914_v35 }
 0x4d2   : > { %v1700_v48 = vpop.f32.mrf.mxu1 }
 0x4d3   : > { %v1701_v49 = vadd.f32 %v3343_v47, %v1700_v48 }
 0x4d4   : > { %v3455_v50 = vpop.f32.mrf.mxu1 }
 0x4d5   : > { %v5429_v51 = vpack.c.bf16 %v1701_v49, %v1701_v49 }
 0x4d6   : > { %v1703_v52 = vpop.f32.mrf.mxu1 }
 0x4d7   : > { %1771 = vrot.lane.b32.xlu0 %v5429_v51, %s4916_s23  ;;  %1708 = vrot.lane.b32.xlu1 %v5429_v51, %s4917_s1 }
 0x4d8   : > { %v3456_v53 = vpop.f32.mrf.mxu1 }
 0x549   : > { %v1709_v54 = vpop.permute.xlu1 %1708  ;;  %v1772_v56 = vpop.permute.xlu0 %1771 }
 0x54a   : > { %v1715_v55 = vsel %vm1710_vm6, %v1709_v54, 0  ;;  %v1779_v57 = vsel %vm1777_vm7, %v1772_v56, 0 }
 0x54b   : > { %3458 = vmatpush3.bf16.xpose.msra.mxu1 %v1715_v55 }
 0x54c   : > { %3463 = vmatprep.subr.bf16.mxu1 %v4914_v35 }
 0x552   : > { %3460 = vmatmul.mubr.msk.bf16.vlgmr.msra.gmra.mxu1 %vm1710_vm6, %v5429_v51 }
 0x553   : > { %3464 = vmatpush3.bf16.msra.mxu1 %v1779_v57  ;;  %3465 = vmatprep.mubr.msk.bf16.mxu1 %vm4915_vm4, %v4914_v35  ;;  %v3947_v57 = vld [vmem:[#allocation22 + $0x8] sm:$0xff]  }
 0x554   : > { %3469 = vmatprep.subr.bf16.mxu1 %v4914_v35  ;;  %3490 = vmatpush3.bf16.msra.mxu0 %v3947_v57 }
 0x555   : > { %3491 = vmatprep.subr.bf16.mxu0 %v4914_v35 }
 0x612   : > { %v1751_v58 = vpop.f32.mrf.mxu1 }
 0x613   : > { %v1757_v59 = vmul.f32 0.25, %v1751_v58 }
 0x614   : > { %v3461_v60 = vpop.f32.mrf.mxu1 }
 0x615   : > { %v1759_v61 = vsel %vm1758_vm8, %v1757_v59, -inf }
 0x616   : > { %1760 = vmax.xlane.f32.xlu1 %v1759_v61  ;;  %v1754_v62 = vpop.f32.mrf.mxu1 }
 0x617   : > { %v3355_v62 = vld [vmem:[#allocation19] ss:$0 sm:$0xff] }
 0x618   : > { %v3462_v63 = vpop.f32.mrf.mxu1 }
 0x69f   : > { %v1761_v0 = vpop.xlane.xlu1 %1760 }
 0x6a0   : > { %v1762_v1 = vsub.f32 %v1757_v59, %v1761_v0  ;;  %v3356_v0 = vld [vmem:[#allocation20] ss:$0 sm:$0xff] }
 0x6a2   : > { %v1763_v2 = vmul.f32 1.442695, %v1762_v1 }
 0x6a4   : > { %3967 = vpow2.f32 %v1763_v2 }
 0x6b1   : > { %v3968_v3 = vpop.eup %3967 }
 0x6b2   : > { %v1765_v4 = vsel %vm1758_vm8, %v3968_v3, 0.0 }
 0x6b3   : > { %1766 = vadd.xlane.f32.xlu0 %v1765_v4  ;;  %v3949_v4 = vld [vmem:[%s5659_s0 + $0x18] sm:$0xff]  }
 0x6c9   : > { %1825 = vrot.lane.b32.xlu0 %v5429_v51, %s4918_s26 }
 0x6cd   : > { %1823 = vrot.lane.b32.xlu0 %v5429_v51, %s4919_s6 }
 0x73c   : > { %v1767_v5 = vpop.xlane.xlu0 %1766 }
 0x73d   : > { %3969 = vrcp.f32 %v1767_v5  ;;  %v3950_v5 = vld [vmem:[%s5659_s0 + $0x10] sm:$0xff]  }
 0x740   : > { %v1826_v8 = vpop.permute.xlu0 %1825 }
 0x741   : > { %v1831_v10 = vsel %vm1710_vm6, %v1826_v8, 0  ;;  %v3357_v8 = vld [vmem:[#allocation23] ss:$0 sm:$0xff] }
 0x744   : > { %v1824_v11 = vpop.permute.xlu0 %1823 }
 0x74a   : > { %v3970_v6 = vpop.eup %3969 }
 0x74b   : > { %v1769_v7 = vmul.f32 %v3970_v6, %v3968_v3  ;;  %v3951_v6 = vld [vmem:[%s5659_s0 + $0x8] sm:$0xff]  }
 0x74d   : > { %v1770_v9 = vpack.c.bf16 %v1769_v7, %v1769_v7  ;;  %v3952_v7 = vld [vmem:[%s5659_s0] sm:$0xff]  }
 0x74f   : > { %3466 = vmatmul.mubr.msk.bf16.vlgmr.msra.gmra.mxu1 %vm1773_vm9, %v1770_v9 }
 0x750   : > { %3470 = vmatpush3.bf16.xpose.msra.mxu1 %v1831_v10  ;;  %3471 = vmatprep.mubr.msk.bf16.mxu1 %vm4915_vm4, %v4914_v35 }
 0x751   : > { %3475 = vmatprep.subr.bf16.mxu1 %v4914_v35 }
 0x757   : > { %3472 = vmatmul.mubr.msk.bf16.vlgmr.msra.gmra.mxu1 %vm1710_vm6, %v1824_v11 }
 0x758   : > { %3477 = vmatprep.mubr.msk.bf16.mxu1 %vm4915_vm4, %v4914_v35 }
 0x80f   : > { %v1815_v12 = vpop.f32.mrf.mxu1 }
 0x810   : > { %1822 = vst.msk [vmem:[#allocation2] sm:$0x3f] %vm1821_vm10, %v1815_v12 }
 0x811   : > { %v3467_v13 = vpop.f32.mrf.mxu1 }
 0x813   : > { %v1818_v14 = vpop.f32.mrf.mxu1 }
 0x815   : > { %v3468_v15 = vpop.f32.mrf.mxu1 }
 0x817   : > { %v1867_v16 = vpop.f32.mrf.mxu1 }
 0x818   : > { %v1873_v17 = vmul.f32 0.25, %v1867_v16 }
 0x819   : > { %v3473_v18 = vpop.f32.mrf.mxu1 }
 0x81a   : > { %v1874_v19 = vsel %vm1758_vm8, %v1873_v17, -inf }
 0x81b   : > { %1875 = vmax.xlane.f32.xlu1 %v1874_v19  ;;  %v1870_v20 = vpop.f32.mrf.mxu1 }
 0x81d   : > { %v3474_v21 = vpop.f32.mrf.mxu1 }
 0x82c   : > { %1886 = vrot.lane.b32.xlu1 %v5429_v51, %s4920_s5 }
 0x8a4   : > { %v1876_v22 = vpop.xlane.xlu1 %1875 }
 0x8a5   : > { %v1877_v23 = vsub.f32 %v1873_v17, %v1876_v22 }
 0x8a7   : > { %v1878_v24 = vmul.f32 1.442695, %v1877_v23 }
 0x8a8   : > { %v1887_v25 = vpop.permute.xlu1 %1886 }
 0x8a9   : > { %3971 = vpow2.f32 %v1878_v24  ;;  %v1892_v26 = vsel %vm1777_vm7, %v1887_v25, 0  ;;  %v3366_v25 = vld [vmem:[#allocation25] ss:$0 sm:$0xff] }
 0x8aa   : > { %3476 = vmatpush3.bf16.msra.mxu1 %v1892_v26 }
 0x8ab   : > { %3481 = vmatprep.subr.bf16.mxu1 %v4914_v35 }
 0x8b6   : > { %v3972_v28 = vpop.eup %3971 }
 0x8b7   : > { %v1880_v29 = vsel %vm1758_vm8, %v3972_v28, 0.0 }
 0x8b8   : > { %1881 = vadd.xlane.f32.xlu0 %v1880_v29 }
 0x941   : > { %v1882_v30 = vpop.xlane.xlu0 %1881 }
 0x942   : > { %3973 = vrcp.f32 %v1882_v30 }
 0x94f   : > { %v3974_v31 = vpop.eup %3973 }
 0x950   : > { %v1884_v32 = vmul.f32 %v3974_v31, %v3972_v28 }
 0x952   : > { %v1885_v33 = vpack.c.bf16 %v1884_v32, %v1884_v32 }
 0x954   : > { %3478 = vmatmul.mubr.msk.bf16.vlgmr.msra.gmra.mxu1 %vm1773_vm9, %v1885_v33 }
 0x955   : > { %3485 = vmatprep.mubr.msk.bf16.mxu1 %vm4915_vm4, %v4914_v35  ;;  %3482 = vmatpush3.bf16.msra.mxu1 %v3945_v34 }
 0x956   : > { %3483 = vmatprep.subr.bf16.mxu1 %v4914_v35 }
 0x959   : > { %3484 = vmatpush3.bf16.msra.mxu1 %v3946_v36 }
 0x95a   : > { %3497 = vmatprep.subr.bf16.mxu1 %v4914_v35 }
 0xa14   : > { %v1928_v37 = vpop.f32.mrf.mxu1 }
 0xa15   : > { %1935 = vrot.lane.b32.xlu1 %v1928_v37, %s4921_s7 }
 0xa16   : > { %v3479_v38 = vpop.f32.mrf.mxu1 }
 0xa18   : > { %v1931_v39 = vpop.f32.mrf.mxu1 }
 0xa19   : > { %v3953_v39 = vld [vmem:[#allocation29 + $0x8] sm:$0xff]  }
 0xa1a   : > { %v3480_v40 = vpop.f32.mrf.mxu1 }
 0xa1b   : > { %v3954_v40 = vld [vmem:[#allocation29] sm:$0xff]  }
 0xa87   : > { %v1936_v41 = vpop.permute.xlu1 %1935 }
 0xa88   : > { %1939 = vst.msk [vmem:[#allocation2] sm:$0x3f] %vm1938_vm11, %v1936_v41 }
 0xa8f   : > { %v1940_v42 = vld [vmem:[#allocation2] sm:$0x3f] }
 0xa90   : > { %v1945_v43 = vpack.c.bf16 %v1940_v42, %v1940_v42 }
 0xa92   : > { %3486 = vmatmul.mubr.msk.bf16.vlgmr.msra.gmra.mxu1 %vm1662_vm5, %v1945_v43 }
 0xa93   : > { %3505 = vmatprep.mubr.msk.bf16.mxu1 %vm4915_vm4, %v4914_v35  ;;  %3498 = vmatpush3.bf16.msra.mxu1 %v3949_v4 }
 0xa94   : > { %3499 = vmatprep.subr.bf16.mxu1 %v4914_v35 }
 0xa97   : > { %3500 = vmatpush3.bf16.msra.mxu1 %v3950_v5 }
 0xa98   : > { %3501 = vmatprep.subr.bf16.mxu1 %v4914_v35 }
 0xa9b   : > { %3502 = vmatpush3.bf16.msra.mxu1 %v3951_v6 }
 0xa9c   : > { %3503 = vmatprep.subr.bf16.mxu1 %v4914_v35 }
 0xa9f   : > { %3504 = vmatpush3.bf16.msra.mxu1 %v3952_v7 }
 0xaa0   : > { %3523 = vmatprep.subr.bf16.mxu1 %v4914_v35 }
 0xb52   : > { %v1995_v44 = vpop.f32.mrf.mxu1 }
 0xb53   : > { %v2001_v46 = vadd.f32 %v1995_v44, %v5412_v27  ;;  %v3948_v27 = vld [vmem:[#allocation22] sm:$0xff]  }
 0xb54   : > { %v3487_v47 = vpop.f32.mrf.mxu1  ;;  %3492 = vmatpush3.bf16.msra.mxu0 %v3948_v27 }
 0xb55   : > { %v5475_v48 = vadd.f32 %v3354_v45, %v2001_v46  ;;  %3509 = vmatprep.subr.bf16.mxu0 %v4914_v35  ;;  %v3367_v45 = vld [vmem:[#allocation26] ss:$0 sm:$0xff]  ;;  %v3368_v47 = vld [vmem:[#allocation28] ss:$0 sm:$0xff] }
 0xb56   : > { %v1998_v49 = vpop.f32.mrf.mxu1 }
 0xb57   : > { %v2012_v50 = vsel %vm1609_vm3, %v5475_v48, 0.0 }
 0xb58   : > { %2013 = vadd.xlane.f32.xlu1 %v2012_v50  ;;  %v3488_v51 = vpop.f32.mrf.mxu1 }
 0xb59   : > { %v3369_v51 = vld [vmem:[#allocation31] ss:$0 sm:$0xff] }
 0xbe1   : > { %v2014_v52 = vpop.xlane.xlu1 %2013 }
 0xbe2   : > { %v2015_v53 = vmul.f32 0.03125, %v2014_v52 }
 0xbe4   : > { %v2016_v54 = vsub.f32 %v5475_v48, %v2015_v53 }
 0xbe6   : > { %v2017_v55 = vmul.f32 %v2016_v54, %v2016_v54 }
 0xbe8   : > { %v2018_v56 = vsel %vm1609_vm3, %v2017_v55, 0.0 }
 0xbe9   : > { %2019 = vadd.xlane.f32.xlu0 %v2018_v56 }
 0xc72   : > { %v2020_v58 = vpop.xlane.xlu0 %2019 }
 0xc73   : > { %v2021_v59 = vmul.f32 0.03125, %v2020_v58 }
 0xc75   : > { %v2022_v60 = vadd.f32 1e-12, %v2021_v59 }
 0xc77   : > { %3975 = vrsqrt.f32 %v2022_v60 }
 0xc84   : > { %v3976_v61 = vpop.eup %3975 }
 0xc85   : > { %v2024_v63 = vmul.f32 %v3976_v61, %v2016_v54 }
 0xc87   : > { %v2031_v1 = vmul.f32 %v3355_v62, %v2024_v63 }
 0xc89   : > { %v2038_v2 = vadd.f32 %v3356_v0, %v2031_v1 }
 0xc8b   : > { %v2043_v3 = vpack.c.bf16 %v2038_v2, %v2038_v2 }
 0xc8d   : > { %3494 = vmatmul.mubr.msk.bf16.vlgmr.msra.gmra.mxu0 %vm1662_vm5, %v2043_v3 }
 0xc8e   : > { %3513 = vmatprep.mubr.msk.bf16.mxu0 %vm4915_vm4, %v4914_v35  ;;  %3510 = vmatpush3.bf16.msra.mxu0 %v3953_v39 }
 0xc8f   : > { %3511 = vmatprep.subr.bf16.mxu0 %v4914_v35 }
 0xc92   : > { %3512 = vmatpush3.bf16.msra.mxu0 %v3954_v40 }
 0xc93   : > { %3517 = vmatprep.subr.bf16.mxu0 %v4914_v35 }
 0xd4d   : > { %v2100_v9 = vpop.f32.mrf.mxu0 }
 0xd4e   : > { %v2101_v10 = vadd.f32 %v3357_v8, %v2100_v9 }
 0xd4f   : > { %v3495_v11 = vpop.f32.mrf.mxu0 }
 0xd50   : > { %v2106_v12 = vmul.f32 %v2101_v10, %v2101_v10 }
 0xd51   : > { %v2103_v13 = vpop.f32.mrf.mxu0 }
 0xd52   : > { %v2107_v14 = vmul.f32 %v2106_v12, %v2101_v10 }
 0xd53   : > { %v3496_v15 = vpop.f32.mrf.mxu0 }
 0xd54   : > { %v2108_v16 = vmul.f32 0.044715, %v2107_v14 }
 0xd56   : > { %v2109_v17 = vadd.f32 %v2108_v16, %v2101_v10 }
 0xd58   : > { %v2110_v18 = vmul.f32 0.7978846, %v2109_v17 }
 0xd5a   : > { %3977 = vtanh.f32 %v2110_v18 }
 0xd67   : > { %v3978_v19 = vpop.eup %3977 }
 0xd68   : > { %v2112_v20 = vadd.f32 1.0, %v3978_v19 }
 0xd6a   : > { %v2113_v21 = vmul.f32 0.5, %v2112_v20 }
 0xd6c   : > { %v2114_v22 = vmul.f32 %v2113_v21, %v2101_v10 }
 0xd6e   : > { %v2123_v23 = vpack.c.bf16 %v2114_v22, %v2114_v22 }
 0xd70   : > { %3506 = vmatmul.mubr.msk.bf16.vlgmr.msra.gmra.mxu1 %vm1546_vm0, %v2123_v23 }
 0xd71   : > { %3525 = vmatprep.mubr.msk.bf16.mxu1 %vm4915_vm4, %v4914_v35 }
 0xe30   : > { %v2185_v24 = vpop.f32.mrf.mxu1 }
 0xe31   : > { %v2191_v26 = vadd.f32 %v2185_v24, %v5475_v48 }
 0xe32   : > { %v3507_v28 = vpop.f32.mrf.mxu1 }
 0xe33   : > { %v5498_v29 = vadd.f32 %v3366_v25, %v2191_v26 }
 0xe34   : > { %v2188_v30 = vpop.f32.mrf.mxu1 }
 0xe35   : > { %v2202_v31 = vsel %vm1609_vm3, %v5498_v29, 0.0 }
 0xe36   : > { %2203 = vadd.xlane.f32.xlu0 %v2202_v31  ;;  %v3508_v32 = vpop.f32.mrf.mxu1 }
 0xebf   : > { %v2204_v33 = vpop.xlane.xlu0 %2203 }
 0xec0   : > { %v2205_v34 = vmul.f32 0.03125, %v2204_v33 }
 0xec2   : > { %v2206_v36 = vsub.f32 %v5498_v29, %v2205_v34  ;;  %v3955_v34 = vld [vmem:[#allocation32 + $0x8] sm:$0xff]  }
 0xec4   : > { %v2207_v37 = vmul.f32 %v2206_v36, %v2206_v36 }
 0xec6   : > { %v2208_v38 = vsel %vm1609_vm3, %v2207_v37, 0.0 }
 0xec7   : > { %2209 = vadd.xlane.f32.xlu0 %v2208_v38 }
 0xf50   : > { %v2210_v41 = vpop.xlane.xlu0 %2209 }
 0xf51   : > { %v2211_v42 = vmul.f32 0.03125, %v2210_v41 }
 0xf53   : > { %v2212_v43 = vadd.f32 1e-12, %v2211_v42 }
 0xf55   : > { %3979 = vrsqrt.f32 %v2212_v43 }
 0xf62   : > { %v3980_v44 = vpop.eup %3979 }
 0xf63   : > { %v2214_v46 = vmul.f32 %v3980_v44, %v2206_v36  ;;  %v3956_v36 = vld [vmem:[#allocation32] sm:$0xff]  }
 0xf65   : > { %v2221_v48 = vmul.f32 %v3367_v45, %v2214_v46 }
 0xf67   : > { %v2228_v49 = vadd.f32 %v3368_v47, %v2221_v48 }
 0xf69   : > { %v2233_v50 = vpack.c.bf16 %v2228_v49, %v2228_v49  ;;  %v3380_v49 = vld [vmem:[#allocation34] ss:$0 sm:$0xff] }
 0xf6b   : > { %3514 = vmatmul.mubr.msk.bf16.vlgmr.msra.gmra.mxu0 %vm1662_vm5, %v2233_v50 }
 0xf6c   : > { %3519 = vmatprep.mubr.msk.bf16.mxu0 %vm4915_vm4, %v4914_v35 }
0x102b   : > { %v2290_v52 = vpop.f32.mrf.mxu0 }
0x102c   : > { %v2291_v53 = vadd.f32 %v3369_v51, %v2290_v52 }
0x102d   : > { %v3515_v54 = vpop.f32.mrf.mxu0 }
0x102e   : > { %v2296_v55 = vpack.c.bf16 %v2291_v53, %v2291_v53 }
0x102f   : > { %v2293_v56 = vpop.f32.mrf.mxu0 }
0x1030   : > { %2410 = vrot.lane.b32.xlu1 %v2296_v55, %s4918_s26  ;;  %2298 = vrot.lane.b32.xlu0 %v2296_v55, %s4917_s1 }
0x1031   : > { %v3516_v57 = vpop.f32.mrf.mxu0 }
0x1034   : > { %2408 = vrot.lane.b32.xlu0 %v2296_v55, %s4919_s6 }
0x10a2   : > { %v2299_v27 = vpop.permute.xlu0 %2298  ;;  %v2411_v59 = vpop.permute.xlu1 %2410 }
0x10a3   : > { %v2304_v58 = vsel %vm1710_vm6, %v2299_v27, 0  ;;  %v2416_v60 = vsel %vm1710_vm6, %v2411_v59, 0 }
0x10a4   : > { %3518 = vmatpush3.bf16.xpose.msra.mxu0 %v2304_v58 }
0x10a5   : > { %3529 = vmatprep.subr.bf16.mxu0 %v4914_v35 }
0x10a6   : > { %v2409_v61 = vpop.permute.xlu0 %2408 }
0x10ab   : > { %3520 = vmatmul.mubr.msk.bf16.vlgmr.msra.gmra.mxu0 %vm1710_vm6, %v2296_v55 }
0x10ac   : > { %3530 = vmatpush3.bf16.xpose.msra.mxu0 %v2416_v60  ;;  %3531 = vmatprep.mubr.msk.bf16.mxu0 %vm4915_vm4, %v4914_v35  ;;  %v3957_v60 = vld [vmem:[#allocation38 + $0x8] sm:$0xff]  }
0x10ad   : > { %3541 = vmatprep.subr.bf16.mxu0 %v4914_v35 }
0x10b3   : > { %3532 = vmatmul.mubr.msk.bf16.vlgmr.msra.gmra.mxu0 %vm1710_vm6, %v2409_v61  ;;  %v3958_v61 = vld [vmem:[#allocation38] sm:$0xff]  }
0x10b4   : > { %3545 = vmatprep.mubr.msk.bf16.mxu0 %vm4915_vm4, %v4914_v35  ;;  %3542 = vmatpush3.bf16.msra.mxu0 %v3955_v34 }
0x10b5   : > { %3543 = vmatprep.subr.bf16.mxu0 %v4914_v35 }
0x10b8   : > { %3544 = vmatpush3.bf16.msra.mxu0 %v3956_v36 }
0x10b9   : > { %3557 = vmatprep.subr.bf16.mxu0 %v4914_v35 }
0x116b   : > { %v2340_v62 = vpop.f32.mrf.mxu0 }
0x116c   : > { %v2346_v63 = vmul.f32 0.25, %v2340_v62 }
0x116d   : > { %v3521_v0 = vpop.f32.mrf.mxu0 }
0x116e   : > { %v2347_v1 = vsel %vm1758_vm8, %v2346_v63, -inf }
0x116f   : > { %2348 = vmax.xlane.f32.xlu0 %v2347_v1  ;;  %v2343_v2 = vpop.f32.mrf.mxu0  ;;  %v3381_v1 = vld [vmem:[#allocation35] ss:$0 sm:$0xff] }
0x1171   : > { %v3522_v3 = vpop.f32.mrf.mxu0 }
0x1172   : > { %v3382_v3 = vld [vmem:[#allocation37] ss:$0 sm:$0xff] }
0x1173   : > { %v2452_v4 = vpop.f32.mrf.mxu0 }
0x1174   : > { %v2458_v5 = vmul.f32 0.25, %v2452_v4 }
0x1175   : > { %v3533_v6 = vpop.f32.mrf.mxu0 }
0x1176   : > { %v2459_v7 = vsel %vm1758_vm8, %v2458_v5, -inf }
0x1177   : > { %2460 = vmax.xlane.f32.xlu1 %v2459_v7  ;;  %v2455_v8 = vpop.f32.mrf.mxu0  ;;  %v3959_v7 = vld [vmem:[%s5660_s28 + $0x18] sm:$0xff]  }
0x1178   : > { %v3960_v8 = vld [vmem:[%s5660_s28 + $0x10] sm:$0xff]  }
0x1179   : > { %v3534_v9 = vpop.f32.mrf.mxu0 }
0x117a   : > { %v3961_v9 = vld [vmem:[%s5660_s28 + $0x8] sm:$0xff]  }
0x1188   : > { %2471 = vrot.lane.b32.xlu1 %v2296_v55, %s4920_s5 }
0x11f8   : > { %v2349_v10 = vpop.xlane.xlu0 %2348 }
0x11f9   : > { %v2350_v11 = vsub.f32 %v2346_v63, %v2349_v10  ;;  %v3962_v10 = vld [vmem:[%s5660_s28] sm:$0xff]  }
0x11fb   : > { %v2351_v12 = vmul.f32 1.442695, %v2350_v11  ;;  %v3383_v11 = vld [vmem:[#allocation40] ss:$0 sm:$0xff] }
0x11fd   : > { %3981 = vpow2.f32 %v2351_v12 }
0x1200   : > { %v2461_v13 = vpop.xlane.xlu1 %2460 }
0x1201   : > { %v2462_v14 = vsub.f32 %v2458_v5, %v2461_v13 }
0x1203   : > { %v2463_v15 = vmul.f32 1.442695, %v2462_v14 }
0x1204   : > { %v2472_v26 = vpop.permute.xlu1 %2471 }
0x1205   : > { %3983 = vpow2.f32 %v2463_v15  ;;  %v2477_v30 = vsel %vm1777_vm7, %v2472_v26, 0 }
0x120a   : > { %v3982_v16 = vpop.eup %3981 }
0x120b   : > { %v2353_v17 = vsel %vm1758_vm8, %v3982_v16, 0.0 }
0x120c   : > { %2354 = vadd.xlane.f32.xlu0 %v2353_v17 }
0x1212   : > { %v3984_v18 = vpop.eup %3983 }
0x1213   : > { %v2465_v19 = vsel %vm1758_vm8, %v3984_v18, 0.0 }
0x1214   : > { %2466 = vadd.xlane.f32.xlu0 %v2465_v19 }
0x122a   : > { %2359 = vrot.lane.b32.xlu0 %v2296_v55, %s4916_s23 }
0x1295   : > { %v2355_v20 = vpop.xlane.xlu0 %2354 }
0x1296   : > { %3985 = vrcp.f32 %v2355_v20 }
0x129d   : > { %v2467_v21 = vpop.xlane.xlu0 %2466 }
0x129e   : > { %3987 = vrcp.f32 %v2467_v21 }
0x12a1   : > { %v2360_v22 = vpop.permute.xlu0 %2359 }
0x12a2   : > { %v2365_v23 = vsel %vm1777_vm7, %v2360_v22, 0 }
0x12a3   : > { %v3986_v24 = vpop.eup %3985  ;;  %3524 = vmatpush3.bf16.msra.mxu1 %v2365_v23 }
0x12a4   : > { %3535 = vmatprep.subr.bf16.mxu1 %v4914_v35  ;;  %v2357_v25 = vmul.f32 %v3986_v24, %v3982_v16 }
0x12a6   : > { %v2358_v28 = vpack.c.bf16 %v2357_v25, %v2357_v25 }
0x12a8   : > { %3526 = vmatmul.mubr.msk.bf16.vlgmr.msra.gmra.mxu1 %vm1773_vm9, %v2358_v28 }
0x12a9   : > { %3536 = vmatpush3.bf16.msra.mxu1 %v2477_v30  ;;  %3537 = vmatprep.mubr.msk.bf16.mxu1 %vm4915_vm4, %v4914_v35  ;;  %v3392_v30 = vld [vmem:[#allocation41] ss:$0 sm:$0xff] }
0x12aa   : > { %3549 = vmatprep.subr.bf16.mxu1 %v4914_v35 }
0x12ab   : > { %v3988_v31 = vpop.eup %3987 }
0x12ac   : > { %v2469_v32 = vmul.f32 %v3988_v31, %v3984_v18 }
0x12ae   : > { %v2470_v33 = vpack.c.bf16 %v2469_v32, %v2469_v32 }
0x12b0   : > { %3538 = vmatmul.mubr.msk.bf16.vlgmr.msra.gmra.mxu1 %vm1773_vm9, %v2470_v33 }
0x12b1   : > { %3553 = vmatprep.mubr.msk.bf16.mxu1 %vm4915_vm4, %v4914_v35  ;;  %3550 = vmatpush3.bf16.msra.mxu1 %v3957_v60 }
0x12b2   : > { %3551 = vmatprep.subr.bf16.mxu1 %v4914_v35 }
0x12b5   : > { %3552 = vmatpush3.bf16.msra.mxu1 %v3958_v61 }
0x12b6   : > { %3569 = vmatprep.subr.bf16.mxu1 %v4914_v35 }
0x1368   : > { %v2401_v37 = vpop.f32.mrf.mxu1 }
0x1369   : > { %2407 = vst.msk [vmem:[#allocation2] sm:$0x3f] %vm1821_vm10, %v2401_v37 }
0x136a   : > { %v3527_v38 = vpop.f32.mrf.mxu1 }
0x136c   : > { %v2404_v39 = vpop.f32.mrf.mxu1 }
0x136e   : > { %v3528_v40 = vpop.f32.mrf.mxu1 }
0x1370   : > { %v2513_v41 = vpop.f32.mrf.mxu1 }
0x1371   : > { %2520 = vrot.lane.b32.xlu1 %v2513_v41, %s4921_s7 }
0x1372   : > { %v3539_v42 = vpop.f32.mrf.mxu1 }
0x1374   : > { %v2516_v43 = vpop.f32.mrf.mxu1 }
0x1375   : > { %v3963_v43 = vld [vmem:[#allocation46 + $0x8] sm:$0xff]  }
0x1376   : > { %v3540_v44 = vpop.f32.mrf.mxu1 }
0x1377   : > { %v3964_v44 = vld [vmem:[#allocation46] sm:$0xff]  }
0x13e3   : > { %v2521_v45 = vpop.permute.xlu1 %2520 }
0x13e4   : > { %2523 = vst.msk [vmem:[#allocation2] sm:$0x3f] %vm1938_vm11, %v2521_v45 }
0x13eb   : > { %v2524_v46 = vld [vmem:[#allocation2] sm:$0x3f] }
0x13ec   : > { %v2529_v47 = vpack.c.bf16 %v2524_v46, %v2524_v46 }
0x13ee   : > { %3546 = vmatmul.mubr.msk.bf16.vlgmr.msra.gmra.mxu0 %vm1662_vm5, %v2529_v47 }
0x13ef   : > { %3565 = vmatprep.mubr.msk.bf16.mxu0 %vm4915_vm4, %v4914_v35  ;;  %3558 = vmatpush3.bf16.msra.mxu0 %v3959_v7 }
0x13f0   : > { %3559 = vmatprep.subr.bf16.mxu0 %v4914_v35 }
0x13f3   : > { %3560 = vmatpush3.bf16.msra.mxu0 %v3960_v8 }
0x13f4   : > { %3561 = vmatprep.subr.bf16.mxu0 %v4914_v35 }
0x13f7   : > { %3562 = vmatpush3.bf16.msra.mxu0 %v3961_v9 }
0x13f8   : > { %3563 = vmatprep.subr.bf16.mxu0 %v4914_v35 }
0x13fb   : > { %3564 = vmatpush3.bf16.msra.mxu0 %v3962_v10 }
0x14ae   : > { %v2579_v48 = vpop.f32.mrf.mxu0 }
0x14af   : > { %v2585_v50 = vadd.f32 %v2579_v48, %v5498_v29 }
0x14b0   : > { %v3547_v51 = vpop.f32.mrf.mxu0 }
0x14b1   : > { %v2593_v52 = vadd.f32 %v3380_v49, %v2585_v50  ;;  %v3393_v49 = vld [vmem:[#allocation43] ss:$0 sm:$0xff]  ;;  %v3394_v51 = vld [vmem:[#allocation44] ss:$0 sm:$0xff] }
0x14b2   : > { %v2582_v53 = vpop.f32.mrf.mxu0 }
0x14b3   : > { %v2596_v54 = vsel %vm1609_vm3, %v2593_v52, 0.0 }
0x14b4   : > { %2597 = vadd.xlane.f32.xlu0 %v2596_v54  ;;  %v3548_v55 = vpop.f32.mrf.mxu0 }
0x14b5   : > { %v3395_v55 = vld [vmem:[#allocation47] ss:$0 sm:$0xff] }
0x153d   : > { %v2598_v56 = vpop.xlane.xlu0 %2597 }
0x153e   : > { %v2599_v57 = vmul.f32 0.03125, %v2598_v56 }
0x1540   : > { %v2600_v27 = vsub.f32 %v2593_v52, %v2599_v57 }
0x1542   : > { %v2601_v58 = vmul.f32 %v2600_v27, %v2600_v27 }
0x1544   : > { %v2602_v59 = vsel %vm1609_vm3, %v2601_v58, 0.0 }
0x1545   : > { %2603 = vadd.xlane.f32.xlu1 %v2602_v59 }
0x15ce   : > { %v2604_v29 = vpop.xlane.xlu1 %2603 }
0x15cf   : > { %v2605_v62 = vmul.f32 0.03125, %v2604_v29 }
0x15d1   : > { %v2606_v63 = vadd.f32 1e-12, %v2605_v62 }
0x15d3   : > { %3989 = vrsqrt.f32 %v2606_v63 }
0x15e0   : > { %v3990_v0 = vpop.eup %3989 }
0x15e1   : > { %v2608_v2 = vmul.f32 %v3990_v0, %v2600_v27 }
0x15e3   : > { %v2615_v4 = vmul.f32 %v3381_v1, %v2608_v2 }
0x15e5   : > { %v2622_v5 = vadd.f32 %v3382_v3, %v2615_v4 }
0x15e7   : > { %v2627_v6 = vpack.c.bf16 %v2622_v5, %v2622_v5 }
0x15e9   : > { %3554 = vmatmul.mubr.msk.bf16.vlgmr.msra.gmra.mxu1 %vm1662_vm5, %v2627_v6 }
0x15ea   : > { %3573 = vmatprep.mubr.msk.bf16.mxu1 %vm4915_vm4, %v4914_v35  ;;  %3570 = vmatpush3.bf16.msra.mxu1 %v3963_v43 }
0x15eb   : > { %3571 = vmatprep.subr.bf16.mxu1 %v4914_v35 }
0x15ee   : > { %3572 = vmatpush3.bf16.msra.mxu1 %v3964_v44 }
0x16a9   : > { %v2684_v12 = vpop.f32.mrf.mxu1 }
0x16aa   : > { %v2685_v13 = vadd.f32 %v3383_v11, %v2684_v12 }
0x16ab   : > { %v3555_v14 = vpop.f32.mrf.mxu1 }
0x16ac   : > { %v2690_v15 = vmul.f32 %v2685_v13, %v2685_v13 }
0x16ad   : > { %v2687_v16 = vpop.f32.mrf.mxu1 }
0x16ae   : > { %v2691_v17 = vmul.f32 %v2690_v15, %v2685_v13 }
0x16af   : > { %v3556_v18 = vpop.f32.mrf.mxu1 }
0x16b0   : > { %v2692_v19 = vmul.f32 0.044715, %v2691_v17 }
0x16b2   : > { %v2693_v20 = vadd.f32 %v2692_v19, %v2685_v13 }
0x16b4   : > { %v2694_v21 = vmul.f32 0.7978846, %v2693_v20 }
0x16b6   : > { %3991 = vtanh.f32 %v2694_v21 }
0x16c3   : > { %v3992_v22 = vpop.eup %3991 }
0x16c4   : > { %v2696_v23 = vadd.f32 1.0, %v3992_v22 }
0x16c6   : > { %v2697_v24 = vmul.f32 0.5, %v2696_v23 }
0x16c8   : > { %v2698_v25 = vmul.f32 %v2697_v24, %v2685_v13 }
0x16ca   : > { %v2707_v26 = vpack.c.bf16 %v2698_v25, %v2698_v25 }
0x16cc   : > { %3566 = vmatmul.mubr.msk.bf16.vlgmr.msra.gmra.mxu0 %vm1546_vm0, %v2707_v26 }
0x178c   : > { %v2769_v28 = vpop.f32.mrf.mxu0 }
0x178d   : > { %v2775_v31 = vadd.f32 %v2769_v28, %v2593_v52 }
0x178e   : > { %v3567_v32 = vpop.f32.mrf.mxu0 }
0x178f   : > { %v2783_v33 = vadd.f32 %v3392_v30, %v2775_v31 }
0x1790   : > { %v2772_v34 = vpop.f32.mrf.mxu0 }
0x1791   : > { %v2786_v36 = vsel %vm1609_vm3, %v2783_v33, 0.0 }
0x1792   : > { %2787 = vadd.xlane.f32.xlu0 %v2786_v36  ;;  %v3568_v37 = vpop.f32.mrf.mxu0 }
0x181b   : > { %v2788_v38 = vpop.xlane.xlu0 %2787 }
0x181c   : > { %v2789_v39 = vmul.f32 0.03125, %v2788_v38 }
0x181e   : > { %v2790_v40 = vsub.f32 %v2783_v33, %v2789_v39 }
0x1820   : > { %v2791_v41 = vmul.f32 %v2790_v40, %v2790_v40 }
0x1822   : > { %v2792_v42 = vsel %vm1609_vm3, %v2791_v41, 0.0 }
0x1823   : > { %2793 = vadd.xlane.f32.xlu0 %v2792_v42 }
0x18ac   : > { %v2794_v45 = vpop.xlane.xlu0 %2793 }
0x18ad   : > { %v2795_v46 = vmul.f32 0.03125, %v2794_v45 }
0x18af   : > { %v2796_v47 = vadd.f32 1e-12, %v2795_v46 }
0x18b1   : > { %3993 = vrsqrt.f32 %v2796_v47 }
0x18be   : > { %v3994_v48 = vpop.eup %3993 }
0x18bf   : > { %v2798_v50 = vmul.f32 %v3994_v48, %v2790_v40 }
0x18c1   : > { %v2805_v52 = vmul.f32 %v3393_v49, %v2798_v50 }
0x18c3   : > { %v2812_v53 = vadd.f32 %v3394_v51, %v2805_v52 }
0x18c5   : > { %v2817_v54 = vpack.c.bf16 %v2812_v53, %v2812_v53 }
0x18c7   : > { %3574 = vmatmul.mubr.msk.bf16.vlgmr.msra.gmra.mxu1 %vm1662_vm5, %v2817_v54 }
0x1987   : > { %v2874_v56 = vpop.f32.mrf.mxu1 }
0x1988   : > { %v2875_v57 = vadd.f32 %v3395_v55, %v2874_v56 }
0x1989   : > { %v3575_v35 = vpop.f32.mrf.mxu1 }
0x198a   : > { %v2880_v27 = vpack.c.bf16 %v2875_v57, %v2875_v57 }
0x198b   : > { %v2877_v58 = vpop.f32.mrf.mxu1 }
0x198c   : > { %2881 = vst [vmem:[%s1430_s16] sm:$0x7] %v2880_v27 }
0x198d   : > { %v3576_v59 = vpop.f32.mrf.mxu1 }
0x198e PF: > { %s95_s15 = sadd.s32 1, %s4845_s15  }
0x198f   : > { %p92_p5 = scmp.ge.s32.totalorder %s95_s15, 4  }
0x1991   :  { %94 = sbr.rel (!%p92_p5) target bundleno = 73 (0x49), region = 341 }
0x1996   :  { %2901 = vsyncpa [#allocation4], 1 }
0x1997   :  { %2903 = vsyncpa [#allocation4 + $0x1], 1 }
0x1998   :  { %2904 = vsyncpa [#allocation6], 1 }
0x1999   :  { %2905 = vsyncpa [#allocation9], 1 }
0x199a   :  { %2906 = vsyncpa [#allocation12], 1 }
0x199b   :  { %2907 = vsyncpa [#allocation15], 1 }
0x199c   :  { %2908 = vsyncpa [#allocation18], 1 }
0x199d   :  { %2909 = vsyncpa [#allocation21], 1 }
0x199e   :  { %2910 = vsyncpa [#allocation24], 1 }
0x199f   :  { %2911 = vsyncpa [#allocation27], 1 }
0x19a0   :  { %2912 = vsyncpa [#allocation30], 1 }
0x19a1   :  { %2913 = vsyncpa [#allocation33], 1 }
0x19a2   :  { %2914 = vsyncpa [#allocation36], 1 }
0x19a3   :  { %2915 = vsyncpa [#allocation39], 1 }
0x19a4   :  { %2916 = vsyncpa [#allocation42], 1 }
0x19a5   :  { %2917 = vsyncpa [#allocation45], 1 }
0x19a6   :  { %2918 = vsyncpa [#allocation48], 1 }

// kernel: vntrocr_forward.3
= control target key start
LH: loop header
LB: loop body
LE: loop exit
PB: predicated region body
PF: predicated region fallthrough
CT: control target
= control target key end

     0   :  { %s7543_s6 = smov 1   ;;  %s7544_s10 = smov 2   ;;  %s8708_s0 = inlined_call_operand.smem [shape: u32[51], index: -1, kind: input, shape index: {}] }
   0x1   :  { %s7644_s5 = sld [smem:[%s8708_s0]]   ;;  %s7545_s14 = smov 3  }
   0x2   :  { %s7649_s9 = sld [smem:[%s8708_s0 + %s7543_s6]]   ;;  %s7546_s18 = smov 4  }
   0x3   :  { %s7654_s13 = sld [smem:[%s8708_s0 + %s7544_s10]]   ;;  %s7547_s22 = smov 5  }
   0x4   :  { %s7659_s17 = sld [smem:[%s8708_s0 + %s7545_s14]]   ;;  %s7548_s26 = smov 6  }
   0x5   :  { %s7664_s21 = sld [smem:[%s8708_s0 + %s7546_s18]]   ;;  %s7549_s30 = smov 7  }
   0x6   :  { %s7669_s25 = sld [smem:[%s8708_s0 + %s7547_s22]]   ;;  %s7550_s4 = smov 8  }
   0x7   :  { %8723 = sst [smem:[#allocation77_spill]] %s7644_s5  ;;  %s7551_s10 = smov 9  }
   0x8   :  { %8724 = sst [smem:[#allocation78_spill]] %s7649_s9  ;;  %s7552_s15 = smov 10  }
   0x9   :  { %8725 = sst [smem:[#allocation79_spill]] %s7654_s13  ;;  %s7553_s20 = smov 11  }
   0xa   :  { %8726 = sst [smem:[#allocation80_spill]] %s7659_s17  ;;  %s7555_s1 = smov 13  }
   0xb   :  { %8727 = sst [smem:[#allocation81_spill]] %s7664_s21  ;;  %s7556_s7 = smov 14  }
   0xc   :  { %s7674_s29 = sld [smem:[%s8708_s0 + %s7548_s26]]   ;;  %s7554_s26 = smov 12  }
   0xd   :  { %s7679_s3 = sld [smem:[%s8708_s0 + %s7549_s30]]   ;;  %s7558_s22 = smov 16  }
   0xe   :  { %s7684_s8 = sld [smem:[%s8708_s0 + %s7550_s4]]   ;;  %s7559_s28 = smov 17  }
   0xf   :  { %s7689_s14 = sld [smem:[%s8708_s0 + %s7551_s10]]  }
  0x10   :  { %s7694_s19 = sld [smem:[%s8708_s0 + %s7552_s15]]   ;;  %s7557_s15 = smov 15  }
  0x11   :  { %s7699_s24 = sld [smem:[%s8708_s0 + %s7553_s20]]  }
  0x12   :  { %8728 = sst [smem:[#allocation82_spill]] %s7674_s29 }
  0x13   :  { %8729 = sst [smem:[#allocation83_spill]] %s7679_s3 }
  0x14   :  { %s7704_s30 = sld [smem:[%s8708_s0 + %s7554_s26]]  }
  0x15   :  { %8730 = sst [smem:[#allocation84_spill]] %s7689_s14 }
  0x16   :  { %8731 = sst [smem:[#allocation85_spill]] %s7694_s19 }
  0x17   :  { %s7709_s6 = sld [smem:[%s8708_s0 + %s7555_s1]]  }
  0x18   :  { %s7714_s12 = sld [smem:[%s8708_s0 + %s7556_s7]]   ;;  %s7560_s7 = smov 18  }
  0x19   :  { %s7719_s20 = sld [smem:[%s8708_s0 + %s7557_s15]]   ;;  %s7561_s15 = smov 19  }
  0x1a   :  { %8732 = sst [smem:[#allocation86_spill]] %s7704_s30 }
  0x1b   :  { %s7724_s27 = sld [smem:[%s8708_s0 + %s7558_s22]]   ;;  %s7562_s22 = smov 20  }
  0x1c   :  { %s7729_s4 = sld [smem:[%s8708_s0 + %s7559_s28]]   ;;  %s7563_s28 = smov 21  }
  0x1d   :  { %8733 = sst [smem:[#allocation87_spill]] %s7709_s6 }
  0x1e   :  { %s7734_s13 = sld [smem:[%s8708_s0 + %s7560_s7]]   ;;  %s7564_s7 = smov 22  }
  0x1f   :  { %8734 = sst [smem:[#allocation88_spill]] %s7719_s20 }
  0x20   :  { %s7739_s5 = sld [smem:[%s8708_s0 + %s7561_s15]]   ;;  %s7565_s15 = smov 23  }
  0x21   :  { %8735 = sst [smem:[#allocation89_spill]] %s7724_s27 }
  0x22   :  { %s7744_s27 = sld [smem:[%s8708_s0 + %s7562_s22]]   ;;  %s7566_s22 = smov 24  }
  0x23   :  { %s7749_s30 = sld [smem:[%s8708_s0 + %s7563_s28]]   ;;  %s7567_s28 = smov 25  }
  0x24   :  { %8736 = sst [smem:[#allocation90_spill]] %s7734_s13 }
  0x25   :  { %s7754_s13 = sld [smem:[%s8708_s0 + %s7564_s7]]   ;;  %s7568_s7 = smov 26  }
  0x26   :  { %8737 = sst [smem:[#allocation91_spill]] %s7739_s5 }
  0x27   :  { %s7759_s19 = sld [smem:[%s8708_s0 + %s7565_s15]]   ;;  %s7569_s15 = smov 27  }
  0x28   :  { %s7764_s29 = sld [smem:[%s8708_s0 + %s7566_s22]]   ;;  %s7570_s22 = smov 28  }
  0x29   :  { %8738 = sst [smem:[#allocation92_spill]] %s7749_s30 }
  0x2a   :  { %s7769_s21 = sld [smem:[%s8708_s0 + %s7567_s28]]   ;;  %s7571_s28 = smov 29  }
  0x2b   :  { %s7774_s9 = sld [smem:[%s8708_s0 + %s7568_s7]]   ;;  %s7572_s7 = smov 30  }
  0x2c   :  { %s7789_s30 = sld [smem:[%s8708_s0 + %s7571_s28]]   ;;  %s7575_s28 = smov 33  }
  0x2d   :  { %8739 = sst [smem:[#allocation93_spill]] %s7759_s19 }
  0x2e   :  { %8740 = sst [smem:[#allocation94_spill]] %s7764_s29 }
  0x2f   :  { %s7779_s19 = sld [smem:[%s8708_s0 + %s7569_s15]]   ;;  %s7573_s15 = smov 31  }
  0x30   :  { %s7784_s29 = sld [smem:[%s8708_s0 + %s7570_s22]]   ;;  %s7574_s22 = smov 32  }
  0x31   :  { %8741 = sst [smem:[#allocation95_spill]] %s7774_s9 }
  0x32   :  { %8743 = sst [smem:[#allocation97_spill]] %s7789_s30 }
  0x33   :  { %s7794_s9 = sld [smem:[%s8708_s0 + %s7572_s7]]   ;;  %s7576_s7 = smov 34  }
  0x34   :  { %s7804_s5 = sld [smem:[%s8708_s0 + %s7574_s22]]   ;;  %s7578_s22 = smov 36  }
  0x35   :  { %8742 = sst [smem:[#allocation96_spill]] %s7779_s19 }
  0x36   :  { %s7799_s19 = sld [smem:[%s8708_s0 + %s7573_s15]]   ;;  %s7577_s15 = smov 35  }
  0x37   :  { %s7809_s30 = sld [smem:[%s8708_s0 + %s7575_s28]]   ;;  %s7579_s28 = smov 37  }
  0x38   :  { %s7819_s20 = sld [smem:[%s8708_s0 + %s7577_s15]]   ;;  %s7581_s15 = smov 39  }
  0x39   :  { %8744 = sst [smem:[#allocation98_spill]] %s7794_s9 }
  0x3a   :  { %8745 = sst [smem:[#allocation99_spill]] %s7804_s5 }
  0x3b   :  { %s7814_s9 = sld [smem:[%s8708_s0 + %s7576_s7]]   ;;  %s7580_s7 = smov 38  }
  0x3c   :  { %s7824_s5 = sld [smem:[%s8708_s0 + %s7578_s22]]   ;;  %s7582_s22 = smov 40  }
  0x3d   :  { %s7829_s6 = sld [smem:[%s8708_s0 + %s7579_s28]]   ;;  %s7583_s28 = smov 41  }
  0x3e   :  { %s7839_s14 = sld [smem:[%s8708_s0 + %s7581_s15]]   ;;  %s7585_s15 = smov 43  }
  0x3f   :  { %s7849_s3 = sld [smem:[%s8708_s0 + %s7583_s28]]   ;;  %s7587_s28 = smov 45  }
  0x41   :  { %8746 = sst [smem:[#allocation100_spill]] %s7814_s9 }
  0x42   :  { %8747 = sst [smem:[#allocation101_spill]] %s7824_s5 }
  0x43   :  { %s7834_s9 = sld [smem:[%s8708_s0 + %s7580_s7]]   ;;  %s7584_s7 = smov 42  }
  0x44   :  { %8749 = sst [smem:[#allocation103_spill]] %s7839_s14 }
  0x45   :  { %s7844_s5 = sld [smem:[%s8708_s0 + %s7582_s22]]   ;;  %s7586_s22 = smov 44  }
  0x46   :  { %8750 = sst [smem:[#allocation104_spill]] %s7849_s3 }
  0x47   :  { %s7859_s14 = sld [smem:[%s8708_s0 + %s7585_s15]]   ;;  %s7589_s15 = smov 47  }
  0x48   :  { %s7864_s17 = sld [smem:[%s8708_s0 + %s7586_s22]]   ;;  %s7590_s22 = smov 48  }
  0x49   :  { %8748 = sst [smem:[#allocation102_spill]] %s7834_s9 }
  0x4a   :  { %s7854_s9 = sld [smem:[%s8708_s0 + %s7584_s7]]   ;;  %s7588_s7 = smov 46  }
  0x4b   :  { %s7869_s3 = sld [smem:[%s8708_s0 + %s7587_s28]]   ;;  %s7591_s28 = smov 49  }
  0x4d   :  { %8752 = sst [smem:[#allocation106_spill]] %s7859_s14 }
  0x4e   :  { %8753 = sst [smem:[#allocation107_spill]] %s7864_s17 }
  0x4f   :  { %s7879_s14 = sld [smem:[%s8708_s0 + %s7589_s15]]  }
  0x50   :  { %8751 = sst [smem:[#allocation105_spill]] %s7854_s9 }
  0x51   :  { %8754 = sst [smem:[#allocation108_spill]] %s7869_s3 }
  0x52   :  { %s7874_s9 = sld [smem:[%s8708_s0 + %s7588_s7]]   ;;  %s7592_s7 = smov 50  }
  0x53   :  { %s7884_s17 = sld [smem:[%s8708_s0 + %s7590_s22]]  }
  0x54   :  { %s7889_s3 = sld [smem:[%s8708_s0 + %s7591_s28]]  }
  0x58   :  { %8755 = sst [smem:[#allocation109_spill]] %s7874_s9 }
  0x59   :  { %s7894_s9 = sld [smem:[%s8708_s0 + %s7592_s7]]  }
  0x5a   :  { %106 = vsyncpa [#allocation4], 0 }
  0x5b   :  { %107 = vsyncpa [#allocation7], 0 }
  0x5c   :  { %108 = vsyncpa [#allocation10], 0 }
  0x5d   :  { %109 = vsyncpa [#allocation13], 0 }
  0x5e   :  { %110 = vsyncpa [#allocation16], 0 }
  0x5f   :  { %111 = vsyncpa [#allocation19], 0 }
  0x60   :  { %112 = vsyncpa [#allocation22], 0 }
  0x61   :  { %113 = vsyncpa [#allocation25], 0 }
  0x62   :  { %114 = vsyncpa [#allocation28], 0 }
  0x63   :  { %115 = vsyncpa [#allocation31], 0 }
  0x64   :  { %116 = vsyncpa [#allocation34], 0 }
  0x65   :  { %117 = vsyncpa [#allocation37], 0 }
  0x66   :  { %118 = vsyncpa [#allocation40], 0 }
  0x67   :  { %119 = vsyncpa [#allocation43], 0 }
  0x68   :  { %120 = vsyncpa [#allocation46], 0 }
  0x69   :  { %121 = vsyncpa [#allocation49], 0 }
  0x6a   :  { %122 = vsyncpa [#allocation52], 0 }
  0x6b   :  { %123 = vsyncpa [#allocation55], 0 }
  0x6c   :  { %124 = vsyncpa [#allocation5], 0  ;;  %s7593_s0 = smov [#allocation6]  }
  0x6d   :  { %s148_s15 = sshll.u32 %s7593_s0, 4  ;;  %s149_s15 = int_to_ptr.vmem [resolvable:$true] %s148_s15 }
  0x6e   :  { %s6793_s16 = scalar_lea.vmem %s149_s15, 512  ;;  %p6798_p1 = scmp.lt.s32.totalorder %s149_s15, %s149_s15 }
  0x6f   :  { %p6794_p0 = scmp.ne.s32.totalorder %s149_s15, %s6793_s16  ;;  %p6799_p2 = scmp.lt.s32.totalorder %s6793_s16, %s6793_s16 }
  0x71   :  { %p6800_p3 = por %p6799_p2, %p6798_p1 }
  0x73   :  { %p6801_p4 = pnand %p6800_p3, %p6794_p0 }
  0x75   :  { %6804 = shalt.err (!%p6801_p4)
}
  0x76   :  { %s7594_s18 = smov 64   ;;  %s7595_s22 = smov 4  }
  0x77   :  { %154 = dma.hbm_to_vmem [thread:$0]  %s7669_s25, 512, %s149_s15, [#allocation7], %s7594_s18, %s7594_s18, %s7595_s22  }
  0x78   :  { %s7596_s23 = smov [#allocation9]   ;;  %s7597_s28 = smov [#allocation12]  }
  0x79   :  { %s173_s26 = sshll.u32 %s7596_s23, 4  ;;  %s195_s1 = sshll.u32 %s7597_s28, 4  ;;  %s174_s26 = int_to_ptr.vmem [resolvable:$true] %s173_s26  ;;  %s196_s1 = int_to_ptr.vmem [resolvable:$true] %s195_s1 }
  0x7a   :  { %s6813_s2 = scalar_lea.vmem %s174_s26, 16  ;;  %s6817_s7 = scalar_lea.vmem %s174_s26, 32 }
  0x7b   :  { %p6814_p5 = scmp.ne.s32.totalorder %s174_s26, %s6813_s2  ;;  %p6818_p6 = scmp.lt.s32.totalorder %s174_s26, %s174_s26 }
  0x7c   :  { %p6819_p7 = scmp.lt.s32.totalorder %s6817_s7, %s6813_s2 }
  0x7e   :  { %p6820_p8 = por %p6819_p7, %p6818_p6 }
  0x80   :  { %p6821_p9 = pnand %p6820_p8, %p6814_p5 }
  0x82   :  { %6824 = shalt.err (!%p6821_p9)
}
  0x83   :  { %176 = dma.hbm_to_vmem [thread:$0]  %s7684_s8, 16, %s174_s26, [#allocation10]  }
  0x84   :  { %s6833_s10 = scalar_lea.vmem %s196_s1, 48  ;;  %s6837_s11 = scalar_lea.vmem %s196_s1, 64 }
  0x85   :  { %p6834_p10 = scmp.ne.s32.totalorder %s196_s1, %s6833_s10  ;;  %p6838_p11 = scmp.lt.s32.totalorder %s196_s1, %s196_s1 }
  0x86   :  { %p6839_p12 = scmp.lt.s32.totalorder %s6837_s11, %s6833_s10 }
  0x88   :  { %p6840_p13 = por %p6839_p12, %p6838_p11 }
  0x8a   :  { %p6841_p0 = pnand %p6840_p13, %p6834_p10 }
  0x8c   :  { %6844 = shalt.err (!%p6841_p0)
}
  0x8d   :  { %198 = dma.hbm_to_vmem [thread:$0]  %s7699_s24, 48, %s196_s1, [#allocation13]  }
  0x8e   :  { %s7598_s25 = smov [#allocation15]   ;;  %s7599_s15 = smov [#allocation18]  }
  0x8f   :  { %s217_s0 = sshll.u32 %s7598_s25, 4  ;;  %s239_s16 = sshll.u32 %s7599_s15, 4  ;;  %s218_s0 = int_to_ptr.vmem [resolvable:$true] %s217_s0  ;;  %s240_s16 = int_to_ptr.vmem [resolvable:$true] %s239_s16 }
  0x90   :  { %s6853_s23 = scalar_lea.vmem %s218_s0, 16  ;;  %s6857_s28 = scalar_lea.vmem %s218_s0, 32 }
  0x91   :  { %p6854_p1 = scmp.ne.s32.totalorder %s218_s0, %s6853_s23  ;;  %p6858_p2 = scmp.lt.s32.totalorder %s218_s0, %s218_s0 }
  0x92   :  { %p6859_p3 = scmp.lt.s32.totalorder %s6857_s28, %s6853_s23 }
  0x94   :  { %p6860_p4 = por %p6859_p3, %p6858_p2 }
  0x96   :  { %p6861_p5 = pnand %p6860_p4, %p6854_p1 }
  0x98   :  { %6864 = shalt.err (!%p6861_p5)
}
  0x99   :  { %220 = dma.hbm_to_vmem [thread:$0]  %s7714_s12, 16, %s218_s0, [#allocation16]  }
  0x9a   :  { %s6873_s8 = scalar_lea.vmem %s240_s16, 16  ;;  %s6877_s26 = scalar_lea.vmem %s240_s16, 32 }
  0x9b   :  { %p6874_p6 = scmp.ne.s32.totalorder %s240_s16, %s6873_s8  ;;  %p6878_p7 = scmp.lt.s32.totalorder %s240_s16, %s240_s16 }
  0x9c   :  { %p6879_p8 = scmp.lt.s32.totalorder %s6877_s26, %s6873_s8 }
  0x9e   :  { %p6880_p9 = por %p6879_p8, %p6878_p7 }
  0xa0   :  { %p6881_p10 = pnand %p6880_p9, %p6874_p6 }
  0xa2   :  { %6884 = shalt.err (!%p6881_p10)
}
  0xa3   :  { %242 = dma.hbm_to_vmem [thread:$0]  %s7729_s4, 16, %s240_s16, [#allocation19]  }
  0xa4   :  { %s7600_s24 = smov [#allocation21]   ;;  %s7601_s2 = smov [#allocation24]  }
  0xa5   :  { %s260_s1 = sshll.u32 %s7600_s24, 4  ;;  %s283_s7 = sshll.u32 %s7601_s2, 4  ;;  %s261_s1 = int_to_ptr.vmem [resolvable:$true] %s260_s1  ;;  %s284_s7 = int_to_ptr.vmem [resolvable:$true] %s283_s7 }
  0xa6   :  { %s6893_s10 = scalar_lea.vmem %s261_s1, 1024  ;;  %p6898_p12 = scmp.lt.s32.totalorder %s261_s1, %s261_s1 }
  0xa7   :  { %p6894_p11 = scmp.ne.s32.totalorder %s261_s1, %s6893_s10  ;;  %p6899_p13 = scmp.lt.s32.totalorder %s6893_s10, %s6893_s10 }
  0xa9   :  { %p6900_p0 = por %p6899_p13, %p6898_p12 }
  0xab   :  { %p6901_p1 = pnand %p6900_p0, %p6894_p11 }
  0xad   :  { %6904 = shalt.err (!%p6901_p1)
}
  0xae   :  { %266 = dma.hbm_to_vmem [thread:$0]  %s7744_s27, 1024, %s261_s1, [#allocation22], %s7594_s18, %s7594_s18, %s7595_s22  }
  0xaf   :  { %s6913_s12 = scalar_lea.vmem %s284_s7, 16  ;;  %s6917_s4 = scalar_lea.vmem %s284_s7, 32 }
  0xb0   :  { %p6914_p2 = scmp.ne.s32.totalorder %s284_s7, %s6913_s12  ;;  %p6918_p3 = scmp.lt.s32.totalorder %s284_s7, %s284_s7 }
  0xb1   :  { %p6919_p4 = scmp.lt.s32.totalorder %s6917_s4, %s6913_s12 }
  0xb3   :  { %p6920_p5 = por %p6919_p4, %p6918_p3 }
  0xb5   :  { %p6921_p6 = pnand %p6920_p5, %p6914_p2 }
  0xb7   :  { %6924 = shalt.err (!%p6921_p6)
}
  0xb8   :  { %286 = dma.hbm_to_vmem [thread:$0]  %s7754_s13, 16, %s284_s7, [#allocation25]  }
  0xb9   :  { %s7602_s11 = smov [#allocation27]   ;;  %s7603_s0 = smov [#allocation30]  }
  0xba   :  { %s305_s25 = sshll.u32 %s7602_s11, 4  ;;  %s327_s15 = sshll.u32 %s7603_s0, 4  ;;  %s306_s25 = int_to_ptr.vmem [resolvable:$true] %s305_s25  ;;  %s328_s15 = int_to_ptr.vmem [resolvable:$true] %s327_s15 }
  0xbb   :  { %s6933_s16 = scalar_lea.vmem %s306_s25, 32  ;;  %p6938_p8 = scmp.lt.s32.totalorder %s306_s25, %s306_s25 }
  0xbc   :  { %p6934_p7 = scmp.ne.s32.totalorder %s306_s25, %s6933_s16  ;;  %p6939_p9 = scmp.lt.s32.totalorder %s6933_s16, %s6933_s16 }
  0xbe   :  { %p6940_p10 = por %p6939_p9, %p6938_p8 }
  0xc0   :  { %p6941_p11 = pnand %p6940_p10, %p6934_p7 }
  0xc2   :  { %6944 = shalt.err (!%p6941_p11)
}
  0xc3   :  { %308 = dma.hbm_to_vmem [thread:$0]  %s7769_s21, 32, %s306_s25, [#allocation28]  }
  0xc4   :  { %s6953_s27 = scalar_lea.vmem %s328_s15, 16  ;;  %s6957_s23 = scalar_lea.vmem %s328_s15, 32 }
  0xc5   :  { %p6954_p12 = scmp.ne.s32.totalorder %s328_s15, %s6953_s27  ;;  %p6958_p13 = scmp.lt.s32.totalorder %s328_s15, %s328_s15 }
  0xc6   :  { %p6959_p0 = scmp.lt.s32.totalorder %s6957_s23, %s6953_s27 }
  0xc8   :  { %p6960_p1 = por %p6959_p0, %p6958_p13 }
  0xca   :  { %p6961_p2 = pnand %p6960_p1, %p6954_p12 }
  0xcc   :  { %6964 = shalt.err (!%p6961_p2)
}
  0xcd   :  { %330 = dma.hbm_to_vmem [thread:$0]  %s7784_s29, 16, %s328_s15, [#allocation31]  }
  0xce   :  { %s7604_s13 = smov [#allocation33]   ;;  %s7605_s8 = smov [#allocation36]  }
  0xcf   :  { %s349_s28 = sshll.u32 %s7604_s13, 4  ;;  %s371_s26 = sshll.u32 %s7605_s8, 4  ;;  %s350_s28 = int_to_ptr.vmem [resolvable:$true] %s349_s28  ;;  %s372_s26 = int_to_ptr.vmem [resolvable:$true] %s371_s26 }
  0xd0   :  { %s6973_s24 = scalar_lea.vmem %s350_s28, 48  ;;  %s6977_s1 = scalar_lea.vmem %s350_s28, 64 }
  0xd1   :  { %p6974_p3 = scmp.ne.s32.totalorder %s350_s28, %s6973_s24  ;;  %p6978_p4 = scmp.lt.s32.totalorder %s350_s28, %s350_s28 }
  0xd2   :  { %p6979_p5 = scmp.lt.s32.totalorder %s6977_s1, %s6973_s24 }
  0xd4   :  { %p6980_p6 = por %p6979_p5, %p6978_p4 }
  0xd6   :  { %p6981_p7 = pnand %p6980_p6, %p6974_p3 }
  0xd8   :  { %6984 = shalt.err (!%p6981_p7)
}
  0xd9   :  { %352 = dma.hbm_to_vmem [thread:$0]  %s7799_s19, 48, %s350_s28, [#allocation34]  }
  0xda   :  { %s6993_s21 = scalar_lea.vmem %s372_s26, 16  ;;  %s6997_s2 = scalar_lea.vmem %s372_s26, 32 }
  0xdb   :  { %p6994_p8 = scmp.ne.s32.totalorder %s372_s26, %s6993_s21  ;;  %p6998_p9 = scmp.lt.s32.totalorder %s372_s26, %s372_s26 }
  0xdc   :  { %p6999_p10 = scmp.lt.s32.totalorder %s6997_s2, %s6993_s21 }
  0xde   :  { %p7000_p11 = por %p6999_p10, %p6998_p9 }
  0xe0   :  { %p7001_p12 = pnand %p7000_p11, %p6994_p8 }
  0xe2   :  { %7004 = shalt.err (!%p7001_p12)
}
  0xe3   :  { %374 = dma.hbm_to_vmem [thread:$0]  %s7809_s30, 16, %s372_s26, [#allocation37]  }
  0xe4   :  { %s7606_s29 = smov [#allocation39]   ;;  %s7607_s10 = smov [#allocation42]  }
  0xe5   :  { %s391_s7 = sshll.u32 %s7606_s29, 4  ;;  %s413_s12 = sshll.u32 %s7607_s10, 4  ;;  %s392_s7 = int_to_ptr.vmem [resolvable:$true] %s391_s7  ;;  %s414_s12 = int_to_ptr.vmem [resolvable:$true] %s413_s12 }
  0xe6   :  { %s7013_s4 = scalar_lea.vmem %s392_s7, 16  ;;  %s7017_s11 = scalar_lea.vmem %s392_s7, 32 }
  0xe7   :  { %p7014_p13 = scmp.ne.s32.totalorder %s392_s7, %s7013_s4  ;;  %p7018_p0 = scmp.lt.s32.totalorder %s392_s7, %s392_s7 }
  0xe8   :  { %p7019_p1 = scmp.lt.s32.totalorder %s7017_s11, %s7013_s4 }
  0xea   :  { %p7020_p2 = por %p7019_p1, %p7018_p0 }
  0xec   :  { %p7021_p3 = pnand %p7020_p2, %p7014_p13 }
  0xee   :  { %7024 = shalt.err (!%p7021_p3)
}
  0xef   :  { %394 = dma.hbm_to_vmem [thread:$0]  %s7819_s20, 16, %s392_s7, [#allocation40]  }
  0xf0   :  { %s7033_s19 = scalar_lea.vmem %s414_s12, 16  ;;  %s7037_s25 = scalar_lea.vmem %s414_s12, 32 }
  0xf1   :  { %p7034_p4 = scmp.ne.s32.totalorder %s414_s12, %s7033_s19  ;;  %p7038_p5 = scmp.lt.s32.totalorder %s414_s12, %s414_s12 }
  0xf2   :  { %p7039_p6 = scmp.lt.s32.totalorder %s7037_s25, %s7033_s19 }
  0xf4   :  { %p7040_p7 = por %p7039_p6, %p7038_p5 }
  0xf6   :  { %p7041_p8 = pnand %p7040_p7, %p7034_p4 }
  0xf8   :  { %7044 = shalt.err (!%p7041_p8)
}
  0xf9   :  { %416 = dma.hbm_to_vmem [thread:$0]  %s7829_s6, 16, %s414_s12, [#allocation43]  }
  0xfa   :  { %s7608_s30 = smov [#allocation45]   ;;  %s7609_s15 = smov [#allocation48]  }
  0xfb   :  { %s434_s0 = sshll.u32 %s7608_s30, 4  ;;  %s457_s16 = sshll.u32 %s7609_s15, 4  ;;  %s435_s0 = int_to_ptr.vmem [resolvable:$true] %s434_s0  ;;  %s458_s16 = int_to_ptr.vmem [resolvable:$true] %s457_s16 }
  0xfc   :  { %s7053_s27 = scalar_lea.vmem %s435_s0, 1024  ;;  %p7058_p10 = scmp.lt.s32.totalorder %s435_s0, %s435_s0 }
  0xfd   :  { %p7054_p9 = scmp.ne.s32.totalorder %s435_s0, %s7053_s27  ;;  %p7059_p11 = scmp.lt.s32.totalorder %s7053_s27, %s7053_s27 }
  0xff   :  { %p7060_p12 = por %p7059_p11, %p7058_p10 }
 0x101   :  { %p7061_p13 = pnand %p7060_p12, %p7054_p9 }
 0x103   :  { %7064 = shalt.err (!%p7061_p13)
}
 0x104   :  { %440 = dma.hbm_to_vmem [thread:$0]  %s7844_s5, 1024, %s435_s0, [#allocation46], %s7594_s18, %s7594_s18, %s7595_s22  }
 0x105   :  { %s7073_s20 = scalar_lea.vmem %s458_s16, 16  ;;  %s7077_s6 = scalar_lea.vmem %s458_s16, 32 }
 0x106   :  { %p7074_p0 = scmp.ne.s32.totalorder %s458_s16, %s7073_s20  ;;  %p7078_p1 = scmp.lt.s32.totalorder %s458_s16, %s458_s16 }
 0x107   :  { %p7079_p2 = scmp.lt.s32.totalorder %s7077_s6, %s7073_s20 }
 0x109   :  { %p7080_p3 = por %p7079_p2, %p7078_p1 }
 0x10b   :  { %p7081_p4 = pnand %p7080_p3, %p7074_p0 }
 0x10d   :  { %7084 = shalt.err (!%p7081_p4)
}
 0x10e   :  { %s8756_s23 = sld [smem:[#allocation105_spill]]  ;;  %s7610_s13 = smov [#allocation51]  }
 0x10f   :  { %s479_s28 = sshll.u32 %s7610_s13, 4  ;;  %s7611_s8 = smov [#allocation54]   ;;  %s480_s28 = int_to_ptr.vmem [resolvable:$true] %s479_s28 }
 0x110   :  { %s501_s26 = sshll.u32 %s7611_s8, 4  ;;  %s7093_s24 = scalar_lea.vmem %s480_s28, 32  ;;  %s502_s26 = int_to_ptr.vmem [resolvable:$true] %s501_s26 }
 0x111   :  { %p7094_p5 = scmp.ne.s32.totalorder %s480_s28, %s7093_s24  ;;  %p7098_p6 = scmp.lt.s32.totalorder %s480_s28, %s480_s28 }
 0x112   :  { %p7099_p7 = scmp.lt.s32.totalorder %s7093_s24, %s7093_s24 }
 0x114   :  { %460 = dma.hbm_to_vmem [thread:$0]  %s8756_s23, 16, %s458_s16, [#allocation49]  }
 0x115   :  { %p7100_p8 = por %p7099_p7, %p7098_p6 }
 0x117   :  { %p7101_p9 = pnand %p7100_p8, %p7094_p5 }
 0x119   :  { %7104 = shalt.err (!%p7101_p9)
}
 0x11a   :  { %s8757_s5 = sld [smem:[#allocation108_spill]]  ;;  %s7113_s1 = scalar_lea.vmem %s502_s26, 16 }
 0x11b   :  { %p7114_p10 = scmp.ne.s32.totalorder %s502_s26, %s7113_s1  ;;  %s7117_s21 = scalar_lea.vmem %s502_s26, 32 }
 0x11c   :  { %p7118_p11 = scmp.lt.s32.totalorder %s502_s26, %s502_s26  ;;  %p7119_p12 = scmp.lt.s32.totalorder %s7117_s21, %s7113_s1 }
 0x11e   :  { %p7120_p13 = por %p7119_p12, %p7118_p11 }
 0x120   :  { %482 = dma.hbm_to_vmem [thread:$0]  %s8757_s5, 32, %s480_s28, [#allocation52]  }
 0x121   :  { %p7121_p0 = pnand %p7120_p13, %p7114_p10 }
 0x123   :  { %7124 = shalt.err (!%p7121_p0)
}
 0x124   :  { %504 = dma.hbm_to_vmem [thread:$0]  %s7884_s17, 16, %s502_s26, [#allocation55]  }
 0x125   :  { %s7612_s2 = smov [#allocation3]   ;;  %s7613_s7 = smov [#allocation8]  }
 0x126   :  { %s137_s29 = sshll.u32 %s7612_s2, 4  ;;  %s163_s10 = sshll.u32 %s7613_s7, 4  ;;  %s138_s29 = int_to_ptr.vmem [resolvable:$true] %s137_s29  ;;  %s164_s10 = int_to_ptr.vmem [resolvable:$true] %s163_s10 }
 0x127   :  { %s7133_s12 = scalar_lea.vmem %s138_s29, 32  ;;  %p7138_p2 = scmp.lt.s32.totalorder %s138_s29, %s138_s29 }
 0x128   :  { %p7134_p1 = scmp.ne.s32.totalorder %s138_s29, %s7133_s12  ;;  %p7139_p3 = scmp.lt.s32.totalorder %s7133_s12, %s7133_s12 }
 0x12a   :  { %p7140_p4 = por %p7139_p3, %p7138_p2 }
 0x12c   :  { %p7141_p5 = pnand %p7140_p4, %p7134_p1 }
 0x12e   :  { %7144 = shalt.err (!%p7141_p5)
}
 0x12f   :  { %s8758_s4 = sld [smem:[#allocation80_spill]]  ;;  %s7153_s11 = scalar_lea.vmem %s164_s10, 16 }
 0x130   :  { %p7154_p6 = scmp.ne.s32.totalorder %s164_s10, %s7153_s11  ;;  %s7157_s19 = scalar_lea.vmem %s164_s10, 32 }
 0x131   :  { %p7158_p7 = scmp.lt.s32.totalorder %s164_s10, %s164_s10  ;;  %p7159_p8 = scmp.lt.s32.totalorder %s7157_s19, %s7153_s11 }
 0x133   :  { %p7160_p9 = por %p7159_p8, %p7158_p7 }
 0x135   :  { %140 = dma.hbm_to_vmem [thread:$0]  %s8758_s4, 32, %s138_s29, [#allocation4]  }
 0x136   :  { %p7161_p10 = pnand %p7160_p9, %p7154_p6 }
 0x138   :  { %7164 = shalt.err (!%p7161_p10)
}
 0x139   :  { %s8759_s17 = sld [smem:[#allocation83_spill]]  ;;  %s7614_s25 = smov [#allocation11]  }
 0x13a   :  { %s183_s30 = sshll.u32 %s7614_s25, 4  ;;  %s7615_s0 = smov [#allocation14]   ;;  %s184_s30 = int_to_ptr.vmem [resolvable:$true] %s183_s30 }
 0x13b   :  { %s207_s15 = sshll.u32 %s7615_s0, 4  ;;  %s7173_s16 = scalar_lea.vmem %s184_s30, 16  ;;  %s208_s15 = int_to_ptr.vmem [resolvable:$true] %s207_s15 }
 0x13c   :  { %p7174_p11 = scmp.ne.s32.totalorder %s184_s30, %s7173_s16  ;;  %s7177_s27 = scalar_lea.vmem %s184_s30, 32 }
 0x13d   :  { %p7178_p12 = scmp.lt.s32.totalorder %s184_s30, %s184_s30  ;;  %p7179_p13 = scmp.lt.s32.totalorder %s7177_s27, %s7173_s16 }
 0x13f   :  { %166 = dma.hbm_to_vmem [thread:$0]  %s8759_s17, 16, %s164_s10, [#allocation7]  }
 0x140   :  { %p7180_p0 = por %p7179_p13, %p7178_p12 }
 0x142   :  { %p7181_p1 = pnand %p7180_p0, %p7174_p11 }
 0x144   :  { %7184 = shalt.err (!%p7181_p1)
}
 0x145   :  { %s8760_s20 = sld [smem:[#allocation84_spill]]  ;;  %s7193_s6 = scalar_lea.vmem %s208_s15, 16 }
 0x146   :  { %p7194_p2 = scmp.ne.s32.totalorder %s208_s15, %s7193_s6  ;;  %s7197_s23 = scalar_lea.vmem %s208_s15, 32 }
 0x147   :  { %p7198_p3 = scmp.lt.s32.totalorder %s208_s15, %s208_s15  ;;  %p7199_p4 = scmp.lt.s32.totalorder %s7197_s23, %s7193_s6 }
 0x149   :  { %p7200_p5 = por %p7199_p4, %p7198_p3 }
 0x14b   :  { %186 = dma.hbm_to_vmem [thread:$0]  %s8760_s20, 16, %s184_s30, [#allocation10]  }
 0x14c   :  { %p7201_p6 = pnand %p7200_p5, %p7194_p2 }
 0x14e   :  { %7204 = shalt.err (!%p7201_p6)
}
 0x14f   :  { %s8761_s13 = sld [smem:[#allocation87_spill]]  ;;  %s7616_s28 = smov [#allocation17]  }
 0x150   :  { %s227_s8 = sshll.u32 %s7616_s28, 4  ;;  %s7617_s26 = smov [#allocation20]   ;;  %s228_s8 = int_to_ptr.vmem [resolvable:$true] %s227_s8 }
 0x151   :  { %s251_s24 = sshll.u32 %s7617_s26, 4  ;;  %s7213_s5 = scalar_lea.vmem %s228_s8, 16  ;;  %s252_s24 = int_to_ptr.vmem [resolvable:$true] %s251_s24 }
 0x152   :  { %p7214_p7 = scmp.ne.s32.totalorder %s228_s8, %s7213_s5  ;;  %s7217_s1 = scalar_lea.vmem %s228_s8, 32 }
 0x153   :  { %p7218_p8 = scmp.lt.s32.totalorder %s228_s8, %s228_s8  ;;  %p7219_p9 = scmp.lt.s32.totalorder %s7217_s1, %s7213_s5 }
 0x155   :  { %210 = dma.hbm_to_vmem [thread:$0]  %s8761_s13, 16, %s208_s15, [#allocation13]  }
 0x156   :  { %p7220_p10 = por %p7219_p9, %p7218_p8 }
 0x158   :  { %p7221_p11 = pnand %p7220_p10, %p7214_p7 }
 0x15a   :  { %7224 = shalt.err (!%p7221_p11)
}
 0x15b   :  { %s8762_s21 = sld [smem:[#allocation88_spill]]  ;;  %s7233_s2 = scalar_lea.vmem %s252_s24, 32 }
 0x15c   :  { %p7234_p12 = scmp.ne.s32.totalorder %s252_s24, %s7233_s2  ;;  %p7238_p13 = scmp.lt.s32.totalorder %s252_s24, %s252_s24 }
 0x15d   :  { %p7239_p0 = scmp.lt.s32.totalorder %s7233_s2, %s7233_s2 }
 0x15f   :  { %p7240_p1 = por %p7239_p0, %p7238_p13 }
 0x161   :  { %230 = dma.hbm_to_vmem [thread:$0]  %s8762_s21, 16, %s228_s8, [#allocation16]  }
 0x162   :  { %p7241_p2 = pnand %p7240_p1, %p7234_p12 }
 0x164   :  { %7244 = shalt.err (!%p7241_p2)
}
 0x165   :  { %s8763_s29 = sld [smem:[#allocation91_spill]]  ;;  %s7618_s7 = smov [#allocation23]  }
 0x166   :  { %s273_s10 = sshll.u32 %s7618_s7, 4  ;;  %s7619_s12 = smov [#allocation26]   ;;  %s274_s10 = int_to_ptr.vmem [resolvable:$true] %s273_s10 }
 0x167   :  { %s293_s4 = sshll.u32 %s7619_s12, 4  ;;  %s7253_s11 = scalar_lea.vmem %s274_s10, 16  ;;  %s294_s4 = int_to_ptr.vmem [resolvable:$true] %s293_s4 }
 0x168   :  { %p7254_p3 = scmp.ne.s32.totalorder %s274_s10, %s7253_s11  ;;  %s7257_s19 = scalar_lea.vmem %s274_s10, 32 }
 0x169   :  { %p7258_p4 = scmp.lt.s32.totalorder %s274_s10, %s274_s10  ;;  %p7259_p5 = scmp.lt.s32.totalorder %s7257_s19, %s7253_s11 }
 0x16b   :  { %254 = dma.hbm_to_vmem [thread:$0]  %s8763_s29, 32, %s252_s24, [#allocation19]  }
 0x16c   :  { %p7260_p6 = por %p7259_p5, %p7258_p4 }
 0x16e   :  { %p7261_p7 = pnand %p7260_p6, %p7254_p3 }
 0x170   :  { %7264 = shalt.err (!%p7261_p7)
}
 0x171   :  { %s8764_s17 = sld [smem:[#allocation92_spill]]  ;;  %s7273_s25 = scalar_lea.vmem %s294_s4, 16 }
 0x172   :  { %p7274_p8 = scmp.ne.s32.totalorder %s294_s4, %s7273_s25  ;;  %s7277_s30 = scalar_lea.vmem %s294_s4, 32 }
 0x173   :  { %p7278_p9 = scmp.lt.s32.totalorder %s294_s4, %s294_s4  ;;  %p7279_p10 = scmp.lt.s32.totalorder %s7277_s30, %s7273_s25 }
 0x175   :  { %p7280_p11 = por %p7279_p10, %p7278_p9 }
 0x177   :  { %276 = dma.hbm_to_vmem [thread:$0]  %s8764_s17, 16, %s274_s10, [#allocation22]  }
 0x178   :  { %p7281_p12 = pnand %p7280_p11, %p7274_p8 }
 0x17a   :  { %7284 = shalt.err (!%p7281_p12)
}
 0x17b   :  { %s8765_s0 = sld [smem:[#allocation93_spill]]  ;;  %s7620_s15 = smov [#allocation29]  }
 0x17c   :  { %s317_s16 = sshll.u32 %s7620_s15, 4  ;;  %s7621_s27 = smov [#allocation32]   ;;  %s318_s16 = int_to_ptr.vmem [resolvable:$true] %s317_s16 }
 0x17d   :  { %s337_s20 = sshll.u32 %s7621_s27, 4  ;;  %s7293_s6 = scalar_lea.vmem %s318_s16, 16  ;;  %s338_s20 = int_to_ptr.vmem [resolvable:$true] %s337_s20 }
 0x17e   :  { %p7294_p13 = scmp.ne.s32.totalorder %s318_s16, %s7293_s6  ;;  %s7297_s23 = scalar_lea.vmem %s318_s16, 32 }
 0x17f   :  { %p7298_p0 = scmp.lt.s32.totalorder %s318_s16, %s318_s16  ;;  %p7299_p1 = scmp.lt.s32.totalorder %s7297_s23, %s7293_s6 }
 0x181   :  { %296 = dma.hbm_to_vmem [thread:$0]  %s8765_s0, 16, %s294_s4, [#allocation25]  }
 0x182   :  { %p7300_p2 = por %p7299_p1, %p7298_p0 }
 0x184   :  { %p7301_p3 = pnand %p7300_p2, %p7294_p13 }
 0x186   :  { %7304 = shalt.err (!%p7301_p3)
}
 0x187   :  { %s8766_s13 = sld [smem:[#allocation96_spill]]  ;;  %s7313_s28 = scalar_lea.vmem %s338_s20, 16 }
 0x188   :  { %p7314_p4 = scmp.ne.s32.totalorder %s338_s20, %s7313_s28  ;;  %s7317_s8 = scalar_lea.vmem %s338_s20, 32 }
 0x189   :  { %p7318_p5 = scmp.lt.s32.totalorder %s338_s20, %s338_s20  ;;  %p7319_p6 = scmp.lt.s32.totalorder %s7317_s8, %s7313_s28 }
 0x18b   :  { %p7320_p7 = por %p7319_p6, %p7318_p5 }
 0x18d   :  { %320 = dma.hbm_to_vmem [thread:$0]  %s8766_s13, 16, %s318_s16, [#allocation28]  }
 0x18e   :  { %p7321_p8 = pnand %p7320_p7, %p7314_p4 }
 0x190   :  { %7324 = shalt.err (!%p7321_p8)
}
 0x191   :  { %s8767_s26 = sld [smem:[#allocation97_spill]]  ;;  %s7622_s24 = smov [#allocation35]  }
 0x192   :  { %s358_s5 = sshll.u32 %s7622_s24, 4  ;;  %s7623_s1 = smov [#allocation38]   ;;  %s359_s5 = int_to_ptr.vmem [resolvable:$true] %s358_s5 }
 0x193   :  { %s381_s21 = sshll.u32 %s7623_s1, 4  ;;  %s7333_s2 = scalar_lea.vmem %s359_s5, 1024  ;;  %s382_s21 = int_to_ptr.vmem [resolvable:$true] %s381_s21 }
 0x194   :  { %p7334_p9 = scmp.ne.s32.totalorder %s359_s5, %s7333_s2  ;;  %p7338_p10 = scmp.lt.s32.totalorder %s359_s5, %s359_s5 }
 0x195   :  { %p7339_p11 = scmp.lt.s32.totalorder %s7333_s2, %s7333_s2 }
 0x197   :  { %340 = dma.hbm_to_vmem [thread:$0]  %s8767_s26, 16, %s338_s20, [#allocation31]  }
 0x198   :  { %p7340_p12 = por %p7339_p11, %p7338_p10 }
 0x19a   :  { %p7341_p13 = pnand %p7340_p12, %p7334_p9 }
 0x19c   :  { %7344 = shalt.err (!%p7341_p13)
}
 0x19d   :  { %s8768_s29 = sld [smem:[#allocation99_spill]]  ;;  %s7353_s7 = scalar_lea.vmem %s382_s21, 16 }
 0x19e   :  { %p7354_p0 = scmp.ne.s32.totalorder %s382_s21, %s7353_s7  ;;  %s7357_s10 = scalar_lea.vmem %s382_s21, 32 }
 0x19f   :  { %p7358_p1 = scmp.lt.s32.totalorder %s382_s21, %s382_s21  ;;  %p7359_p2 = scmp.lt.s32.totalorder %s7357_s10, %s7353_s7 }
 0x1a1   :  { %p7360_p3 = por %p7359_p2, %p7358_p1 }
 0x1a3   :  { %364 = dma.hbm_to_vmem [thread:$0]  %s8768_s29, 1024, %s359_s5, [#allocation34], %s7594_s18, %s7594_s18, %s7595_s22  }
 0x1a4   :  { %p7361_p4 = pnand %p7360_p3, %p7354_p0 }
 0x1a6   :  { %7364 = shalt.err (!%p7361_p4)
}
 0x1a7   :  { %s8769_s12 = sld [smem:[#allocation100_spill]]  ;;  %s7624_s4 = smov [#allocation41]  }
 0x1a8   :  { %s400_s11 = sshll.u32 %s7624_s4, 4  ;;  %s7625_s19 = smov [#allocation44]   ;;  %s401_s11 = int_to_ptr.vmem [resolvable:$true] %s400_s11 }
 0x1a9   :  { %s425_s17 = sshll.u32 %s7625_s19, 4  ;;  %s7373_s25 = scalar_lea.vmem %s401_s11, 1024  ;;  %s426_s17 = int_to_ptr.vmem [resolvable:$true] %s425_s17 }
 0x1aa   :  { %p7374_p5 = scmp.ne.s32.totalorder %s401_s11, %s7373_s25  ;;  %p7378_p6 = scmp.lt.s32.totalorder %s401_s11, %s401_s11 }
 0x1ab   :  { %p7379_p7 = scmp.lt.s32.totalorder %s7373_s25, %s7373_s25 }
 0x1ad   :  { %384 = dma.hbm_to_vmem [thread:$0]  %s8769_s12, 16, %s382_s21, [#allocation37]  }
 0x1ae   :  { %p7380_p8 = por %p7379_p7, %p7378_p6 }
 0x1b0   :  { %p7381_p9 = pnand %p7380_p8, %p7374_p5 }
 0x1b2   :  { %7384 = shalt.err (!%p7381_p9)
}
 0x1b3   :  { %s8770_s30 = sld [smem:[#allocation101_spill]]  ;;  %s7393_s0 = scalar_lea.vmem %s426_s17, 32 }
 0x1b4   :  { %p7394_p10 = scmp.ne.s32.totalorder %s426_s17, %s7393_s0  ;;  %p7398_p11 = scmp.lt.s32.totalorder %s426_s17, %s426_s17 }
 0x1b5   :  { %p7399_p12 = scmp.lt.s32.totalorder %s7393_s0, %s7393_s0 }
 0x1b7   :  { %p7400_p13 = por %p7399_p12, %p7398_p11 }
 0x1b9   :  { %406 = dma.hbm_to_vmem [thread:$0]  %s8770_s30, 1024, %s401_s11, [#allocation40], %s7594_s18, %s7594_s18, %s7595_s22  }
 0x1ba   :  { %p7401_p0 = pnand %p7400_p13, %p7394_p10 }
 0x1bc   :  { %7404 = shalt.err (!%p7401_p0)
}
 0x1bd   :  { %s8771_s15 = sld [smem:[#allocation103_spill]]  ;;  %s7626_s16 = smov [#allocation47]  }
 0x1be   :  { %s447_s27 = sshll.u32 %s7626_s16, 4  ;;  %s7627_s20 = smov [#allocation50]   ;;  %s448_s27 = int_to_ptr.vmem [resolvable:$true] %s447_s27 }
 0x1bf   :  { %s467_s6 = sshll.u32 %s7627_s20, 4  ;;  %s7413_s23 = scalar_lea.vmem %s448_s27, 16  ;;  %s468_s6 = int_to_ptr.vmem [resolvable:$true] %s467_s6 }
 0x1c0   :  { %p7414_p1 = scmp.ne.s32.totalorder %s448_s27, %s7413_s23  ;;  %s7417_s13 = scalar_lea.vmem %s448_s27, 32 }
 0x1c1   :  { %p7418_p2 = scmp.lt.s32.totalorder %s448_s27, %s448_s27  ;;  %p7419_p3 = scmp.lt.s32.totalorder %s7417_s13, %s7413_s23 }
 0x1c3   :  { %428 = dma.hbm_to_vmem [thread:$0]  %s8771_s15, 32, %s426_s17, [#allocation43]  }
 0x1c4   :  { %p7420_p4 = por %p7419_p3, %p7418_p2 }
 0x1c6   :  { %p7421_p5 = pnand %p7420_p4, %p7414_p1 }
 0x1c8   :  { %7424 = shalt.err (!%p7421_p5)
}
 0x1c9   :  { %s8772_s22 = sld [smem:[#allocation104_spill]]  ;;  %s7433_s28 = scalar_lea.vmem %s468_s6, 16 }
 0x1ca   :  { %p7434_p6 = scmp.ne.s32.totalorder %s468_s6, %s7433_s28  ;;  %s7437_s8 = scalar_lea.vmem %s468_s6, 32 }
 0x1cb   :  { %p7438_p7 = scmp.lt.s32.totalorder %s468_s6, %s468_s6  ;;  %p7439_p8 = scmp.lt.s32.totalorder %s7437_s8, %s7433_s28 }
 0x1cd   :  { %p7440_p9 = por %p7439_p8, %p7438_p7 }
 0x1cf   :  { %450 = dma.hbm_to_vmem [thread:$0]  %s8772_s22, 16, %s448_s27, [#allocation46]  }
 0x1d0   :  { %p7441_p10 = pnand %p7440_p9, %p7434_p6 }
 0x1d2   :  { %7444 = shalt.err (!%p7441_p10)
}
 0x1d3   :  { %s8773_s26 = sld [smem:[#allocation106_spill]]  ;;  %s7628_s24 = smov [#allocation53]  }
 0x1d4   :  { %s491_s5 = sshll.u32 %s7628_s24, 4  ;;  %s7629_s1 = smov [#allocation56]   ;;  %s492_s5 = int_to_ptr.vmem [resolvable:$true] %s491_s5 }
 0x1d5   :  { %s511_s21 = sshll.u32 %s7629_s1, 4  ;;  %s7453_s2 = scalar_lea.vmem %s492_s5, 16  ;;  %s512_s21 = int_to_ptr.vmem [resolvable:$true] %s511_s21 }
 0x1d6   :  { %p7454_p11 = scmp.ne.s32.totalorder %s492_s5, %s7453_s2  ;;  %s7457_s29 = scalar_lea.vmem %s492_s5, 32 }
 0x1d7   :  { %p7458_p12 = scmp.lt.s32.totalorder %s492_s5, %s492_s5  ;;  %p7459_p13 = scmp.lt.s32.totalorder %s7457_s29, %s7453_s2 }
 0x1d9   :  { %470 = dma.hbm_to_vmem [thread:$0]  %s8773_s26, 16, %s468_s6, [#allocation49]  }
 0x1da   :  { %p7460_p0 = por %p7459_p13, %p7458_p12 }
 0x1dc   :  { %p7461_p1 = pnand %p7460_p0, %p7454_p11 }
 0x1de   :  { %7464 = shalt.err (!%p7461_p1)
}
 0x1df   :  { %494 = dma.hbm_to_vmem [thread:$0]  %s7879_s14, 16, %s492_s5, [#allocation52]  }
 0x1e0   :  { %s7473_s7 = scalar_lea.vmem %s512_s21, 16  ;;  %s7477_s10 = scalar_lea.vmem %s512_s21, 32 }
 0x1e1   :  { %p7474_p2 = scmp.ne.s32.totalorder %s512_s21, %s7473_s7  ;;  %p7478_p3 = scmp.lt.s32.totalorder %s512_s21, %s512_s21 }
 0x1e2   :  { %p7479_p4 = scmp.lt.s32.totalorder %s7477_s10, %s7473_s7 }
 0x1e4   :  { %p7480_p5 = por %p7479_p4, %p7478_p3 }
 0x1e6   :  { %p7481_p6 = pnand %p7480_p5, %p7474_p2 }
 0x1e8   :  { %7484 = shalt.err (!%p7481_p6)
}
 0x1e9   :  { %514 = dma.hbm_to_vmem [thread:$0]  %s7889_s3, 16, %s512_s21, [#allocation55]  }
 0x1ea   :  { %7505 = dma.done.wait [#allocation4], 32  }
 0x1eb   :  { %7506 = vsyncadd [#allocation4], 4294967264 }
 0x1ec   :  { %7507 = dma.done.wait [#allocation7], 528  }
 0x1ed   :  { %7508 = vsyncadd [#allocation7], 4294966768 }
 0x1ee   :  { %7509 = dma.done.wait [#allocation10], 32  }
 0x1ef   :  { %7510 = vsyncadd [#allocation10], 4294967264 }
 0x1f0   :  { %7511 = dma.done.wait [#allocation13], 64  }
 0x1f1   :  { %7512 = vsyncadd [#allocation13], 4294967232 }
 0x1f2   :  { %7513 = dma.done.wait [#allocation16], 32  }
 0x1f3   :  { %7514 = vsyncadd [#allocation16], 4294967264 }
 0x1f4   :  { %7515 = dma.done.wait [#allocation19], 48  }
 0x1f5   :  { %7516 = vsyncadd [#allocation19], 4294967248 }
 0x1f6   :  { %7517 = dma.done.wait [#allocation22], 1040  }
 0x1f7   :  { %7518 = vsyncadd [#allocation22], 4294966256 }
 0x1f8   :  { %7519 = dma.done.wait [#allocation25], 32  }
 0x1f9   :  { %7520 = vsyncadd [#allocation25], 4294967264 }
 0x1fa   :  { %7521 = dma.done.wait [#allocation28], 48  }
 0x1fb   :  { %7522 = vsyncadd [#allocation28], 4294967248 }
 0x1fc   :  { %7523 = dma.done.wait [#allocation31], 32  }
 0x1fd   :  { %7524 = vsyncadd [#allocation31], 4294967264 }
 0x1fe   :  { %7525 = dma.done.wait [#allocation34], 1072  }
 0x1ff   :  { %7526 = vsyncadd [#allocation34], 4294966224 }
 0x200   :  { %7527 = dma.done.wait [#allocation37], 32  }
 0x201   :  { %7528 = vsyncadd [#allocation37], 4294967264 }
 0x202   :  { %7529 = dma.done.wait [#allocation40], 1040  }
 0x203   :  { %7530 = vsyncadd [#allocation40], 4294966256 }
 0x204   :  { %7531 = dma.done.wait [#allocation43], 48  }
 0x205   :  { %7532 = vsyncadd [#allocation43], 4294967248 }
 0x206   :  { %7533 = dma.done.wait [#allocation46], 1040  }
 0x207   :  { %7534 = vsyncadd [#allocation46], 4294966256 }
 0x208   :  { %7535 = dma.done.wait [#allocation49], 32  }
 0x209   :  { %7536 = vsyncadd [#allocation49], 4294967264 }
 0x20a   :  { %7537 = dma.done.wait [#allocation52], 48  }
 0x20b   :  { %7538 = vsyncadd [#allocation52], 4294967248 }
 0x20c   :  { %7539 = dma.done.wait [#allocation55], 32  }
 0x20d   :  { %7540 = vsyncadd [#allocation55], 4294967264  ;;  %s8774_s3 = sld [smem:[#allocation78_spill]]  ;;  %v7630_v0 = vmov 0   ;;  %v7631_v1 = vmov 0.0   ;;  %v6413_v3 = vld [vmem:[#allocation6 + $0x18] sm:$0xff]   ;;  %v629_v8 = vlaneseq }
 0x20e   :  { %6411 = vset.pattern.permute.xlu0 %v7630_v0  ;;  %5942 = vmatprep.subr.bf16.mxu0 %v7631_v1  ;;  %v6414_v5 = vld [vmem:[#allocation6 + $0x10] sm:$0xff]   ;;  %vm7632_vm0 = vmmov 0   ;;  %v6415_v6 = vld [vmem:[#allocation6 + $0x8] sm:$0xff]   ;;  %v6416_v7 = vld [vmem:[#allocation6] sm:$0xff]   ;;  %s8775_s14 = sld [smem:[#allocation81_spill]]  ;;  %vm670_vm3 = vcmask 523264  }
 0x20f   :  { %1024 = vmatprep.mubr.bf16.mxu1 %v7630_v0  ;;  %6412 = vset.pattern.permute.xlu1 %v7630_v0  ;;  %v7959_v9 = vand.u32 127, %v629_v8  ;;  %vm725_vm4 = vcmask 1045504   ;;  %s8776_s12 = sld [smem:[#allocation82_spill]]  ;;  %v5502_v44 = vld [vmem:[#allocation8] ss:$0 sm:$0xff]  ;;  %vm1168_vm5 = vcmask 1042432  }
 0x210   :  { %5943 = vmatpush3.bf16.msra.mxu0 %v6413_v3  ;;  %5950 = vmatprep.mubr.msk.bf16.mxu0 %vm7632_vm0, %v7631_v1  ;;  %s8777_s4 = sld [smem:[#allocation85_spill]]  ;;  %vm1169_vm6 = vcmask 1043456   ;;  %vm1080_vm8 = vcmask 1041409   ;;  %vm1083_vm9 = vcmask 1042434   ;;  %vm1086_vm10 = vcmask 1043459   ;;  %s7635_s6 = smov [#allocation57]  }
 0x211   :  { %5944 = vmatprep.subr.bf16.mxu0 %v7631_v1  ;;  %vm1089_vm11 = vcmask 1044484   ;;  %vm1092_vm12 = vcmask 1045509   ;;  %vm1095_vm13 = vcmask 1046534   ;;  %s8778_s11 = sld [smem:[#allocation86_spill]]  ;;  %s5418_s23 = sshll.u32 %s7635_s6, 4  ;;  %s5419_s23 = int_to_ptr.vmem [resolvable:$true] %s5418_s23 }
 0x212   :  { %s8779_s19 = sld [smem:[#allocation90_spill]]  ;;  %s7485_s13 = scalar_lea.vmem %s5419_s23, 16 }
 0x213   :  { %v631_v2 = vld [vmem:[%s8774_s3] sm:$0xff]  ;;  %v632_v4 = vld [vmem:[%s8774_s3 + $0x8] sm:$0x3f]  ;;  %s8780_s17 = sld [smem:[#allocation89_spill]]  ;;  %p7486_p7 = scmp.ne.s32.totalorder %s5419_s23, %s7485_s13 }
 0x214   :  { %634 = vperm.xlu0 %6411, %v631_v2   ;;  %5945 = vmatpush3.bf16.msra.mxu0 %v6414_v5  ;;  %v718_v18 = vld [vmem:[%s8775_s14 + $0x8] sm:$0x3f]  ;;  %v717_v24 = vld [vmem:[%s8775_s14] sm:$0xff]  ;;  %s8781_s25 = sld [smem:[#allocation77_spill]]  ;;  %s7489_s22 = scalar_lea.vmem %s5419_s23, 32 }
 0x215   :  { %5946 = vmatprep.subr.bf16.mxu0 %v7631_v1  ;;  %v5501_v42 = vld [vmem:[%s8776_s12] ss:$0 sm:$0xff]  ;;  %s8782_s30 = sld [smem:[#allocation94_spill]]  ;;  %p7490_p8 = scmp.lt.s32.totalorder %s5419_s23, %s5419_s23 }
 0x216   :  { %v6417_v52 = vld [vmem:[%s8777_s4 + $0xac] ss:$12 sps:$4 sm:$0xff]   ;;  %v6419_v53 = vld [vmem:[%s8777_s4 + $0xa8] ss:$12 sps:$4 sm:$0xff]   ;;  %v6420_v54 = vld [vmem:[%s8777_s4 + $0xb0] ss:$12 sps:$4 sm:$0xff]   ;;  %p7491_p9 = scmp.lt.s32.totalorder %s7489_s22, %s7485_s13 }
 0x217   :  { %992 = vmatprep.subr.bf16.mxu1 %v6417_v52  ;;  %v6421_v2 = vld [vmem:[%s8777_s4 + $0x94] ss:$12 sps:$4 sm:$0xff]   ;;  %v6423_v3 = vld [vmem:[%s8777_s4 + $0x90] ss:$12 sps:$4 sm:$0xff]   ;;  %s8783_s0 = sld [smem:[#allocation95_spill]] }
 0x218   :  { %637 = vperm.xlu0 %6411, %v632_v4   ;;  %5947 = vmatpush3.bf16.msra.mxu0 %v6415_v6  ;;  %v6424_v4 = vld [vmem:[%s8777_s4 + $0x98] ss:$12 sps:$4 sm:$0xff]   ;;  %v6425_v5 = vld [vmem:[%s8777_s4 + $0x7c] ss:$12 sps:$4 sm:$0xff]   ;;  %s8784_s15 = sld [smem:[#allocation98_spill]]  ;;  %p7492_p10 = por %p7491_p9, %p7490_p8 }
 0x219   :  { %5948 = vmatprep.subr.bf16.mxu0 %v7631_v1  ;;  %993 = vmatpush1.bf16.msra.mxu1 %v6419_v53  ;;  %v6427_v6 = vld [vmem:[%s8777_s4 + $0x78] ss:$12 sps:$4 sm:$0xff]   ;;  %s8785_s16 = sld [smem:[#allocation102_spill]] }
 0x21a   :  { %994 = vmatprep.subr.bf16.mxu1 %v6421_v2  ;;  %v7633_v2 = vmov 65535   ;;  %s8787_s27 = sld [smem:[#allocation109_spill]]  ;;  %p7493_p11 = pnand %p7492_p10, %p7486_p7 }
 0x21b   :  { %s8788_s20 = sld [smem:[#allocation79_spill]] }
 0x21c   :  { %5949 = vmatpush3.bf16.msra.mxu0 %v6416_v7  ;;  %v6428_v7 = vld [vmem:[%s8777_s4 + $0x80] ss:$12 sps:$4 sm:$0xff]  }
 0x21d   :  { %5954 = vmatprep.subr.bf16.mxu0 %v7631_v1  ;;  %995 = vmatpush1.bf16.msra.mxu1 %v6423_v3  ;;  %v1170_v3 = vsel %vm1168_vm5, 4294967295, %v7633_v2 }
 0x21e   :  { %996 = vmatprep.subr.bf16.mxu1 %v6425_v5 }
 0x221   :  { %997 = vmatpush1.bf16.msra.mxu1 %v6427_v6 }
 0x28f   :  { %v635_v10 = vpop.permute.xlu0 %634 }
 0x290   :  { %vm639_vm1 = vcmp.eq.s32.totalorder %v7959_v9, %v635_v10  ;;  %v6429_v10 = vld [vmem:[%s8777_s4 + $0x64] ss:$12 sps:$4 sm:$0xff]  }
 0x291   :  { %v5494_v12 = vsel %vm639_vm1, 1.0, %v7631_v1  ;;  %998 = vmatprep.subr.bf16.mxu1 %v6429_v10 }
 0x293   :  { %v638_v11 = vpop.permute.xlu0 %637 }
 0x294   :  { %vm640_vm2 = vcmp.eq.s32.totalorder %v7959_v9, %v638_v11  ;;  %v6431_v11 = vld [vmem:[%s8777_s4 + $0x60] ss:$12 sps:$4 sm:$0xff]  }
 0x295   :  { %v5495_v13 = vsel %vm640_vm2, 1.0, %v7631_v1  ;;  %999 = vmatpush1.bf16.msra.mxu1 %v6431_v11  ;;  %vm1150_vm2 = vcmask 55296  }
 0x296   :  { %v645_v14 = vpack.c.bf16 %v5495_v13, %v5494_v12  ;;  %v6432_v12 = vld [vmem:[%s8777_s4 + $0x68] ss:$12 sps:$4 sm:$0xff]   ;;  %v6433_v13 = vld [vmem:[%s8777_s4 + $0x4c] ss:$12 sps:$4 sm:$0xff]  }
 0x297   :  { %1000 = vmatprep.subr.bf16.mxu1 %v6433_v13 }
 0x298   :  { %5951 = vmatmul.mubr.msk.bf16.vlgmr.msra.gmra.mxu0 %vm670_vm3, %v645_v14  ;;  %v6435_v14 = vld [vmem:[%s8777_s4 + $0x48] ss:$12 sps:$4 sm:$0xff]  }
 0x299   :  { %5970 = vmatprep.mubr.msk.bf16.mxu0 %vm7632_vm0, %v7631_v1  ;;  %5955 = vmatpush3.bf16.msra.mxu0 %v6420_v54 }
 0x29a   :  { %5956 = vmatprep.subr.bf16.mxu0 %v7631_v1  ;;  %1001 = vmatpush1.bf16.msra.mxu1 %v6435_v14  ;;  %v8053_v14 = vsel %vm1169_vm6, %v1170_v3, 0 }
 0x29d   :  { %5957 = vmatpush3.bf16.msra.mxu0 %v6424_v4 }
 0x29e   :  { %5958 = vmatprep.subr.bf16.mxu0 %v7631_v1 }
 0x2a1   :  { %5959 = vmatpush3.bf16.msra.mxu0 %v6428_v7 }
 0x2a2   :  { %5960 = vmatprep.subr.bf16.mxu0 %v7631_v1 }
 0x2a5   :  { %5961 = vmatpush3.bf16.msra.mxu0 %v6432_v12 }
 0x2a6   :  { %5962 = vmatprep.subr.bf16.mxu0 %v7631_v1 }
 0x358   :  { %v708_v15 = vpop.f32.mrf.mxu0 }
 0x359   :  { %v715_v22 = vmul.f32 11.313708, %v708_v15  ;;  %v6436_v15 = vld [vmem:[%s8777_s4 + $0x50] ss:$12 sps:$4 sm:$0xff]  }
 0x35a   :  { %v5952_v16 = vpop.f32.mrf.mxu0  ;;  %5963 = vmatpush3.bf16.msra.mxu0 %v6436_v15 }
 0x35b   :  { %v719_v25 = vadd.f32 %v717_v24, %v715_v22  ;;  %v6437_v16 = vld [vmem:[%s8777_s4 + $0x34] ss:$12 sps:$4 sm:$0xff]   ;;  %5964 = vmatprep.subr.bf16.mxu0 %v7631_v1  ;;  %v6445_v22 = vld [vmem:[%s8777_s4 + $0x4] ss:$12 sps:$4 sm:$0xff]  }
 0x35c   :  { %v711_v17 = vpop.f32.mrf.mxu0  ;;  %1002 = vmatprep.subr.bf16.mxu1 %v6437_v16  ;;  %v6448_v24 = vld [vmem:[%s8777_s4 + $0x8] ss:$12 sps:$4 sm:$0xff]  }
 0x35d   :  { %v716_v19 = vmul.f32 11.313708, %v711_v17  ;;  %v6439_v17 = vld [vmem:[%s8777_s4 + $0x30] ss:$12 sps:$4 sm:$0xff]  }
 0x35e   :  { %v5953_v20 = vpop.f32.mrf.mxu0  ;;  %1003 = vmatpush1.bf16.msra.mxu1 %v6439_v17 }
 0x35f   :  { %v720_v21 = vadd.f32 %v718_v18, %v716_v19  ;;  %v6440_v18 = vld [vmem:[%s8777_s4 + $0x38] ss:$12 sps:$4 sm:$0xff]   ;;  %v6441_v19 = vld [vmem:[%s8777_s4 + $0x1c] ss:$12 sps:$4 sm:$0xff]  }
 0x360   :  { %5965 = vmatpush3.bf16.msra.mxu0 %v6440_v18  ;;  %v6443_v20 = vld [vmem:[%s8777_s4 + $0x18] ss:$12 sps:$4 sm:$0xff]   ;;  %1004 = vmatprep.subr.bf16.mxu1 %v6441_v19 }
 0x361   :  { %v726_v23 = vsel %vm725_vm4, %v720_v21, 0.0  ;;  %5966 = vmatprep.subr.bf16.mxu0 %v7631_v1 }
 0x362   :  { %727 = vadd.xlane.f32.xlu1 %v726_v23  ;;  %1005 = vmatpush1.bf16.msra.mxu1 %v6443_v20  ;;  %v6447_v23 = vld [vmem:[%s8777_s4] ss:$12 sps:$4 sm:$0xff]  }
 0x363   :  { %1006 = vmatprep.subr.bf16.mxu1 %v6445_v22 }
 0x366   :  { %723 = vadd.xlane.f32.xlu1 %v719_v25  ;;  %1007 = vmatpush1.bf16.msra.mxu1 %v6447_v23 }
 0x367   :  { %5974 = vmatprep.subr.bf16.mxu1 %v7631_v1 }
 0x3eb   :  { %v728_v26 = vpop.xlane.xlu1 %727 }
 0x3ec   :  { %v731_v27 = vmul.f32 0.0078125, %v728_v26 }
 0x3ee   :  { %v733_v28 = vsub.f32 %v720_v21, %v731_v27  ;;  %v6444_v21 = vld [vmem:[%s8777_s4 + $0x20] ss:$12 sps:$4 sm:$0xff]  }
 0x3ef   :  { %v724_v29 = vpop.xlane.xlu1 %723  ;;  %5967 = vmatpush3.bf16.msra.mxu0 %v6444_v21 }
 0x3f0   :  { %v730_v30 = vmul.f32 0.0078125, %v724_v29  ;;  %v735_v31 = vmul.f32 %v733_v28, %v733_v28  ;;  %5968 = vmatprep.subr.bf16.mxu0 %v7631_v1 }
 0x3f2   :  { %v738_v32 = vsel %vm725_vm4, %v735_v31, 0.0  ;;  %v732_v33 = vsub.f32 %v719_v25, %v730_v30 }
 0x3f3   :  { %739 = vadd.xlane.f32.xlu0 %v738_v32  ;;  %5969 = vmatpush3.bf16.msra.mxu0 %v6448_v24 }
 0x3f4   :  { %v734_v34 = vmul.f32 %v732_v33, %v732_v33  ;;  %5986 = vmatprep.subr.bf16.mxu0 %v7631_v1 }
 0x3f6   :  { %736 = vadd.xlane.f32.xlu1 %v734_v34 }
 0x47c   :  { %v740_v35 = vpop.xlane.xlu0 %739 }
 0x47d   :  { %v742_v36 = vmul.f32 0.0078125, %v740_v35 }
 0x47f   :  { %v744_v37 = vadd.f32 1e-05, %v742_v36  ;;  %v737_v38 = vpop.xlane.xlu1 %736 }
 0x480   :  { %v741_v39 = vmul.f32 0.0078125, %v737_v38 }
 0x481   :  { %6658 = vrsqrt.f32 %v744_v37  ;;  %v5504_v37 = vld [vmem:[#allocation11] ss:$0 sm:$0xff] }
 0x482   :  { %v743_v40 = vadd.f32 1e-05, %v741_v39 }
 0x484   :  { %6660 = vrsqrt.f32 %v743_v40 }
 0x48e   :  { %v6659_v41 = vpop.eup %6658 }
 0x48f   :  { %v748_v43 = vmul.f32 %v6659_v41, %v733_v28 }
 0x491   :  { %v6661_v45 = vpop.eup %6660  ;;  %v756_v46 = vmul.f32 %v5501_v42, %v748_v43 }
 0x492   :  { %v747_v47 = vmul.f32 %v6661_v45, %v732_v33  ;;  %v5503_v33 = vld [vmem:[#allocation9] ss:$0 sm:$0xff] }
 0x493   :  { %v7973_v48 = vadd.f32 %v5502_v44, %v756_v46 }
 0x494   :  { %v755_v49 = vmul.f32 %v5501_v42, %v747_v47  ;;  %v8031_v42 = vshrl.u32 %v629_v8, 7 }
 0x495   :  { %v776_v50 = vsel %vm725_vm4, %v7973_v48, 0.0 }
 0x496   :  { %777 = vadd.xlane.f32.xlu1 %v776_v50  ;;  %v7977_v51 = vadd.f32 %v5502_v44, %v755_v49  ;;  %v8034_v43 = vsub.s32 0, %v8031_v42  ;;  %v847_v44 = vld [vmem:[#allocation12] sm:$0x7]  ;;  %v8037_v45 = vsub.s32 1, %v8031_v42  ;;  %v859_v47 = vsub.s32 2, %v8031_v42 }
 0x497   :  { %vm769_vm14 = vcmp.ge.s32.totalorder %v8031_v42, %v7959_v9 }
 0x498   :  { %v852_v46 = vrot.slane %v847_v44, %v8034_v43  ;;  %v856_v49 = vrot.slane %v847_v44, %v8037_v45  ;;  %v860_v8 = vrot.slane %v847_v44, %v859_v47 }
 0x49a   :  { %774 = vadd.xlane.f32.xlu1 %v7977_v51 }
 0x51f   :  { %v778_v55 = vpop.xlane.xlu1 %777 }
 0x520   :  { %v780_v56 = vmul.f32 0.0078125, %v778_v55 }
 0x522   :  { %v7985_v59 = vsub.f32 %v7973_v48, %v780_v56 }
 0x523   :  { %v775_v57 = vpop.xlane.xlu1 %774 }
 0x524   :  { %v779_v58 = vmul.f32 0.0078125, %v775_v57  ;;  %v784_v62 = vmul.f32 %v7985_v59, %v7985_v59 }
 0x526   :  { %v7988_v60 = vsub.f32 %v7977_v51, %v779_v58  ;;  %v787_v63 = vsel %vm725_vm4, %v784_v62, 0.0 }
 0x528   :  { %v783_v61 = vmul.f32 %v7988_v60, %v7988_v60 }
 0x52a   :  { %785 = vadd.xlane.f32.xlu1 %v783_v61 }
 0x52e   :  { %788 = vadd.xlane.f32.xlu1 %v787_v63 }
 0x5b3   :  { %v786_v25 = vpop.xlane.xlu1 %785 }
 0x5b4   :  { %v790_v26 = vmul.f32 0.0078125, %v786_v25 }
 0x5b6   :  { %v792_v27 = vadd.f32 1e-05, %v790_v26 }
 0x5b7   :  { %v789_v28 = vpop.xlane.xlu1 %788 }
 0x5b8   :  { %6662 = vrsqrt.f32 %v792_v27  ;;  %v791_v29 = vmul.f32 0.0078125, %v789_v28 }
 0x5ba   :  { %v793_v30 = vadd.f32 1e-05, %v791_v29 }
 0x5bc   :  { %6664 = vrsqrt.f32 %v793_v30 }
 0x5c5   :  { %v6663_v31 = vpop.eup %6662 }
 0x5c6   :  { %v796_v32 = vmul.f32 %v6663_v31, %v7988_v60 }
 0x5c8   :  { %v804_v36 = vmul.f32 %v5503_v33, %v796_v32 }
 0x5c9   :  { %v6665_v34 = vpop.eup %6664 }
 0x5ca   :  { %v797_v35 = vmul.f32 %v6665_v34, %v7985_v59  ;;  %v812_v39 = vadd.f32 %v5504_v37, %v804_v36 }
 0x5cc   :  { %v805_v38 = vmul.f32 %v5503_v33, %v797_v35  ;;  %v770_v33 = vld [vmem:[#allocation3] sm:$0x3] }
 0x5cd   :  { %vm771_vm7 = vcmp.gt.s32.totalorder %v770_v33, 0 }
 0x5ce   :  { %v813_v40 = vadd.f32 %v5504_v37, %v805_v38  ;;  %v1078_v34 = vsel %vm771_vm7, 1, %v7630_v0 }
 0x5cf   :  { %v1079_v35 = vrot.slane %v1078_v34, 7  ;;  %v1082_v36 = vrot.slane %v1078_v34, 6  ;;  %v1085_v38 = vrot.slane %v1078_v34, 5  ;;  %v1091_v44 = vrot.slane %v1078_v34, 3 }
 0x5d0   :  { %v846_v41 = vpack.c.bf16 %v813_v40, %v812_v39  ;;  %v1088_v40 = vrot.slane %v1078_v34, 4 }
 0x5d1   :  { %v1081_v37 = vsel %vm1080_vm8, %v1079_v35, %v1078_v34 }
 0x5d2   :  { %1025 = vmatmul.mubr.bf16.vlgmr.msra.gmra.mxu1 %v846_v41  ;;  %5971 = vmatmul.mubr.bf16.vlgmr.msra.gmra.mxu0 %v846_v41  ;;  %v1084_v39 = vsel %vm1083_vm9, %v1082_v36, %v1081_v37 }
 0x5d3   :  { %5976 = vmatprep.mubr.msk.bf16.mxu1 %vm7632_vm0, %v7631_v1  ;;  %5988 = vmatprep.mubr.msk.bf16.mxu0 %vm7632_vm0, %v7631_v1  ;;  %v1087_v41 = vsel %vm1086_vm10, %v1085_v38, %v1084_v39 }
 0x692   :  { %v1026_v50 = vpop.f32.mrf.mxu1  ;;  %v1069_v52 = vpop.f32.mrf.mxu0 }
 0x693   :  { %v1027_v53 = vadd.f32 %v1026_v50, %v852_v46  ;;  %v1070_v60 = vadd.f32 %v1069_v52, %v860_v8 }
 0x694   :  { %v1028_v54 = vpop.f32.mrf.mxu1  ;;  %v5972_v55 = vpop.f32.mrf.mxu0 }
 0x695   :  { %v1029_v56 = vadd.f32 %v1028_v54, %v856_v49  ;;  %v1100_v57 = vpack.c.bf16 %v1027_v53, %v1027_v53  ;;  %v8051_v13 = vpack.c.bf16 %v1070_v60, %v1070_v60 }
 0x696   :  { %v1030_v58 = vpop.f32.mrf.mxu1  ;;  %v1072_v59 = vpop.f32.mrf.mxu0 }
 0x697   :  { %v1031_v61 = vadd.f32 %v1030_v58, %v852_v46  ;;  %v1073_v62 = vadd.f32 %v1072_v59, %v860_v8  ;;  %1218 = vrot.lane.b32.xlu0 %v1100_v57, %s7594_s18  ;;  %v1101_v63 = vpack.c.bf16 %v1029_v56, %v1029_v56  ;;  %v1173_v21 = vand.u32 %v8053_v14, %v8051_v13 }
 0x698   :  { %v1032_v4 = vpop.f32.mrf.mxu1  ;;  %v5973_v5 = vpop.f32.mrf.mxu0  ;;  %v1090_v46 = vsel %vm1089_vm11, %v1088_v40, %v1087_v41  ;;  %v7634_v8 = vmov -1e+09  }
 0x699   :  { %v1348_v6 = vpack.c.bf16 %v1031_v61, %v1027_v53  ;;  %v8046_v7 = vpack.c.bf16 %v1073_v62, %v1070_v60  ;;  %v1033_v10 = vadd.f32 %v1032_v4, %v856_v49  ;;  %1221 = vrot.lane.b32.xlu1 %v1101_v63, %s7594_s18  ;;  %v1106_v11 = vsel %vm670_vm3, %v1101_v63, 0 }
 0x69a   :  { %5975 = vmatpush3.bf16.xpose.msra.mxu1 %v1106_v11  ;;  %v1094_v49 = vrot.slane %v1078_v34, 2  ;;  %v1093_v50 = vsel %vm1092_vm12, %v1091_v44, %v1090_v46  ;;  %v1338_v61 = vrot.slane %v1078_v34, 1 }
 0x69b   :  { %v1349_v12 = vpack.c.bf16 %v1033_v10, %v1029_v56  ;;  %5980 = vmatprep.subr.bf16.mxu1 %v7631_v1  ;;  %v1351_v17 = vshrl.u32 %v1348_v6, 16  ;;  %v1354_v18 = vshll.u32 %v1348_v6, 16 }
 0x69c   :  { %v1096_v52 = vsel %vm1095_vm13, %v1094_v49, %v1093_v50  ;;  %v1339_v62 = vsel %vm1080_vm8, %v1078_v34, %v1338_v61  ;;  %v1431_v61 = vshll.u32 %v8046_v7, 16  ;;  %vm1164_vm8 = vcmask 56320  }
 0x69d   :  { %v1359_v15 = vshrl.u32 %v1349_v12, 16  ;;  %v1362_v16 = vshll.u32 %v1349_v12, 16  ;;  %v1353_v23 = vrot.slane %v1351_v17, 3  ;;  %v1356_v24 = vrot.slane %v1354_v18, 4 }
 0x69e   :  { %vm1097_vm15 = vcmp.ne.s32.totalorder %v1096_v52, 0  ;;  %v1340_v63 = vsel %vm1083_vm9, %v1079_v35, %v1339_v62  ;;  %vm1215_vm9 = vcmask 522240  }
 0x69f   :  { %v1361_v19 = vrot.slane %v1359_v15, 3  ;;  %v1364_v20 = vrot.slane %v1362_v16, 4  ;;  %v1357_v25 = vor.u32 %v1356_v24, %v1353_v23  ;;  %vm1098_vm1 = vmand %vm769_vm14, %vm1097_vm15  ;;  %v1341_v2 = vsel %vm1086_vm10, %v1082_v36, %v1340_v63 }
 0x6a0   :  { %v8090_v54 = vsel %vm1098_vm1, 0.0, %v7634_v8  ;;  %v1342_v3 = vsel %vm1089_vm11, %v1085_v38, %v1341_v2  ;;  %v1433_v63 = vrot.slane %v1431_v61, 4  ;;  %vm1336_vm10 = vcmask 1047040  }
 0x6a1   :  { %5977 = vmatmul.mubr.msk.bf16.vlgmr.msra.gmra.mxu1 %vm670_vm3, %v1100_v57  ;;  %v1365_v22 = vor.u32 %v1364_v20, %v1361_v19  ;;  %v1343_v4 = vsel %vm1092_vm12, %v1088_v40, %v1342_v3  ;;  %vm2079_vm11 = vcmask 47104   ;;  %vm2093_vm12 = vcmask 48128  }
 0x6a2   :  { %5981 = vmatpush3.bf16.msra.mxu1 %v1173_v21  ;;  %5982 = vmatprep.mubr.msk.bf16.mxu1 %vm7632_vm0, %v7631_v1  ;;  %v1344_v5 = vsel %vm1095_vm13, %v1091_v44, %v1343_v4  ;;  %vm5387_vm15 = vcmask 7168   ;;  %vm5410_vm1 = vcmask 0  }
 0x6a3   :  { %1484 = vrot.lane.b32.xlu1 %v1365_v22, %s7594_s18  ;;  %5992 = vmatprep.subr.bf16.mxu1 %v7631_v1  ;;  %v1370_v29 = vsel %vm670_vm3, %v1365_v22, 0  ;;  %vm1345_vm6 = vcmp.ne.s32.totalorder %v1344_v5, 0 }
 0x6a4   :  { %vm1346_vm7 = vmand %vm769_vm14, %vm1345_vm6 }
 0x6a5   :  { %v8105_v19 = vsel %vm1346_vm7, 0.0, %v7634_v8 }
 0x6a7   :  { %1482 = vrot.lane.b32.xlu1 %v1357_v25, %s7594_s18 }
 0x709   :  { %v1219_v28 = vpop.permute.xlu0 %1218 }
 0x70b   :  { %v1222_v26 = vpop.permute.xlu1 %1221 }
 0x70c   :  { %v1227_v27 = vsel %vm670_vm3, %v1222_v26, 0 }
 0x70d   :  { %5987 = vmatpush3.bf16.xpose.msra.mxu0 %v1227_v27 }
 0x70e   :  { %5998 = vmatprep.subr.bf16.mxu0 %v7631_v1 }
 0x714   :  { %5989 = vmatmul.mubr.msk.bf16.vlgmr.msra.gmra.mxu0 %vm670_vm3, %v1219_v28 }
 0x715   :  { %5999 = vmatpush3.bf16.xpose.msra.mxu0 %v1370_v29  ;;  %6000 = vmatprep.mubr.msk.bf16.mxu0 %vm7632_vm0, %v7631_v1  ;;  %v1485_v30 = vpop.permute.xlu1 %1484 }
 0x716   :  { %6010 = vmatprep.subr.bf16.mxu0 %v7631_v1  ;;  %v1490_v31 = vsel %vm670_vm3, %v1485_v30, 0 }
 0x719   :  { %v1483_v32 = vpop.permute.xlu1 %1482 }
 0x71c   :  { %6001 = vmatmul.mubr.msk.bf16.vlgmr.msra.gmra.mxu0 %vm670_vm3, %v1357_v25 }
 0x71d   :  { %6011 = vmatpush3.bf16.xpose.msra.mxu0 %v1490_v31  ;;  %6012 = vmatprep.mubr.msk.bf16.mxu0 %vm7632_vm0, %v7631_v1 }
 0x71e   :  { %6022 = vmatprep.subr.bf16.mxu0 %v7631_v1 }
 0x724   :  { %6013 = vmatmul.mubr.msk.bf16.vlgmr.msra.gmra.mxu0 %vm670_vm3, %v1483_v32 }
 0x725   :  { %6038 = vmatprep.mubr.msk.bf16.mxu0 %vm7632_vm0, %v7631_v1 }
 0x761   :  { %v1142_v53 = vpop.f32.mrf.mxu1 }
 0x762   :  { %v1148_v55 = vmul.f32 0.125, %v1142_v53 }
 0x763   :  { %v5978_v56 = vpop.f32.mrf.mxu1 }
 0x764   :  { %v1149_v57 = vadd.f32 %v1148_v55, %v8090_v54 }
 0x765   :  { %v1145_v58 = vpop.f32.mrf.mxu1 }
 0x766   :  { %v1151_v59 = vsel %vm1150_vm2, %v1149_v57, -inf }
 0x767   :  { %1152 = vmax.xlane.f32.xlu1 %v1151_v59  ;;  %v5979_v60 = vpop.f32.mrf.mxu1 }
 0x768   :  { %v1428_v60 = vshrl.u32 %v8046_v7, 16 }
 0x76a   :  { %v1430_v62 = vrot.slane %v1428_v60, 3 }
 0x76c   :  { %v1434_v3 = vor.u32 %v1433_v63, %v1430_v62  ;;  %v5545_v63 = vld [vmem:[#allocation14] ss:$0 sm:$0xff] }
 0x7d4   :  { %v1263_v6 = vpop.f32.mrf.mxu0 }
 0x7d5   :  { %v1269_v10 = vmul.f32 0.125, %v1263_v6 }
 0x7d6   :  { %v5990_v11 = vpop.f32.mrf.mxu0 }
 0x7d7   :  { %v1270_v12 = vadd.f32 %v1269_v10, %v8090_v54 }
 0x7d8   :  { %v1266_v15 = vpop.f32.mrf.mxu0 }
 0x7d9   :  { %v1271_v16 = vsel %vm1150_vm2, %v1270_v12, -inf }
 0x7da   :  { %1272 = vmax.xlane.f32.xlu0 %v1271_v16  ;;  %v5991_v17 = vpop.f32.mrf.mxu0 }
 0x7db   :  { %v1439_v17 = vand.u32 %v1434_v3, %v8053_v14 }
 0x7dc   :  { %v1406_v18 = vpop.f32.mrf.mxu0 }
 0x7dd   :  { %v1412_v20 = vmul.f32 0.125, %v1406_v18 }
 0x7de   :  { %v6002_v21 = vpop.f32.mrf.mxu0 }
 0x7df   :  { %v1413_v22 = vadd.f32 %v1412_v20, %v8105_v19 }
 0x7e0   :  { %v1409_v23 = vpop.f32.mrf.mxu0 }
 0x7e1   :  { %v1414_v24 = vsel %vm1150_vm2, %v1413_v22, -inf }
 0x7e2   :  { %1415 = vmax.xlane.f32.xlu1 %v1414_v24  ;;  %v6003_v25 = vpop.f32.mrf.mxu0 }
 0x7e4   :  { %v1526_v26 = vpop.f32.mrf.mxu0 }
 0x7e5   :  { %v1532_v27 = vmul.f32 0.125, %v1526_v26 }
 0x7e6   :  { %v6014_v28 = vpop.f32.mrf.mxu0 }
 0x7e7   :  { %v1533_v29 = vadd.f32 %v1532_v27, %v8105_v19 }
 0x7e8   :  { %v1529_v30 = vpop.f32.mrf.mxu0 }
 0x7e9   :  { %v1534_v31 = vsel %vm1150_vm2, %v1533_v29, -inf }
 0x7ea   :  { %1535 = vmax.xlane.f32.xlu0 %v1534_v31  ;;  %v6015_v32 = vpop.f32.mrf.mxu0  ;;  %v6449_v31 = vld [vmem:[%s8778_s11 + $0x38] sm:$0xff]  }
 0x7eb   :  { %6023 = vmatpush3.bf16.msra.mxu0 %v6449_v31  ;;  %v6450_v32 = vld [vmem:[%s8778_s11 + $0x30] sm:$0xff]  }
 0x7ec   :  { %6024 = vmatprep.subr.bf16.mxu0 %v7631_v1  ;;  %v6471_v31 = vld [vmem:[%s8779_s19 + $0x30] ss:$8 sps:$4 sm:$0xff]  }
 0x7ef   :  { %6025 = vmatpush3.bf16.msra.mxu0 %v6450_v32  ;;  %v6470_v32 = vld [vmem:[%s8780_s17 + $0x30] sm:$0xff]  }
 0x7f0   :  { %v1153_v33 = vpop.xlane.xlu1 %1152  ;;  %6026 = vmatprep.subr.bf16.mxu0 %v7631_v1 }
 0x7f1   :  { %v1154_v34 = vsub.f32 %v1149_v57, %v1153_v33  ;;  %v6451_v33 = vld [vmem:[%s8778_s11 + $0x28] sm:$0xff]  }
 0x7f3   :  { %v1155_v35 = vmul.f32 1.442695, %v1154_v34  ;;  %6027 = vmatpush3.bf16.msra.mxu0 %v6451_v33  ;;  %v6452_v34 = vld [vmem:[%s8778_s11 + $0x20] sm:$0xff]  }
 0x7f4   :  { %6028 = vmatprep.subr.bf16.mxu0 %v7631_v1  ;;  %v6477_v33 = vld [vmem:[%s8779_s19 + $0x24] ss:$8 sps:$4 sm:$0xff]  }
 0x7f5   :  { %6666 = vpow2.f32 %v1155_v35  ;;  %v6453_v35 = vld [vmem:[%s8778_s11 + $0x18] sm:$0xff]  }
 0x7f7   :  { %6029 = vmatpush3.bf16.msra.mxu0 %v6452_v34  ;;  %v6475_v34 = vld [vmem:[%s8779_s19 + $0x20] ss:$8 sps:$4 sm:$0xff]  }
 0x7f8   :  { %6030 = vmatprep.subr.bf16.mxu0 %v7631_v1 }
 0x7fb   :  { %6031 = vmatpush3.bf16.msra.mxu0 %v6453_v35  ;;  %v6474_v35 = vld [vmem:[%s8780_s17 + $0x28] sm:$0xff]  }
 0x7fc   :  { %6032 = vmatprep.subr.bf16.mxu0 %v7631_v1 }
 0x802   :  { %v6667_v36 = vpop.eup %6666 }
 0x803   :  { %v1157_v37 = vsel %vm1150_vm2, %v6667_v36, 0.0 }
 0x804   :  { %1158 = vadd.xlane.f32.xlu1 %v1157_v37 }
 0x863   :  { %v1273_v38 = vpop.xlane.xlu0 %1272 }
 0x864   :  { %v1274_v39 = vsub.f32 %v1270_v12, %v1273_v38 }
 0x866   :  { %v1275_v40 = vmul.f32 1.442695, %v1274_v39 }
 0x868   :  { %6668 = vpow2.f32 %v1275_v40 }
 0x86b   :  { %v1416_v41 = vpop.xlane.xlu1 %1415 }
 0x86c   :  { %v1417_v44 = vsub.f32 %v1413_v22, %v1416_v41  ;;  %v6455_v41 = vld [vmem:[%s8778_s11 + $0x8] sm:$0xff]  }
 0x86e   :  { %v1418_v46 = vmul.f32 1.442695, %v1417_v44 }
 0x870   :  { %6670 = vpow2.f32 %v1418_v46 }
 0x873   :  { %v1536_v49 = vpop.xlane.xlu0 %1535 }
 0x874   :  { %v1537_v50 = vsub.f32 %v1533_v29, %v1536_v49  ;;  %v6456_v49 = vld [vmem:[%s8778_s11] sm:$0xff]  }
 0x875   :  { %v6669_v52 = vpop.eup %6668 }
 0x876   :  { %v1538_v53 = vmul.f32 1.442695, %v1537_v50  ;;  %v1277_v8 = vsel %vm1150_vm2, %v6669_v52, 0.0 }
 0x877   :  { %1278 = vadd.xlane.f32.xlu0 %v1277_v8 }
 0x878   :  { %6672 = vpow2.f32 %v1538_v53 }
 0x87d   :  { %v6671_v55 = vpop.eup %6670 }
 0x87e   :  { %v1420_v56 = vsel %vm1150_vm2, %v6671_v55, 0.0 }
 0x87f   :  { %1421 = vadd.xlane.f32.xlu1 %v1420_v56 }
 0x885   :  { %v6673_v57 = vpop.eup %6672 }
 0x886   :  { %v1540_v58 = vsel %vm1150_vm2, %v6673_v57, 0.0 }
 0x887   :  { %1541 = vadd.xlane.f32.xlu0 %v1540_v58 }
 0x88d   :  { %v1159_v59 = vpop.xlane.xlu1 %1158 }
 0x88e   :  { %6674 = vrcp.f32 %v1159_v59 }
 0x890   :  { %1284 = vrot.lane.b32.xlu1 %v8051_v13, %s7594_s18 }
 0x89b   :  { %v6675_v2 = vpop.eup %6674 }
 0x89c   :  { %v1161_v4 = vmul.f32 %v6675_v2, %v6667_v36  ;;  %v6454_v36 = vld [vmem:[%s8778_s11 + $0x10] sm:$0xff]  }
 0x89d   :  { %1546 = vrot.lane.b32.xlu0 %v1434_v3, %s7594_s18  ;;  %6033 = vmatpush3.bf16.msra.mxu0 %v6454_v36  ;;  %v6481_v36 = vld [vmem:[%s8779_s19 + $0x14] ss:$8 sps:$4 sm:$0xff]  }
 0x89e   :  { %v1162_v5 = vpack.c.bf16 %v1161_v4, %v1161_v4  ;;  %6034 = vmatprep.subr.bf16.mxu0 %v7631_v1 }
 0x8a0   :  { %5983 = vmatmul.mubr.msk.bf16.vlgmr.msra.gmra.mxu1 %vm1164_vm8, %v1162_v5 }
 0x8a1   :  { %5994 = vmatprep.mubr.msk.bf16.mxu1 %vm7632_vm0, %v7631_v1  ;;  %6035 = vmatpush3.bf16.msra.mxu0 %v6455_v41  ;;  %v6482_v41 = vld [vmem:[%s8780_s17 + $0x18] sm:$0xff]  }
 0x8a2   :  { %6036 = vmatprep.subr.bf16.mxu0 %v7631_v1 }
 0x8a5   :  { %6037 = vmatpush3.bf16.msra.mxu0 %v6456_v49  ;;  %v6488_v49 = vld [vmem:[%s8780_s17 + $0x8] sm:$0xff]  }
 0x900   :  { %v1279_v6 = vpop.xlane.xlu0 %1278 }
 0x901   :  { %6676 = vrcp.f32 %v1279_v6 }
 0x908   :  { %v1422_v13 = vpop.xlane.xlu1 %1421 }
 0x909   :  { %6678 = vrcp.f32 %v1422_v13 }
 0x90c   :  { %v1285_v10 = vpop.permute.xlu1 %1284 }
 0x90d   :  { %v1290_v7 = vand.u32 %v1285_v10, %v8053_v14 }
 0x90e   :  { %v6677_v11 = vpop.eup %6676 }
 0x90f   :  { %5993 = vmatpush3.bf16.msra.mxu1 %v1290_v7  ;;  %v1281_v12 = vmul.f32 %v6677_v11, %v6669_v52  ;;  %v6457_v11 = vld [vmem:[%s8779_s19 + $0x70] ss:$8 sps:$4 sm:$0xff]  }
 0x910   :  { %v1542_v15 = vpop.xlane.xlu0 %1541  ;;  %6004 = vmatprep.subr.bf16.mxu1 %v7631_v1 }
 0x911   :  { %6680 = vrcp.f32 %v1542_v15  ;;  %v1282_v16 = vpack.c.bf16 %v1281_v12, %v1281_v12  ;;  %v6459_v12 = vld [vmem:[%s8779_s19 + $0x74] ss:$8 sps:$4 sm:$0xff]   ;;  %v6460_v15 = vld [vmem:[%s8779_s19 + $0x60] ss:$8 sps:$4 sm:$0xff]  }
 0x912   :  { %1987 = vmatprep.subr.bf16.mxu0 %v6459_v12 }
 0x913   :  { %5995 = vmatmul.mubr.msk.bf16.vlgmr.msra.gmra.mxu1 %vm1164_vm8, %v1282_v16  ;;  %v6465_v16 = vld [vmem:[%s8779_s19 + $0x54] ss:$8 sps:$4 sm:$0xff]  }
 0x914   :  { %6005 = vmatpush3.bf16.msra.mxu1 %v1439_v17  ;;  %6006 = vmatprep.mubr.msk.bf16.mxu1 %vm7632_vm0, %v7631_v1  ;;  %v1547_v20 = vpop.permute.xlu0 %1546 }
 0x915   :  { %6016 = vmatprep.subr.bf16.mxu1 %v7631_v1  ;;  %v1552_v23 = vand.u32 %v1547_v20, %v8053_v14 }
 0x916   :  { %v6679_v18 = vpop.eup %6678 }
 0x917   :  { %v1424_v21 = vmul.f32 %v6679_v18, %v6671_v55 }
 0x919   :  { %v1425_v22 = vpack.c.bf16 %v1424_v21, %v1424_v21 }
 0x91b   :  { %6007 = vmatmul.mubr.msk.bf16.vlgmr.msra.gmra.mxu1 %vm1164_vm8, %v1425_v22 }
 0x91c   :  { %6017 = vmatpush3.bf16.msra.mxu1 %v1552_v23  ;;  %6018 = vmatprep.mubr.msk.bf16.mxu1 %vm7632_vm0, %v7631_v1 }
 0x91d   :  { %6042 = vmatprep.subr.bf16.mxu1 %v7631_v1 }
 0x91e   :  { %v6681_v24 = vpop.eup %6680 }
 0x91f   :  { %v1544_v25 = vmul.f32 %v6681_v24, %v6673_v57 }
 0x921   :  { %v1545_v26 = vpack.c.bf16 %v1544_v25, %v1544_v25 }
 0x923   :  { %6019 = vmatmul.mubr.msk.bf16.vlgmr.msra.gmra.mxu1 %vm1164_vm8, %v1545_v26 }
 0x924   :  { %6058 = vmatprep.mubr.msk.bf16.mxu1 %vm7632_vm0, %v7631_v1 }
 0x960   :  { %v1209_v27 = vpop.f32.mrf.mxu1 }
 0x961   :  { %1216 = vst.msk [vmem:[#allocation2] sm:$0x7f] %vm1215_vm9, %v1209_v27  ;;  %v6469_v27 = vld [vmem:[%s8779_s19 + $0x44] ss:$8 sps:$4 sm:$0xff]  }
 0x962   :  { %v5984_v28 = vpop.f32.mrf.mxu1 }
 0x963   :  { %v6467_v28 = vld [vmem:[%s8779_s19 + $0x40] ss:$8 sps:$4 sm:$0xff]  }
 0x964   :  { %v1212_v29 = vpop.f32.mrf.mxu1 }
 0x965   :  { %v6466_v29 = vld [vmem:[%s8780_s17 + $0x38] sm:$0xff]  }
 0x966   :  { %v5985_v30 = vpop.f32.mrf.mxu1  ;;  %6043 = vmatpush3.bf16.msra.mxu1 %v6466_v29 }
 0x967   :  { %v6473_v30 = vld [vmem:[%s8779_s19 + $0x34] ss:$8 sps:$4 sm:$0xff]   ;;  %6044 = vmatprep.subr.bf16.mxu1 %v7631_v1 }
 0x96a   :  { %6045 = vmatpush3.bf16.msra.mxu1 %v6470_v32 }
 0x96b   :  { %6046 = vmatprep.subr.bf16.mxu1 %v7631_v1 }
 0x96e   :  { %6047 = vmatpush3.bf16.msra.mxu1 %v6474_v35 }
 0x96f   :  { %6048 = vmatprep.subr.bf16.mxu1 %v7631_v1 }
 0x9d3   :  { %v1326_v37 = vpop.f32.mrf.mxu1 }
 0x9d4   :  { %1333 = vrot.lane.b32.xlu1 %v1326_v37, %s7594_s18  ;;  %v6478_v37 = vld [vmem:[%s8780_s17 + $0x20] sm:$0xff]  }
 0x9d5   :  { %v5996_v38 = vpop.f32.mrf.mxu1  ;;  %6049 = vmatpush3.bf16.msra.mxu1 %v6478_v37 }
 0x9d6   :  { %v6479_v38 = vld [vmem:[%s8779_s19 + $0x10] ss:$8 sps:$4 sm:$0xff]   ;;  %6050 = vmatprep.subr.bf16.mxu1 %v7631_v1 }
 0x9d7   :  { %v1329_v39 = vpop.f32.mrf.mxu1 }
 0x9d8   :  { %v6485_v39 = vld [vmem:[%s8779_s19 + $0x4] ss:$8 sps:$4 sm:$0xff]  }
 0x9d9   :  { %v5997_v40 = vpop.f32.mrf.mxu1  ;;  %6051 = vmatpush3.bf16.msra.mxu1 %v6482_v41 }
 0x9da   :  { %v6483_v40 = vld [vmem:[%s8779_s19] ss:$8 sps:$4 sm:$0xff]   ;;  %6052 = vmatprep.subr.bf16.mxu1 %v7631_v1 }
 0x9db   :  { %v1475_v44 = vpop.f32.mrf.mxu1 }
 0x9dc   :  { %1481 = vst.msk [vmem:[#allocation2 + $0x7] sm:$0x7f] %vm1215_vm9, %v1475_v44  ;;  %v6487_v44 = vld [vmem:[%s8781_s25] sm:$0x3f]  }
 0x9dd   :  { %v6008_v46 = vpop.f32.mrf.mxu1 }
 0x9de   :  { %v6486_v46 = vld [vmem:[%s8780_s17 + $0x10] sm:$0xff]  }
 0x9df   :  { %v1478_v50 = vpop.f32.mrf.mxu1  ;;  %6053 = vmatpush3.bf16.msra.mxu1 %v6486_v46 }
 0x9e0   :  { %6054 = vmatprep.subr.bf16.mxu1 %v7631_v1  ;;  %v6489_v50 = vld [vmem:[%s8780_s17] sm:$0xff]  }
 0x9e1   :  { %v6009_v52 = vpop.f32.mrf.mxu1 }
 0x9e3   :  { %v1588_v53 = vpop.f32.mrf.mxu1  ;;  %6055 = vmatpush3.bf16.msra.mxu1 %v6488_v49 }
 0x9e4   :  { %1595 = vrot.lane.b32.xlu1 %v1588_v53, %s7594_s18  ;;  %6056 = vmatprep.subr.bf16.mxu1 %v7631_v1 }
 0x9e5   :  { %v6020_v8 = vpop.f32.mrf.mxu1 }
 0x9e7   :  { %v1591_v55 = vpop.f32.mrf.mxu1  ;;  %6057 = vmatpush3.bf16.msra.mxu1 %v6489_v50 }
 0x9e8   :  { %6062 = vmatprep.subr.bf16.mxu1 %v7631_v1 }
 0x9e9   :  { %v6021_v56 = vpop.f32.mrf.mxu1 }
 0xa46   :  { %v1334_v57 = vpop.permute.xlu1 %1333 }
 0xa47   :  { %1337 = vst.msk [vmem:[#allocation2] sm:$0x7f] %vm1336_vm10, %v1334_v57 }
 0xa56   :  { %v1596_v58 = vpop.permute.xlu1 %1595 }
 0xa57   :  { %1598 = vst.msk [vmem:[#allocation2 + $0x7] sm:$0x7f] %vm1336_vm10, %v1596_v58 }
 0xa5e   :  { %v1599_v59 = vld [vmem:[#allocation2] sm:$0xff]  ;;  %v1600_v60 = vld [vmem:[#allocation2 + $0x8] sm:$0x3f] }
 0xa5f   :  { %v1617_v61 = vpack.c.bf16 %v1600_v60, %v1599_v59  ;;  %v5546_v60 = vld [vmem:[#allocation15] ss:$0 sm:$0xff] }
 0xa61   :  { %6039 = vmatmul.mubr.bf16.vlgmr.msra.gmra.mxu0 %v1617_v61 }
 0xa62   :  { %2019 = vmatprep.mubr.bf16.mxu0 %v7630_v0  ;;  %1988 = vmatpush1.bf16.msra.mxu0 %v6457_v11 }
 0xb21   :  { %v1700_v62 = vpop.f32.mrf.mxu0 }
 0xb22   :  { %v1707_v2 = vadd.f32 %v1700_v62, %v7977_v51  ;;  %v6462_v51 = vld [vmem:[%s8779_s19 + $0x64] ss:$8 sps:$4 sm:$0xff]  }
 0xb23   :  { %v6040_v3 = vpop.f32.mrf.mxu0  ;;  %1989 = vmatprep.subr.bf16.mxu0 %v6462_v51 }
 0xb24   :  { %v8161_v4 = vadd.f32 %v5545_v63, %v1707_v2  ;;  %1990 = vmatpush1.bf16.msra.mxu0 %v6460_v15  ;;  %v5547_v2 = vld [vmem:[#allocation17] ss:$0 sm:$0xff] }
 0xb25   :  { %v1703_v5 = vpop.f32.mrf.mxu0  ;;  %1991 = vmatprep.subr.bf16.mxu0 %v6465_v16 }
 0xb26   :  { %v1708_v6 = vadd.f32 %v1703_v5, %v7973_v48  ;;  %1720 = vadd.xlane.f32.xlu1 %v8161_v4  ;;  %v6463_v48 = vld [vmem:[%s8779_s19 + $0x50] ss:$8 sps:$4 sm:$0xff]  }
 0xb27   :  { %v6041_v13 = vpop.f32.mrf.mxu0 }
 0xb28   :  { %v8165_v10 = vadd.f32 %v5545_v63, %v1708_v6  ;;  %1992 = vmatpush1.bf16.msra.mxu0 %v6463_v48 }
 0xb29   :  { %1993 = vmatprep.subr.bf16.mxu0 %v6469_v27 }
 0xb2a   :  { %v1722_v7 = vsel %vm725_vm4, %v8165_v10, 0.0 }
 0xb2b   :  { %1723 = vadd.xlane.f32.xlu0 %v1722_v7  ;;  %v1889_v7 = vld [vmem:[#allocation20] sm:$0x3] }
 0xb2c   :  { %1994 = vmatpush1.bf16.msra.mxu0 %v6467_v28  ;;  %v1894_v11 = vrot.slane %v1889_v7, %v8034_v43  ;;  %v1898_v12 = vrot.slane %v1889_v7, %v8037_v45  ;;  %v5548_v28 = vld [vmem:[#allocation18] ss:$0 sm:$0xff] }
 0xb2d   :  { %1995 = vmatprep.subr.bf16.mxu0 %v6473_v30 }
 0xb30   :  { %1996 = vmatpush1.bf16.msra.mxu0 %v6471_v31 }
 0xb31   :  { %1997 = vmatprep.subr.bf16.mxu0 %v6477_v33 }
 0xb34   :  { %1998 = vmatpush1.bf16.msra.mxu0 %v6475_v34 }
 0xb35   :  { %1999 = vmatprep.subr.bf16.mxu0 %v6481_v36 }
 0xb38   :  { %2000 = vmatpush1.bf16.msra.mxu0 %v6479_v38 }
 0xb39   :  { %2001 = vmatprep.subr.bf16.mxu0 %v6485_v39 }
 0xb3c   :  { %2002 = vmatpush1.bf16.msra.mxu0 %v6483_v40 }
 0xb3d   :  { %6086 = vmatprep.subr.bf16.mxu0 %v7631_v1 }
 0xb3f   :  { %2020 = vmatmul.mubr.bf16.vlgmr.msra.gmra.mxu0 %v6487_v44 }
 0xb40   :  { %6088 = vmatprep.mubr.msk.bf16.mxu0 %vm7632_vm0, %v7631_v1 }
 0xbaf   :  { %v1721_v17 = vpop.xlane.xlu1 %1720 }
 0xbb0   :  { %v1725_v18 = vmul.f32 0.0078125, %v1721_v17 }
 0xbb2   :  { %v8176_v20 = vsub.f32 %v8161_v4, %v1725_v18 }
 0xbb4   :  { %v1724_v21 = vpop.xlane.xlu0 %1723  ;;  %v1729_v22 = vmul.f32 %v8176_v20, %v8176_v20 }
 0xbb5   :  { %v1726_v23 = vmul.f32 0.0078125, %v1724_v21 }
 0xbb6   :  { %1731 = vadd.xlane.f32.xlu0 %v1729_v22 }
 0xbb7   :  { %v8181_v24 = vsub.f32 %v8165_v10, %v1726_v23 }
 0xbb9   :  { %v1730_v25 = vmul.f32 %v8181_v24, %v8181_v24 }
 0xbbb   :  { %v1733_v26 = vsel %vm725_vm4, %v1730_v25, 0.0 }
 0xbbc   :  { %1734 = vadd.xlane.f32.xlu0 %v1733_v26 }
 0xbff   :  { %v2021_v51 = vpop.f32.mrf.mxu0 }
 0xc00   :  { %v2022_v15 = vadd.f32 %v2021_v51, %v1894_v11 }
 0xc01   :  { %v2023_v16 = vpop.f32.mrf.mxu0 }
 0xc02   :  { %v2031_v48 = vpack.c.bf16 %v2022_v15, %v2022_v15  ;;  %v8222_v17 = vadd.f32 %v2023_v16, %v1898_v12 }
 0xc03   :  { %v2025_v18 = vpop.f32.mrf.mxu0 }
 0xc04   :  { %v2036_v21 = vsel %vm670_vm3, %v2031_v48, 0  ;;  %v2092_v30 = vpack.c.bf16 %v8222_v17, %v8222_v17 }
 0xc05   :  { %v2027_v22 = vpop.f32.mrf.mxu0 }
 0xc06   :  { %v2098_v36 = vsel %vm1168_vm5, %v2092_v30, 0 }
 0xc3f   :  { %v1732_v52 = vpop.xlane.xlu0 %1731 }
 0xc40   :  { %v1736_v53 = vmul.f32 0.0078125, %v1732_v52 }
 0xc42   :  { %v1738_v8 = vadd.f32 1e-05, %v1736_v53 }
 0xc44   :  { %6682 = vrsqrt.f32 %v1738_v8 }
 0xc45   :  { %v1735_v55 = vpop.xlane.xlu0 %1734 }
 0xc46   :  { %v1737_v56 = vmul.f32 0.0078125, %v1735_v55 }
 0xc48   :  { %v1739_v57 = vadd.f32 1e-05, %v1737_v56 }
 0xc4a   :  { %6684 = vrsqrt.f32 %v1739_v57 }
 0xc51   :  { %v6683_v58 = vpop.eup %6682 }
 0xc52   :  { %v1742_v59 = vmul.f32 %v6683_v58, %v8176_v20  ;;  %v2026_v20 = vadd.f32 %v2025_v18, %v1894_v11 }
 0xc54   :  { %v1750_v63 = vmul.f32 %v5546_v60, %v1742_v59  ;;  %v2261_v23 = vpack.c.bf16 %v2026_v20, %v2022_v15 }
 0xc56   :  { %v1758_v5 = vadd.f32 %v5547_v2, %v1750_v63  ;;  %v2271_v25 = vrot.slane %v2261_v23, 3 }
 0xc57   :  { %v6685_v61 = vpop.eup %6684 }
 0xc58   :  { %v1743_v62 = vmul.f32 %v6685_v61, %v8181_v24  ;;  %v8225_v24 = vadd.f32 %v2027_v22, %v1898_v12  ;;  %v2276_v27 = vsel %vm670_vm3, %v2271_v25, 0 }
 0xc59   :  { %6087 = vmatpush3.bf16.xpose.msra.mxu0 %v2276_v27 }
 0xc5a   :  { %v1751_v3 = vmul.f32 %v5546_v60, %v1743_v62  ;;  %v2331_v26 = vpack.c.bf16 %v8225_v24, %v8222_v17  ;;  %6098 = vmatprep.subr.bf16.mxu0 %v7631_v1 }
 0xc5c   :  { %v1759_v6 = vadd.f32 %v5547_v2, %v1751_v3 }
 0xc5e   :  { %v1776_v13 = vpack.c.bf16 %v1759_v6, %v1758_v5 }
 0xc60   :  { %6059 = vmatmul.mubr.bf16.vlgmr.msra.gmra.mxu1 %v1776_v13 }
 0xc61   :  { %6064 = vmatprep.mubr.msk.bf16.mxu1 %vm7632_vm0, %v7631_v1  ;;  %6063 = vmatpush3.bf16.xpose.msra.mxu1 %v2036_v21 }
 0xc62   :  { %6068 = vmatprep.subr.bf16.mxu1 %v7631_v1 }
 0xd20   :  { %v1866_v29 = vpop.f32.mrf.mxu1 }
 0xd21   :  { %v1867_v31 = vadd.f32 %v5548_v28, %v1866_v29 }
 0xd22   :  { %v6060_v32 = vpop.f32.mrf.mxu1 }
 0xd23   :  { %v2030_v33 = vpack.c.bf16 %v1867_v31, %v1867_v31 }
 0xd24   :  { %v1869_v34 = vpop.f32.mrf.mxu1 }
 0xd25   :  { %v1870_v35 = vadd.f32 %v5548_v28, %v1869_v34  ;;  %6065 = vmatmul.mubr.msk.bf16.vlgmr.msra.gmra.mxu1 %vm670_vm3, %v2030_v33 }
 0xd26   :  { %6069 = vmatpush3.bf16.msra.mxu1 %v2098_v36  ;;  %v6061_v37 = vpop.f32.mrf.mxu1  ;;  %6070 = vmatprep.mubr.msk.bf16.mxu1 %vm7632_vm0, %v7631_v1 }
 0xd27   :  { %v2260_v38 = vpack.c.bf16 %v1870_v35, %v1867_v31  ;;  %6074 = vmatprep.subr.bf16.mxu1 %v7631_v1 }
 0xd29   :  { %v2263_v39 = vshrl.u32 %v2260_v38, 16  ;;  %v2266_v40 = vshll.u32 %v2260_v38, 16 }
 0xd2b   :  { %v2265_v41 = vrot.slane %v2263_v39, 3  ;;  %v2268_v44 = vrot.slane %v2266_v40, 4 }
 0xd2d   :  { %v2269_v46 = vor.u32 %v2268_v44, %v2265_v41 }
 0xd2f   :  { %6089 = vmatmul.mubr.msk.bf16.vlgmr.msra.gmra.mxu0 %vm670_vm3, %v2269_v46 }
 0xd30   :  { %6100 = vmatprep.mubr.msk.bf16.mxu0 %vm7632_vm0, %v7631_v1 }
 0xde5   :  { %v2072_v49 = vpop.f32.mrf.mxu1 }
 0xde6   :  { %v2078_v50 = vmul.f32 0.125, %v2072_v49 }
 0xde7   :  { %v6066_v52 = vpop.f32.mrf.mxu1 }
 0xde8   :  { %v2080_v53 = vsel %vm2079_vm11, %v2078_v50, -inf }
 0xde9   :  { %2081 = vmax.xlane.f32.xlu1 %v2080_v53  ;;  %v2075_v8 = vpop.f32.mrf.mxu1 }
 0xdeb   :  { %v6067_v55 = vpop.f32.mrf.mxu1 }
 0xdef   :  { %v2312_v56 = vpop.f32.mrf.mxu0 }
 0xdf0   :  { %v2318_v60 = vmul.f32 0.125, %v2312_v56 }
 0xdf1   :  { %v6090_v57 = vpop.f32.mrf.mxu0 }
 0xdf2   :  { %v2319_v61 = vsel %vm2079_vm11, %v2318_v60, -inf }
 0xdf3   :  { %v2315_v58 = vpop.f32.mrf.mxu0 }
 0xdf5   :  { %v6091_v59 = vpop.f32.mrf.mxu0 }
 0xdfa   :  { %2145 = vrot.lane.b32.xlu1 %v2031_v48, %s7594_s18 }
 0xdfe   :  { %2383 = vrot.lane.b32.xlu1 %v2271_v25, %s7594_s18 }
 0xe02   :  { %2381 = vrot.lane.b32.xlu1 %v2269_v46, %s7594_s18 }
 0xe26   :  { %2320 = vmax.xlane.f32.xlu1 %v2319_v61 }
 0xe72   :  { %v2082_v62 = vpop.xlane.xlu1 %2081 }
 0xe73   :  { %v2083_v63 = vsub.f32 %v2078_v50, %v2082_v62  ;;  %v2333_v62 = vrot.slane %v2331_v26, 3 }
 0xe75   :  { %v2084_v2 = vmul.f32 1.442695, %v2083_v63 }
 0xe76   :  { %v2146_v3 = vpop.permute.xlu1 %2145 }
 0xe77   :  { %6686 = vpow2.f32 %v2084_v2  ;;  %v2151_v23 = vsel %vm670_vm3, %v2146_v3, 0 }
 0xe7a   :  { %v2384_v5 = vpop.permute.xlu1 %2383 }
 0xe7b   :  { %v2389_v6 = vsel %vm670_vm3, %v2384_v5, 0 }
 0xe7c   :  { %6099 = vmatpush3.bf16.xpose.msra.mxu0 %v2389_v6 }
 0xe7d   :  { %6110 = vmatprep.subr.bf16.mxu0 %v7631_v1 }
 0xe7e   :  { %v2382_v13 = vpop.permute.xlu1 %2381 }
 0xe83   :  { %6101 = vmatmul.mubr.msk.bf16.vlgmr.msra.gmra.mxu0 %vm670_vm3, %v2382_v13 }
 0xe84   :  { %v6687_v7 = vpop.eup %6686  ;;  %6126 = vmatprep.mubr.msk.bf16.mxu0 %vm7632_vm0, %v7631_v1 }
 0xe85   :  { %v2086_v11 = vsel %vm2079_vm11, %v6687_v7, 0.0 }
 0xe86   :  { %2087 = vadd.xlane.f32.xlu0 %v2086_v11 }
 0xe9c   :  { %2142 = vrot.lane.b32.xlu0 %v2030_v33, %s7594_s18 }
 0xeaf   :  { %v2321_v12 = vpop.xlane.xlu1 %2320 }
 0xeb0   :  { %v2322_v51 = vsub.f32 %v2318_v60, %v2321_v12 }
 0xeb2   :  { %v2323_v15 = vmul.f32 1.442695, %v2322_v51 }
 0xeb4   :  { %6688 = vpow2.f32 %v2323_v15 }
 0xec1   :  { %v8254_v16 = vpop.eup %6688 }
 0xec2   :  { %v2325_v48 = vsel %vm2079_vm11, %v8254_v16, 0.0 }
 0xec3   :  { %2326 = vadd.xlane.f32.xlu1 %v2325_v48  ;;  %v6490_v48 = vld [vmem:[#allocation21 + $0x38] sm:$0xff]  }
 0xec4   :  { %6111 = vmatpush3.bf16.msra.mxu0 %v6490_v48  ;;  %v6515_v48 = vld [vmem:[%s8782_s30 + $0x24] ss:$8 sps:$4 sm:$0xff]  }
 0xec5   :  { %6112 = vmatprep.subr.bf16.mxu0 %v7631_v1 }
 0xed4   :  { %2207 = vrot.lane.b32.xlu1 %v2092_v30, %s7594_s18 }
 0xf0f   :  { %v2088_v18 = vpop.xlane.xlu0 %2087 }
 0xf10   :  { %6690 = vrcp.f32 %v2088_v18  ;;  %v6492_v18 = vld [vmem:[#allocation21 + $0x28] sm:$0xff]  }
 0xf13   :  { %v2143_v25 = vpop.permute.xlu0 %2142 }
 0xf1d   :  { %v6691_v20 = vpop.eup %6690 }
 0xf1e   :  { %v2090_v21 = vmul.f32 %v6691_v20, %v6687_v7  ;;  %v2338_v7 = vsel %vm1168_vm5, %v2333_v62, 0  ;;  %v6493_v20 = vld [vmem:[#allocation21 + $0x20] sm:$0xff]  }
 0xf20   :  { %v2091_v22 = vpack.c.bf16 %v2090_v21, %v2090_v21  ;;  %v6494_v21 = vld [vmem:[#allocation21 + $0x18] sm:$0xff]  }
 0xf22   :  { %6071 = vmatmul.mubr.msk.bf16.vlgmr.msra.gmra.mxu1 %vm2093_vm12, %v2091_v22  ;;  %v6495_v22 = vld [vmem:[#allocation21 + $0x10] sm:$0xff]  }
 0xf23   :  { %6075 = vmatpush3.bf16.xpose.msra.mxu1 %v2151_v23  ;;  %6076 = vmatprep.mubr.msk.bf16.mxu1 %vm7632_vm0, %v7631_v1 }
 0xf24   :  { %6080 = vmatprep.subr.bf16.mxu1 %v7631_v1 }
 0xf2a   :  { %6077 = vmatmul.mubr.msk.bf16.vlgmr.msra.gmra.mxu1 %vm670_vm3, %v2143_v25 }
 0xf2b   :  { %6082 = vmatprep.mubr.msk.bf16.mxu1 %vm7632_vm0, %v7631_v1 }
 0xf43   :  { %v2425_v27 = vpop.f32.mrf.mxu0 }
 0xf44   :  { %v2431_v41 = vmul.f32 0.125, %v2425_v27 }
 0xf45   :  { %v6102_v28 = vpop.f32.mrf.mxu0 }
 0xf46   :  { %v2432_v50 = vsel %vm2079_vm11, %v2431_v41, -inf  ;;  %v6496_v28 = vld [vmem:[#allocation21 + $0x8] sm:$0xff]  }
 0xf47   :  { %v2428_v29 = vpop.f32.mrf.mxu0 }
 0xf49   :  { %v6103_v30 = vpop.f32.mrf.mxu0 }
 0xf4a   :  { %v6497_v30 = vld [vmem:[#allocation21] sm:$0xff]  }
 0xf4c   :  { %v2327_v31 = vpop.xlane.xlu1 %2326 }
 0xf50   :  { %v2208_v32 = vpop.permute.xlu1 %2207 }
 0xf51   :  { %v2213_v33 = vsel %vm1168_vm5, %v2208_v32, 0 }
 0xf52   :  { %6081 = vmatpush3.bf16.msra.mxu1 %v2213_v33 }
 0xf53   :  { %6092 = vmatprep.subr.bf16.mxu1 %v7631_v1 }
 0xfe2   :  { %v2134_v34 = vpop.f32.mrf.mxu1 }
 0xfe3   :  { %2140 = vst.msk [vmem:[#allocation2] sm:$0x7f] %vm1215_vm9, %v2134_v34 }
 0xfe4   :  { %v6072_v35 = vpop.f32.mrf.mxu1 }
 0xfe6   :  { %v2137_v36 = vpop.f32.mrf.mxu1 }
 0xfe8   :  { %v6073_v37 = vpop.f32.mrf.mxu1 }
 0xfea   :  { %v2187_v38 = vpop.f32.mrf.mxu1 }
 0xfeb   :  { %v2193_v39 = vmul.f32 0.125, %v2187_v38 }
 0xfec   :  { %v6078_v40 = vpop.f32.mrf.mxu1 }
 0xfed   :  { %v2194_v44 = vsel %vm2079_vm11, %v2193_v39, -inf }
 0xfee   :  { %2195 = vmax.xlane.f32.xlu0 %v2194_v44  ;;  %v2190_v46 = vpop.f32.mrf.mxu1 }
 0xff0   :  { %v6079_v49 = vpop.f32.mrf.mxu1 }
 0xff2   :  { %2433 = vmax.xlane.f32.xlu0 %v2432_v50  ;;  %v5590_v50 = vld [vmem:[#allocation23] ss:$0 sm:$0xff] }
0x1077   :  { %v2196_v52 = vpop.xlane.xlu0 %2195 }
0x1078   :  { %v2197_v53 = vsub.f32 %v2193_v39, %v2196_v52 }
0x107a   :  { %v2198_v8 = vmul.f32 1.442695, %v2197_v53 }
0x107b   :  { %v2434_v55 = vpop.xlane.xlu0 %2433 }
0x107c   :  { %6692 = vpow2.f32 %v2198_v8  ;;  %v2435_v56 = vsub.f32 %v2431_v41, %v2434_v55 }
0x107e   :  { %v2436_v57 = vmul.f32 1.442695, %v2435_v56 }
0x1080   :  { %6694 = vpow2.f32 %v2436_v57 }
0x1089   :  { %v6693_v58 = vpop.eup %6692 }
0x108a   :  { %v2200_v59 = vsel %vm2079_vm11, %v6693_v58, 0.0 }
0x108b   :  { %2201 = vadd.xlane.f32.xlu0 %v2200_v59 }
0x108d   :  { %v6695_v60 = vpop.eup %6694 }
0x108e   :  { %v2438_v61 = vsel %vm2079_vm11, %v6695_v60, 0.0 }
0x108f   :  { %2439 = vadd.xlane.f32.xlu0 %v2438_v61 }
0x10a5   :  { %2444 = vrot.lane.b32.xlu0 %v2333_v62, %s7594_s18 }
0x1114   :  { %v2202_v63 = vpop.xlane.xlu0 %2201 }
0x1115   :  { %6696 = vrcp.f32 %v2202_v63 }
0x1116   :  { %6698 = vrcp.f32 %v2327_v31 }
0x1118   :  { %v2440_v2 = vpop.xlane.xlu0 %2439 }
0x1119   :  { %6700 = vrcp.f32 %v2440_v2 }
0x111c   :  { %v2445_v24 = vpop.permute.xlu0 %2444 }
0x111d   :  { %v2450_v12 = vsel %vm1168_vm5, %v2445_v24, 0  ;;  %v6506_v24 = vld [vmem:[%s8782_s30 + $0x54] ss:$8 sps:$4 sm:$0xff]  }
0x1122   :  { %v6697_v3 = vpop.eup %6696 }
0x1123   :  { %v2204_v5 = vmul.f32 %v6697_v3, %v6693_v58  ;;  %v6699_v13 = vpop.eup %6698 }
0x1124   :  { %v2329_v17 = vmul.f32 %v6699_v13, %v8254_v16  ;;  %v6491_v16 = vld [vmem:[#allocation21 + $0x30] sm:$0xff]  }
0x1125   :  { %v2205_v6 = vpack.c.bf16 %v2204_v5, %v2204_v5  ;;  %6113 = vmatpush3.bf16.msra.mxu0 %v6491_v16  ;;  %v6498_v13 = vld [vmem:[%s8782_s30 + $0x70] ss:$8 sps:$4 sm:$0xff]   ;;  %v6513_v16 = vld [vmem:[%s8782_s30 + $0x20] ss:$8 sps:$4 sm:$0xff]  }
0x1126   :  { %v2330_v26 = vpack.c.bf16 %v2329_v17, %v2329_v17  ;;  %v6701_v11 = vpop.eup %6700  ;;  %6114 = vmatprep.subr.bf16.mxu0 %v7631_v1  ;;  %v6501_v17 = vld [vmem:[%s8782_s30 + $0x60] ss:$8 sps:$4 sm:$0xff]  }
0x1127   :  { %6083 = vmatmul.mubr.msk.bf16.vlgmr.msra.gmra.mxu1 %vm2093_vm12, %v2205_v6  ;;  %v2442_v51 = vmul.f32 %v6701_v11, %v6695_v60  ;;  %v6500_v6 = vld [vmem:[%s8782_s30 + $0x74] ss:$8 sps:$4 sm:$0xff]   ;;  %v6507_v11 = vld [vmem:[%s8782_s30 + $0x40] ss:$8 sps:$4 sm:$0xff]  }
0x1128   :  { %6093 = vmatpush3.bf16.msra.mxu1 %v2338_v7  ;;  %6094 = vmatprep.mubr.msk.bf16.mxu1 %vm7632_vm0, %v7631_v1  ;;  %v6503_v7 = vld [vmem:[%s8782_s30 + $0x64] ss:$8 sps:$4 sm:$0xff]  }
0x1129   :  { %6104 = vmatprep.subr.bf16.mxu1 %v7631_v1  ;;  %v2443_v15 = vpack.c.bf16 %v2442_v51, %v2442_v51  ;;  %6115 = vmatpush3.bf16.msra.mxu0 %v6492_v18  ;;  %v6512_v51 = vld [vmem:[%s8782_s30 + $0x34] ss:$8 sps:$4 sm:$0xff]  }
0x112a   :  { %6116 = vmatprep.subr.bf16.mxu0 %v7631_v1  ;;  %v6518_v18 = vld [vmem:[%s8782_s30 + $0x14] ss:$8 sps:$4 sm:$0xff]  }
0x112d   :  { %6117 = vmatpush3.bf16.msra.mxu0 %v6493_v20  ;;  %v6516_v20 = vld [vmem:[%s8782_s30 + $0x10] ss:$8 sps:$4 sm:$0xff]  }
0x112e   :  { %6118 = vmatprep.subr.bf16.mxu0 %v7631_v1 }
0x112f   :  { %6095 = vmatmul.mubr.msk.bf16.vlgmr.msra.gmra.mxu1 %vm2093_vm12, %v2330_v26  ;;  %v6504_v26 = vld [vmem:[%s8782_s30 + $0x50] ss:$8 sps:$4 sm:$0xff]  }
0x1130   :  { %6105 = vmatpush3.bf16.msra.mxu1 %v2450_v12  ;;  %6106 = vmatprep.mubr.msk.bf16.mxu1 %vm7632_vm0, %v7631_v1  ;;  %v6509_v12 = vld [vmem:[%s8782_s30 + $0x44] ss:$8 sps:$4 sm:$0xff]  }
0x1131   :  { %6119 = vmatpush3.bf16.msra.mxu0 %v6494_v21  ;;  %2767 = vmatprep.subr.bf16.mxu1 %v6500_v6  ;;  %v6521_v21 = vld [vmem:[%s8782_s30 + $0x4] ss:$8 sps:$4 sm:$0xff]  }
0x1132   :  { %6120 = vmatprep.subr.bf16.mxu0 %v7631_v1 }
0x1135   :  { %6121 = vmatpush3.bf16.msra.mxu0 %v6495_v22  ;;  %v6519_v22 = vld [vmem:[%s8782_s30] ss:$8 sps:$4 sm:$0xff]  }
0x1136   :  { %6122 = vmatprep.subr.bf16.mxu0 %v7631_v1 }
0x1137   :  { %6107 = vmatmul.mubr.msk.bf16.vlgmr.msra.gmra.mxu1 %vm2093_vm12, %v2443_v15  ;;  %v6510_v15 = vld [vmem:[%s8782_s30 + $0x30] ss:$8 sps:$4 sm:$0xff]  }
0x1138   :  { %2799 = vmatprep.mubr.bf16.mxu1 %v7630_v0  ;;  %2768 = vmatpush1.bf16.msra.mxu1 %v6498_v13 }
0x1139   :  { %6123 = vmatpush3.bf16.msra.mxu0 %v6496_v28  ;;  %2769 = vmatprep.subr.bf16.mxu1 %v6503_v7 }
0x113a   :  { %6124 = vmatprep.subr.bf16.mxu0 %v7631_v1 }
0x113c   :  { %2770 = vmatpush1.bf16.msra.mxu1 %v6501_v17 }
0x113d   :  { %6125 = vmatpush3.bf16.msra.mxu0 %v6497_v30  ;;  %2771 = vmatprep.subr.bf16.mxu1 %v6506_v24 }
0x1140   :  { %2772 = vmatpush1.bf16.msra.mxu1 %v6504_v26 }
0x1141   :  { %2773 = vmatprep.subr.bf16.mxu1 %v6509_v12 }
0x1144   :  { %2774 = vmatpush1.bf16.msra.mxu1 %v6507_v11 }
0x1145   :  { %2775 = vmatprep.subr.bf16.mxu1 %v6512_v51 }
0x1148   :  { %2776 = vmatpush1.bf16.msra.mxu1 %v6510_v15 }
0x1149   :  { %2777 = vmatprep.subr.bf16.mxu1 %v6515_v48 }
0x114c   :  { %2778 = vmatpush1.bf16.msra.mxu1 %v6513_v16 }
0x114d   :  { %2779 = vmatprep.subr.bf16.mxu1 %v6518_v18 }
0x1150   :  { %2780 = vmatpush1.bf16.msra.mxu1 %v6516_v20 }
0x1151   :  { %2781 = vmatprep.subr.bf16.mxu1 %v6521_v21 }
0x1154   :  { %2782 = vmatpush1.bf16.msra.mxu1 %v6519_v22 }
0x11e7   :  { %v2249_v23 = vpop.f32.mrf.mxu1 }
0x11e8   :  { %2256 = vrot.lane.b32.xlu1 %v2249_v23, %s7594_s18 }
0x11e9   :  { %v6084_v25 = vpop.f32.mrf.mxu1 }
0x11eb   :  { %v2252_v27 = vpop.f32.mrf.mxu1 }
0x11ed   :  { %v6085_v29 = vpop.f32.mrf.mxu1 }
0x11ef   :  { %v2374_v31 = vpop.f32.mrf.mxu1 }
0x11f0   :  { %2380 = vst.msk [vmem:[#allocation2 + $0x7] sm:$0x7f] %vm1215_vm9, %v2374_v31 }
0x11f1   :  { %v6096_v32 = vpop.f32.mrf.mxu1 }
0x11f3   :  { %v2377_v33 = vpop.f32.mrf.mxu1 }
0x11f4   :  { %v5591_v33 = vld [vmem:[#allocation24] ss:$0 sm:$0xff] }
0x11f5   :  { %v6097_v34 = vpop.f32.mrf.mxu1 }
0x11f7   :  { %v2486_v35 = vpop.f32.mrf.mxu1 }
0x11f8   :  { %2493 = vrot.lane.b32.xlu1 %v2486_v35, %s7594_s18 }
0x11f9   :  { %v6108_v36 = vpop.f32.mrf.mxu1 }
0x11fb   :  { %v2489_v37 = vpop.f32.mrf.mxu1 }
0x11fc   :  { %v5592_v37 = vld [vmem:[#allocation26] ss:$0 sm:$0xff] }
0x11fd   :  { %v6109_v38 = vpop.f32.mrf.mxu1 }
0x125a   :  { %v2257_v39 = vpop.permute.xlu1 %2256 }
0x125b   :  { %2259 = vst.msk [vmem:[#allocation2] sm:$0x7f] %vm1336_vm10, %v2257_v39 }
0x126a   :  { %v2494_v40 = vpop.permute.xlu1 %2493 }
0x126b   :  { %2496 = vst.msk [vmem:[#allocation2 + $0x7] sm:$0x7f] %vm1336_vm10, %v2494_v40 }
0x1272   :  { %v2497_v41 = vld [vmem:[#allocation2] sm:$0xff]  ;;  %v2498_v44 = vld [vmem:[#allocation2 + $0x8] sm:$0x3f] }
0x1273   :  { %v2515_v46 = vpack.c.bf16 %v2498_v44, %v2497_v41  ;;  %v6522_v44 = vld [vmem:[%s8783_s0 + $0x78] sm:$0xff]  }
0x1274   :  { %5825 = vmatprep.subr.bf16.mxu0 %v6522_v44 }
0x1275   :  { %6127 = vmatmul.mubr.bf16.vlgmr.msra.gmra.mxu0 %v2515_v46  ;;  %v6523_v46 = vld [vmem:[%s8783_s0 + $0x38] sm:$0xff]  }
0x1276   :  { %5826 = vmatpush3.bf16.msra.mxu0 %v6523_v46 }
0x1335   :  { %v2598_v49 = vpop.f32.mrf.mxu0 }
0x1336   :  { %v2605_v52 = vadd.f32 %v2598_v49, %v8161_v4  ;;  %v6524_v49 = vld [vmem:[%s8783_s0 + $0x70] sm:$0xff]  }
0x1337   :  { %v6128_v53 = vpop.f32.mrf.mxu0  ;;  %5827 = vmatprep.subr.bf16.mxu0 %v6524_v49 }
0x1338   :  { %v8303_v8 = vadd.f32 %v5590_v50, %v2605_v52  ;;  %v6526_v52 = vld [vmem:[%s8783_s0 + $0x68] sm:$0xff]  }
0x1339   :  { %v2601_v55 = vpop.f32.mrf.mxu0  ;;  %v6527_v53 = vld [vmem:[%s8783_s0 + $0x28] sm:$0xff]  }
0x133a   :  { %v2606_v56 = vadd.f32 %v2601_v55, %v8165_v10  ;;  %2618 = vadd.xlane.f32.xlu1 %v8303_v8  ;;  %v6528_v55 = vld [vmem:[%s8783_s0 + $0x60] sm:$0xff]  }
0x133b   :  { %v6129_v57 = vpop.f32.mrf.mxu0 }
0x133c   :  { %v8307_v58 = vadd.f32 %v5590_v50, %v2606_v56  ;;  %v6525_v50 = vld [vmem:[%s8783_s0 + $0x30] sm:$0xff]   ;;  %v6529_v56 = vld [vmem:[%s8783_s0 + $0x20] sm:$0xff]   ;;  %v6530_v57 = vld [vmem:[%s8783_s0 + $0x58] sm:$0xff]  }
0x133d   :  { %5828 = vmatpush3.bf16.msra.mxu0 %v6525_v50 }
0x133e   :  { %v2620_v59 = vsel %vm725_vm4, %v8307_v58, 0.0  ;;  %5829 = vmatprep.subr.bf16.mxu0 %v6526_v52 }
0x133f   :  { %2621 = vadd.xlane.f32.xlu0 %v2620_v59  ;;  %v6531_v59 = vld [vmem:[%s8783_s0 + $0x18] sm:$0xff]  }
0x1341   :  { %5830 = vmatpush3.bf16.msra.mxu0 %v6527_v53 }
0x1342   :  { %5831 = vmatprep.subr.bf16.mxu0 %v6528_v55 }
0x1345   :  { %5832 = vmatpush3.bf16.msra.mxu0 %v6529_v56 }
0x1346   :  { %5833 = vmatprep.subr.bf16.mxu0 %v6530_v57 }
0x1349   :  { %5834 = vmatpush3.bf16.msra.mxu0 %v6531_v59 }
0x13c3   :  { %v2619_v60 = vpop.xlane.xlu1 %2618 }
0x13c4   :  { %v2623_v4 = vmul.f32 0.0078125, %v2619_v60  ;;  %v6532_v60 = vld [vmem:[%s8783_s0 + $0x50] sm:$0xff]  }
0x13c5   :  { %5835 = vmatprep.subr.bf16.mxu0 %v6532_v60 }
0x13c6   :  { %v2625_v61 = vsub.f32 %v8303_v8, %v2623_v4  ;;  %v6533_v4 = vld [vmem:[%s8783_s0 + $0x10] sm:$0xff]  }
0x13c7   :  { %5836 = vmatpush3.bf16.msra.mxu0 %v6533_v4 }
0x13c8   :  { %v2622_v62 = vpop.xlane.xlu0 %2621  ;;  %v2627_v10 = vmul.f32 %v2625_v61, %v2625_v61 }
0x13c9   :  { %v2624_v63 = vmul.f32 0.0078125, %v2622_v62  ;;  %v6535_v62 = vld [vmem:[%s8783_s0 + $0x8] sm:$0xff]  }
0x13ca   :  { %2629 = vadd.xlane.f32.xlu0 %v2627_v10  ;;  %v6536_v10 = vld [vmem:[%s8783_s0 + $0x40] sm:$0xff]  }
0x13cb   :  { %v2626_v2 = vsub.f32 %v8307_v58, %v2624_v63  ;;  %v6537_v63 = vld [vmem:[%s8783_s0] sm:$0xff]  }
0x13cd   :  { %v2628_v3 = vmul.f32 %v2626_v2, %v2626_v2 }
0x13cf   :  { %v2631_v5 = vsel %vm725_vm4, %v2628_v3, 0.0 }
0x13d0   :  { %2632 = vadd.xlane.f32.xlu0 %v2631_v5 }
0x1453   :  { %v2630_v23 = vpop.xlane.xlu0 %2629 }
0x1454   :  { %v2634_v25 = vmul.f32 0.0078125, %v2630_v23 }
0x1456   :  { %v2636_v27 = vadd.f32 1e-05, %v2634_v25 }
0x1458   :  { %6702 = vrsqrt.f32 %v2636_v27 }
0x1459   :  { %v2633_v28 = vpop.xlane.xlu0 %2632 }
0x145a   :  { %v2635_v29 = vmul.f32 0.0078125, %v2633_v28 }
0x145c   :  { %v2637_v30 = vadd.f32 1e-05, %v2635_v29 }
0x145e   :  { %6704 = vrsqrt.f32 %v2637_v30 }
0x1465   :  { %v6703_v31 = vpop.eup %6702 }
0x1466   :  { %v2640_v32 = vmul.f32 %v6703_v31, %v2625_v61  ;;  %v6534_v61 = vld [vmem:[%s8783_s0 + $0x48] sm:$0xff]  }
0x1467   :  { %5837 = vmatprep.subr.bf16.mxu0 %v6534_v61 }
0x1468   :  { %v2648_v36 = vmul.f32 %v5591_v33, %v2640_v32  ;;  %5838 = vmatpush3.bf16.msra.mxu0 %v6535_v62 }
0x1469   :  { %5839 = vmatprep.subr.bf16.mxu0 %v6536_v10 }
0x146a   :  { %v2656_v39 = vadd.f32 %v5592_v37, %v2648_v36 }
0x146b   :  { %v6705_v34 = vpop.eup %6704 }
0x146c   :  { %v2641_v35 = vmul.f32 %v6705_v34, %v2626_v2  ;;  %5840 = vmatpush3.bf16.msra.mxu0 %v6537_v63  ;;  %v2675_v2 = vld [vmem:[#allocation27] sm:$0x3] }
0x146d   :  { %6130 = vmatprep.subr.bf16.mxu0 %v7631_v1  ;;  %v2680_v3 = vrot.slane %v2675_v2, %v8034_v43  ;;  %v2684_v5 = vrot.slane %v2675_v2, %v8037_v45 }
0x146e   :  { %v2649_v38 = vmul.f32 %v5591_v33, %v2641_v35 }
0x1470   :  { %v2657_v40 = vadd.f32 %v5592_v37, %v2649_v38 }
0x1472   :  { %v2674_v41 = vpack.c.bf16 %v2657_v40, %v2656_v39 }
0x1474   :  { %2800 = vmatmul.mubr.bf16.vlgmr.msra.gmra.mxu1 %v2674_v41 }
0x1475   :  { %3280 = vmatprep.mubr.bf16.mxu1 %v7630_v0 }
0x1534   :  { %v2801_v6 = vpop.f32.mrf.mxu1 }
0x1535   :  { %v2802_v13 = vadd.f32 %v2801_v6, %v2680_v3 }
0x1536   :  { %v2803_v7 = vpop.f32.mrf.mxu1 }
0x1537   :  { %v2810_v17 = vmul.f32 %v2802_v13, %v2802_v13  ;;  %v2804_v24 = vadd.f32 %v2803_v7, %v2684_v5 }
0x1538   :  { %v2805_v26 = vpop.f32.mrf.mxu1 }
0x1539   :  { %v2814_v11 = vmul.f32 %v2810_v17, %v2802_v13  ;;  %v2811_v12 = vmul.f32 %v2804_v24, %v2804_v24  ;;  %v2806_v51 = vadd.f32 %v2805_v26, %v2680_v3  ;;  %v5625_v3 = vld [vmem:[#allocation29] ss:$0 sm:$0xff] }
0x153a   :  { %v2807_v15 = vpop.f32.mrf.mxu1 }
0x153b   :  { %v2818_v48 = vmul.f32 0.044715, %v2814_v11  ;;  %v2815_v16 = vmul.f32 %v2811_v12, %v2804_v24  ;;  %v2812_v18 = vmul.f32 %v2806_v51, %v2806_v51  ;;  %v2808_v20 = vadd.f32 %v2807_v15, %v2684_v5 }
0x153d   :  { %v2822_v21 = vadd.f32 %v2818_v48, %v2802_v13  ;;  %v2819_v22 = vmul.f32 0.044715, %v2815_v16  ;;  %v2816_v23 = vmul.f32 %v2812_v18, %v2806_v51  ;;  %v2813_v25 = vmul.f32 %v2808_v20, %v2808_v20 }
0x153f   :  { %v2826_v27 = vmul.f32 0.7978846, %v2822_v21  ;;  %v2823_v28 = vadd.f32 %v2819_v22, %v2804_v24  ;;  %v2820_v29 = vmul.f32 0.044715, %v2816_v23  ;;  %v2817_v30 = vmul.f32 %v2813_v25, %v2808_v20  ;;  %v6538_v21 = vld [vmem:[%s8784_s15 + $0xa8] ss:$12 sps:$4 sm:$0xff]  }
0x1540   :  { %v6541_v22 = vld [vmem:[%s8784_s15 + $0xb0] ss:$12 sps:$4 sm:$0xff]   ;;  %v6544_v23 = vld [vmem:[%s8784_s15 + $0x94] ss:$12 sps:$4 sm:$0xff]  }
0x1541   :  { %v2827_v31 = vmul.f32 0.7978846, %v2823_v28  ;;  %v2824_v32 = vadd.f32 %v2820_v29, %v2806_v51  ;;  %v2821_v33 = vmul.f32 0.044715, %v2817_v30  ;;  %6706 = vtanh.f32 %v2826_v27  ;;  %v6542_v25 = vld [vmem:[%s8784_s15 + $0x90] ss:$12 sps:$4 sm:$0xff]  }
0x1542   :  { %v6545_v27 = vld [vmem:[%s8784_s15 + $0x98] ss:$12 sps:$4 sm:$0xff]   ;;  %v6548_v28 = vld [vmem:[%s8784_s15 + $0x7c] ss:$12 sps:$4 sm:$0xff]   ;;  %v6549_v30 = vld [vmem:[%s8784_s15 + $0x80] ss:$12 sps:$4 sm:$0xff]  }
0x1543   :  { %6708 = vtanh.f32 %v2827_v31  ;;  %v2828_v34 = vmul.f32 0.7978846, %v2824_v32  ;;  %v2825_v35 = vadd.f32 %v2821_v33, %v2808_v20  ;;  %v6546_v29 = vld [vmem:[%s8784_s15 + $0x78] ss:$12 sps:$4 sm:$0xff]   ;;  %v6550_v31 = vld [vmem:[%s8784_s15 + $0x60] ss:$12 sps:$4 sm:$0xff]  }
0x1544   :  { %v6552_v32 = vld [vmem:[%s8784_s15 + $0x64] ss:$12 sps:$4 sm:$0xff]   ;;  %v6553_v33 = vld [vmem:[%s8784_s15 + $0x68] ss:$12 sps:$4 sm:$0xff]  }
0x1545   :  { %6710 = vtanh.f32 %v2828_v34  ;;  %v2829_v36 = vmul.f32 0.7978846, %v2825_v35  ;;  %v6556_v34 = vld [vmem:[%s8784_s15 + $0x4c] ss:$12 sps:$4 sm:$0xff]   ;;  %v6554_v35 = vld [vmem:[%s8784_s15 + $0x48] ss:$12 sps:$4 sm:$0xff]  }
0x1547   :  { %6712 = vtanh.f32 %v2829_v36  ;;  %v6557_v36 = vld [vmem:[%s8784_s15 + $0x50] ss:$12 sps:$4 sm:$0xff]  }
0x154e   :  { %v6707_v37 = vpop.eup %6706 }
0x154f   :  { %v2834_v41 = vadd.f32 1.0, %v6707_v37  ;;  %v6560_v37 = vld [vmem:[%s8784_s15 + $0x34] ss:$12 sps:$4 sm:$0xff]  }
0x1550   :  { %v6709_v38 = vpop.eup %6708 }
0x1551   :  { %v2835_v39 = vadd.f32 1.0, %v6709_v38  ;;  %v2838_v53 = vmul.f32 0.5, %v2834_v41  ;;  %v6558_v38 = vld [vmem:[%s8784_s15 + $0x30] ss:$12 sps:$4 sm:$0xff]   ;;  %v6562_v41 = vld [vmem:[%s8784_s15 + $0x18] ss:$12 sps:$4 sm:$0xff]  }
0x1552   :  { %v6711_v40 = vpop.eup %6710 }
0x1553   :  { %v2836_v44 = vadd.f32 1.0, %v6711_v40  ;;  %v2839_v52 = vmul.f32 0.5, %v2835_v39  ;;  %v2842_v60 = vmul.f32 %v2838_v53, %v2802_v13  ;;  %v6561_v39 = vld [vmem:[%s8784_s15 + $0x38] ss:$12 sps:$4 sm:$0xff]   ;;  %v6564_v40 = vld [vmem:[%s8784_s15 + $0x1c] ss:$12 sps:$4 sm:$0xff]  }
0x1554   :  { %v6713_v46 = vpop.eup %6712 }
0x1555   :  { %v2840_v49 = vmul.f32 0.5, %v2836_v44  ;;  %v2837_v50 = vadd.f32 1.0, %v6713_v46  ;;  %v2843_v57 = vmul.f32 %v2839_v52, %v2804_v24  ;;  %v6565_v44 = vld [vmem:[%s8784_s15 + $0x20] ss:$12 sps:$4 sm:$0xff]   ;;  %v6568_v46 = vld [vmem:[%s8784_s15 + $0x4] ss:$12 sps:$4 sm:$0xff]  }
0x1557   :  { %v2841_v55 = vmul.f32 0.5, %v2837_v50  ;;  %v2844_v56 = vmul.f32 %v2840_v49, %v2806_v51  ;;  %v6566_v49 = vld [vmem:[%s8784_s15] ss:$12 sps:$4 sm:$0xff]   ;;  %v6569_v50 = vld [vmem:[%s8784_s15 + $0x8] ss:$12 sps:$4 sm:$0xff]  }
0x1559   :  { %v2845_v59 = vmul.f32 %v2841_v55, %v2808_v20  ;;  %v2878_v61 = vpack.c.bf16 %v2844_v56, %v2842_v60  ;;  %v6540_v20 = vld [vmem:[%s8784_s15 + $0xac] ss:$12 sps:$4 sm:$0xff]  }
0x155a   :  { %3248 = vmatprep.subr.bf16.mxu1 %v6540_v20 }
0x155b   :  { %v2879_v4 = vpack.c.bf16 %v2845_v59, %v2843_v57  ;;  %3249 = vmatpush1.bf16.msra.mxu1 %v6538_v21 }
0x155c   :  { %3250 = vmatprep.subr.bf16.mxu1 %v6544_v23 }
0x155d   :  { %3008 = vmatprep.mubr.bf16.mxu0 %v2879_v4 }
0x155e   :  { %3009 = vmatmul.mubr.bf16.vlgmr.msra.gmra.mxu0 %v2878_v61  ;;  %v5626_v61 = vld [vmem:[#allocation30] ss:$0 sm:$0xff] }
0x155f   :  { %6146 = vmatprep.mubr.msk.bf16.mxu0 %vm7632_vm0, %v7631_v1  ;;  %6131 = vmatpush3.bf16.msra.mxu0 %v6541_v22 }
0x1560   :  { %6132 = vmatprep.subr.bf16.mxu0 %v7631_v1  ;;  %3251 = vmatpush1.bf16.msra.mxu1 %v6542_v25 }
0x1561   :  { %3252 = vmatprep.subr.bf16.mxu1 %v6548_v28 }
0x1563   :  { %6133 = vmatpush3.bf16.msra.mxu0 %v6545_v27 }
0x1564   :  { %6134 = vmatprep.subr.bf16.mxu0 %v7631_v1  ;;  %3253 = vmatpush1.bf16.msra.mxu1 %v6546_v29 }
0x1565   :  { %3254 = vmatprep.subr.bf16.mxu1 %v6552_v32 }
0x1567   :  { %6135 = vmatpush3.bf16.msra.mxu0 %v6549_v30 }
0x1568   :  { %6136 = vmatprep.subr.bf16.mxu0 %v7631_v1  ;;  %3255 = vmatpush1.bf16.msra.mxu1 %v6550_v31 }
0x1569   :  { %3256 = vmatprep.subr.bf16.mxu1 %v6556_v34 }
0x156b   :  { %6137 = vmatpush3.bf16.msra.mxu0 %v6553_v33 }
0x156c   :  { %6138 = vmatprep.subr.bf16.mxu0 %v7631_v1  ;;  %3257 = vmatpush1.bf16.msra.mxu1 %v6554_v35 }
0x156d   :  { %3258 = vmatprep.subr.bf16.mxu1 %v6560_v37 }
0x156f   :  { %6139 = vmatpush3.bf16.msra.mxu0 %v6557_v36 }
0x1570   :  { %6140 = vmatprep.subr.bf16.mxu0 %v7631_v1  ;;  %3259 = vmatpush1.bf16.msra.mxu1 %v6558_v38 }
0x1571   :  { %3260 = vmatprep.subr.bf16.mxu1 %v6564_v40 }
0x1573   :  { %6141 = vmatpush3.bf16.msra.mxu0 %v6561_v39 }
0x1574   :  { %6142 = vmatprep.subr.bf16.mxu0 %v7631_v1  ;;  %3261 = vmatpush1.bf16.msra.mxu1 %v6562_v41 }
0x1575   :  { %3262 = vmatprep.subr.bf16.mxu1 %v6568_v46 }
0x1577   :  { %6143 = vmatpush3.bf16.msra.mxu0 %v6565_v44 }
0x1578   :  { %6144 = vmatprep.subr.bf16.mxu0 %v7631_v1  ;;  %3263 = vmatpush1.bf16.msra.mxu1 %v6566_v49 }
0x1579   :  { %6150 = vmatprep.subr.bf16.mxu1 %v7631_v1 }
0x157b   :  { %6145 = vmatpush3.bf16.msra.mxu0 %v6569_v50 }
0x157c   :  { %6174 = vmatprep.subr.bf16.mxu0 %v7631_v1 }
0x161e   :  { %v5841_v62 = vpop.f32.mrf.mxu0 }
0x1620   :  { %v5842_v10 = vpop.f32.mrf.mxu0 }
0x1621   :  { %v5843_v63 = vadd.f32 %v5842_v10, %v5841_v62 }
0x1622   :  { %v5844_v2 = vpop.f32.mrf.mxu0 }
0x1623   :  { %v3017_v5 = vadd.f32 %v5843_v63, %v8303_v8 }
0x1624   :  { %v5845_v6 = vpop.f32.mrf.mxu0 }
0x1625   :  { %v5846_v7 = vadd.f32 %v5845_v6, %v5844_v2  ;;  %v8353_v17 = vadd.f32 %v5625_v3, %v3017_v5  ;;  %v5627_v2 = vld [vmem:[#allocation32] ss:$0 sm:$0xff] }
0x1627   :  { %v3018_v13 = vadd.f32 %v5846_v7, %v8307_v58  ;;  %3030 = vadd.xlane.f32.xlu0 %v8353_v17 }
0x1629   :  { %v8357_v24 = vadd.f32 %v5625_v3, %v3018_v13  ;;  %v3103_v13 = vld [vmem:[#allocation33] sm:$0x7] }
0x162b   :  { %v3032_v26 = vsel %vm725_vm4, %v8357_v24, 0.0 }
0x162c   :  { %3033 = vadd.xlane.f32.xlu1 %v3032_v26  ;;  %v3112_v26 = vrot.slane %v3103_v13, %v8037_v45 }
0x16b0   :  { %v3031_v11 = vpop.xlane.xlu0 %3030 }
0x16b1   :  { %v3035_v12 = vmul.f32 0.0078125, %v3031_v11 }
0x16b3   :  { %v8362_v8 = vsub.f32 %v8353_v17, %v3035_v12 }
0x16b5   :  { %v3034_v51 = vpop.xlane.xlu1 %3033  ;;  %v3039_v58 = vmul.f32 %v8362_v8, %v8362_v8 }
0x16b6   :  { %v3036_v15 = vmul.f32 0.0078125, %v3034_v51 }
0x16b7   :  { %3041 = vadd.xlane.f32.xlu1 %v3039_v58 }
0x16b8   :  { %v8367_v48 = vsub.f32 %v8357_v24, %v3036_v15 }
0x16ba   :  { %v3040_v16 = vmul.f32 %v8367_v48, %v8367_v48 }
0x16bc   :  { %v3043_v18 = vsel %vm725_vm4, %v3040_v16, 0.0 }
0x16bd   :  { %3044 = vadd.xlane.f32.xlu0 %v3043_v18  ;;  %v3108_v18 = vrot.slane %v3103_v13, %v8034_v43 }
0x1740   :  { %v3042_v52 = vpop.xlane.xlu1 %3041 }
0x1741   :  { %v3046_v53 = vmul.f32 0.0078125, %v3042_v52 }
0x1743   :  { %v3048_v55 = vadd.f32 1e-05, %v3046_v53 }
0x1745   :  { %6714 = vrsqrt.f32 %v3048_v55 }
0x1746   :  { %v3045_v56 = vpop.xlane.xlu0 %3044 }
0x1747   :  { %v3047_v57 = vmul.f32 0.0078125, %v3045_v56 }
0x1749   :  { %v3049_v59 = vadd.f32 1e-05, %v3047_v57 }
0x174b   :  { %6716 = vrsqrt.f32 %v3049_v59 }
0x1752   :  { %v6715_v60 = vpop.eup %6714 }
0x1753   :  { %v3052_v4 = vmul.f32 %v6715_v60, %v8362_v8  ;;  %v3116_v8 = vrot.slane %v3103_v13, %v859_v47 }
0x1755   :  { %v3060_v63 = vmul.f32 %v5626_v61, %v3052_v4 }
0x1757   :  { %v3068_v5 = vadd.f32 %v5627_v2, %v3060_v63 }
0x1758   :  { %v6717_v62 = vpop.eup %6716 }
0x1759   :  { %v3053_v10 = vmul.f32 %v6717_v62, %v8367_v48 }
0x175b   :  { %v3061_v3 = vmul.f32 %v5626_v61, %v3053_v10 }
0x175d   :  { %v3069_v6 = vadd.f32 %v5627_v2, %v3061_v3 }
0x175f   :  { %v3102_v7 = vpack.c.bf16 %v3069_v6, %v3068_v5 }
0x1761   :  { %3281 = vmatmul.mubr.bf16.vlgmr.msra.gmra.mxu1 %v3102_v7  ;;  %6147 = vmatmul.mubr.bf16.vlgmr.msra.gmra.mxu0 %v3102_v7 }
0x1762   :  { %6152 = vmatprep.mubr.msk.bf16.mxu1 %vm7632_vm0, %v7631_v1  ;;  %6176 = vmatprep.mubr.msk.bf16.mxu0 %vm7632_vm0, %v7631_v1 }
0x1821   :  { %v3282_v11 = vpop.f32.mrf.mxu1  ;;  %v3325_v12 = vpop.f32.mrf.mxu0 }
0x1822   :  { %v3326_v20 = vadd.f32 %v3325_v12, %v3116_v8  ;;  %v3283_v42 = vadd.f32 %v3282_v11, %v3108_v18 }
0x1823   :  { %v3284_v51 = vpop.f32.mrf.mxu1  ;;  %v6148_v58 = vpop.f32.mrf.mxu0 }
0x1824   :  { %v3285_v15 = vadd.f32 %v3284_v51, %v3112_v26  ;;  %v8419_v31 = vpack.c.bf16 %v3326_v20, %v3326_v20  ;;  %v3332_v35 = vpack.c.bf16 %v3283_v42, %v3283_v42 }
0x1825   :  { %v3286_v48 = vpop.f32.mrf.mxu1  ;;  %v3328_v16 = vpop.f32.mrf.mxu0 }
0x1826   :  { %v3333_v21 = vpack.c.bf16 %v3285_v15, %v3285_v15  ;;  %v3329_v22 = vadd.f32 %v3328_v16, %v3116_v8  ;;  %v3287_v27 = vadd.f32 %v3286_v48, %v3108_v18  ;;  %v3399_v38 = vand.u32 %v8419_v31, %v8053_v14 }
0x1827   :  { %v3288_v23 = vpop.f32.mrf.mxu1  ;;  %v6149_v25 = vpop.f32.mrf.mxu0 }
0x1828   :  { %v8415_v28 = vpack.c.bf16 %v3329_v22, %v3326_v20  ;;  %v3289_v29 = vadd.f32 %v3288_v23, %v3112_v26  ;;  %v3338_v30 = vsel %vm670_vm3, %v3333_v21, 0  ;;  %v3562_v32 = vpack.c.bf16 %v3287_v27, %v3283_v42 }
0x1829   :  { %6151 = vmatpush3.bf16.xpose.msra.mxu1 %v3338_v30 }
0x182a   :  { %v3563_v47 = vpack.c.bf16 %v3289_v29, %v3285_v15  ;;  %6156 = vmatprep.subr.bf16.mxu1 %v7631_v1  ;;  %v3565_v39 = vshrl.u32 %v3562_v32, 16  ;;  %v3568_v40 = vshll.u32 %v3562_v32, 16 }
0x182c   :  { %v3573_v33 = vshrl.u32 %v3563_v47, 16  ;;  %v3576_v34 = vshll.u32 %v3563_v47, 16  ;;  %v3567_v46 = vrot.slane %v3565_v39, 3  ;;  %v3570_v49 = vrot.slane %v3568_v40, 4 }
0x182e   :  { %v3575_v36 = vrot.slane %v3573_v33, 3  ;;  %v3578_v37 = vrot.slane %v3576_v34, 4  ;;  %v3571_v50 = vor.u32 %v3570_v49, %v3567_v46 }
0x1830   :  { %6153 = vmatmul.mubr.msk.bf16.vlgmr.msra.gmra.mxu1 %vm670_vm3, %v3332_v35  ;;  %v3579_v41 = vor.u32 %v3578_v37, %v3575_v36 }
0x1831   :  { %6157 = vmatpush3.bf16.msra.mxu1 %v3399_v38  ;;  %6158 = vmatprep.mubr.msk.bf16.mxu1 %vm7632_vm0, %v7631_v1 }
0x1832   :  { %v3584_v44 = vsel %vm670_vm3, %v3579_v41, 0  ;;  %6162 = vmatprep.subr.bf16.mxu1 %v7631_v1 }
0x1833   :  { %6175 = vmatpush3.bf16.xpose.msra.mxu0 %v3584_v44 }
0x1834   :  { %6186 = vmatprep.subr.bf16.mxu0 %v7631_v1 }
0x183a   :  { %6177 = vmatmul.mubr.msk.bf16.vlgmr.msra.gmra.mxu0 %vm670_vm3, %v3571_v50 }
0x183b   :  { %6188 = vmatprep.mubr.msk.bf16.mxu0 %vm7632_vm0, %v7631_v1 }
0x18f0   :  { %v3374_v52 = vpop.f32.mrf.mxu1 }
0x18f1   :  { %v3380_v53 = vmul.f32 0.125, %v3374_v52 }
0x18f2   :  { %v6154_v55 = vpop.f32.mrf.mxu1 }
0x18f3   :  { %v3381_v56 = vadd.f32 %v3380_v53, %v8090_v54 }
0x18f4   :  { %v3377_v57 = vpop.f32.mrf.mxu1 }
0x18f5   :  { %v3382_v59 = vsel %vm1150_vm2, %v3381_v56, -inf }
0x18f6   :  { %3383 = vmax.xlane.f32.xlu1 %v3382_v59  ;;  %v6155_v60 = vpop.f32.mrf.mxu1 }
0x18fa   :  { %v3620_v4 = vpop.f32.mrf.mxu0 }
0x18fb   :  { %v3626_v63 = vmul.f32 0.125, %v3620_v4 }
0x18fc   :  { %v6178_v61 = vpop.f32.mrf.mxu0 }
0x18fd   :  { %v3627_v2 = vadd.f32 %v3626_v63, %v8105_v19  ;;  %v3645_v63 = vshll.u32 %v8415_v28, 16 }
0x18fe   :  { %v3623_v62 = vpop.f32.mrf.mxu0 }
0x18ff   :  { %v3628_v3 = vsel %vm1150_vm2, %v3627_v2, -inf }
0x1900   :  { %v6179_v10 = vpop.f32.mrf.mxu0 }
0x1901   :  { %v3642_v10 = vshrl.u32 %v8415_v28, 16 }
0x1907   :  { %3446 = vrot.lane.b32.xlu1 %v3333_v21, %s7594_s18 }
0x190b   :  { %3698 = vrot.lane.b32.xlu1 %v3579_v41, %s7594_s18 }
0x190f   :  { %3696 = vrot.lane.b32.xlu1 %v3571_v50, %s7594_s18 }
0x1933   :  { %3629 = vmax.xlane.f32.xlu1 %v3628_v3  ;;  %v3647_v3 = vrot.slane %v3645_v63, 4 }
0x197f   :  { %v3384_v5 = vpop.xlane.xlu1 %3383 }
0x1980   :  { %v3385_v6 = vsub.f32 %v3381_v56, %v3384_v5 }
0x1982   :  { %v3386_v7 = vmul.f32 1.442695, %v3385_v6 }
0x1983   :  { %v3447_v13 = vpop.permute.xlu1 %3446 }
0x1984   :  { %6718 = vpow2.f32 %v3386_v7  ;;  %v3452_v25 = vsel %vm670_vm3, %v3447_v13, 0 }
0x1987   :  { %v3699_v26 = vpop.permute.xlu1 %3698 }
0x1988   :  { %v3704_v11 = vsel %vm670_vm3, %v3699_v26, 0 }
0x1989   :  { %6187 = vmatpush3.bf16.xpose.msra.mxu0 %v3704_v11 }
0x198a   :  { %6198 = vmatprep.subr.bf16.mxu0 %v7631_v1 }
0x198b   :  { %v3697_v12 = vpop.permute.xlu1 %3696 }
0x1990   :  { %6189 = vmatmul.mubr.msk.bf16.vlgmr.msra.gmra.mxu0 %vm670_vm3, %v3697_v12 }
0x1991   :  { %v6719_v8 = vpop.eup %6718  ;;  %6214 = vmatprep.mubr.msk.bf16.mxu0 %vm7632_vm0, %v7631_v1 }
0x1992   :  { %v3388_v51 = vsel %vm1150_vm2, %v6719_v8, 0.0 }
0x1993   :  { %3389 = vadd.xlane.f32.xlu0 %v3388_v51 }
0x19a9   :  { %3443 = vrot.lane.b32.xlu0 %v3332_v35, %s7594_s18 }
0x19bc   :  { %v3630_v58 = vpop.xlane.xlu1 %3629 }
0x19bd   :  { %v3631_v15 = vsub.f32 %v3627_v2, %v3630_v58  ;;  %v3644_v2 = vrot.slane %v3642_v10, 3  ;;  %v6586_v10 = vld [vmem:[%s8785_s16 + $0x54] ss:$8 sps:$4 sm:$0xff]  }
0x19bf   :  { %v3632_v48 = vmul.f32 1.442695, %v3631_v15  ;;  %v3648_v5 = vor.u32 %v3647_v3, %v3644_v2 }
0x19c1   :  { %6720 = vpow2.f32 %v3632_v48 }
0x19ce   :  { %v8446_v16 = vpop.eup %6720 }
0x19cf   :  { %v3634_v18 = vsel %vm1150_vm2, %v8446_v16, 0.0 }
0x19d0   :  { %3635 = vadd.xlane.f32.xlu1 %v3634_v18 }
0x19e1   :  { %3509 = vrot.lane.b32.xlu1 %v8419_v31, %s7594_s18 }
0x1a1c   :  { %v3390_v20 = vpop.xlane.xlu0 %3389 }
0x1a1d   :  { %6722 = vrcp.f32 %v3390_v20 }
0x1a20   :  { %v3444_v27 = vpop.permute.xlu0 %3443 }
0x1a2a   :  { %v6723_v21 = vpop.eup %6722 }
0x1a2b   :  { %v3392_v22 = vmul.f32 %v6723_v21, %v6719_v8  ;;  %v3653_v8 = vand.u32 %v3648_v5, %v8053_v14  ;;  %v6571_v21 = vld [vmem:[#allocation35 + $0x30] sm:$0xff]  }
0x1a2d   :  { %v3393_v23 = vpack.c.bf16 %v3392_v22, %v3392_v22  ;;  %v6573_v22 = vld [vmem:[#allocation35 + $0x20] sm:$0xff]  }
0x1a2f   :  { %6159 = vmatmul.mubr.msk.bf16.vlgmr.msra.gmra.mxu1 %vm1164_vm8, %v3393_v23  ;;  %v6574_v23 = vld [vmem:[#allocation35 + $0x18] sm:$0xff]  }
0x1a30   :  { %6163 = vmatpush3.bf16.xpose.msra.mxu1 %v3452_v25  ;;  %6164 = vmatprep.mubr.msk.bf16.mxu1 %vm7632_vm0, %v7631_v1  ;;  %v6575_v25 = vld [vmem:[#allocation35 + $0x10] sm:$0xff]  }
0x1a31   :  { %6168 = vmatprep.subr.bf16.mxu1 %v7631_v1 }
0x1a37   :  { %6165 = vmatmul.mubr.msk.bf16.vlgmr.msra.gmra.mxu1 %vm670_vm3, %v3444_v27 }
0x1a38   :  { %6170 = vmatprep.mubr.msk.bf16.mxu1 %vm7632_vm0, %v7631_v1 }
0x1a50   :  { %v3740_v29 = vpop.f32.mrf.mxu0 }
0x1a51   :  { %v3746_v39 = vmul.f32 0.125, %v3740_v29 }
0x1a52   :  { %v6190_v30 = vpop.f32.mrf.mxu0 }
0x1a53   :  { %v3747_v50 = vadd.f32 %v3746_v39, %v8105_v19 }
0x1a54   :  { %v3743_v42 = vpop.f32.mrf.mxu0 }
0x1a55   :  { %v3748_v53 = vsel %vm1150_vm2, %v3747_v50, -inf  ;;  %v6576_v42 = vld [vmem:[#allocation35 + $0x8] sm:$0xff]  }
0x1a56   :  { %v6191_v47 = vpop.f32.mrf.mxu0 }
0x1a59   :  { %v3636_v31 = vpop.xlane.xlu1 %3635 }
0x1a5d   :  { %v3510_v32 = vpop.permute.xlu1 %3509 }
0x1a5e   :  { %v3515_v33 = vand.u32 %v3510_v32, %v8053_v14 }
0x1a60   :  { %6169 = vmatpush3.bf16.msra.mxu1 %v3515_v33 }
0x1a61   :  { %6180 = vmatprep.subr.bf16.mxu1 %v7631_v1 }
0x1aef   :  { %v3435_v34 = vpop.f32.mrf.mxu1 }
0x1af0   :  { %3441 = vst.msk [vmem:[#allocation2] sm:$0x7f] %vm1215_vm9, %v3435_v34 }
0x1af1   :  { %v6160_v35 = vpop.f32.mrf.mxu1 }
0x1af3   :  { %v3438_v36 = vpop.f32.mrf.mxu1 }
0x1af5   :  { %v6161_v37 = vpop.f32.mrf.mxu1 }
0x1af7   :  { %v3488_v38 = vpop.f32.mrf.mxu1 }
0x1af8   :  { %v3494_v40 = vmul.f32 0.125, %v3488_v38 }
0x1af9   :  { %v6166_v41 = vpop.f32.mrf.mxu1 }
0x1afa   :  { %v3495_v44 = vadd.f32 %v3494_v40, %v8090_v54 }
0x1afb   :  { %v3491_v46 = vpop.f32.mrf.mxu1 }
0x1afc   :  { %v3496_v49 = vsel %vm1150_vm2, %v3495_v44, -inf }
0x1afd   :  { %3497 = vmax.xlane.f32.xlu0 %v3496_v49  ;;  %v6167_v52 = vpop.f32.mrf.mxu1 }
0x1afe   :  { %v5668_v52 = vld [vmem:[#allocation36] ss:$0 sm:$0xff] }
0x1b01   :  { %3749 = vmax.xlane.f32.xlu0 %v3748_v53 }
0x1b86   :  { %v3498_v55 = vpop.xlane.xlu0 %3497 }
0x1b87   :  { %v3499_v56 = vsub.f32 %v3495_v44, %v3498_v55 }
0x1b89   :  { %v3500_v57 = vmul.f32 1.442695, %v3499_v56 }
0x1b8a   :  { %v3750_v59 = vpop.xlane.xlu0 %3749 }
0x1b8b   :  { %6724 = vpow2.f32 %v3500_v57  ;;  %v3751_v60 = vsub.f32 %v3747_v50, %v3750_v59 }
0x1b8d   :  { %v3752_v4 = vmul.f32 1.442695, %v3751_v60 }
0x1b8f   :  { %6726 = vpow2.f32 %v3752_v4 }
0x1b98   :  { %v6725_v61 = vpop.eup %6724 }
0x1b99   :  { %v3502_v54 = vsel %vm1150_vm2, %v6725_v61, 0.0 }
0x1b9a   :  { %3503 = vadd.xlane.f32.xlu0 %v3502_v54  ;;  %v6578_v54 = vld [vmem:[%s8785_s16 + $0x70] ss:$8 sps:$4 sm:$0xff]  }
0x1b9c   :  { %v6727_v62 = vpop.eup %6726 }
0x1b9d   :  { %v3754_v19 = vsel %vm1150_vm2, %v6727_v62, 0.0 }
0x1b9e   :  { %3755 = vadd.xlane.f32.xlu0 %v3754_v19  ;;  %v6581_v19 = vld [vmem:[%s8785_s16 + $0x60] ss:$8 sps:$4 sm:$0xff]  }
0x1bb4   :  { %3760 = vrot.lane.b32.xlu0 %v3648_v5, %s7594_s18 }
0x1c23   :  { %v3504_v6 = vpop.xlane.xlu0 %3503 }
0x1c24   :  { %6728 = vrcp.f32 %v3504_v6 }
0x1c25   :  { %6730 = vrcp.f32 %v3636_v31  ;;  %v6577_v31 = vld [vmem:[#allocation35] sm:$0xff]  }
0x1c27   :  { %v3756_v7 = vpop.xlane.xlu0 %3755 }
0x1c28   :  { %6732 = vrcp.f32 %v3756_v7 }
0x1c2b   :  { %v3761_v51 = vpop.permute.xlu0 %3760 }
0x1c2c   :  { %v3766_v48 = vand.u32 %v3761_v51, %v8053_v14  ;;  %v6572_v14 = vld [vmem:[#allocation35 + $0x28] sm:$0xff]   ;;  %v6594_v51 = vld [vmem:[%s8785_s16 + $0x34] ss:$8 sps:$4 sm:$0xff]  }
0x1c31   :  { %v6729_v13 = vpop.eup %6728 }
0x1c32   :  { %v3506_v26 = vmul.f32 %v6729_v13, %v6725_v61  ;;  %v6731_v12 = vpop.eup %6730 }
0x1c33   :  { %v3638_v28 = vmul.f32 %v6731_v12, %v8446_v16  ;;  %v6570_v16 = vld [vmem:[#allocation35 + $0x38] sm:$0xff]   ;;  %v6590_v12 = vld [vmem:[%s8785_s16 + $0x44] ss:$8 sps:$4 sm:$0xff]  }
0x1c34   :  { %v3507_v11 = vpack.c.bf16 %v3506_v26, %v3506_v26  ;;  %6199 = vmatpush3.bf16.msra.mxu0 %v6570_v16  ;;  %v6602_v16 = vld [vmem:[%s8785_s16 + $0x14] ss:$8 sps:$4 sm:$0xff]  }
0x1c35   :  { %v3639_v58 = vpack.c.bf16 %v3638_v28, %v3638_v28  ;;  %v6733_v15 = vpop.eup %6732  ;;  %6200 = vmatprep.subr.bf16.mxu0 %v7631_v1  ;;  %v6587_v28 = vld [vmem:[#allocation41 + $0x38] sm:$0xff]  }
0x1c36   :  { %6171 = vmatmul.mubr.msk.bf16.vlgmr.msra.gmra.mxu1 %vm1164_vm8, %v3507_v11  ;;  %v3758_v18 = vmul.f32 %v6733_v15, %v6727_v62  ;;  %v6580_v62 = vld [vmem:[%s8785_s16 + $0x74] ss:$8 sps:$4 sm:$0xff]  }
0x1c37   :  { %6181 = vmatpush3.bf16.msra.mxu1 %v3653_v8  ;;  %6182 = vmatprep.mubr.msk.bf16.mxu1 %vm7632_vm0, %v7631_v1  ;;  %v6588_v8 = vld [vmem:[%s8785_s16 + $0x40] ss:$8 sps:$4 sm:$0xff]   ;;  %v6591_v15 = vld [vmem:[#allocation41 + $0x30] sm:$0xff]  }
0x1c38   :  { %6192 = vmatprep.subr.bf16.mxu1 %v7631_v1  ;;  %v3759_v20 = vpack.c.bf16 %v3758_v18, %v3758_v18  ;;  %6201 = vmatpush3.bf16.msra.mxu0 %v6571_v21  ;;  %v6596_v18 = vld [vmem:[%s8785_s16 + $0x20] ss:$8 sps:$4 sm:$0xff]  }
0x1c39   :  { %6202 = vmatprep.subr.bf16.mxu0 %v7631_v1  ;;  %v6599_v21 = vld [vmem:[#allocation41 + $0x20] sm:$0xff]  }
0x1c3c   :  { %6203 = vmatpush3.bf16.msra.mxu0 %v6572_v14  ;;  %v6600_v14 = vld [vmem:[%s8785_s16 + $0x10] ss:$8 sps:$4 sm:$0xff]  }
0x1c3d   :  { %6204 = vmatprep.subr.bf16.mxu0 %v7631_v1 }
0x1c3e   :  { %6183 = vmatmul.mubr.msk.bf16.vlgmr.msra.gmra.mxu1 %vm1164_vm8, %v3639_v58  ;;  %v6592_v58 = vld [vmem:[%s8785_s16 + $0x30] ss:$8 sps:$4 sm:$0xff]  }
0x1c3f   :  { %6193 = vmatpush3.bf16.msra.mxu1 %v3766_v48  ;;  %6194 = vmatprep.mubr.msk.bf16.mxu1 %vm7632_vm0, %v7631_v1  ;;  %v6598_v48 = vld [vmem:[%s8785_s16 + $0x24] ss:$8 sps:$4 sm:$0xff]  }
0x1c40   :  { %6218 = vmatprep.subr.bf16.mxu1 %v7631_v1  ;;  %6205 = vmatpush3.bf16.msra.mxu0 %v6573_v22  ;;  %v6606_v22 = vld [vmem:[%s8785_s16 + $0x4] ss:$8 sps:$4 sm:$0xff]  }
0x1c41   :  { %6206 = vmatprep.subr.bf16.mxu0 %v7631_v1 }
0x1c44   :  { %6207 = vmatpush3.bf16.msra.mxu0 %v6574_v23  ;;  %v6604_v23 = vld [vmem:[%s8785_s16] ss:$8 sps:$4 sm:$0xff]  }
0x1c45   :  { %6208 = vmatprep.subr.bf16.mxu0 %v7631_v1 }
0x1c46   :  { %6195 = vmatmul.mubr.msk.bf16.vlgmr.msra.gmra.mxu1 %vm1164_vm8, %v3759_v20  ;;  %v6595_v20 = vld [vmem:[#allocation41 + $0x28] sm:$0xff]  }
0x1c47   :  { %6234 = vmatprep.mubr.msk.bf16.mxu1 %vm7632_vm0, %v7631_v1  ;;  %6219 = vmatpush3.bf16.msra.mxu1 %v6587_v28 }
0x1c48   :  { %6209 = vmatpush3.bf16.msra.mxu0 %v6575_v25  ;;  %6220 = vmatprep.subr.bf16.mxu1 %v7631_v1  ;;  %v6603_v25 = vld [vmem:[#allocation41 + $0x18] sm:$0xff]  }
0x1c49   :  { %6210 = vmatprep.subr.bf16.mxu0 %v7631_v1 }
0x1c4b   :  { %6221 = vmatpush3.bf16.msra.mxu1 %v6591_v15 }
0x1c4c   :  { %6211 = vmatpush3.bf16.msra.mxu0 %v6576_v42  ;;  %6222 = vmatprep.subr.bf16.mxu1 %v7631_v1  ;;  %v6609_v42 = vld [vmem:[#allocation41] sm:$0xff]  }
0x1c4d   :  { %6212 = vmatprep.subr.bf16.mxu0 %v7631_v1 }
0x1c4f   :  { %6223 = vmatpush3.bf16.msra.mxu1 %v6595_v20 }
0x1c50   :  { %6213 = vmatpush3.bf16.msra.mxu0 %v6577_v31  ;;  %6224 = vmatprep.subr.bf16.mxu1 %v7631_v1 }
0x1c51   :  { %4195 = vmatprep.subr.bf16.mxu0 %v6580_v62 }
0x1c53   :  { %6225 = vmatpush3.bf16.msra.mxu1 %v6599_v21 }
0x1c54   :  { %6226 = vmatprep.subr.bf16.mxu1 %v7631_v1 }
0x1c57   :  { %6227 = vmatpush3.bf16.msra.mxu1 %v6603_v25 }
0x1c58   :  { %6228 = vmatprep.subr.bf16.mxu1 %v7631_v1 }
0x1cf6   :  { %v3551_v27 = vpop.f32.mrf.mxu1 }
0x1cf7   :  { %3558 = vrot.lane.b32.xlu1 %v3551_v27, %s7594_s18  ;;  %v6607_v27 = vld [vmem:[#allocation41 + $0x10] sm:$0xff]  }
0x1cf8   :  { %v6172_v29 = vpop.f32.mrf.mxu1  ;;  %6229 = vmatpush3.bf16.msra.mxu1 %v6607_v27 }
0x1cf9   :  { %v6780_v29 = vld [vmem:[%s8781_s25] sm:$0x3f]   ;;  %6230 = vmatprep.subr.bf16.mxu1 %v7631_v1 }
0x1cfa   :  { %v3554_v30 = vpop.f32.mrf.mxu1 }
0x1cfb   :  { %v6608_v30 = vld [vmem:[#allocation41 + $0x8] sm:$0xff]  }
0x1cfc   :  { %v6173_v47 = vpop.f32.mrf.mxu1  ;;  %6231 = vmatpush3.bf16.msra.mxu1 %v6608_v30 }
0x1cfd   :  { %6232 = vmatprep.subr.bf16.mxu1 %v7631_v1 }
0x1cfe   :  { %v3689_v32 = vpop.f32.mrf.mxu1 }
0x1cff   :  { %3695 = vst.msk [vmem:[#allocation2 + $0x7] sm:$0x7f] %vm1215_vm9, %v3689_v32 }
0x1d00   :  { %v6184_v33 = vpop.f32.mrf.mxu1  ;;  %6233 = vmatpush3.bf16.msra.mxu1 %v6609_v42 }
0x1d01   :  { %6238 = vmatprep.subr.bf16.mxu1 %v7631_v1 }
0x1d02   :  { %v3692_v34 = vpop.f32.mrf.mxu1 }
0x1d04   :  { %v6185_v35 = vpop.f32.mrf.mxu1 }
0x1d06   :  { %v3802_v36 = vpop.f32.mrf.mxu1 }
0x1d07   :  { %3809 = vrot.lane.b32.xlu1 %v3802_v36, %s7594_s18 }
0x1d08   :  { %v6196_v37 = vpop.f32.mrf.mxu1 }
0x1d0a   :  { %v3805_v38 = vpop.f32.mrf.mxu1 }
0x1d0b   :  { %v5669_v38 = vld [vmem:[#allocation38] ss:$0 sm:$0xff] }
0x1d0c   :  { %v6197_v39 = vpop.f32.mrf.mxu1 }
0x1d69   :  { %v3559_v40 = vpop.permute.xlu1 %3558 }
0x1d6a   :  { %3561 = vst.msk [vmem:[#allocation2] sm:$0x7f] %vm1336_vm10, %v3559_v40 }
0x1d79   :  { %v3810_v41 = vpop.permute.xlu1 %3809 }
0x1d7a   :  { %3812 = vst.msk [vmem:[#allocation2 + $0x7] sm:$0x7f] %vm1336_vm10, %v3810_v41 }
0x1d81   :  { %v3813_v44 = vld [vmem:[#allocation2] sm:$0xff]  ;;  %v3814_v46 = vld [vmem:[#allocation2 + $0x8] sm:$0x3f] }
0x1d82   :  { %v3831_v49 = vpack.c.bf16 %v3814_v46, %v3813_v44  ;;  %v5670_v44 = vld [vmem:[#allocation39] ss:$0 sm:$0xff] }
0x1d84   :  { %6215 = vmatmul.mubr.bf16.vlgmr.msra.gmra.mxu0 %v3831_v49 }
0x1d85   :  { %4227 = vmatprep.mubr.bf16.mxu0 %v7630_v0  ;;  %4196 = vmatpush1.bf16.msra.mxu0 %v6578_v54 }
0x1e44   :  { %v3914_v50 = vpop.f32.mrf.mxu0 }
0x1e45   :  { %v3921_v53 = vadd.f32 %v3914_v50, %v8353_v17  ;;  %v6583_v17 = vld [vmem:[%s8785_s16 + $0x64] ss:$8 sps:$4 sm:$0xff]  }
0x1e46   :  { %v6216_v55 = vpop.f32.mrf.mxu0  ;;  %4197 = vmatprep.subr.bf16.mxu0 %v6583_v17 }
0x1e47   :  { %v8500_v56 = vadd.f32 %v5668_v52, %v3921_v53  ;;  %4198 = vmatpush1.bf16.msra.mxu0 %v6581_v19  ;;  %v4103_v53 = vld [vmem:[#allocation44] sm:$0x3] }
0x1e48   :  { %v3917_v57 = vpop.f32.mrf.mxu0  ;;  %4199 = vmatprep.subr.bf16.mxu0 %v6586_v10  ;;  %v4108_v55 = vrot.slane %v4103_v53, %v8034_v43 }
0x1e49   :  { %v3922_v59 = vadd.f32 %v3917_v57, %v8357_v24  ;;  %3934 = vadd.xlane.f32.xlu1 %v8500_v56  ;;  %v6584_v24 = vld [vmem:[%s8785_s16 + $0x50] ss:$8 sps:$4 sm:$0xff]   ;;  %v4112_v57 = vrot.slane %v4103_v53, %v8037_v45 }
0x1e4a   :  { %v6217_v60 = vpop.f32.mrf.mxu0 }
0x1e4b   :  { %v8504_v4 = vadd.f32 %v5668_v52, %v3922_v59  ;;  %4200 = vmatpush1.bf16.msra.mxu0 %v6584_v24 }
0x1e4c   :  { %4201 = vmatprep.subr.bf16.mxu0 %v6590_v12 }
0x1e4d   :  { %v3936_v61 = vsel %vm725_vm4, %v8504_v4, 0.0 }
0x1e4e   :  { %3937 = vadd.xlane.f32.xlu0 %v3936_v61 }
0x1e4f   :  { %4202 = vmatpush1.bf16.msra.mxu0 %v6588_v8 }
0x1e50   :  { %4203 = vmatprep.subr.bf16.mxu0 %v6594_v51 }
0x1e53   :  { %4204 = vmatpush1.bf16.msra.mxu0 %v6592_v58 }
0x1e54   :  { %4205 = vmatprep.subr.bf16.mxu0 %v6598_v48 }
0x1e57   :  { %4206 = vmatpush1.bf16.msra.mxu0 %v6596_v18 }
0x1e58   :  { %4207 = vmatprep.subr.bf16.mxu0 %v6602_v16 }
0x1e5b   :  { %4208 = vmatpush1.bf16.msra.mxu0 %v6600_v14 }
0x1e5c   :  { %4209 = vmatprep.subr.bf16.mxu0 %v6606_v22 }
0x1e5f   :  { %4210 = vmatpush1.bf16.msra.mxu0 %v6604_v23 }
0x1e60   :  { %6262 = vmatprep.subr.bf16.mxu0 %v7631_v1 }
0x1e62   :  { %4228 = vmatmul.mubr.bf16.vlgmr.msra.gmra.mxu0 %v6780_v29 }
0x1e63   :  { %6264 = vmatprep.mubr.msk.bf16.mxu0 %vm7632_vm0, %v7631_v1 }
0x1ed2   :  { %v3935_v63 = vpop.xlane.xlu1 %3934 }
0x1ed3   :  { %v3939_v2 = vmul.f32 0.0078125, %v3935_v63 }
0x1ed5   :  { %v8515_v3 = vsub.f32 %v8500_v56, %v3939_v2 }
0x1ed7   :  { %v3938_v5 = vpop.xlane.xlu0 %3937  ;;  %v3943_v6 = vmul.f32 %v8515_v3, %v8515_v3 }
0x1ed8   :  { %v3940_v7 = vmul.f32 0.0078125, %v3938_v5 }
0x1ed9   :  { %3945 = vadd.xlane.f32.xlu0 %v3943_v6 }
0x1eda   :  { %v8520_v13 = vsub.f32 %v8504_v4, %v3940_v7  ;;  %v5671_v7 = vld [vmem:[#allocation42] ss:$0 sm:$0xff] }
0x1edc   :  { %v3944_v26 = vmul.f32 %v8520_v13, %v8520_v13 }
0x1ede   :  { %v3947_v11 = vsel %vm725_vm4, %v3944_v26, 0.0 }
0x1edf   :  { %3948 = vadd.xlane.f32.xlu0 %v3947_v11 }
0x1f22   :  { %v4229_v59 = vpop.f32.mrf.mxu0 }
0x1f23   :  { %v4230_v60 = vadd.f32 %v4229_v59, %v4108_v55 }
0x1f24   :  { %v4231_v61 = vpop.f32.mrf.mxu0 }
0x1f25   :  { %v4239_v54 = vpack.c.bf16 %v4230_v60, %v4230_v60  ;;  %v8553_v62 = vadd.f32 %v4231_v61, %v4112_v57 }
0x1f26   :  { %v4233_v17 = vpop.f32.mrf.mxu0 }
0x1f27   :  { %v4234_v19 = vadd.f32 %v4233_v17, %v4108_v55  ;;  %v4244_v10 = vsel %vm670_vm3, %v4239_v54, 0  ;;  %v4299_v26 = vpack.c.bf16 %v8553_v62, %v8553_v62 }
0x1f28   :  { %v4235_v24 = vpop.f32.mrf.mxu0 }
0x1f29   :  { %v4467_v63 = vpack.c.bf16 %v4234_v19, %v4230_v60  ;;  %v8556_v2 = vadd.f32 %v4235_v24, %v4112_v57  ;;  %v4304_v58 = vsel %vm1168_vm5, %v4299_v26, 0 }
0x1f2b   :  { %v4537_v5 = vpack.c.bf16 %v8556_v2, %v8553_v62 }
0x1f62   :  { %v3946_v47 = vpop.xlane.xlu0 %3945 }
0x1f63   :  { %v3950_v31 = vmul.f32 0.0078125, %v3946_v47 }
0x1f65   :  { %v3952_v32 = vadd.f32 1e-05, %v3950_v31 }
0x1f67   :  { %6734 = vrsqrt.f32 %v3952_v32 }
0x1f68   :  { %v3949_v33 = vpop.xlane.xlu0 %3948 }
0x1f69   :  { %v3951_v34 = vmul.f32 0.0078125, %v3949_v33 }
0x1f6b   :  { %v3953_v35 = vadd.f32 1e-05, %v3951_v34 }
0x1f6d   :  { %6736 = vrsqrt.f32 %v3953_v35 }
0x1f74   :  { %v6735_v36 = vpop.eup %6734 }
0x1f75   :  { %v3956_v37 = vmul.f32 %v6735_v36, %v8515_v3  ;;  %v4477_v3 = vrot.slane %v4467_v63, 3 }
0x1f77   :  { %v3964_v41 = vmul.f32 %v5669_v38, %v3956_v37  ;;  %v4482_v6 = vsel %vm670_vm3, %v4477_v3, 0 }
0x1f78   :  { %6263 = vmatpush3.bf16.xpose.msra.mxu0 %v4482_v6 }
0x1f79   :  { %v3972_v49 = vadd.f32 %v5670_v44, %v3964_v41  ;;  %6274 = vmatprep.subr.bf16.mxu0 %v7631_v1 }
0x1f7a   :  { %v6737_v39 = vpop.eup %6736 }
0x1f7b   :  { %v3957_v40 = vmul.f32 %v6737_v39, %v8520_v13 }
0x1f7d   :  { %v3965_v46 = vmul.f32 %v5669_v38, %v3957_v40 }
0x1f7f   :  { %v3973_v50 = vadd.f32 %v5670_v44, %v3965_v46 }
0x1f81   :  { %v3990_v52 = vpack.c.bf16 %v3973_v50, %v3972_v49 }
0x1f83   :  { %6235 = vmatmul.mubr.bf16.vlgmr.msra.gmra.mxu1 %v3990_v52 }
0x1f84   :  { %6240 = vmatprep.mubr.msk.bf16.mxu1 %vm7632_vm0, %v7631_v1  ;;  %6239 = vmatpush3.bf16.xpose.msra.mxu1 %v4244_v10 }
0x1f85   :  { %6244 = vmatprep.subr.bf16.mxu1 %v7631_v1 }
0x2043   :  { %v4080_v13 = vpop.f32.mrf.mxu1 }
0x2044   :  { %v4081_v11 = vadd.f32 %v5671_v7, %v4080_v13 }
0x2045   :  { %v6236_v12 = vpop.f32.mrf.mxu1 }
0x2046   :  { %v4238_v8 = vpack.c.bf16 %v4081_v11, %v4081_v11 }
0x2047   :  { %v4083_v28 = vpop.f32.mrf.mxu1 }
0x2048   :  { %v4084_v51 = vadd.f32 %v5671_v7, %v4083_v28  ;;  %6241 = vmatmul.mubr.msk.bf16.vlgmr.msra.gmra.mxu1 %vm670_vm3, %v4238_v8 }
0x2049   :  { %6245 = vmatpush3.bf16.msra.mxu1 %v4304_v58  ;;  %v6237_v15 = vpop.f32.mrf.mxu1  ;;  %6246 = vmatprep.mubr.msk.bf16.mxu1 %vm7632_vm0, %v7631_v1 }
0x204a   :  { %v4466_v48 = vpack.c.bf16 %v4084_v51, %v4081_v11  ;;  %6250 = vmatprep.subr.bf16.mxu1 %v7631_v1 }
0x204c   :  { %v4469_v18 = vshrl.u32 %v4466_v48, 16  ;;  %v4472_v20 = vshll.u32 %v4466_v48, 16 }
0x204e   :  { %v4471_v16 = vrot.slane %v4469_v18, 3  ;;  %v4474_v21 = vrot.slane %v4472_v20, 4 }
0x2050   :  { %v4475_v14 = vor.u32 %v4474_v21, %v4471_v16 }
0x2052   :  { %6265 = vmatmul.mubr.msk.bf16.vlgmr.msra.gmra.mxu0 %vm670_vm3, %v4475_v14 }
0x2053   :  { %6276 = vmatprep.mubr.msk.bf16.mxu0 %vm7632_vm0, %v7631_v1 }
0x2108   :  { %v4280_v22 = vpop.f32.mrf.mxu1 }
0x2109   :  { %v4286_v23 = vmul.f32 0.125, %v4280_v22 }
0x210a   :  { %v6242_v25 = vpop.f32.mrf.mxu1 }
0x210b   :  { %v4287_v27 = vsel %vm2079_vm11, %v4286_v23, -inf }
0x210c   :  { %4288 = vmax.xlane.f32.xlu1 %v4287_v27  ;;  %v4283_v29 = vpop.f32.mrf.mxu1 }
0x210e   :  { %v6243_v30 = vpop.f32.mrf.mxu1 }
0x2112   :  { %v4518_v42 = vpop.f32.mrf.mxu0 }
0x2113   :  { %v4524_v33 = vmul.f32 0.125, %v4518_v42 }
0x2114   :  { %v6266_v47 = vpop.f32.mrf.mxu0 }
0x2115   :  { %v4525_v34 = vsel %vm2079_vm11, %v4524_v33, -inf  ;;  %v4539_v47 = vrot.slane %v4537_v5, 3 }
0x2116   :  { %v4521_v31 = vpop.f32.mrf.mxu0 }
0x2118   :  { %v6267_v32 = vpop.f32.mrf.mxu0 }
0x211d   :  { %4351 = vrot.lane.b32.xlu1 %v4239_v54, %s7594_s18 }
0x2121   :  { %4589 = vrot.lane.b32.xlu1 %v4477_v3, %s7594_s18 }
0x2125   :  { %4587 = vrot.lane.b32.xlu1 %v4475_v14, %s7594_s18 }
0x2149   :  { %4526 = vmax.xlane.f32.xlu1 %v4525_v34 }
0x2195   :  { %v4289_v35 = vpop.xlane.xlu1 %4288 }
0x2196   :  { %v4290_v36 = vsub.f32 %v4286_v23, %v4289_v35 }
0x2198   :  { %v4291_v37 = vmul.f32 1.442695, %v4290_v36 }
0x2199   :  { %v4352_v38 = vpop.permute.xlu1 %4351 }
0x219a   :  { %6738 = vpow2.f32 %v4291_v37  ;;  %v4357_v54 = vsel %vm670_vm3, %v4352_v38, 0  ;;  %v4544_v37 = vsel %vm1168_vm5, %v4539_v47, 0 }
0x219d   :  { %v4590_v39 = vpop.permute.xlu1 %4589 }
0x219e   :  { %v4595_v40 = vsel %vm670_vm3, %v4590_v39, 0 }
0x219f   :  { %6275 = vmatpush3.bf16.xpose.msra.mxu0 %v4595_v40 }
0x21a0   :  { %6286 = vmatprep.subr.bf16.mxu0 %v7631_v1 }
0x21a1   :  { %v4588_v41 = vpop.permute.xlu1 %4587 }
0x21a6   :  { %6277 = vmatmul.mubr.msk.bf16.vlgmr.msra.gmra.mxu0 %vm670_vm3, %v4588_v41 }
0x21a7   :  { %v6739_v44 = vpop.eup %6738  ;;  %6302 = vmatprep.mubr.msk.bf16.mxu0 %vm7632_vm0, %v7631_v1 }
0x21a8   :  { %v4293_v46 = vsel %vm2079_vm11, %v6739_v44, 0.0 }
0x21a9   :  { %4294 = vadd.xlane.f32.xlu0 %v4293_v46  ;;  %v6611_v46 = vld [vmem:[#allocation45 + $0x30] sm:$0xff]  }
0x21bf   :  { %4348 = vrot.lane.b32.xlu0 %v4238_v8, %s7594_s18 }
0x21d2   :  { %v4527_v49 = vpop.xlane.xlu1 %4526 }
0x21d3   :  { %v4528_v50 = vsub.f32 %v4524_v33, %v4527_v49  ;;  %v6612_v49 = vld [vmem:[#allocation45 + $0x28] sm:$0xff]  }
0x21d5   :  { %v4529_v52 = vmul.f32 1.442695, %v4528_v50  ;;  %v6613_v50 = vld [vmem:[#allocation45 + $0x20] sm:$0xff]  }
0x21d7   :  { %6740 = vpow2.f32 %v4529_v52  ;;  %v6614_v52 = vld [vmem:[#allocation45 + $0x18] sm:$0xff]  }
0x21e4   :  { %v8585_v53 = vpop.eup %6740 }
0x21e5   :  { %v4531_v55 = vsel %vm2079_vm11, %v8585_v53, 0.0 }
0x21e6   :  { %4532 = vadd.xlane.f32.xlu1 %v4531_v55 }
0x21f7   :  { %4413 = vrot.lane.b32.xlu1 %v4299_v26, %s7594_s18 }
0x2232   :  { %v4295_v57 = vpop.xlane.xlu0 %4294 }
0x2233   :  { %6742 = vrcp.f32 %v4295_v57 }
0x2236   :  { %v4349_v17 = vpop.permute.xlu0 %4348 }
0x2240   :  { %v6743_v59 = vpop.eup %6742 }
0x2241   :  { %v4297_v60 = vmul.f32 %v6743_v59, %v6739_v44  ;;  %v6610_v44 = vld [vmem:[#allocation45 + $0x38] sm:$0xff]   ;;  %v6616_v59 = vld [vmem:[#allocation45 + $0x8] sm:$0xff]  }
0x2242   :  { %6287 = vmatpush3.bf16.msra.mxu0 %v6610_v44 }
0x2243   :  { %v4298_v61 = vpack.c.bf16 %v4297_v60, %v4297_v60  ;;  %6288 = vmatprep.subr.bf16.mxu0 %v7631_v1 }
0x2245   :  { %6247 = vmatmul.mubr.msk.bf16.vlgmr.msra.gmra.mxu1 %vm2093_vm12, %v4298_v61  ;;  %v6617_v61 = vld [vmem:[#allocation45] sm:$0xff]  }
0x2246   :  { %6251 = vmatpush3.bf16.xpose.msra.mxu1 %v4357_v54  ;;  %6252 = vmatprep.mubr.msk.bf16.mxu1 %vm7632_vm0, %v7631_v1 }
0x2247   :  { %6256 = vmatprep.subr.bf16.mxu1 %v7631_v1  ;;  %6289 = vmatpush3.bf16.msra.mxu0 %v6611_v46 }
0x2248   :  { %6290 = vmatprep.subr.bf16.mxu0 %v7631_v1 }
0x224b   :  { %6291 = vmatpush3.bf16.msra.mxu0 %v6612_v49 }
0x224c   :  { %6292 = vmatprep.subr.bf16.mxu0 %v7631_v1 }
0x224d   :  { %6253 = vmatmul.mubr.msk.bf16.vlgmr.msra.gmra.mxu1 %vm670_vm3, %v4349_v17 }
0x224e   :  { %6258 = vmatprep.mubr.msk.bf16.mxu1 %vm7632_vm0, %v7631_v1 }
0x224f   :  { %6293 = vmatpush3.bf16.msra.mxu0 %v6613_v50 }
0x2250   :  { %6294 = vmatprep.subr.bf16.mxu0 %v7631_v1 }
0x2253   :  { %6295 = vmatpush3.bf16.msra.mxu0 %v6614_v52 }
0x2254   :  { %6296 = vmatprep.subr.bf16.mxu0 %v7631_v1 }
0x2266   :  { %v4631_v19 = vpop.f32.mrf.mxu0 }
0x2267   :  { %v4637_v58 = vmul.f32 0.125, %v4631_v19 }
0x2268   :  { %v6278_v10 = vpop.f32.mrf.mxu0 }
0x2269   :  { %v4638_v20 = vsel %vm2079_vm11, %v4637_v58, -inf }
0x226a   :  { %v4634_v24 = vpop.f32.mrf.mxu0 }
0x226c   :  { %v6279_v63 = vpop.f32.mrf.mxu0 }
0x226f   :  { %v4533_v3 = vpop.xlane.xlu1 %4532 }
0x2273   :  { %v4414_v6 = vpop.permute.xlu1 %4413 }
0x2274   :  { %v4419_v7 = vsel %vm1168_vm5, %v4414_v6, 0 }
0x2275   :  { %6257 = vmatpush3.bf16.msra.mxu1 %v4419_v7 }
0x2276   :  { %6268 = vmatprep.subr.bf16.mxu1 %v7631_v1 }
0x2305   :  { %v4340_v13 = vpop.f32.mrf.mxu1 }
0x2306   :  { %4346 = vst.msk [vmem:[#allocation2] sm:$0x7f] %vm1215_vm9, %v4340_v13 }
0x2307   :  { %v6248_v26 = vpop.f32.mrf.mxu1 }
0x2309   :  { %v4343_v11 = vpop.f32.mrf.mxu1 }
0x230b   :  { %v6249_v12 = vpop.f32.mrf.mxu1 }
0x230d   :  { %v4393_v8 = vpop.f32.mrf.mxu1 }
0x230e   :  { %v4399_v28 = vmul.f32 0.125, %v4393_v8 }
0x230f   :  { %v6254_v51 = vpop.f32.mrf.mxu1 }
0x2310   :  { %v4400_v15 = vsel %vm2079_vm11, %v4399_v28, -inf }
0x2311   :  { %4401 = vmax.xlane.f32.xlu0 %v4400_v15  ;;  %v4396_v48 = vpop.f32.mrf.mxu1 }
0x2313   :  { %v6255_v18 = vpop.f32.mrf.mxu1 }
0x2315   :  { %4639 = vmax.xlane.f32.xlu0 %v4638_v20 }
0x239a   :  { %v4402_v16 = vpop.xlane.xlu0 %4401 }
0x239b   :  { %v4403_v21 = vsub.f32 %v4399_v28, %v4402_v16  ;;  %v5712_v28 = vld [vmem:[#allocation47] ss:$0 sm:$0xff] }
0x239d   :  { %v4404_v14 = vmul.f32 1.442695, %v4403_v21 }
0x239e   :  { %v4640_v22 = vpop.xlane.xlu0 %4639 }
0x239f   :  { %6744 = vpow2.f32 %v4404_v14  ;;  %v4641_v23 = vsub.f32 %v4637_v58, %v4640_v22 }
0x23a1   :  { %v4642_v25 = vmul.f32 1.442695, %v4641_v23 }
0x23a3   :  { %6746 = vpow2.f32 %v4642_v25 }
0x23ac   :  { %v6745_v27 = vpop.eup %6744 }
0x23ad   :  { %v4406_v29 = vsel %vm2079_vm11, %v6745_v27, 0.0 }
0x23ae   :  { %4407 = vadd.xlane.f32.xlu0 %v4406_v29 }
0x23b0   :  { %v6747_v30 = vpop.eup %6746 }
0x23b1   :  { %v4644_v42 = vsel %vm2079_vm11, %v6747_v30, 0.0 }
0x23b2   :  { %4645 = vadd.xlane.f32.xlu0 %v4644_v42 }
0x23c8   :  { %4650 = vrot.lane.b32.xlu0 %v4539_v47, %s7594_s18 }
0x2437   :  { %v4408_v31 = vpop.xlane.xlu0 %4407 }
0x2438   :  { %6748 = vrcp.f32 %v4408_v31 }
0x2439   :  { %6750 = vrcp.f32 %v4533_v3 }
0x243b   :  { %v4646_v32 = vpop.xlane.xlu0 %4645 }
0x243c   :  { %6752 = vrcp.f32 %v4646_v32 }
0x243f   :  { %v4651_v2 = vpop.permute.xlu0 %4650 }
0x2440   :  { %v4656_v39 = vsel %vm1168_vm5, %v4651_v2, 0 }
0x2445   :  { %v6749_v33 = vpop.eup %6748 }
0x2446   :  { %v4410_v34 = vmul.f32 %v6749_v33, %v6745_v27  ;;  %v6751_v36 = vpop.eup %6750 }
0x2447   :  { %v4535_v62 = vmul.f32 %v6751_v36, %v8585_v53  ;;  %v6615_v53 = vld [vmem:[#allocation45 + $0x10] sm:$0xff]  }
0x2448   :  { %v4411_v35 = vpack.c.bf16 %v4410_v34, %v4410_v34  ;;  %6297 = vmatpush3.bf16.msra.mxu0 %v6615_v53 }
0x2449   :  { %v4536_v5 = vpack.c.bf16 %v4535_v62, %v4535_v62  ;;  %v6753_v38 = vpop.eup %6752  ;;  %6298 = vmatprep.subr.bf16.mxu0 %v7631_v1 }
0x244a   :  { %6259 = vmatmul.mubr.msk.bf16.vlgmr.msra.gmra.mxu1 %vm2093_vm12, %v4411_v35  ;;  %v4648_v40 = vmul.f32 %v6753_v38, %v6747_v30 }
0x244b   :  { %6269 = vmatpush3.bf16.msra.mxu1 %v4544_v37  ;;  %6270 = vmatprep.mubr.msk.bf16.mxu1 %vm7632_vm0, %v7631_v1 }
0x244c   :  { %6280 = vmatprep.subr.bf16.mxu1 %v7631_v1  ;;  %v4649_v41 = vpack.c.bf16 %v4648_v40, %v4648_v40  ;;  %6299 = vmatpush3.bf16.msra.mxu0 %v6616_v59 }
0x244d   :  { %6300 = vmatprep.subr.bf16.mxu0 %v7631_v1 }
0x2450   :  { %6301 = vmatpush3.bf16.msra.mxu0 %v6617_v61 }
0x2452   :  { %6271 = vmatmul.mubr.msk.bf16.vlgmr.msra.gmra.mxu1 %vm2093_vm12, %v4536_v5 }
0x2453   :  { %6281 = vmatpush3.bf16.msra.mxu1 %v4656_v39  ;;  %6282 = vmatprep.mubr.msk.bf16.mxu1 %vm7632_vm0, %v7631_v1 }
0x245a   :  { %6283 = vmatmul.mubr.msk.bf16.vlgmr.msra.gmra.mxu1 %vm2093_vm12, %v4649_v41 }
0x245b   :  { %5005 = vmatprep.mubr.bf16.mxu1 %v7630_v0 }
0x250a   :  { %v4455_v0 = vpop.f32.mrf.mxu1 }
0x250b   :  { %4462 = vrot.lane.b32.xlu1 %v4455_v0, %s7594_s18 }
0x250c   :  { %v6260_v55 = vpop.f32.mrf.mxu1 }
0x250e   :  { %v4458_v57 = vpop.f32.mrf.mxu1 }
0x250f   :  { %v5713_v57 = vld [vmem:[#allocation48] ss:$0 sm:$0xff] }
0x2510   :  { %v6261_v60 = vpop.f32.mrf.mxu1 }
0x2512   :  { %v4580_v54 = vpop.f32.mrf.mxu1 }
0x2513   :  { %4586 = vst.msk [vmem:[#allocation2 + $0x7] sm:$0x7f] %vm1215_vm9, %v4580_v54  ;;  %v5714_v54 = vld [vmem:[#allocation50] ss:$0 sm:$0xff] }
0x2514   :  { %v6272_v17 = vpop.f32.mrf.mxu1 }
0x2516   :  { %v4583_v19 = vpop.f32.mrf.mxu1 }
0x2518   :  { %v6273_v10 = vpop.f32.mrf.mxu1 }
0x251a   :  { %v4692_v24 = vpop.f32.mrf.mxu1 }
0x251b   :  { %4699 = vrot.lane.b32.xlu1 %v4692_v24, %s7594_s18  ;;  %s8786_s18 = sld [smem:[#allocation107_spill]] }
0x251c   :  { %v6284_v63 = vpop.f32.mrf.mxu1 }
0x251d   :  { %v6781_v63 = vld [vmem:[#allocation6 + $0x18] sm:$0xff]  }
0x251e   :  { %v4695_v3 = vpop.f32.mrf.mxu1 }
0x251f   :  { %v6782_v3 = vld [vmem:[#allocation6 + $0x10] sm:$0xff]  }
0x2520   :  { %v6285_v6 = vpop.f32.mrf.mxu1 }
0x2521   :  { %v6620_v42 = vld [vmem:[%s8786_s18 + $0x74] ss:$8 sps:$4 sm:$0xff]   ;;  %v6618_v47 = vld [vmem:[%s8786_s18 + $0x70] ss:$8 sps:$4 sm:$0xff]   ;;  %v6623_v31 = vld [vmem:[%s8786_s18 + $0x64] ss:$8 sps:$4 sm:$0xff]  }
0x2522   :  { %4973 = vmatprep.subr.bf16.mxu1 %v6620_v42  ;;  %v6621_v32 = vld [vmem:[%s8786_s18 + $0x60] ss:$8 sps:$4 sm:$0xff]   ;;  %v6626_v33 = vld [vmem:[%s8786_s18 + $0x54] ss:$8 sps:$4 sm:$0xff]   ;;  %v6624_v34 = vld [vmem:[%s8786_s18 + $0x50] ss:$8 sps:$4 sm:$0xff]  }
0x2523   :  { %4974 = vmatpush1.bf16.msra.mxu1 %v6618_v47  ;;  %v6629_v35 = vld [vmem:[%s8786_s18 + $0x44] ss:$8 sps:$4 sm:$0xff]   ;;  %v6627_v36 = vld [vmem:[%s8786_s18 + $0x40] ss:$8 sps:$4 sm:$0xff]   ;;  %v6632_v37 = vld [vmem:[%s8786_s18 + $0x34] ss:$8 sps:$4 sm:$0xff]  }
0x2524   :  { %4975 = vmatprep.subr.bf16.mxu1 %v6623_v31  ;;  %v6630_v62 = vld [vmem:[%s8786_s18 + $0x30] ss:$8 sps:$4 sm:$0xff]   ;;  %v6635_v2 = vld [vmem:[%s8786_s18 + $0x24] ss:$8 sps:$4 sm:$0xff]   ;;  %v6633_v5 = vld [vmem:[%s8786_s18 + $0x20] ss:$8 sps:$4 sm:$0xff]  }
0x2525   :  { %v6638_v38 = vld [vmem:[%s8786_s18 + $0x14] ss:$8 sps:$4 sm:$0xff]   ;;  %v6636_v39 = vld [vmem:[%s8786_s18 + $0x10] ss:$8 sps:$4 sm:$0xff]   ;;  %v6641_v40 = vld [vmem:[%s8786_s18 + $0x4] ss:$8 sps:$4 sm:$0xff]  }
0x2526   :  { %v6639_v41 = vld [vmem:[%s8786_s18] ss:$8 sps:$4 sm:$0xff]  }
0x2527   :  { %4976 = vmatpush1.bf16.msra.mxu1 %v6621_v32  ;;  %v6783_v6 = vld [vmem:[#allocation6 + $0x8] sm:$0xff]  }
0x2528   :  { %4977 = vmatprep.subr.bf16.mxu1 %v6626_v33 }
0x252b   :  { %4978 = vmatpush1.bf16.msra.mxu1 %v6624_v34 }
0x252c   :  { %4979 = vmatprep.subr.bf16.mxu1 %v6629_v35 }
0x252f   :  { %4980 = vmatpush1.bf16.msra.mxu1 %v6627_v36 }
0x2530   :  { %4981 = vmatprep.subr.bf16.mxu1 %v6632_v37 }
0x2533   :  { %4982 = vmatpush1.bf16.msra.mxu1 %v6630_v62 }
0x2534   :  { %4983 = vmatprep.subr.bf16.mxu1 %v6635_v2 }
0x2537   :  { %4984 = vmatpush1.bf16.msra.mxu1 %v6633_v5 }
0x2538   :  { %4985 = vmatprep.subr.bf16.mxu1 %v6638_v38 }
0x253b   :  { %4986 = vmatpush1.bf16.msra.mxu1 %v6636_v39 }
0x253c   :  { %4987 = vmatprep.subr.bf16.mxu1 %v6641_v40 }
0x253f   :  { %4988 = vmatpush1.bf16.msra.mxu1 %v6639_v41 }
0x2540   :  { %6306 = vmatprep.subr.bf16.mxu1 %v7631_v1 }
0x257d   :  { %v4463_v7 = vpop.permute.xlu1 %4462 }
0x257e   :  { %4465 = vst.msk [vmem:[#allocation2] sm:$0x7f] %vm1336_vm10, %v4463_v7  ;;  %v6784_v7 = vld [vmem:[#allocation6] sm:$0xff]  }
0x258d   :  { %v4700_v13 = vpop.permute.xlu1 %4699 }
0x258e   :  { %4702 = vst.msk [vmem:[#allocation2 + $0x7] sm:$0x7f] %vm1336_vm10, %v4700_v13  ;;  %v6642_v13 = vld [vmem:[%s8787_s27 + $0x78] sm:$0xff]  }
0x258f   :  { %5915 = vmatprep.subr.bf16.mxu0 %v6642_v13 }
0x2595   :  { %v4703_v26 = vld [vmem:[#allocation2] sm:$0xff]  ;;  %v4704_v11 = vld [vmem:[#allocation2 + $0x8] sm:$0x3f] }
0x2596   :  { %v4721_v12 = vpack.c.bf16 %v4704_v11, %v4703_v26  ;;  %v6643_v26 = vld [vmem:[%s8787_s27 + $0x38] sm:$0xff]   ;;  %v6644_v11 = vld [vmem:[%s8787_s27 + $0x70] sm:$0xff]  }
0x2598   :  { %6303 = vmatmul.mubr.bf16.vlgmr.msra.gmra.mxu0 %v4721_v12  ;;  %v6645_v12 = vld [vmem:[%s8787_s27 + $0x30] sm:$0xff]  }
0x2599   :  { %5916 = vmatpush3.bf16.msra.mxu0 %v6643_v26 }
0x259a   :  { %5917 = vmatprep.subr.bf16.mxu0 %v6644_v11 }
0x259d   :  { %5918 = vmatpush3.bf16.msra.mxu0 %v6645_v12 }
0x2658   :  { %v4804_v8 = vpop.f32.mrf.mxu0 }
0x2659   :  { %v4811_v51 = vadd.f32 %v4804_v8, %v8500_v56  ;;  %v6646_v8 = vld [vmem:[%s8787_s27 + $0x68] sm:$0xff]  }
0x265a   :  { %v6304_v58 = vpop.f32.mrf.mxu0  ;;  %5919 = vmatprep.subr.bf16.mxu0 %v6646_v8 }
0x265b   :  { %v8634_v15 = vadd.f32 %v5712_v28, %v4811_v51  ;;  %v6648_v51 = vld [vmem:[%s8787_s27 + $0x60] sm:$0xff]  }
0x265c   :  { %v4807_v48 = vpop.f32.mrf.mxu0  ;;  %v6649_v58 = vld [vmem:[%s8787_s27 + $0x20] sm:$0xff]  }
0x265d   :  { %v4812_v18 = vadd.f32 %v4807_v48, %v8504_v4  ;;  %4824 = vadd.xlane.f32.xlu1 %v8634_v15  ;;  %v6650_v48 = vld [vmem:[%s8787_s27 + $0x58] sm:$0xff]  }
0x265e   :  { %v6305_v20 = vpop.f32.mrf.mxu0 }
0x265f   :  { %v8638_v16 = vadd.f32 %v5712_v28, %v4812_v18  ;;  %v6647_v28 = vld [vmem:[%s8787_s27 + $0x28] sm:$0xff]   ;;  %v6651_v18 = vld [vmem:[%s8787_s27 + $0x18] sm:$0xff]   ;;  %v6652_v20 = vld [vmem:[%s8787_s27 + $0x50] sm:$0xff]  }
0x2660   :  { %5920 = vmatpush3.bf16.msra.mxu0 %v6647_v28 }
0x2661   :  { %v4826_v21 = vsel %vm725_vm4, %v8638_v16, 0.0  ;;  %5921 = vmatprep.subr.bf16.mxu0 %v6648_v51 }
0x2662   :  { %4827 = vadd.xlane.f32.xlu0 %v4826_v21  ;;  %v6653_v21 = vld [vmem:[%s8787_s27 + $0x10] sm:$0xff]  }
0x2664   :  { %5922 = vmatpush3.bf16.msra.mxu0 %v6649_v58 }
0x2665   :  { %5923 = vmatprep.subr.bf16.mxu0 %v6650_v48 }
0x2668   :  { %5924 = vmatpush3.bf16.msra.mxu0 %v6651_v18  ;;  %v5747_v18 = vld [vmem:[#allocation53] ss:$0 sm:$0xff] }
0x2669   :  { %5925 = vmatprep.subr.bf16.mxu0 %v6652_v20 }
0x266c   :  { %5926 = vmatpush3.bf16.msra.mxu0 %v6653_v21 }
0x26e6   :  { %v4825_v14 = vpop.xlane.xlu1 %4824 }
0x26e7   :  { %v4829_v56 = vmul.f32 0.0078125, %v4825_v14  ;;  %v6654_v14 = vld [vmem:[%s8787_s27 + $0x48] sm:$0xff]  }
0x26e8   :  { %5927 = vmatprep.subr.bf16.mxu0 %v6654_v14 }
0x26e9   :  { %v4831_v22 = vsub.f32 %v8634_v15, %v4829_v56  ;;  %v6655_v56 = vld [vmem:[%s8787_s27 + $0x8] sm:$0xff]  }
0x26ea   :  { %5928 = vmatpush3.bf16.msra.mxu0 %v6655_v56 }
0x26eb   :  { %v4828_v23 = vpop.xlane.xlu0 %4827  ;;  %v4833_v4 = vmul.f32 %v4831_v22, %v4831_v22 }
0x26ec   :  { %v4830_v25 = vmul.f32 0.0078125, %v4828_v23  ;;  %v6657_v23 = vld [vmem:[%s8787_s27] sm:$0xff]  }
0x26ed   :  { %4835 = vadd.xlane.f32.xlu0 %v4833_v4  ;;  %v4881_v4 = vld [vmem:[#allocation51] sm:$0x3] }
0x26ee   :  { %v4832_v27 = vsub.f32 %v8638_v16, %v4830_v25  ;;  %v4886_v25 = vrot.slane %v4881_v4, %v8034_v43 }
0x26f0   :  { %v4834_v29 = vmul.f32 %v4832_v27, %v4832_v27 }
0x26f2   :  { %v4837_v30 = vsel %vm725_vm4, %v4834_v29, 0.0 }
0x26f3   :  { %4838 = vadd.xlane.f32.xlu0 %v4837_v30 }
0x2776   :  { %v4836_v44 = vpop.xlane.xlu0 %4835 }
0x2777   :  { %v4840_v46 = vmul.f32 0.0078125, %v4836_v44 }
0x2779   :  { %v4842_v49 = vadd.f32 1e-05, %v4840_v46 }
0x277b   :  { %6754 = vrsqrt.f32 %v4842_v49 }
0x277c   :  { %v4839_v50 = vpop.xlane.xlu0 %4838 }
0x277d   :  { %v4841_v52 = vmul.f32 0.0078125, %v4839_v50 }
0x277f   :  { %v4843_v53 = vadd.f32 1e-05, %v4841_v52 }
0x2781   :  { %6756 = vrsqrt.f32 %v4843_v53 }
0x2788   :  { %v6755_v0 = vpop.eup %6754 }
0x2789   :  { %v4846_v55 = vmul.f32 %v6755_v0, %v4831_v22  ;;  %v6656_v22 = vld [vmem:[%s8787_s27 + $0x40] sm:$0xff]  }
0x278a   :  { %5929 = vmatprep.subr.bf16.mxu0 %v6656_v22 }
0x278b   :  { %v4854_v61 = vmul.f32 %v5713_v57, %v4846_v55  ;;  %5930 = vmatpush3.bf16.msra.mxu0 %v6657_v23 }
0x278d   :  { %v4862_v19 = vadd.f32 %v5714_v54, %v4854_v61 }
0x278e   :  { %v6757_v59 = vpop.eup %6756 }
0x278f   :  { %v4847_v60 = vmul.f32 %v6757_v59, %v4832_v27  ;;  %v4890_v27 = vrot.slane %v4881_v4, %v8037_v45 }
0x2791   :  { %v4855_v17 = vmul.f32 %v5713_v57, %v4847_v60 }
0x2793   :  { %v4863_v10 = vadd.f32 %v5714_v54, %v4855_v17 }
0x2795   :  { %v4880_v24 = vpack.c.bf16 %v4863_v10, %v4862_v19 }
0x2797   :  { %5006 = vmatmul.mubr.bf16.vlgmr.msra.gmra.mxu1 %v4880_v24 }
0x2798   :  { %6307 = vmatpush3.bf16.xpose.msra.mxu1 %v6781_v63  ;;  %6314 = vmatprep.mubr.msk.bf16.mxu1 %vm7632_vm0, %v7631_v1  ;;  %vm5321_vm0 = vcmask 521216  }
0x2799   :  { %6308 = vmatprep.subr.bf16.mxu1 %v7631_v1 }
0x27a0   :  { %6309 = vmatpush3.bf16.xpose.msra.mxu1 %v6782_v3 }
0x27a1   :  { %6310 = vmatprep.subr.bf16.mxu1 %v7631_v1 }
0x27a8   :  { %6311 = vmatpush3.bf16.xpose.msra.mxu1 %v6783_v6 }
0x27a9   :  { %6312 = vmatprep.subr.bf16.mxu1 %v7631_v1 }
0x27b0   :  { %6313 = vmatpush3.bf16.xpose.msra.mxu1 %v6784_v7 }
0x2857   :  { %v5007_v29 = vpop.f32.mrf.mxu1 }
0x2858   :  { %v5008_v30 = vadd.f32 %v5007_v29, %v4886_v25 }
0x2859   :  { %v5009_v42 = vpop.f32.mrf.mxu1 }
0x285a   :  { %v5016_v47 = vmul.f32 %v5008_v30, %v5008_v30  ;;  %v5010_v31 = vadd.f32 %v5009_v42, %v4890_v27 }
0x285b   :  { %v5011_v32 = vpop.f32.mrf.mxu1 }
0x285c   :  { %v5020_v33 = vmul.f32 %v5016_v47, %v5008_v30  ;;  %v5017_v34 = vmul.f32 %v5010_v31, %v5010_v31  ;;  %v5012_v35 = vadd.f32 %v5011_v32, %v4886_v25 }
0x285d   :  { %v5013_v36 = vpop.f32.mrf.mxu1 }
0x285e   :  { %v5024_v37 = vmul.f32 0.044715, %v5020_v33  ;;  %v5021_v62 = vmul.f32 %v5017_v34, %v5010_v31  ;;  %v5018_v2 = vmul.f32 %v5012_v35, %v5012_v35  ;;  %v5014_v5 = vadd.f32 %v5013_v36, %v4890_v27 }
0x2860   :  { %v5028_v38 = vadd.f32 %v5024_v37, %v5008_v30  ;;  %v5025_v39 = vmul.f32 0.044715, %v5021_v62  ;;  %v5022_v40 = vmul.f32 %v5018_v2, %v5012_v35  ;;  %v5019_v43 = vmul.f32 %v5014_v5, %v5014_v5 }
0x2862   :  { %v5032_v41 = vmul.f32 0.7978846, %v5028_v38  ;;  %v5029_v45 = vadd.f32 %v5025_v39, %v5010_v31  ;;  %v5026_v44 = vmul.f32 0.044715, %v5022_v40  ;;  %v5023_v46 = vmul.f32 %v5019_v43, %v5014_v5  ;;  %v5749_v43 = vld [vmem:[#allocation56] ss:$0 sm:$0xff] }
0x2864   :  { %v5033_v49 = vmul.f32 0.7978846, %v5029_v45  ;;  %v5030_v50 = vadd.f32 %v5026_v44, %v5012_v35  ;;  %v5027_v52 = vmul.f32 0.044715, %v5023_v46  ;;  %6758 = vtanh.f32 %v5032_v41 }
0x2866   :  { %6760 = vtanh.f32 %v5033_v49  ;;  %v5034_v53 = vmul.f32 0.7978846, %v5030_v50  ;;  %v5031_v0 = vadd.f32 %v5027_v52, %v5014_v5 }
0x2868   :  { %6762 = vtanh.f32 %v5034_v53  ;;  %v5035_v55 = vmul.f32 0.7978846, %v5031_v0 }
0x286a   :  { %6764 = vtanh.f32 %v5035_v55 }
0x2871   :  { %v6759_v57 = vpop.eup %6758 }
0x2872   :  { %v5040_v54 = vadd.f32 1.0, %v6759_v57 }
0x2873   :  { %v6761_v59 = vpop.eup %6760 }
0x2874   :  { %v5041_v60 = vadd.f32 1.0, %v6761_v59  ;;  %v5044_v3 = vmul.f32 0.5, %v5040_v54 }
0x2875   :  { %v6763_v61 = vpop.eup %6762 }
0x2876   :  { %v5042_v17 = vadd.f32 1.0, %v6763_v61  ;;  %v5045_v63 = vmul.f32 0.5, %v5041_v60  ;;  %v5048_v11 = vmul.f32 %v5044_v3, %v5008_v30  ;;  %v5343_v3 = vld [vmem:[%s8788_s20] sm:$0xff] }
0x2877   :  { %v6765_v19 = vpop.eup %6764  ;;  %vm5379_vm13 = vcmp.ne.s32.totalorder %v5343_v3, 1 }
0x2878   :  { %v5046_v10 = vmul.f32 0.5, %v5042_v17  ;;  %v5043_v24 = vadd.f32 1.0, %v6765_v19  ;;  %v5049_v13 = vmul.f32 %v5045_v63, %v5010_v31 }
0x287a   :  { %v5047_v6 = vmul.f32 0.5, %v5043_v24  ;;  %v5050_v7 = vmul.f32 %v5046_v10, %v5012_v35 }
0x287c   :  { %v5051_v26 = vmul.f32 %v5047_v6, %v5014_v5  ;;  %v5084_v8 = vpack.c.bf16 %v5050_v7, %v5048_v11  ;;  %v5748_v5 = vld [vmem:[#allocation54] ss:$0 sm:$0xff] }
0x287d   :  { %v5344_v6 = vld [vmem:[%s8788_s20 + $0x8] sm:$0x3f] }
0x287e   :  { %v5085_v12 = vpack.c.bf16 %v5051_v26, %v5049_v13  ;;  %vm5380_vm14 = vcmp.ne.s32.totalorder %v5344_v6, 1 }
0x2880   :  { %5214 = vmatprep.mubr.bf16.mxu0 %v5085_v12 }
0x2881   :  { %5215 = vmatmul.mubr.bf16.vlgmr.msra.gmra.mxu0 %v5084_v8 }
0x2941   :  { %v5931_v28 = vpop.f32.mrf.mxu0 }
0x2943   :  { %v5932_v51 = vpop.f32.mrf.mxu0 }
0x2944   :  { %v5933_v58 = vadd.f32 %v5932_v51, %v5931_v28 }
0x2945   :  { %v5934_v48 = vpop.f32.mrf.mxu0 }
0x2946   :  { %v5223_v20 = vadd.f32 %v5933_v58, %v8634_v15 }
0x2947   :  { %v5935_v21 = vpop.f32.mrf.mxu0 }
0x2948   :  { %v5936_v14 = vadd.f32 %v5935_v21, %v5934_v48  ;;  %v5232_v56 = vadd.f32 %v5747_v18, %v5223_v20  ;;  %v5751_v20 = vsel %vm5380_vm14, 1.0, %v7631_v1 }
0x294a   :  { %v5224_v22 = vadd.f32 %v5936_v14, %v8638_v16  ;;  %5236 = vadd.xlane.f32.xlu0 %v5232_v56 }
0x294c   :  { %v5233_v23 = vadd.f32 %v5747_v18, %v5224_v22  ;;  %v5750_v18 = vsel %vm5379_vm13, 1.0, %v7631_v1 }
0x294d   :  { %v5398_v21 = vsel %vm5387_vm15, %v5750_v18, 0.0 }
0x294e   :  { %v5238_v4 = vsel %vm725_vm4, %v5233_v23, 0.0 }
0x294f   :  { %5239 = vadd.xlane.f32.xlu1 %v5238_v4 }
0x29d3   :  { %v5237_v25 = vpop.xlane.xlu0 %5236 }
0x29d4   :  { %v5241_v27 = vmul.f32 0.0078125, %v5237_v25 }
0x29d6   :  { %v5243_v29 = vsub.f32 %v5232_v56, %v5241_v27 }
0x29d8   :  { %v5240_v30 = vpop.xlane.xlu1 %5239  ;;  %v5245_v42 = vmul.f32 %v5243_v29, %v5243_v29 }
0x29d9   :  { %v5242_v47 = vmul.f32 0.0078125, %v5240_v30 }
0x29da   :  { %5247 = vadd.xlane.f32.xlu1 %v5245_v42 }
0x29db   :  { %v5244_v31 = vsub.f32 %v5233_v23, %v5242_v47 }
0x29dd   :  { %v5246_v32 = vmul.f32 %v5244_v31, %v5244_v31 }
0x29df   :  { %v5249_v15 = vsel %vm725_vm4, %v5246_v32, 0.0 }
0x29e0   :  { %5250 = vadd.xlane.f32.xlu0 %v5249_v15 }
0x2a63   :  { %v5248_v33 = vpop.xlane.xlu1 %5247 }
0x2a64   :  { %v5252_v34 = vmul.f32 0.0078125, %v5248_v33 }
0x2a66   :  { %v5254_v16 = vadd.f32 1e-05, %v5252_v34 }
0x2a68   :  { %6766 = vrsqrt.f32 %v5254_v16 }
0x2a69   :  { %v5251_v35 = vpop.xlane.xlu0 %5250 }
0x2a6a   :  { %v5253_v36 = vmul.f32 0.0078125, %v5251_v35 }
0x2a6c   :  { %v5255_v37 = vadd.f32 1e-05, %v5253_v36 }
0x2a6e   :  { %6768 = vrsqrt.f32 %v5255_v37 }
0x2a75   :  { %v6767_v62 = vpop.eup %6766 }
0x2a76   :  { %v5258_v2 = vmul.f32 %v6767_v62, %v5243_v29 }
0x2a78   :  { %v5266_v40 = vmul.f32 %v5748_v5, %v5258_v2 }
0x2a7a   :  { %v5274_v45 = vadd.f32 %v5749_v43, %v5266_v40 }
0x2a7b   :  { %v6769_v38 = vpop.eup %6768 }
0x2a7c   :  { %v5259_v39 = vmul.f32 %v6769_v38, %v5244_v31 }
0x2a7e   :  { %v5267_v41 = vmul.f32 %v5748_v5, %v5259_v39 }
0x2a80   :  { %v5275_v44 = vadd.f32 %v5749_v43, %v5267_v41 }
0x2a82   :  { %v5276_v46 = vpack.c.bf16 %v5275_v44, %v5274_v45 }
0x2a84   :  { %6315 = vmatmul.mubr.bf16.vlgmr.msra.gmra.mxu1 %v5276_v46 }
0x2b44   :  { %v5311_v49 = vpop.f32.mrf.mxu1 }
0x2b45   :  { %v5318_v50 = vsel %vm670_vm3, %v5311_v49, -inf  ;;  %v5365_v8 = vsel %vm670_vm3, %v5311_v49, 0.0 }
0x2b46   :  { %5319 = vmax.xlane.f32.xlu1 %v5318_v50  ;;  %v6316_v52 = vpop.f32.mrf.mxu1 }
0x2b48   :  { %v5314_v53 = vpop.f32.mrf.mxu1 }
0x2b49   :  { %v5322_v0 = vsel %vm5321_vm0, %v5314_v53, -inf  ;;  %v5368_v48 = vsel %vm5321_vm0, %v5314_v53, 0.0 }
0x2b4a   :  { %5323 = vmax.xlane.f32.xlu0 %v5322_v0  ;;  %v6317_v55 = vpop.f32.mrf.mxu1 }
0x2bcf   :  { %v5320_v57 = vpop.xlane.xlu1 %5319 }
0x2bd0   :  { %v5325_v59 = vsub.f32 %v5311_v49, %v5320_v57 }
0x2bd2   :  { %v5327_v60 = vmul.f32 1.442695, %v5325_v59 }
0x2bd3   :  { %v5324_v61 = vpop.xlane.xlu0 %5323 }
0x2bd4   :  { %6770 = vpow2.f32 %v5327_v60  ;;  %v5326_v54 = vsub.f32 %v5314_v53, %v5324_v61 }
0x2bd6   :  { %v5329_v17 = vmul.f32 1.442695, %v5326_v54 }
0x2bd8   :  { %6772 = vpow2.f32 %v5329_v17 }
0x2be1   :  { %v6771_v19 = vpop.eup %6770 }
0x2be2   :  { %v5331_v10 = vsel %vm670_vm3, %v6771_v19, 0.0 }
0x2be3   :  { %5332 = vadd.xlane.f32.xlu1 %v5331_v10 }
0x2be5   :  { %v6773_v24 = vpop.eup %6772 }
0x2be6   :  { %v5334_v63 = vsel %vm5321_vm0, %v6773_v24, 0.0 }
0x2be7   :  { %5335 = vadd.xlane.f32.xlu0 %v5334_v63 }
0x2bf4   :  { %5346 = vperm.xlu1 %6412, %v5343_v3  }
0x2bfd   :  { %5349 = vperm.xlu0 %6411, %v5344_v6  }
0x2c6c   :  { %v5333_v7 = vpop.xlane.xlu1 %5332 }
0x2c6d   :  { %6774 = vlog2.f32 %v5333_v7 }
0x2c70   :  { %v5347_v13 = vpop.permute.xlu1 %5346  ;;  %v5336_v12 = vpop.xlane.xlu0 %5335 }
0x2c71   :  { %vm5351_vm4 = vcmp.eq.s32.totalorder %v7959_v9, %v5347_v13  ;;  %6776 = vlog2.f32 %v5336_v12 }
0x2c72   :  { %v5353_v26 = vsel %vm5351_vm4, %v5311_v49, 0.0 }
0x2c73   :  { %v5355_v11 = vsel %vm670_vm3, %v5353_v26, 0.0  ;;  %vm5389_vm3 = vcmask 5120  }
0x2c74   :  { %5356 = vadd.xlane.f32.xlu1 %v5355_v11 }
0x2c78   :  { %5366 = vadd.xlane.f32.xlu1 %v5365_v8  ;;  %v5350_v28 = vpop.permute.xlu0 %5349 }
0x2c79   :  { %vm5352_vm5 = vcmp.eq.s32.totalorder %v7959_v9, %v5350_v28  ;;  %v5399_v9 = vsel %vm5389_vm3, %v5751_v20, 0.0 }
0x2c7a   :  { %v5354_v51 = vsel %vm5352_vm5, %v5314_v53, 0.0  ;;  %v5400_v14 = vadd.f32 %v5399_v9, %v5398_v21  ;;  %v6775_v56 = vpop.eup %6774 }
0x2c7b   :  { %v5358_v58 = vsel %vm5321_vm0, %v5354_v51, 0.0  ;;  %v5338_v23 = vmul.f32 0.6931472, %v6775_v56 }
0x2c7c   :  { %5359 = vadd.xlane.f32.xlu0 %v5358_v58  ;;  %v5401_v22 = vrot.slane %v5400_v14, 4 }
0x2c7d   :  { %v5341_v25 = vadd.f32 %v5338_v23, %v5320_v57 }
0x2c7e   :  { %v5402_v4 = vadd.f32 %v5401_v22, %v5400_v14  ;;  %v6777_v27 = vpop.eup %6776 }
0x2c7f   :  { %v5340_v42 = vmul.f32 0.6931472, %v6777_v27  ;;  %v5363_v47 = vmul.f32 64.0, %v5341_v25 }
0x2c80   :  { %5369 = vadd.xlane.f32.xlu0 %v5368_v48  ;;  %v5403_v29 = vrot.slane %v5402_v4, 2 }
0x2c81   :  { %v5342_v33 = vadd.f32 %v5340_v42, %v5324_v61 }
0x2c82   :  { %v5404_v31 = vadd.f32 %v5403_v29, %v5402_v4 }
0x2c83   :  { %v5364_v62 = vmul.f32 64.0, %v5342_v33 }
0x2c84   :  { %v5405_v34 = vrot.slane %v5404_v31, 1 }
0x2c86   :  { %v5406_v2 = vadd.f32 %v5405_v34, %v5404_v31 }
0x2c88   :  { %v5407_v41 = vmax.f32 %v5406_v2, 1.0 }
0x2c8a   :  { %6778 = vrcp.f32 %v5407_v41 }
0x2c97   :  { %v6779_v60 = vpop.eup %6778 }
0x2cfd   :  { %v5357_v30 = vpop.xlane.xlu1 %5356 }
0x2cfe   :  { %v5361_v15 = vsub.f32 %v5341_v25, %v5357_v30 }
0x2d00   :  { %v5373_v36 = vmul.f32 0.9, %v5361_v15 }
0x2d01   :  { %v5367_v32 = vpop.xlane.xlu1 %5366 }
0x2d02   :  { %v5371_v1 = vsub.f32 %v5363_v47, %v5367_v32 }
0x2d04   :  { %v5375_v35 = vmul.f32 0.0015625, %v5371_v1 }
0x2d05   :  { %v5360_v16 = vpop.xlane.xlu0 %5359 }
0x2d06   :  { %v5362_v37 = vsub.f32 %v5342_v33, %v5360_v16  ;;  %v5377_v38 = vadd.f32 %v5375_v35, %v5373_v36 }
0x2d08   :  { %v5374_v40 = vmul.f32 0.9, %v5362_v37  ;;  %v5385_v45 = vmul.f32 %v5750_v18, %v5377_v38 }
0x2d09   :  { %v5370_v5 = vpop.xlane.xlu0 %5369 }
0x2d0a   :  { %v5372_v39 = vsub.f32 %v5364_v62, %v5370_v5  ;;  %v5388_v49 = vsel %vm5387_vm15, %v5385_v45, 0.0 }
0x2d0c   :  { %v5376_v43 = vmul.f32 0.0015625, %v5372_v39 }
0x2d0e   :  { %v5378_v44 = vadd.f32 %v5376_v43, %v5374_v40 }
0x2d10   :  { %v5386_v46 = vmul.f32 %v5751_v20, %v5378_v44 }
0x2d12   :  { %v5390_v50 = vsel %vm5389_vm3, %v5386_v46, 0.0 }
0x2d13   :  { %v5391_v52 = vadd.f32 %v5390_v50, %v5388_v49 }
0x2d15   :  { %v5392_v53 = vrot.slane %v5391_v52, 4 }
0x2d17   :  { %v5393_v0 = vadd.f32 %v5392_v53, %v5391_v52 }
0x2d19   :  { %v5394_v55 = vrot.slane %v5393_v0, 2 }
0x2d1b   :  { %v5395_v57 = vadd.f32 %v5394_v55, %v5393_v0 }
0x2d1d   :  { %v5396_v59 = vrot.slane %v5395_v57, 1 }
0x2d1f   :  { %v5397_v61 = vadd.f32 %v5396_v59, %v5395_v57 }
0x2d21   :  { %v5409_v54 = vmul.f32 %v6779_v60, %v5397_v61 }
0x2d23   :  { %5411 = vst.msk [vmem:[#allocation57] sm:$0x1] %vm5410_vm1, %v5409_v54 }
0x2d24   :  { %7496 = shalt.err (!%p7493_p11)
}
0x2d25   :  { %5421 = dma.vmem_to_hbm [thread:$0]  %s5419_s23, 16, %s7894_s9, [#allocation5]  }
0x2d26   :  { %7541 = dma.done.wait [#allocation5], 16  }
0x2d27   :  { %7542 = vsyncadd [#allocation5], 4294967280 }
0x2d28   :  { %5425 = vsyncpa [#allocation4], 1 }
0x2d29   :  { %5426 = vsyncpa [#allocation7], 1 }
0x2d2a   :  { %5427 = vsyncpa [#allocation10], 1 }
0x2d2b   :  { %5428 = vsyncpa [#allocation13], 1 }
0x2d2c   :  { %5429 = vsyncpa [#allocation16], 1 }
0x2d2d   :  { %5430 = vsyncpa [#allocation19], 1 }
0x2d2e   :  { %5431 = vsyncpa [#allocation22], 1 }
0x2d2f   :  { %5432 = vsyncpa [#allocation25], 1 }
0x2d30   :  { %5433 = vsyncpa [#allocation28], 1 }
0x2d31   :  { %5434 = vsyncpa [#allocation31], 1 }
0x2d32   :  { %5435 = vsyncpa [#allocation34], 1 }
0x2d33   :  { %5436 = vsyncpa [#allocation37], 1 }
0x2d34   :  { %5437 = vsyncpa [#allocation40], 1 }
0x2d35   :  { %5438 = vsyncpa [#allocation43], 1 }
0x2d36   :  { %5439 = vsyncpa [#allocation46], 1 }
0x2d37   :  { %5440 = vsyncpa [#allocation49], 1 }
0x2d38   :  { %5441 = vsyncpa [#allocation52], 1 }
0x2d39   :  { %5442 = vsyncpa [#allocation55], 1 }
0x2d3a   :  { %5443 = vsyncpa [#allocation5], 1 }

</bundles_post_ra>
